<compile_context>
chip_gen: v7x
topology: tpu7x:2x2x1
jax: 0.10.0
libtpu: 0.0.40
codegen_flags: <defaults>
</compile_context>

<pallas_src>
import jax
import jax.numpy as jnp
from jax import lax
from jax.experimental import pallas as pl
from jax.experimental.pallas import tpu as pltpu

_VMEM = pl.BlockSpec(memory_space=pltpu.MemorySpace.VMEM)
_VMEM_LIMIT = 32 * 1024 * 1024  # safe on v5e/v6e (128 MiB) and v7x (64 MiB)


# ----------------------- row-tiled dense helpers (MXU) -----------------------
def _dense_kernel(x_ref, w_ref, b_ref, o_ref):
    o_ref[...] = (jnp.dot(x_ref[...].astype(jnp.bfloat16), w_ref[...],
                          preferred_element_type=jnp.float32) + b_ref[...])


def _matmul_kernel(x_ref, w_ref, o_ref):
    o_ref[...] = jnp.dot(x_ref[...].astype(jnp.bfloat16), w_ref[...],
                         preferred_element_type=jnp.float32)


def _row_tile(m):
    for t in (512, 256, 128):
        if m % t == 0:
            return t
    return m  # small M: single full block (block == full dims is always legal)


def _rowwise_call(kernel, x, others, n):
    M, K = x.shape
    tm = _row_tile(M)
    other_specs = [pl.BlockSpec(o.shape, lambda i: (0, 0)) for o in others]
    return pl.pallas_call(
        kernel,
        out_shape=jax.ShapeDtypeStruct((M, n), jnp.float32),
        grid=(M // tm,),
        in_specs=[pl.BlockSpec((tm, K), lambda i: (i, 0))] + other_specs,
        out_specs=pl.BlockSpec((tm, n), lambda i: (i, 0)),
        compiler_params=pltpu.CompilerParams(
            dimension_semantics=("parallel",)),
    )(x, *others)


def dense(x, w_bf16, b_f32):
    """Y = X @ W + b, row-tiled grid, bf16 operands, f32 accumulation."""
    return _rowwise_call(_dense_kernel, x, [w_bf16, b_f32], w_bf16.shape[1])


def matmul(x, w_bf16):
    """Y = X @ W (no bias), row-tiled grid."""
    return _rowwise_call(_matmul_kernel, x, [w_bf16], w_bf16.shape[1])


# --------------- fused bidirectional masked GRU encoder kernel ---------------
# grid=(2,) over direction (fwd / bwd); on v7x the two directions run on the
# two TensorCores ("parallel"), elsewhere they pipeline sequentially.
def _enc_gru_kernel(x_ref, mask_ref, h0_ref, wih_ref, whh_ref, gbias_ref,
                    bhhn_ref, out_ref, hT_ref, gi_ref):
    T, B, E = x_ref.shape
    HP = whh_ref.shape[0]

    # Hoisted input projection for ALL timesteps in one MXU call.
    # gbias = bih + [bhh_r, bhh_z, 0]  (r/z hidden biases pre-folded).
    gi_ref[...] = (
        jnp.dot(x_ref[...].reshape(T * B, E), wih_ref[...],
                preferred_element_type=jnp.float32)
        + gbias_ref[...]).reshape(T, B, 3 * HP)

    bhh_n = jnp.broadcast_to(bhhn_ref[...], (B, HP))  # hoisted broadcast

    def step(t, h):
        gi = gi_ref[t]                                            # [B, 3HP]
        gh = jnp.dot(h.astype(jnp.bfloat16), whh_ref[...],
                     preferred_element_type=jnp.float32)          # [B, 3HP]
        # gate slices are 128-lane aligned (HP = 128-multiple)
        r = jax.nn.sigmoid(gi[:, :HP] + gh[:, :HP])
        z = jax.nn.sigmoid(gi[:, HP:2 * HP] + gh[:, HP:2 * HP])
        n = jnp.tanh(gi[:, 2 * HP:] + r * (gh[:, 2 * HP:] + bhh_n))
        h_new = (1.0 - z) * n + z * h
        m = mask_ref[t]                           # [B, 1]; 1=valid, 0=padding
        h_new = m * h_new + (1.0 - m) * h         # freeze state past length
        out_ref[t] = m * h_new                    # pad positions -> 0
        return h_new

    hT_ref[...] = lax.fori_loop(0, T, step, h0_ref[...], unroll=True)


def bigru_encode(x_stack, mask_tm, h0, wih, whh, gbias, bhh_n):
    ND, T, B, E = x_stack.shape       # ND = 2 directions
    HP = whh.shape[1]
    return pl.pallas_call(
        _enc_gru_kernel,
        out_shape=(jax.ShapeDtypeStruct((ND, T, B, HP), jnp.float32),
                   jax.ShapeDtypeStruct((ND, B, HP), jnp.float32)),
        grid=(ND,),
        in_specs=[
            pl.BlockSpec((None, T, B, E), lambda d: (d, 0, 0, 0)),
            pl.BlockSpec((T, B, 1), lambda d: (0, 0, 0)),
            pl.BlockSpec((B, HP), lambda d: (0, 0)),
            pl.BlockSpec((None, E, 3 * HP), lambda d: (d, 0, 0)),
            pl.BlockSpec((None, HP, 3 * HP), lambda d: (d, 0, 0)),
            pl.BlockSpec((None, 1, 3 * HP), lambda d: (d, 0, 0)),
            pl.BlockSpec((None, 1, HP), lambda d: (d, 0, 0)),
        ],
        out_specs=(pl.BlockSpec((None, T, B, HP), lambda d: (d, 0, 0, 0)),
                   pl.BlockSpec((None, B, HP), lambda d: (d, 0, 0))),
        scratch_shapes=[pltpu.VMEM((T, B, 3 * HP), jnp.float32)],
        compiler_params=pltpu.CompilerParams(
            dimension_semantics=("parallel",),
            vmem_limit_bytes=_VMEM_LIMIT),
    )(x_stack, mask_tm, h0, wih, whh, gbias, bhh_n)


# ------- conditional-GRU decoder with Bahdanau attention (one kernel) --------
def _decoder_kernel(emb_ref, enc_ref, pkey_ref, smask_ref, h0_ref,
                    w_h_ref, w_c_ref, wih_e_ref, wpo_e_ref, wpo_h_ref, ve_ref,
                    gbias_ref, bhhn_ref, bpo_ref,
                    states_ref, preout_ref, hT_ref,
                    gi_emb_ref, po_emb_ref):
    Tt, B, E = emb_ref.shape
    _, Ts, _ = enc_ref.shape
    HP = wpo_h_ref.shape[0]

    # Hoisted embedding-side projections for ALL target timesteps (2 matmuls).
    emb2 = emb_ref[...].reshape(Tt * B, E).astype(jnp.bfloat16)
    gi_emb_ref[...] = (
        jnp.dot(emb2, wih_e_ref[...], preferred_element_type=jnp.float32)
        + gbias_ref[...]).reshape(Tt, B, 3 * HP)
    po_emb_ref[...] = (
        jnp.dot(emb2, wpo_e_ref[...], preferred_element_type=jnp.float32)
        + bpo_ref[...]).reshape(Tt, B, HP)

    pkey = pkey_ref[...]            # [B, Ts, HP]  key_layer(encoder_hidden)
    smask = smask_ref[...]          # [B, Ts]
    bhh_n = jnp.broadcast_to(bhhn_ref[...], (B, HP))

    def step(t, h):
        # fused hidden-state projections: [GRU gates (3HP) | attn query (HP)]
        hp = jnp.dot(h.astype(jnp.bfloat16), w_h_ref[...],
                     preferred_element_type=jnp.float32)          # [B, 4HP]
        gh, q = hp[:, :3 * HP], hp[:, 3 * HP:]

        # --- Bahdanau attention (matmul form) ---
        e = jnp.tanh(q[:, None, :] + pkey)                        # [B, Ts, HP]
        scores = jnp.dot(e.reshape(B * Ts, HP).astype(jnp.bfloat16),
                         ve_ref[...],
                         preferred_element_type=jnp.float32).reshape(B, Ts)
        # NOTE: if an smask row were all zero the softmax becomes uniform over
        # padding instead of NaN (matches the safe -1e9 masking convention).
        scores = jnp.where(smask > 0.0, scores, -1e9)
        scores = scores - jnp.max(scores, axis=-1, keepdims=True)
        p = jnp.exp(scores)
        alphas = p * pl.reciprocal(jnp.sum(p, axis=-1, keepdims=True),
                                   approx=True)
        context = jnp.einsum(
            "bqs,bsd->bqd", alphas[:, None, :].astype(jnp.bfloat16),
            enc_ref[...], preferred_element_type=jnp.float32)[:, 0, :]  # [B,2H]

        # fused context projections: [GRU gates (3HP) | pre-output (HP)]
        cp = jnp.dot(context.astype(jnp.bfloat16), w_c_ref[...],
                     preferred_element_type=jnp.float32)          # [B, 4HP]
        gi = gi_emb_ref[t] + cp[:, :3 * HP]

        # --- GRU cell (PyTorch gate order r, z, n) ---
        r = jax.nn.sigmoid(gi[:, :HP] + gh[:, :HP])
        z = jax.nn.sigmoid(gi[:, HP:2 * HP] + gh[:, HP:2 * HP])
        n = jnp.tanh(gi[:, 2 * HP:] + r * (gh[:, 2 * HP:] + bhh_n))
        h_new = (1.0 - z) * n + z * h

        # --- pre-output projection on [embedding ; hidden ; context] ---
        po = (po_emb_ref[t] + cp[:, 3 * HP:]
              + jnp.dot(h_new.astype(jnp.bfloat16), wpo_h_ref[...],
                        preferred_element_type=jnp.float32))
        states_ref[t] = h_new
        preout_ref[t] = po
        return h_new

    hT_ref[...] = lax.fori_loop(0, Tt, step, h0_ref[...], unroll=True)


def decoder_unroll(emb_tm, enc_bf, pkey, smask, h0, kp):
    Tt, B, _ = emb_tm.shape
    HP = kp["HP"]
    return pl.pallas_call(
        _decoder_kernel,
        out_shape=(jax.ShapeDtypeStruct((Tt, B, HP), jnp.float32),
                   jax.ShapeDtypeStruct((Tt, B, HP), jnp.float32),
                   jax.ShapeDtypeStruct((B, HP), jnp.float32)),
        in_specs=[_VMEM] * 14,
        out_specs=(_VMEM, _VMEM, _VMEM),
        scratch_shapes=[pltpu.VMEM((Tt, B, 3 * HP), jnp.float32),
                        pltpu.VMEM((Tt, B, HP), jnp.float32)],
        compiler_params=pltpu.CompilerParams(vmem_limit_bytes=_VMEM_LIMIT),
    )(emb_tm, enc_bf, pkey, smask, h0,
      kp["dec_w_h"], kp["dec_w_c"], kp["dec_wih_emb"], kp["dec_wpo_emb"],
      kp["dec_wpo_h"], kp["ve"], kp["dec_gbias"], kp["dec_bhh_n"],
      kp["dec_bpo"])


# -------------------------- parameter preparation ----------------------------
def init_params(key, v_src, v_trg, emb_dim, hidden):
    ks = jax.random.split(key, 20)

    def w(k, shape, scale=0.1):
        return jax.random.normal(k, shape, dtype=jnp.float32) * scale

    H, E = hidden, emb_dim
    return {
        "src_emb": w(ks[0], (v_src, E)),
        "trg_emb": w(ks[1], (v_trg, E)),
        "enc_fwd": dict(wih=w(ks[2], (E, 3 * H)), whh=w(ks[3], (H, 3 * H)),
                        bih=w(ks[4], (1, 3 * H)), bhh=w(ks[5], (1, 3 * H))),
        "enc_bwd": dict(wih=w(ks[6], (E, 3 * H)), whh=w(ks[7], (H, 3 * H)),
                        bih=w(ks[8], (1, 3 * H)), bhh=w(ks[9], (1, 3 * H))),
        "bridge_w": w(ks[10], (2 * H, H)),
        "bridge_b": jnp.zeros((1, H), jnp.float32),
        "key_w": w(ks[11], (2 * H, H)),
        "query_w": w(ks[12], (H, H)),
        "energy_w": w(ks[13], (1, H)),
        "dec": dict(wih=w(ks[14], (E + 2 * H, 3 * H)),
                    whh=w(ks[15], (H, 3 * H)),
                    bih=w(ks[16], (1, 3 * H)), bhh=w(ks[17], (1, 3 * H))),
        "po_w": w(ks[18], (E + 3 * H, H)),
        "po_b": jnp.zeros((1, H), jnp.float32),
        # generator exists in the module but forward() never applies it
        "gen_w": w(ks[19], (H, v_trg)),
        "gen_b": jnp.zeros((1, v_trg), jnp.float32),
    }


def prepare_kernel_params(p):
    """Pad hidden width to 128 lanes, fold biases, fuse/split weights, bf16."""
    H = p["enc_fwd"]["whh"].shape[0]
    E = p["src_emb"].shape[1]
    HP = max(128, ((H + 127) // 128) * 128)
    bf, f32 = jnp.bfloat16, jnp.float32

    def pad_gates(w):                       # [..., 3H] -> [..., 3HP]
        lead = w.shape[:-1]
        w3 = w.reshape(lead + (3, H))
        w3 = jnp.pad(w3, [(0, 0)] * len(lead) + [(0, 0), (0, HP - H)])
        return w3.reshape(lead + (3 * HP,))

    def pad_last(w):
        return jnp.pad(w, [(0, 0)] * (w.ndim - 1) + [(0, HP - w.shape[-1])])

    def pad_first(w):
        return jnp.pad(w, [(0, HP - w.shape[0])] + [(0, 0)] * (w.ndim - 1))

    def gru_pack(g):
        wih = pad_gates(g["wih"]).astype(bf)                  # [Din, 3HP]
        whh = pad_first(pad_gates(g["whh"])).astype(bf)       # [HP, 3HP]
        bih = pad_gates(g["bih"]).astype(f32)
        bhh = pad_gates(g["bhh"]).astype(f32)
        gbias = bih + jnp.concatenate(
            [bhh[:, :2 * HP], jnp.zeros((1, HP), f32)], axis=-1)
        return wih, whh, gbias, bhh[:, 2 * HP:]

    wih_f, whh_f, gb_f, bn_f = gru_pack(p["enc_fwd"])
    wih_b, whh_b, gb_b, bn_b = gru_pack(p["enc_bwd"])

    # decoder GRU: input order is [embedding (E) ; context (2H)]
    dwih = p["dec"]["wih"]
    dwih_emb = pad_gates(dwih[:E]).astype(bf)                 # [E, 3HP]
    dwih_ctx = pad_gates(dwih[E:])                            # [2H, 3HP]
    dwhh = pad_first(pad_gates(p["dec"]["whh"]))              # [HP, 3HP]
    dbih = pad_gates(p["dec"]["bih"]).astype(f32)
    dbhh = pad_gates(p["dec"]["bhh"]).astype(f32)
    dec_gbias = dbih + jnp.concatenate(
        [dbhh[:, :2 * HP], jnp.zeros((1, HP), f32)], axis=-1)
    dec_bhh_n = dbhh[:, 2 * HP:]

    wq = pad_first(pad_last(p["query_w"]))                    # [HP, HP]
    w_h = jnp.concatenate([dwhh, wq], axis=-1).astype(bf)     # [HP, 4HP]

    # pre-output layer: input order [embedding (E) ; hidden (H) ; context (2H)]
    po = p["po_w"]
    wpo_emb = pad_last(po[:E]).astype(bf)                     # [E, HP]
    wpo_h = pad_first(pad_last(po[E:E + H])).astype(bf)       # [HP, HP]
    wpo_ctx = pad_last(po[E + H:])                            # [2H, HP]
    w_c = jnp.concatenate([dwih_ctx, wpo_ctx], axis=-1).astype(bf)  # [2H, 4HP]

    return dict(
        H=H, HP=HP, E=E,
        src_emb=p["src_emb"], trg_emb=p["trg_emb"],
        enc_wih=jnp.stack([wih_f, wih_b], axis=0),
        enc_whh=jnp.stack([whh_f, whh_b], axis=0),
        enc_gbias=jnp.stack([gb_f, gb_b], axis=0),
        enc_bhh_n=jnp.stack([bn_f, bn_b], axis=0),
        bridge_w=pad_last(p["bridge_w"]).astype(bf),          # [2H, HP]
        bridge_b=pad_last(p["bridge_b"]).astype(f32),         # [1, HP]
        key_w=pad_last(p["key_w"]).astype(bf),                # [2H, HP]  (no bias)
        dec_w_h=w_h, dec_w_c=w_c,
        dec_wih_emb=dwih_emb, dec_wpo_emb=wpo_emb, dec_wpo_h=wpo_h,
        dec_gbias=dec_gbias, dec_bhh_n=dec_bhh_n,
        dec_bpo=pad_last(p["po_b"]).astype(f32),
        ve=pad_first(p["energy_w"].T).astype(bf),             # [HP, 1]
    )


# ------------------------------- model glue ----------------------------------
def encode(kp, src, src_lengths):
    B, Ts = src.shape
    H, HP = kp["H"], kp["HP"]
    emb = jnp.take(kp["src_emb"], src, axis=0)                # [B, Ts, E]
    t_idx = jnp.arange(Ts)
    valid = (t_idx[None, :] < src_lengths[:, None]).astype(jnp.float32)
    mask_tm = jnp.transpose(valid)[:, :, None]                # [Ts, B, 1]
    # backward direction (pack_padded semantics): reverse within valid length
    rev_idx = jnp.clip(src_lengths[:, None] - 1 - t_idx[None, :], 0, Ts - 1)
    emb_rev = jnp.take_along_axis(emb, rev_idx[:, :, None], axis=1)
    x_stack = jnp.stack([jnp.transpose(emb, (1, 0, 2)),
                         jnp.transpose(emb_rev, (1, 0, 2))],
                        axis=0).astype(jnp.bfloat16)          # [2, Ts, B, E]
    h0 = jnp.zeros((B, HP), jnp.float32)

    out, hT = bigru_encode(x_stack, mask_tm, h0, kp["enc_wih"], kp["enc_whh"],
                           kp["enc_gbias"], kp["enc_bhh_n"])

    out_f = jnp.transpose(out[0], (1, 0, 2))[..., :H]         # [B, Ts, H]
    out_b_rev = jnp.transpose(out[1], (1, 0, 2))[..., :H]
    out_b = (jnp.take_along_axis(out_b_rev, rev_idx[:, :, None], axis=1)
             * valid[:, :, None])
    encoder_hidden = jnp.concatenate([out_f, out_b], axis=-1)  # [B, Ts, 2H]
    encoder_final = jnp.concatenate([hT[0, :, :H], hT[1, :, :H]], axis=-1)
    return encoder_hidden, encoder_final


def decode(kp, encoder_hidden, encoder_final, src_mask, trg,
           decoder_hidden=None):
    B, Ts, twoH = encoder_hidden.shape
    H, HP = kp["H"], kp["HP"]
    emb_tm = jnp.transpose(jnp.take(kp["trg_emb"], trg, axis=0), (1, 0, 2))
    if decoder_hidden is None:  # "bridge": tanh(Linear(encoder_final))
        decoder_hidden = jnp.tanh(
            dense(encoder_final, kp["bridge_w"], kp["bridge_b"]))   # [B, HP]
    pkey = matmul(encoder_hidden.reshape(B * Ts, twoH),
                  kp["key_w"]).reshape(B, Ts, HP)
    smask = src_mask.astype(jnp.float32)
    enc_bf = encoder_hidden.astype(jnp.bfloat16)
    states, preout, hT = decoder_unroll(emb_tm, enc_bf, pkey, smask,
                                        decoder_hidden, kp)
    decoder_states = jnp.transpose(states, (1, 0, 2))[..., :H]  # [B, Tt, H]
    pre_output = jnp.transpose(preout, (1, 0, 2))[..., :H]      # [B, Tt, H]
    return decoder_states, hT[:, :H], pre_output


def encoder_decoder_forward(params, src, trg, src_mask, trg_mask,
                            src_lengths, trg_lengths):
    """EncoderDecoder.forward: encode then decode (generator is NOT applied)."""
    kp = prepare_kernel_params(params)
    encoder_hidden, encoder_final = encode(kp, src, src_lengths)
    return decode(kp, encoder_hidden, encoder_final, src_mask, trg)


if __name__ == "__main__":
    B, Ts, Tt = 2, 8, 8
    V_SRC, V_TRG, E, H = 16, 16, 32, 32

    key = jax.random.PRNGKey(0)
    k_par, k_src, k_trg = jax.random.split(key, 3)
    params = init_params(k_par, V_SRC, V_TRG, E, H)

    src = jax.random.randint(k_src, (B, Ts), 1, V_SRC, dtype=jnp.int32)
    trg = jax.random.randint(k_trg, (B, Tt), 1, V_TRG, dtype=jnp.int32)
    src_lengths = jnp.array([Ts, Ts - 2], dtype=jnp.int32)
    trg_lengths = jnp.array([Tt, Tt], dtype=jnp.int32)
    src_mask = jnp.arange(Ts)[None, :] < src_lengths[:, None]   # [B, Ts]
    trg_mask = jnp.arange(Tt)[None, :] < trg_lengths[:, None]   # [B, Tt]

    fwd = jax.jit(encoder_decoder_forward)
    decoder_states, hidden, pre_output = fwd(params, src, trg, src_mask,
                                             trg_mask, src_lengths,
                                             trg_lengths)
    jax.block_until_ready((decoder_states, hidden, pre_output))

    assert decoder_states.shape == (B, Tt, H)
    assert pre_output.shape == (B, Tt, H)
    assert hidden.shape == (B, H)
    assert bool(jnp.all(jnp.isfinite(decoder_states)))
    assert bool(jnp.all(jnp.isfinite(pre_output)))
    print("KERNEL_OK")
</pallas_src>

<mosaic_0001>
module attributes {stable_mosaic.version = 11 : i64} {
  func.func @_enc_gru_kernel(%arg0: i32, %arg1: memref<1x8x2x32xbf16, #tpu.memory_space<vmem>>, %arg2: memref<8x2x1xf32, #tpu.memory_space<vmem>>, %arg3: memref<2x128xf32, #tpu.memory_space<vmem>>, %arg4: memref<1x32x384xbf16, #tpu.memory_space<vmem>>, %arg5: memref<1x128x384xbf16, #tpu.memory_space<vmem>>, %arg6: memref<1x1x384xf32, #tpu.memory_space<vmem>>, %arg7: memref<1x1x128xf32, #tpu.memory_space<vmem>>, %arg8: memref<1x8x2x128xf32, #tpu.memory_space<vmem>>, %arg9: memref<1x2x128xf32, #tpu.memory_space<vmem>>, %arg10: memref<8x2x384xf32, #tpu.memory_space<vmem>>) attributes {dimension_semantics = [#tpu.dimension_semantics<parallel>], iteration_bounds = array<i64: 2>, scalar_prefetch = 0 : i64, scratch_operands = 1 : i64, tpu.core_type = #tpu.core_type<tc>, window_params = [{transform_indices = @transform_0, window_bounds = array<i64: 1, 8, 2, 32>}, {pipeline_mode = #tpu.pipeline_mode<synchronous>, transform_indices = @transform_1, window_bounds = array<i64: 8, 2, 1>}, {pipeline_mode = #tpu.pipeline_mode<synchronous>, transform_indices = @transform_2, window_bounds = array<i64: 2, 128>}, {transform_indices = @transform_3, window_bounds = array<i64: 1, 32, 384>}, {transform_indices = @transform_4, window_bounds = array<i64: 1, 128, 384>}, {transform_indices = @transform_5, window_bounds = array<i64: 1, 1, 384>}, {transform_indices = @transform_6, window_bounds = array<i64: 1, 1, 128>}, {transform_indices = @transform_7, window_bounds = array<i64: 1, 8, 2, 128>}, {transform_indices = @transform_8, window_bounds = array<i64: 1, 2, 128>}]} {
    %c0 = arith.constant 0 : index
    %c0_0 = arith.constant 0 : index
    %c0_1 = arith.constant 0 : index
    %c0_2 = arith.constant 0 : index
    %0 = vector.load %arg1[%c0, %c0_0, %c0_1, %c0_2] : memref<1x8x2x32xbf16, #tpu.memory_space<vmem>>, vector<1x8x2x32xbf16>
    %1 = vector.shape_cast %0 : vector<1x8x2x32xbf16> to vector<8x2x32xbf16>
    %2 = vector.shape_cast %1 : vector<8x2x32xbf16> to vector<16x32xbf16>
    %c0_3 = arith.constant 0 : index
    %c0_4 = arith.constant 0 : index
    %c0_5 = arith.constant 0 : index
    %3 = vector.load %arg4[%c0_3, %c0_4, %c0_5] : memref<1x32x384xbf16, #tpu.memory_space<vmem>>, vector<1x32x384xbf16>
    %4 = vector.shape_cast %3 : vector<1x32x384xbf16> to vector<32x384xbf16>
    %cst = arith.constant dense<0.000000e+00> : vector<16x384xf32>
    %5 = tpu.matmul %2, %4, %cst {dimension_numbers = #tpu.dot_dimension_numbers<[1], [0], [0], [1], [0, 0, 1, 1], [], []>} : vector<16x32xbf16>, vector<32x384xbf16>, vector<16x384xf32> -> vector<16x384xf32>
    %c0_6 = arith.constant 0 : index
    %c0_7 = arith.constant 0 : index
    %c0_8 = arith.constant 0 : index
    %6 = vector.load %arg6[%c0_6, %c0_7, %c0_8] : memref<1x1x384xf32, #tpu.memory_space<vmem>>, vector<1x1x384xf32>
    %7 = vector.shape_cast %6 : vector<1x1x384xf32> to vector<1x384xf32>
    %8 = vector.broadcast %7 : vector<1x384xf32> to vector<16x384xf32>
    %9 = arith.addf %5, %8 : vector<16x384xf32>
    %10 = vector.shape_cast %9 : vector<16x384xf32> to vector<8x2x384xf32>
    %c0_9 = arith.constant 0 : index
    %c0_10 = arith.constant 0 : index
    %c0_11 = arith.constant 0 : index
    %11 = vector.load %arg10[%c0_9, %c0_10, %c0_11] : memref<8x2x384xf32, #tpu.memory_space<vmem>>, vector<8x2x384xf32>
    tpu.vector_store %arg10[%c0_9, %c0_10, %c0_11], %10 {strides = array<i32>} : memref<8x2x384xf32, #tpu.memory_space<vmem>>, vector<8x2x384xf32>,
    %c0_12 = arith.constant 0 : index
    %c0_13 = arith.constant 0 : index
    %c0_14 = arith.constant 0 : index
    %12 = vector.load %arg7[%c0_12, %c0_13, %c0_14] : memref<1x1x128xf32, #tpu.memory_space<vmem>>, vector<1x1x128xf32>
    %13 = vector.shape_cast %12 : vector<1x1x128xf32> to vector<1x128xf32>
    %14 = vector.shape_cast %13 : vector<1x128xf32> to vector<1x128xf32>
    %15 = vector.broadcast %14 : vector<1x128xf32> to vector<2x128xf32>
    %c0_15 = arith.constant 0 : index
    %c0_16 = arith.constant 0 : index
    %16 = vector.load %arg3[%c0_15, %c0_16] : memref<2x128xf32, #tpu.memory_space<vmem>>, vector<2x128xf32>
    %c0_i32 = arith.constant 0 : i32
    %17 = arith.index_cast %c0_i32 : i32 to index
    %c0_17 = arith.constant 0 : index
    %c0_18 = arith.constant 0 : index
    %18 = vector.load %arg10[%17, %c0_17, %c0_18] : memref<8x2x384xf32, #tpu.memory_space<vmem>>, vector<1x2x384xf32>
    %19 = vector.shape_cast %18 : vector<1x2x384xf32> to vector<2x384xf32>
    %20 = arith.truncf %16 : vector<2x128xf32> to vector<2x128xbf16>
    %c0_19 = arith.constant 0 : index
    %c0_20 = arith.constant 0 : index
    %c0_21 = arith.constant 0 : index
    %21 = vector.load %arg5[%c0_19, %c0_20, %c0_21] : memref<1x128x384xbf16, #tpu.memory_space<vmem>>, vector<1x128x384xbf16>
    %22 = vector.shape_cast %21 : vector<1x128x384xbf16> to vector<128x384xbf16>
    %cst_22 = arith.constant dense<0.000000e+00> : vector<2x384xf32>
    %23 = tpu.matmul %20, %22, %cst_22 {dimension_numbers = #tpu.dot_dimension_numbers<[1], [0], [0], [1], [0, 0, 1, 1], [], []>} : vector<2x128xbf16>, vector<128x384xbf16>, vector<2x384xf32> -> vector<2x384xf32>
    %24 = vector.extract_strided_slice %19 {offsets = [0, 0], sizes = [2, 128], strides = [1, 1]} : vector<2x384xf32> to vector<2x128xf32>
    %25 = vector.extract_strided_slice %23 {offsets = [0, 0], sizes = [2, 128], strides = [1, 1]} : vector<2x384xf32> to vector<2x128xf32>
    %26 = arith.addf %24, %25 : vector<2x128xf32>
    %27 = arith.negf %26 : vector<2x128xf32>
    %28 = math.exp %27 : vector<2x128xf32>
    %cst_23 = arith.constant 1.000000e+00 : f32
    %29 = vector.broadcast %cst_23 : f32 to vector<2x128xf32>
    %30 = arith.addf %29, %28 : vector<2x128xf32>
    %31 = arith.divf %29, %30 : vector<2x128xf32>
    %32 = vector.extract_strided_slice %19 {offsets = [0, 128], sizes = [2, 128], strides = [1, 1]} : vector<2x384xf32> to vector<2x128xf32>
    %33 = vector.extract_strided_slice %23 {offsets = [0, 128], sizes = [2, 128], strides = [1, 1]} : vector<2x384xf32> to vector<2x128xf32>
    %34 = arith.addf %32, %33 : vector<2x128xf32>
    %35 = arith.negf %34 : vector<2x128xf32>
    %36 = math.exp %35 : vector<2x128xf32>
    %cst_24 = arith.constant 1.000000e+00 : f32
    %37 = vector.broadcast %cst_24 : f32 to vector<2x128xf32>
    %38 = arith.addf %37, %36 : vector<2x128xf32>
    %39 = arith.divf %37, %38 : vector<2x128xf32>
    %40 = vector.extract_strided_slice %19 {offsets = [0, 256], sizes = [2, 128], strides = [1, 1]} : vector<2x384xf32> to vector<2x128xf32>
    %41 = vector.extract_strided_slice %23 {offsets = [0, 256], sizes = [2, 128], strides = [1, 1]} : vector<2x384xf32> to vector<2x128xf32>
    %42 = arith.addf %41, %15 : vector<2x128xf32>
    %43 = arith.mulf %31, %42 : vector<2x128xf32>
    %44 = arith.addf %40, %43 : vector<2x128xf32>
    %45 = math.tanh %44 : vector<2x128xf32>
    %cst_25 = arith.constant 1.000000e+00 : f32
    %46 = vector.broadcast %cst_25 : f32 to vector<2x128xf32>
    %47 = arith.subf %46, %39 : vector<2x128xf32>
    %48 = arith.mulf %47, %45 : vector<2x128xf32>
    %49 = arith.mulf %39, %16 : vector<2x128xf32>
    %50 = arith.addf %48, %49 : vector<2x128xf32>
    %51 = arith.index_cast %c0_i32 : i32 to index
    %c0_26 = arith.constant 0 : index
    %c0_27 = arith.constant 0 : index
    %52 = vector.load %arg2[%51, %c0_26, %c0_27] : memref<8x2x1xf32, #tpu.memory_space<vmem>>, vector<1x2x1xf32>
    %53 = vector.shape_cast %52 : vector<1x2x1xf32> to vector<2x1xf32>
    %54 = vector.broadcast %53 : vector<2x1xf32> to vector<2x128xf32>
    %55 = arith.mulf %54, %50 : vector<2x128xf32>
    %cst_28 = arith.constant 1.000000e+00 : f32
    %56 = vector.broadcast %cst_28 : f32 to vector<2x1xf32>
    %57 = arith.subf %56, %53 : vector<2x1xf32>
    %58 = vector.broadcast %57 : vector<2x1xf32> to vector<2x128xf32>
    %59 = arith.mulf %58, %16 : vector<2x128xf32>
    %60 = arith.addf %55, %59 : vector<2x128xf32>
    %61 = vector.broadcast %53 : vector<2x1xf32> to vector<2x128xf32>
    %62 = arith.mulf %61, %60 : vector<2x128xf32>
    %c0_29 = arith.constant 0 : index
    %63 = arith.index_cast %c0_i32 : i32 to index
    %c0_30 = arith.constant 0 : index
    %c0_31 = arith.constant 0 : index
    %64 = vector.load %arg8[%c0_29, %63, %c0_30, %c0_31] : memref<1x8x2x128xf32, #tpu.memory_space<vmem>>, vector<1x1x2x128xf32>
    %65 = vector.shape_cast %64 : vector<1x1x2x128xf32> to vector<2x128xf32>
    %66 = vector.shape_cast %62 : vector<2x128xf32> to vector<1x1x2x128xf32>
    tpu.vector_store %arg8[%c0_29, %63, %c0_30, %c0_31], %66 {strides = array<i32>} : memref<1x8x2x128xf32, #tpu.memory_space<vmem>>, vector<1x1x2x128xf32>,
    %c1_i32 = arith.constant 1 : i32
    %67 = arith.index_cast %c1_i32 : i32 to index
    %c0_32 = arith.constant 0 : index
    %c0_33 = arith.constant 0 : index
    %68 = vector.load %arg10[%67, %c0_32, %c0_33] : memref<8x2x384xf32, #tpu.memory_space<vmem>>, vector<1x2x384xf32>
    %69 = vector.shape_cast %68 : vector<1x2x384xf32> to vector<2x384xf32>
    %70 = arith.truncf %60 : vector<2x128xf32> to vector<2x128xbf16>
    %c0_34 = arith.constant 0 : index
    %c0_35 = arith.constant 0 : index
    %c0_36 = arith.constant 0 : index
    %71 = vector.load %arg5[%c0_34, %c0_35, %c0_36] : memref<1x128x384xbf16, #tpu.memory_space<vmem>>, vector<1x128x384xbf16>
    %72 = vector.shape_cast %71 : vector<1x128x384xbf16> to vector<128x384xbf16>
    %cst_37 = arith.constant dense<0.000000e+00> : vector<2x384xf32>
    %73 = tpu.matmul %70, %72, %cst_37 {dimension_numbers = #tpu.dot_dimension_numbers<[1], [0], [0], [1], [0, 0, 1, 1], [], []>} : vector<2x128xbf16>, vector<128x384xbf16>, vector<2x384xf32> -> vector<2x384xf32>
    %74 = vector.extract_strided_slice %69 {offsets = [0, 0], sizes = [2, 128], strides = [1, 1]} : vector<2x384xf32> to vector<2x128xf32>
    %75 = vector.extract_strided_slice %73 {offsets = [0, 0], sizes = [2, 128], strides = [1, 1]} : vector<2x384xf32> to vector<2x128xf32>
    %76 = arith.addf %74, %75 : vector<2x128xf32>
    %77 = arith.negf %76 : vector<2x128xf32>
    %78 = math.exp %77 : vector<2x128xf32>
    %cst_38 = arith.constant 1.000000e+00 : f32
    %79 = vector.broadcast %cst_38 : f32 to vector<2x128xf32>
    %80 = arith.addf %79, %78 : vector<2x128xf32>
    %81 = arith.divf %79, %80 : vector<2x128xf32>
    %82 = vector.extract_strided_slice %69 {offsets = [0, 128], sizes = [2, 128], strides = [1, 1]} : vector<2x384xf32> to vector<2x128xf32>
    %83 = vector.extract_strided_slice %73 {offsets = [0, 128], sizes = [2, 128], strides = [1, 1]} : vector<2x384xf32> to vector<2x128xf32>
    %84 = arith.addf %82, %83 : vector<2x128xf32>
    %85 = arith.negf %84 : vector<2x128xf32>
    %86 = math.exp %85 : vector<2x128xf32>
    %cst_39 = arith.constant 1.000000e+00 : f32
    %87 = vector.broadcast %cst_39 : f32 to vector<2x128xf32>
    %88 = arith.addf %87, %86 : vector<2x128xf32>
    %89 = arith.divf %87, %88 : vector<2x128xf32>
    %90 = vector.extract_strided_slice %69 {offsets = [0, 256], sizes = [2, 128], strides = [1, 1]} : vector<2x384xf32> to vector<2x128xf32>
    %91 = vector.extract_strided_slice %73 {offsets = [0, 256], sizes = [2, 128], strides = [1, 1]} : vector<2x384xf32> to vector<2x128xf32>
    %92 = arith.addf %91, %15 : vector<2x128xf32>
    %93 = arith.mulf %81, %92 : vector<2x128xf32>
    %94 = arith.addf %90, %93 : vector<2x128xf32>
    %95 = math.tanh %94 : vector<2x128xf32>
    %cst_40 = arith.constant 1.000000e+00 : f32
    %96 = vector.broadcast %cst_40 : f32 to vector<2x128xf32>
    %97 = arith.subf %96, %89 : vector<2x128xf32>
    %98 = arith.mulf %97, %95 : vector<2x128xf32>
    %99 = arith.mulf %89, %60 : vector<2x128xf32>
    %100 = arith.addf %98, %99 : vector<2x128xf32>
    %101 = arith.index_cast %c1_i32 : i32 to index
    %c0_41 = arith.constant 0 : index
    %c0_42 = arith.constant 0 : index
    %102 = vector.load %arg2[%101, %c0_41, %c0_42] : memref<8x2x1xf32, #tpu.memory_space<vmem>>, vector<1x2x1xf32>
    %103 = vector.shape_cast %102 : vector<1x2x1xf32> to vector<2x1xf32>
    %104 = vector.broadcast %103 : vector<2x1xf32> to vector<2x128xf32>
    %105 = arith.mulf %104, %100 : vector<2x128xf32>
    %cst_43 = arith.constant 1.000000e+00 : f32
    %106 = vector.broadcast %cst_43 : f32 to vector<2x1xf32>
    %107 = arith.subf %106, %103 : vector<2x1xf32>
    %108 = vector.broadcast %107 : vector<2x1xf32> to vector<2x128xf32>
    %109 = arith.mulf %108, %60 : vector<2x128xf32>
    %110 = arith.addf %105, %109 : vector<2x128xf32>
    %111 = vector.broadcast %103 : vector<2x1xf32> to vector<2x128xf32>
    %112 = arith.mulf %111, %110 : vector<2x128xf32>
    %c0_44 = arith.constant 0 : index
    %113 = arith.index_cast %c1_i32 : i32 to index
    %c0_45 = arith.constant 0 : index
    %c0_46 = arith.constant 0 : index
    %114 = vector.load %arg8[%c0_44, %113, %c0_45, %c0_46] : memref<1x8x2x128xf32, #tpu.memory_space<vmem>>, vector<1x1x2x128xf32>
    %115 = vector.shape_cast %114 : vector<1x1x2x128xf32> to vector<2x128xf32>
    %116 = vector.shape_cast %112 : vector<2x128xf32> to vector<1x1x2x128xf32>
    tpu.vector_store %arg8[%c0_44, %113, %c0_45, %c0_46], %116 {strides = array<i32>} : memref<1x8x2x128xf32, #tpu.memory_space<vmem>>, vector<1x1x2x128xf32>,
    %c2_i32 = arith.constant 2 : i32
    %117 = arith.index_cast %c2_i32 : i32 to index
    %c0_47 = arith.constant 0 : index
    %c0_48 = arith.constant 0 : index
    %118 = vector.load %arg10[%117, %c0_47, %c0_48] : memref<8x2x384xf32, #tpu.memory_space<vmem>>, vector<1x2x384xf32>
    %119 = vector.shape_cast %118 : vector<1x2x384xf32> to vector<2x384xf32>
    %120 = arith.truncf %110 : vector<2x128xf32> to vector<2x128xbf16>
    %c0_49 = arith.constant 0 : index
    %c0_50 = arith.constant 0 : index
    %c0_51 = arith.constant 0 : index
    %121 = vector.load %arg5[%c0_49, %c0_50, %c0_51] : memref<1x128x384xbf16, #tpu.memory_space<vmem>>, vector<1x128x384xbf16>
    %122 = vector.shape_cast %121 : vector<1x128x384xbf16> to vector<128x384xbf16>
    %cst_52 = arith.constant dense<0.000000e+00> : vector<2x384xf32>
    %123 = tpu.matmul %120, %122, %cst_52 {dimension_numbers = #tpu.dot_dimension_numbers<[1], [0], [0], [1], [0, 0, 1, 1], [], []>} : vector<2x128xbf16>, vector<128x384xbf16>, vector<2x384xf32> -> vector<2x384xf32>
    %124 = vector.extract_strided_slice %119 {offsets = [0, 0], sizes = [2, 128], strides = [1, 1]} : vector<2x384xf32> to vector<2x128xf32>
    %125 = vector.extract_strided_slice %123 {offsets = [0, 0], sizes = [2, 128], strides = [1, 1]} : vector<2x384xf32> to vector<2x128xf32>
    %126 = arith.addf %124, %125 : vector<2x128xf32>
    %127 = arith.negf %126 : vector<2x128xf32>
    %128 = math.exp %127 : vector<2x128xf32>
    %cst_53 = arith.constant 1.000000e+00 : f32
    %129 = vector.broadcast %cst_53 : f32 to vector<2x128xf32>
    %130 = arith.addf %129, %128 : vector<2x128xf32>
    %131 = arith.divf %129, %130 : vector<2x128xf32>
    %132 = vector.extract_strided_slice %119 {offsets = [0, 128], sizes = [2, 128], strides = [1, 1]} : vector<2x384xf32> to vector<2x128xf32>
    %133 = vector.extract_strided_slice %123 {offsets = [0, 128], sizes = [2, 128], strides = [1, 1]} : vector<2x384xf32> to vector<2x128xf32>
    %134 = arith.addf %132, %133 : vector<2x128xf32>
    %135 = arith.negf %134 : vector<2x128xf32>
    %136 = math.exp %135 : vector<2x128xf32>
    %cst_54 = arith.constant 1.000000e+00 : f32
    %137 = vector.broadcast %cst_54 : f32 to vector<2x128xf32>
    %138 = arith.addf %137, %136 : vector<2x128xf32>
    %139 = arith.divf %137, %138 : vector<2x128xf32>
    %140 = vector.extract_strided_slice %119 {offsets = [0, 256], sizes = [2, 128], strides = [1, 1]} : vector<2x384xf32> to vector<2x128xf32>
    %141 = vector.extract_strided_slice %123 {offsets = [0, 256], sizes = [2, 128], strides = [1, 1]} : vector<2x384xf32> to vector<2x128xf32>
    %142 = arith.addf %141, %15 : vector<2x128xf32>
    %143 = arith.mulf %131, %142 : vector<2x128xf32>
    %144 = arith.addf %140, %143 : vector<2x128xf32>
    %145 = math.tanh %144 : vector<2x128xf32>
    %cst_55 = arith.constant 1.000000e+00 : f32
    %146 = vector.broadcast %cst_55 : f32 to vector<2x128xf32>
    %147 = arith.subf %146, %139 : vector<2x128xf32>
    %148 = arith.mulf %147, %145 : vector<2x128xf32>
    %149 = arith.mulf %139, %110 : vector<2x128xf32>
    %150 = arith.addf %148, %149 : vector<2x128xf32>
    %151 = arith.index_cast %c2_i32 : i32 to index
    %c0_56 = arith.constant 0 : index
    %c0_57 = arith.constant 0 : index
    %152 = vector.load %arg2[%151, %c0_56, %c0_57] : memref<8x2x1xf32, #tpu.memory_space<vmem>>, vector<1x2x1xf32>
    %153 = vector.shape_cast %152 : vector<1x2x1xf32> to vector<2x1xf32>
    %154 = vector.broadcast %153 : vector<2x1xf32> to vector<2x128xf32>
    %155 = arith.mulf %154, %150 : vector<2x128xf32>
    %cst_58 = arith.constant 1.000000e+00 : f32
    %156 = vector.broadcast %cst_58 : f32 to vector<2x1xf32>
    %157 = arith.subf %156, %153 : vector<2x1xf32>
    %158 = vector.broadcast %157 : vector<2x1xf32> to vector<2x128xf32>
    %159 = arith.mulf %158, %110 : vector<2x128xf32>
    %160 = arith.addf %155, %159 : vector<2x128xf32>
    %161 = vector.broadcast %153 : vector<2x1xf32> to vector<2x128xf32>
    %162 = arith.mulf %161, %160 : vector<2x128xf32>
    %c0_59 = arith.constant 0 : index
    %163 = arith.index_cast %c2_i32 : i32 to index
    %c0_60 = arith.constant 0 : index
    %c0_61 = arith.constant 0 : index
    %164 = vector.load %arg8[%c0_59, %163, %c0_60, %c0_61] : memref<1x8x2x128xf32, #tpu.memory_space<vmem>>, vector<1x1x2x128xf32>
    %165 = vector.shape_cast %164 : vector<1x1x2x128xf32> to vector<2x128xf32>
    %166 = vector.shape_cast %162 : vector<2x128xf32> to vector<1x1x2x128xf32>
    tpu.vector_store %arg8[%c0_59, %163, %c0_60, %c0_61], %166 {strides = array<i32>} : memref<1x8x2x128xf32, #tpu.memory_space<vmem>>, vector<1x1x2x128xf32>,
    %c3_i32 = arith.constant 3 : i32
    %167 = arith.index_cast %c3_i32 : i32 to index
    %c0_62 = arith.constant 0 : index
    %c0_63 = arith.constant 0 : index
    %168 = vector.load %arg10[%167, %c0_62, %c0_63] : memref<8x2x384xf32, #tpu.memory_space<vmem>>, vector<1x2x384xf32>
    %169 = vector.shape_cast %168 : vector<1x2x384xf32> to vector<2x384xf32>
    %170 = arith.truncf %160 : vector<2x128xf32> to vector<2x128xbf16>
    %c0_64 = arith.constant 0 : index
    %c0_65 = arith.constant 0 : index
    %c0_66 = arith.constant 0 : index
    %171 = vector.load %arg5[%c0_64, %c0_65, %c0_66] : memref<1x128x384xbf16, #tpu.memory_space<vmem>>, vector<1x128x384xbf16>
    %172 = vector.shape_cast %171 : vector<1x128x384xbf16> to vector<128x384xbf16>
    %cst_67 = arith.constant dense<0.000000e+00> : vector<2x384xf32>
    %173 = tpu.matmul %170, %172, %cst_67 {dimension_numbers = #tpu.dot_dimension_numbers<[1], [0], [0], [1], [0, 0, 1, 1], [], []>} : vector<2x128xbf16>, vector<128x384xbf16>, vector<2x384xf32> -> vector<2x384xf32>
    %174 = vector.extract_strided_slice %169 {offsets = [0, 0], sizes = [2, 128], strides = [1, 1]} : vector<2x384xf32> to vector<2x128xf32>
    %175 = vector.extract_strided_slice %173 {offsets = [0, 0], sizes = [2, 128], strides = [1, 1]} : vector<2x384xf32> to vector<2x128xf32>
    %176 = arith.addf %174, %175 : vector<2x128xf32>
    %177 = arith.negf %176 : vector<2x128xf32>
    %178 = math.exp %177 : vector<2x128xf32>
    %cst_68 = arith.constant 1.000000e+00 : f32
    %179 = vector.broadcast %cst_68 : f32 to vector<2x128xf32>
    %180 = arith.addf %179, %178 : vector<2x128xf32>
    %181 = arith.divf %179, %180 : vector<2x128xf32>
    %182 = vector.extract_strided_slice %169 {offsets = [0, 128], sizes = [2, 128], strides = [1, 1]} : vector<2x384xf32> to vector<2x128xf32>
    %183 = vector.extract_strided_slice %173 {offsets = [0, 128], sizes = [2, 128], strides = [1, 1]} : vector<2x384xf32> to vector<2x128xf32>
    %184 = arith.addf %182, %183 : vector<2x128xf32>
    %185 = arith.negf %184 : vector<2x128xf32>
    %186 = math.exp %185 : vector<2x128xf32>
    %cst_69 = arith.constant 1.000000e+00 : f32
    %187 = vector.broadcast %cst_69 : f32 to vector<2x128xf32>
    %188 = arith.addf %187, %186 : vector<2x128xf32>
    %189 = arith.divf %187, %188 : vector<2x128xf32>
    %190 = vector.extract_strided_slice %169 {offsets = [0, 256], sizes = [2, 128], strides = [1, 1]} : vector<2x384xf32> to vector<2x128xf32>
    %191 = vector.extract_strided_slice %173 {offsets = [0, 256], sizes = [2, 128], strides = [1, 1]} : vector<2x384xf32> to vector<2x128xf32>
    %192 = arith.addf %191, %15 : vector<2x128xf32>
    %193 = arith.mulf %181, %192 : vector<2x128xf32>
    %194 = arith.addf %190, %193 : vector<2x128xf32>
    %195 = math.tanh %194 : vector<2x128xf32>
    %cst_70 = arith.constant 1.000000e+00 : f32
    %196 = vector.broadcast %cst_70 : f32 to vector<2x128xf32>
    %197 = arith.subf %196, %189 : vector<2x128xf32>
    %198 = arith.mulf %197, %195 : vector<2x128xf32>
    %199 = arith.mulf %189, %160 : vector<2x128xf32>
    %200 = arith.addf %198, %199 : vector<2x128xf32>
    %201 = arith.index_cast %c3_i32 : i32 to index
    %c0_71 = arith.constant 0 : index
    %c0_72 = arith.constant 0 : index
    %202 = vector.load %arg2[%201, %c0_71, %c0_72] : memref<8x2x1xf32, #tpu.memory_space<vmem>>, vector<1x2x1xf32>
    %203 = vector.shape_cast %202 : vector<1x2x1xf32> to vector<2x1xf32>
    %204 = vector.broadcast %203 : vector<2x1xf32> to vector<2x128xf32>
    %205 = arith.mulf %204, %200 : vector<2x128xf32>
    %cst_73 = arith.constant 1.000000e+00 : f32
    %206 = vector.broadcast %cst_73 : f32 to vector<2x1xf32>
    %207 = arith.subf %206, %203 : vector<2x1xf32>
    %208 = vector.broadcast %207 : vector<2x1xf32> to vector<2x128xf32>
    %209 = arith.mulf %208, %160 : vector<2x128xf32>
    %210 = arith.addf %205, %209 : vector<2x128xf32>
    %211 = vector.broadcast %203 : vector<2x1xf32> to vector<2x128xf32>
    %212 = arith.mulf %211, %210 : vector<2x128xf32>
    %c0_74 = arith.constant 0 : index
    %213 = arith.index_cast %c3_i32 : i32 to index
    %c0_75 = arith.constant 0 : index
    %c0_76 = arith.constant 0 : index
    %214 = vector.load %arg8[%c0_74, %213, %c0_75, %c0_76] : memref<1x8x2x128xf32, #tpu.memory_space<vmem>>, vector<1x1x2x128xf32>
    %215 = vector.shape_cast %214 : vector<1x1x2x128xf32> to vector<2x128xf32>
    %216 = vector.shape_cast %212 : vector<2x128xf32> to vector<1x1x2x128xf32>
    tpu.vector_store %arg8[%c0_74, %213, %c0_75, %c0_76], %216 {strides = array<i32>} : memref<1x8x2x128xf32, #tpu.memory_space<vmem>>, vector<1x1x2x128xf32>,
    %c4_i32 = arith.constant 4 : i32
    %217 = arith.index_cast %c4_i32 : i32 to index
    %c0_77 = arith.constant 0 : index
    %c0_78 = arith.constant 0 : index
    %218 = vector.load %arg10[%217, %c0_77, %c0_78] : memref<8x2x384xf32, #tpu.memory_space<vmem>>, vector<1x2x384xf32>
    %219 = vector.shape_cast %218 : vector<1x2x384xf32> to vector<2x384xf32>
    %220 = arith.truncf %210 : vector<2x128xf32> to vector<2x128xbf16>
    %c0_79 = arith.constant 0 : index
    %c0_80 = arith.constant 0 : index
    %c0_81 = arith.constant 0 : index
    %221 = vector.load %arg5[%c0_79, %c0_80, %c0_81] : memref<1x128x384xbf16, #tpu.memory_space<vmem>>, vector<1x128x384xbf16>
    %222 = vector.shape_cast %221 : vector<1x128x384xbf16> to vector<128x384xbf16>
    %cst_82 = arith.constant dense<0.000000e+00> : vector<2x384xf32>
    %223 = tpu.matmul %220, %222, %cst_82 {dimension_numbers = #tpu.dot_dimension_numbers<[1], [0], [0], [1], [0, 0, 1, 1], [], []>} : vector<2x128xbf16>, vector<128x384xbf16>, vector<2x384xf32> -> vector<2x384xf32>
    %224 = vector.extract_strided_slice %219 {offsets = [0, 0], sizes = [2, 128], strides = [1, 1]} : vector<2x384xf32> to vector<2x128xf32>
    %225 = vector.extract_strided_slice %223 {offsets = [0, 0], sizes = [2, 128], strides = [1, 1]} : vector<2x384xf32> to vector<2x128xf32>
    %226 = arith.addf %224, %225 : vector<2x128xf32>
    %227 = arith.negf %226 : vector<2x128xf32>
    %228 = math.exp %227 : vector<2x128xf32>
    %cst_83 = arith.constant 1.000000e+00 : f32
    %229 = vector.broadcast %cst_83 : f32 to vector<2x128xf32>
    %230 = arith.addf %229, %228 : vector<2x128xf32>
    %231 = arith.divf %229, %230 : vector<2x128xf32>
    %232 = vector.extract_strided_slice %219 {offsets = [0, 128], sizes = [2, 128], strides = [1, 1]} : vector<2x384xf32> to vector<2x128xf32>
    %233 = vector.extract_strided_slice %223 {offsets = [0, 128], sizes = [2, 128], strides = [1, 1]} : vector<2x384xf32> to vector<2x128xf32>
    %234 = arith.addf %232, %233 : vector<2x128xf32>
    %235 = arith.negf %234 : vector<2x128xf32>
    %236 = math.exp %235 : vector<2x128xf32>
    %cst_84 = arith.constant 1.000000e+00 : f32
    %237 = vector.broadcast %cst_84 : f32 to vector<2x128xf32>
    %238 = arith.addf %237, %236 : vector<2x128xf32>
    %239 = arith.divf %237, %238 : vector<2x128xf32>
    %240 = vector.extract_strided_slice %219 {offsets = [0, 256], sizes = [2, 128], strides = [1, 1]} : vector<2x384xf32> to vector<2x128xf32>
    %241 = vector.extract_strided_slice %223 {offsets = [0, 256], sizes = [2, 128], strides = [1, 1]} : vector<2x384xf32> to vector<2x128xf32>
    %242 = arith.addf %241, %15 : vector<2x128xf32>
    %243 = arith.mulf %231, %242 : vector<2x128xf32>
    %244 = arith.addf %240, %243 : vector<2x128xf32>
    %245 = math.tanh %244 : vector<2x128xf32>
    %cst_85 = arith.constant 1.000000e+00 : f32
    %246 = vector.broadcast %cst_85 : f32 to vector<2x128xf32>
    %247 = arith.subf %246, %239 : vector<2x128xf32>
    %248 = arith.mulf %247, %245 : vector<2x128xf32>
    %249 = arith.mulf %239, %210 : vector<2x128xf32>
    %250 = arith.addf %248, %249 : vector<2x128xf32>
    %251 = arith.index_cast %c4_i32 : i32 to index
    %c0_86 = arith.constant 0 : index
    %c0_87 = arith.constant 0 : index
    %252 = vector.load %arg2[%251, %c0_86, %c0_87] : memref<8x2x1xf32, #tpu.memory_space<vmem>>, vector<1x2x1xf32>
    %253 = vector.shape_cast %252 : vector<1x2x1xf32> to vector<2x1xf32>
    %254 = vector.broadcast %253 : vector<2x1xf32> to vector<2x128xf32>
    %255 = arith.mulf %254, %250 : vector<2x128xf32>
    %cst_88 = arith.constant 1.000000e+00 : f32
    %256 = vector.broadcast %cst_88 : f32 to vector<2x1xf32>
    %257 = arith.subf %256, %253 : vector<2x1xf32>
    %258 = vector.broadcast %257 : vector<2x1xf32> to vector<2x128xf32>
    %259 = arith.mulf %258, %210 : vector<2x128xf32>
    %260 = arith.addf %255, %259 : vector<2x128xf32>
    %261 = vector.broadcast %253 : vector<2x1xf32> to vector<2x128xf32>
    %262 = arith.mulf %261, %260 : vector<2x128xf32>
    %c0_89 = arith.constant 0 : index
    %263 = arith.index_cast %c4_i32 : i32 to index
    %c0_90 = arith.constant 0 : index
    %c0_91 = arith.constant 0 : index
    %264 = vector.load %arg8[%c0_89, %263, %c0_90, %c0_91] : memref<1x8x2x128xf32, #tpu.memory_space<vmem>>, vector<1x1x2x128xf32>
    %265 = vector.shape_cast %264 : vector<1x1x2x128xf32> to vector<2x128xf32>
    %266 = vector.shape_cast %262 : vector<2x128xf32> to vector<1x1x2x128xf32>
    tpu.vector_store %arg8[%c0_89, %263, %c0_90, %c0_91], %266 {strides = array<i32>} : memref<1x8x2x128xf32, #tpu.memory_space<vmem>>, vector<1x1x2x128xf32>,
    %c5_i32 = arith.constant 5 : i32
    %267 = arith.index_cast %c5_i32 : i32 to index
    %c0_92 = arith.constant 0 : index
    %c0_93 = arith.constant 0 : index
    %268 = vector.load %arg10[%267, %c0_92, %c0_93] : memref<8x2x384xf32, #tpu.memory_space<vmem>>, vector<1x2x384xf32>
    %269 = vector.shape_cast %268 : vector<1x2x384xf32> to vector<2x384xf32>
    %270 = arith.truncf %260 : vector<2x128xf32> to vector<2x128xbf16>
    %c0_94 = arith.constant 0 : index
    %c0_95 = arith.constant 0 : index
    %c0_96 = arith.constant 0 : index
    %271 = vector.load %arg5[%c0_94, %c0_95, %c0_96] : memref<1x128x384xbf16, #tpu.memory_space<vmem>>, vector<1x128x384xbf16>
    %272 = vector.shape_cast %271 : vector<1x128x384xbf16> to vector<128x384xbf16>
    %cst_97 = arith.constant dense<0.000000e+00> : vector<2x384xf32>
    %273 = tpu.matmul %270, %272, %cst_97 {dimension_numbers = #tpu.dot_dimension_numbers<[1], [0], [0], [1], [0, 0, 1, 1], [], []>} : vector<2x128xbf16>, vector<128x384xbf16>, vector<2x384xf32> -> vector<2x384xf32>
    %274 = vector.extract_strided_slice %269 {offsets = [0, 0], sizes = [2, 128], strides = [1, 1]} : vector<2x384xf32> to vector<2x128xf32>
    %275 = vector.extract_strided_slice %273 {offsets = [0, 0], sizes = [2, 128], strides = [1, 1]} : vector<2x384xf32> to vector<2x128xf32>
    %276 = arith.addf %274, %275 : vector<2x128xf32>
    %277 = arith.negf %276 : vector<2x128xf32>
    %278 = math.exp %277 : vector<2x128xf32>
    %cst_98 = arith.constant 1.000000e+00 : f32
    %279 = vector.broadcast %cst_98 : f32 to vector<2x128xf32>
    %280 = arith.addf %279, %278 : vector<2x128xf32>
    %281 = arith.divf %279, %280 : vector<2x128xf32>
    %282 = vector.extract_strided_slice %269 {offsets = [0, 128], sizes = [2, 128], strides = [1, 1]} : vector<2x384xf32> to vector<2x128xf32>
    %283 = vector.extract_strided_slice %273 {offsets = [0, 128], sizes = [2, 128], strides = [1, 1]} : vector<2x384xf32> to vector<2x128xf32>
    %284 = arith.addf %282, %283 : vector<2x128xf32>
    %285 = arith.negf %284 : vector<2x128xf32>
    %286 = math.exp %285 : vector<2x128xf32>
    %cst_99 = arith.constant 1.000000e+00 : f32
    %287 = vector.broadcast %cst_99 : f32 to vector<2x128xf32>
    %288 = arith.addf %287, %286 : vector<2x128xf32>
    %289 = arith.divf %287, %288 : vector<2x128xf32>
    %290 = vector.extract_strided_slice %269 {offsets = [0, 256], sizes = [2, 128], strides = [1, 1]} : vector<2x384xf32> to vector<2x128xf32>
    %291 = vector.extract_strided_slice %273 {offsets = [0, 256], sizes = [2, 128], strides = [1, 1]} : vector<2x384xf32> to vector<2x128xf32>
    %292 = arith.addf %291, %15 : vector<2x128xf32>
    %293 = arith.mulf %281, %292 : vector<2x128xf32>
    %294 = arith.addf %290, %293 : vector<2x128xf32>
    %295 = math.tanh %294 : vector<2x128xf32>
    %cst_100 = arith.constant 1.000000e+00 : f32
    %296 = vector.broadcast %cst_100 : f32 to vector<2x128xf32>
    %297 = arith.subf %296, %289 : vector<2x128xf32>
    %298 = arith.mulf %297, %295 : vector<2x128xf32>
    %299 = arith.mulf %289, %260 : vector<2x128xf32>
    %300 = arith.addf %298, %299 : vector<2x128xf32>
    %301 = arith.index_cast %c5_i32 : i32 to index
    %c0_101 = arith.constant 0 : index
    %c0_102 = arith.constant 0 : index
    %302 = vector.load %arg2[%301, %c0_101, %c0_102] : memref<8x2x1xf32, #tpu.memory_space<vmem>>, vector<1x2x1xf32>
    %303 = vector.shape_cast %302 : vector<1x2x1xf32> to vector<2x1xf32>
    %304 = vector.broadcast %303 : vector<2x1xf32> to vector<2x128xf32>
    %305 = arith.mulf %304, %300 : vector<2x128xf32>
    %cst_103 = arith.constant 1.000000e+00 : f32
    %306 = vector.broadcast %cst_103 : f32 to vector<2x1xf32>
    %307 = arith.subf %306, %303 : vector<2x1xf32>
    %308 = vector.broadcast %307 : vector<2x1xf32> to vector<2x128xf32>
    %309 = arith.mulf %308, %260 : vector<2x128xf32>
    %310 = arith.addf %305, %309 : vector<2x128xf32>
    %311 = vector.broadcast %303 : vector<2x1xf32> to vector<2x128xf32>
    %312 = arith.mulf %311, %310 : vector<2x128xf32>
    %c0_104 = arith.constant 0 : index
    %313 = arith.index_cast %c5_i32 : i32 to index
    %c0_105 = arith.constant 0 : index
    %c0_106 = arith.constant 0 : index
    %314 = vector.load %arg8[%c0_104, %313, %c0_105, %c0_106] : memref<1x8x2x128xf32, #tpu.memory_space<vmem>>, vector<1x1x2x128xf32>
    %315 = vector.shape_cast %314 : vector<1x1x2x128xf32> to vector<2x128xf32>
    %316 = vector.shape_cast %312 : vector<2x128xf32> to vector<1x1x2x128xf32>
    tpu.vector_store %arg8[%c0_104, %313, %c0_105, %c0_106], %316 {strides = array<i32>} : memref<1x8x2x128xf32, #tpu.memory_space<vmem>>, vector<1x1x2x128xf32>,
    %c6_i32 = arith.constant 6 : i32
    %317 = arith.index_cast %c6_i32 : i32 to index
    %c0_107 = arith.constant 0 : index
    %c0_108 = arith.constant 0 : index
    %318 = vector.load %arg10[%317, %c0_107, %c0_108] : memref<8x2x384xf32, #tpu.memory_space<vmem>>, vector<1x2x384xf32>
    %319 = vector.shape_cast %318 : vector<1x2x384xf32> to vector<2x384xf32>
    %320 = arith.truncf %310 : vector<2x128xf32> to vector<2x128xbf16>
    %c0_109 = arith.constant 0 : index
    %c0_110 = arith.constant 0 : index
    %c0_111 = arith.constant 0 : index
    %321 = vector.load %arg5[%c0_109, %c0_110, %c0_111] : memref<1x128x384xbf16, #tpu.memory_space<vmem>>, vector<1x128x384xbf16>
    %322 = vector.shape_cast %321 : vector<1x128x384xbf16> to vector<128x384xbf16>
    %cst_112 = arith.constant dense<0.000000e+00> : vector<2x384xf32>
    %323 = tpu.matmul %320, %322, %cst_112 {dimension_numbers = #tpu.dot_dimension_numbers<[1], [0], [0], [1], [0, 0, 1, 1], [], []>} : vector<2x128xbf16>, vector<128x384xbf16>, vector<2x384xf32> -> vector<2x384xf32>
    %324 = vector.extract_strided_slice %319 {offsets = [0, 0], sizes = [2, 128], strides = [1, 1]} : vector<2x384xf32> to vector<2x128xf32>
    %325 = vector.extract_strided_slice %323 {offsets = [0, 0], sizes = [2, 128], strides = [1, 1]} : vector<2x384xf32> to vector<2x128xf32>
    %326 = arith.addf %324, %325 : vector<2x128xf32>
    %327 = arith.negf %326 : vector<2x128xf32>
    %328 = math.exp %327 : vector<2x128xf32>
    %cst_113 = arith.constant 1.000000e+00 : f32
    %329 = vector.broadcast %cst_113 : f32 to vector<2x128xf32>
    %330 = arith.addf %329, %328 : vector<2x128xf32>
    %331 = arith.divf %329, %330 : vector<2x128xf32>
    %332 = vector.extract_strided_slice %319 {offsets = [0, 128], sizes = [2, 128], strides = [1, 1]} : vector<2x384xf32> to vector<2x128xf32>
    %333 = vector.extract_strided_slice %323 {offsets = [0, 128], sizes = [2, 128], strides = [1, 1]} : vector<2x384xf32> to vector<2x128xf32>
    %334 = arith.addf %332, %333 : vector<2x128xf32>
    %335 = arith.negf %334 : vector<2x128xf32>
    %336 = math.exp %335 : vector<2x128xf32>
    %cst_114 = arith.constant 1.000000e+00 : f32
    %337 = vector.broadcast %cst_114 : f32 to vector<2x128xf32>
    %338 = arith.addf %337, %336 : vector<2x128xf32>
    %339 = arith.divf %337, %338 : vector<2x128xf32>
    %340 = vector.extract_strided_slice %319 {offsets = [0, 256], sizes = [2, 128], strides = [1, 1]} : vector<2x384xf32> to vector<2x128xf32>
    %341 = vector.extract_strided_slice %323 {offsets = [0, 256], sizes = [2, 128], strides = [1, 1]} : vector<2x384xf32> to vector<2x128xf32>
    %342 = arith.addf %341, %15 : vector<2x128xf32>
    %343 = arith.mulf %331, %342 : vector<2x128xf32>
    %344 = arith.addf %340, %343 : vector<2x128xf32>
    %345 = math.tanh %344 : vector<2x128xf32>
    %cst_115 = arith.constant 1.000000e+00 : f32
    %346 = vector.broadcast %cst_115 : f32 to vector<2x128xf32>
    %347 = arith.subf %346, %339 : vector<2x128xf32>
    %348 = arith.mulf %347, %345 : vector<2x128xf32>
    %349 = arith.mulf %339, %310 : vector<2x128xf32>
    %350 = arith.addf %348, %349 : vector<2x128xf32>
    %351 = arith.index_cast %c6_i32 : i32 to index
    %c0_116 = arith.constant 0 : index
    %c0_117 = arith.constant 0 : index
    %352 = vector.load %arg2[%351, %c0_116, %c0_117] : memref<8x2x1xf32, #tpu.memory_space<vmem>>, vector<1x2x1xf32>
    %353 = vector.shape_cast %352 : vector<1x2x1xf32> to vector<2x1xf32>
    %354 = vector.broadcast %353 : vector<2x1xf32> to vector<2x128xf32>
    %355 = arith.mulf %354, %350 : vector<2x128xf32>
    %cst_118 = arith.constant 1.000000e+00 : f32
    %356 = vector.broadcast %cst_118 : f32 to vector<2x1xf32>
    %357 = arith.subf %356, %353 : vector<2x1xf32>
    %358 = vector.broadcast %357 : vector<2x1xf32> to vector<2x128xf32>
    %359 = arith.mulf %358, %310 : vector<2x128xf32>
    %360 = arith.addf %355, %359 : vector<2x128xf32>
    %361 = vector.broadcast %353 : vector<2x1xf32> to vector<2x128xf32>
    %362 = arith.mulf %361, %360 : vector<2x128xf32>
    %c0_119 = arith.constant 0 : index
    %363 = arith.index_cast %c6_i32 : i32 to index
    %c0_120 = arith.constant 0 : index
    %c0_121 = arith.constant 0 : index
    %364 = vector.load %arg8[%c0_119, %363, %c0_120, %c0_121] : memref<1x8x2x128xf32, #tpu.memory_space<vmem>>, vector<1x1x2x128xf32>
    %365 = vector.shape_cast %364 : vector<1x1x2x128xf32> to vector<2x128xf32>
    %366 = vector.shape_cast %362 : vector<2x128xf32> to vector<1x1x2x128xf32>
    tpu.vector_store %arg8[%c0_119, %363, %c0_120, %c0_121], %366 {strides = array<i32>} : memref<1x8x2x128xf32, #tpu.memory_space<vmem>>, vector<1x1x2x128xf32>,
    %c7_i32 = arith.constant 7 : i32
    %367 = arith.index_cast %c7_i32 : i32 to index
    %c0_122 = arith.constant 0 : index
    %c0_123 = arith.constant 0 : index
    %368 = vector.load %arg10[%367, %c0_122, %c0_123] : memref<8x2x384xf32, #tpu.memory_space<vmem>>, vector<1x2x384xf32>
    %369 = vector.shape_cast %368 : vector<1x2x384xf32> to vector<2x384xf32>
    %370 = arith.truncf %360 : vector<2x128xf32> to vector<2x128xbf16>
    %c0_124 = arith.constant 0 : index
    %c0_125 = arith.constant 0 : index
    %c0_126 = arith.constant 0 : index
    %371 = vector.load %arg5[%c0_124, %c0_125, %c0_126] : memref<1x128x384xbf16, #tpu.memory_space<vmem>>, vector<1x128x384xbf16>
    %372 = vector.shape_cast %371 : vector<1x128x384xbf16> to vector<128x384xbf16>
    %cst_127 = arith.constant dense<0.000000e+00> : vector<2x384xf32>
    %373 = tpu.matmul %370, %372, %cst_127 {dimension_numbers = #tpu.dot_dimension_numbers<[1], [0], [0], [1], [0, 0, 1, 1], [], []>} : vector<2x128xbf16>, vector<128x384xbf16>, vector<2x384xf32> -> vector<2x384xf32>
    %374 = vector.extract_strided_slice %369 {offsets = [0, 0], sizes = [2, 128], strides = [1, 1]} : vector<2x384xf32> to vector<2x128xf32>
    %375 = vector.extract_strided_slice %373 {offsets = [0, 0], sizes = [2, 128], strides = [1, 1]} : vector<2x384xf32> to vector<2x128xf32>
    %376 = arith.addf %374, %375 : vector<2x128xf32>
    %377 = arith.negf %376 : vector<2x128xf32>
    %378 = math.exp %377 : vector<2x128xf32>
    %cst_128 = arith.constant 1.000000e+00 : f32
    %379 = vector.broadcast %cst_128 : f32 to vector<2x128xf32>
    %380 = arith.addf %379, %378 : vector<2x128xf32>
    %381 = arith.divf %379, %380 : vector<2x128xf32>
    %382 = vector.extract_strided_slice %369 {offsets = [0, 128], sizes = [2, 128], strides = [1, 1]} : vector<2x384xf32> to vector<2x128xf32>
    %383 = vector.extract_strided_slice %373 {offsets = [0, 128], sizes = [2, 128], strides = [1, 1]} : vector<2x384xf32> to vector<2x128xf32>
    %384 = arith.addf %382, %383 : vector<2x128xf32>
    %385 = arith.negf %384 : vector<2x128xf32>
    %386 = math.exp %385 : vector<2x128xf32>
    %cst_129 = arith.constant 1.000000e+00 : f32
    %387 = vector.broadcast %cst_129 : f32 to vector<2x128xf32>
    %388 = arith.addf %387, %386 : vector<2x128xf32>
    %389 = arith.divf %387, %388 : vector<2x128xf32>
    %390 = vector.extract_strided_slice %369 {offsets = [0, 256], sizes = [2, 128], strides = [1, 1]} : vector<2x384xf32> to vector<2x128xf32>
    %391 = vector.extract_strided_slice %373 {offsets = [0, 256], sizes = [2, 128], strides = [1, 1]} : vector<2x384xf32> to vector<2x128xf32>
    %392 = arith.addf %391, %15 : vector<2x128xf32>
    %393 = arith.mulf %381, %392 : vector<2x128xf32>
    %394 = arith.addf %390, %393 : vector<2x128xf32>
    %395 = math.tanh %394 : vector<2x128xf32>
    %cst_130 = arith.constant 1.000000e+00 : f32
    %396 = vector.broadcast %cst_130 : f32 to vector<2x128xf32>
    %397 = arith.subf %396, %389 : vector<2x128xf32>
    %398 = arith.mulf %397, %395 : vector<2x128xf32>
    %399 = arith.mulf %389, %360 : vector<2x128xf32>
    %400 = arith.addf %398, %399 : vector<2x128xf32>
    %401 = arith.index_cast %c7_i32 : i32 to index
    %c0_131 = arith.constant 0 : index
    %c0_132 = arith.constant 0 : index
    %402 = vector.load %arg2[%401, %c0_131, %c0_132] : memref<8x2x1xf32, #tpu.memory_space<vmem>>, vector<1x2x1xf32>
    %403 = vector.shape_cast %402 : vector<1x2x1xf32> to vector<2x1xf32>
    %404 = vector.broadcast %403 : vector<2x1xf32> to vector<2x128xf32>
    %405 = arith.mulf %404, %400 : vector<2x128xf32>
    %cst_133 = arith.constant 1.000000e+00 : f32
    %406 = vector.broadcast %cst_133 : f32 to vector<2x1xf32>
    %407 = arith.subf %406, %403 : vector<2x1xf32>
    %408 = vector.broadcast %407 : vector<2x1xf32> to vector<2x128xf32>
    %409 = arith.mulf %408, %360 : vector<2x128xf32>
    %410 = arith.addf %405, %409 : vector<2x128xf32>
    %411 = vector.broadcast %403 : vector<2x1xf32> to vector<2x128xf32>
    %412 = arith.mulf %411, %410 : vector<2x128xf32>
    %c0_134 = arith.constant 0 : index
    %413 = arith.index_cast %c7_i32 : i32 to index
    %c0_135 = arith.constant 0 : index
    %c0_136 = arith.constant 0 : index
    %414 = vector.load %arg8[%c0_134, %413, %c0_135, %c0_136] : memref<1x8x2x128xf32, #tpu.memory_space<vmem>>, vector<1x1x2x128xf32>
    %415 = vector.shape_cast %414 : vector<1x1x2x128xf32> to vector<2x128xf32>
    %416 = vector.shape_cast %412 : vector<2x128xf32> to vector<1x1x2x128xf32>
    tpu.vector_store %arg8[%c0_134, %413, %c0_135, %c0_136], %416 {strides = array<i32>} : memref<1x8x2x128xf32, #tpu.memory_space<vmem>>, vector<1x1x2x128xf32>,
    %c8_i32 = arith.constant 8 : i32
    %c0_137 = arith.constant 0 : index
    %c0_138 = arith.constant 0 : index
    %c0_139 = arith.constant 0 : index
    %417 = vector.load %arg9[%c0_137, %c0_138, %c0_139] : memref<1x2x128xf32, #tpu.memory_space<vmem>>, vector<1x2x128xf32>
    %418 = vector.shape_cast %417 : vector<1x2x128xf32> to vector<2x128xf32>
    %419 = vector.shape_cast %410 : vector<2x128xf32> to vector<1x2x128xf32>
    tpu.vector_store %arg9[%c0_137, %c0_138, %c0_139], %419 {strides = array<i32>} : memref<1x2x128xf32, #tpu.memory_space<vmem>>, vector<1x2x128xf32>,
    return
  }
  func.func @transform_0(%arg0: i32) -> (i32, i32, i32, i32) {
    %c0_i32 = arith.constant 0 : i32
    %c0_i32_0 = arith.constant 0 : i32
    %c0_i32_1 = arith.constant 0 : i32
    %c0_i32_2 = arith.constant 0 : i32
    return %arg0, %c0_i32, %c0_i32_0, %c0_i32_1 : i32, i32, i32, i32
  }
  func.func @transform_1(%arg0: i32) -> (i32, i32, i32) {
    %c0_i32 = arith.constant 0 : i32
    %c0_i32_0 = arith.constant 0 : i32
    %c0_i32_1 = arith.constant 0 : i32
    %c0_i32_2 = arith.constant 0 : i32
    return %c0_i32, %c0_i32_0, %c0_i32_1 : i32, i32, i32
  }
  func.func @transform_2(%arg0: i32) -> (i32, i32) {
    %c0_i32 = arith.constant 0 : i32
    %c0_i32_0 = arith.constant 0 : i32
    %c0_i32_1 = arith.constant 0 : i32
    return %c0_i32, %c0_i32_0 : i32, i32
  }
  func.func @transform_3(%arg0: i32) -> (i32, i32, i32) {
    %c0_i32 = arith.constant 0 : i32
    %c0_i32_0 = arith.constant 0 : i32
    %c0_i32_1 = arith.constant 0 : i32
    return %arg0, %c0_i32, %c0_i32_0 : i32, i32, i32
  }
  func.func @transform_4(%arg0: i32) -> (i32, i32, i32) {
    %c0_i32 = arith.constant 0 : i32
    %c0_i32_0 = arith.constant 0 : i32
    %c0_i32_1 = arith.constant 0 : i32
    return %arg0, %c0_i32, %c0_i32_0 : i32, i32, i32
  }
  func.func @transform_5(%arg0: i32) -> (i32, i32, i32) {
    %c0_i32 = arith.constant 0 : i32
    %c0_i32_0 = arith.constant 0 : i32
    %c0_i32_1 = arith.constant 0 : i32
    return %arg0, %c0_i32, %c0_i32_0 : i32, i32, i32
  }
  func.func @transform_6(%arg0: i32) -> (i32, i32, i32) {
    %c0_i32 = arith.constant 0 : i32
    %c0_i32_0 = arith.constant 0 : i32
    %c0_i32_1 = arith.constant 0 : i32
    return %arg0, %c0_i32, %c0_i32_0 : i32, i32, i32
  }
  func.func @transform_7(%arg0: i32) -> (i32, i32, i32, i32) {
    %c0_i32 = arith.constant 0 : i32
    %c0_i32_0 = arith.constant 0 : i32
    %c0_i32_1 = arith.constant 0 : i32
    %c0_i32_2 = arith.constant 0 : i32
    return %arg0, %c0_i32, %c0_i32_0, %c0_i32_1 : i32, i32, i32, i32
  }
  func.func @transform_8(%arg0: i32) -> (i32, i32, i32) {
    %c0_i32 = arith.constant 0 : i32
    %c0_i32_0 = arith.constant 0 : i32
    %c0_i32_1 = arith.constant 0 : i32
    return %arg0, %c0_i32, %c0_i32_0 : i32, i32, i32
  }
}

module attributes {stable_mosaic.version = 11 : i64} {
  func.func @_dense_kernel(%arg0: i32, %arg1: memref<2x64xf32, #tpu.memory_space<vmem>>, %arg2: memref<64x128xbf16, #tpu.memory_space<vmem>>, %arg3: memref<1x128xf32, #tpu.memory_space<vmem>>, %arg4: memref<2x128xf32, #tpu.memory_space<vmem>>) attributes {dimension_semantics = [#tpu.dimension_semantics<parallel>], iteration_bounds = array<i64: 1>, scalar_prefetch = 0 : i64, scratch_operands = 0 : i64, tpu.core_type = #tpu.core_type<tc>, window_params = [{transform_indices = @transform_0, window_bounds = array<i64: 2, 64>}, {pipeline_mode = #tpu.pipeline_mode<synchronous>, transform_indices = @transform_1, window_bounds = array<i64: 64, 128>}, {pipeline_mode = #tpu.pipeline_mode<synchronous>, transform_indices = @transform_2, window_bounds = array<i64: 1, 128>}, {transform_indices = @transform_3, window_bounds = array<i64: 2, 128>}]} {
    %c0 = arith.constant 0 : index
    %c0_0 = arith.constant 0 : index
    %0 = vector.load %arg1[%c0, %c0_0] : memref<2x64xf32, #tpu.memory_space<vmem>>, vector<2x64xf32>
    %1 = arith.truncf %0 : vector<2x64xf32> to vector<2x64xbf16>
    %c0_1 = arith.constant 0 : index
    %c0_2 = arith.constant 0 : index
    %2 = vector.load %arg2[%c0_1, %c0_2] : memref<64x128xbf16, #tpu.memory_space<vmem>>, vector<64x128xbf16>
    %cst = arith.constant dense<0.000000e+00> : vector<2x128xf32>
    %3 = tpu.matmul %1, %2, %cst {dimension_numbers = #tpu.dot_dimension_numbers<[1], [0], [0], [1], [0, 0, 1, 1], [], []>} : vector<2x64xbf16>, vector<64x128xbf16>, vector<2x128xf32> -> vector<2x128xf32>
    %c0_3 = arith.constant 0 : index
    %c0_4 = arith.constant 0 : index
    %4 = vector.load %arg3[%c0_3, %c0_4] : memref<1x128xf32, #tpu.memory_space<vmem>>, vector<1x128xf32>
    %5 = vector.broadcast %4 : vector<1x128xf32> to vector<2x128xf32>
    %6 = arith.addf %3, %5 : vector<2x128xf32>
    %c0_5 = arith.constant 0 : index
    %c0_6 = arith.constant 0 : index
    %7 = vector.load %arg4[%c0_5, %c0_6] : memref<2x128xf32, #tpu.memory_space<vmem>>, vector<2x128xf32>
    tpu.vector_store %arg4[%c0_5, %c0_6], %6 {strides = array<i32>} : memref<2x128xf32, #tpu.memory_space<vmem>>, vector<2x128xf32>,
    return
  }
  func.func @transform_0(%arg0: i32) -> (i32, i32) {
    %c0_i32 = arith.constant 0 : i32
    %c0_i32_0 = arith.constant 0 : i32
    return %arg0, %c0_i32 : i32, i32
  }
  func.func @transform_1(%arg0: i32) -> (i32, i32) {
    %c0_i32 = arith.constant 0 : i32
    %c0_i32_0 = arith.constant 0 : i32
    %c0_i32_1 = arith.constant 0 : i32
    return %c0_i32, %c0_i32_0 : i32, i32
  }
  func.func @transform_2(%arg0: i32) -> (i32, i32) {
    %c0_i32 = arith.constant 0 : i32
    %c0_i32_0 = arith.constant 0 : i32
    %c0_i32_1 = arith.constant 0 : i32
    return %c0_i32, %c0_i32_0 : i32, i32
  }
  func.func @transform_3(%arg0: i32) -> (i32, i32) {
    %c0_i32 = arith.constant 0 : i32
    %c0_i32_0 = arith.constant 0 : i32
    return %arg0, %c0_i32 : i32, i32
  }
}

module attributes {stable_mosaic.version = 11 : i64} {
  func.func @_matmul_kernel(%arg0: i32, %arg1: memref<16x64xf32, #tpu.memory_space<vmem>>, %arg2: memref<64x128xbf16, #tpu.memory_space<vmem>>, %arg3: memref<16x128xf32, #tpu.memory_space<vmem>>) attributes {dimension_semantics = [#tpu.dimension_semantics<parallel>], iteration_bounds = array<i64: 1>, scalar_prefetch = 0 : i64, scratch_operands = 0 : i64, tpu.core_type = #tpu.core_type<tc>, window_params = [{transform_indices = @transform_0, window_bounds = array<i64: 16, 64>}, {pipeline_mode = #tpu.pipeline_mode<synchronous>, transform_indices = @transform_1, window_bounds = array<i64: 64, 128>}, {transform_indices = @transform_2, window_bounds = array<i64: 16, 128>}]} {
    %c0 = arith.constant 0 : index
    %c0_0 = arith.constant 0 : index
    %0 = vector.load %arg1[%c0, %c0_0] : memref<16x64xf32, #tpu.memory_space<vmem>>, vector<16x64xf32>
    %1 = arith.truncf %0 : vector<16x64xf32> to vector<16x64xbf16>
    %c0_1 = arith.constant 0 : index
    %c0_2 = arith.constant 0 : index
    %2 = vector.load %arg2[%c0_1, %c0_2] : memref<64x128xbf16, #tpu.memory_space<vmem>>, vector<64x128xbf16>
    %cst = arith.constant dense<0.000000e+00> : vector<16x128xf32>
    %3 = tpu.matmul %1, %2, %cst {dimension_numbers = #tpu.dot_dimension_numbers<[1], [0], [0], [1], [0, 0, 1, 1], [], []>} : vector<16x64xbf16>, vector<64x128xbf16>, vector<16x128xf32> -> vector<16x128xf32>
    %c0_3 = arith.constant 0 : index
    %c0_4 = arith.constant 0 : index
    %4 = vector.load %arg3[%c0_3, %c0_4] : memref<16x128xf32, #tpu.memory_space<vmem>>, vector<16x128xf32>
    tpu.vector_store %arg3[%c0_3, %c0_4], %3 {strides = array<i32>} : memref<16x128xf32, #tpu.memory_space<vmem>>, vector<16x128xf32>,
    return
  }
  func.func @transform_0(%arg0: i32) -> (i32, i32) {
    %c0_i32 = arith.constant 0 : i32
    %c0_i32_0 = arith.constant 0 : i32
    return %arg0, %c0_i32 : i32, i32
  }
  func.func @transform_1(%arg0: i32) -> (i32, i32) {
    %c0_i32 = arith.constant 0 : i32
    %c0_i32_0 = arith.constant 0 : i32
    %c0_i32_1 = arith.constant 0 : i32
    return %c0_i32, %c0_i32_0 : i32, i32
  }
  func.func @transform_2(%arg0: i32) -> (i32, i32) {
    %c0_i32 = arith.constant 0 : i32
    %c0_i32_0 = arith.constant 0 : i32
    return %arg0, %c0_i32 : i32, i32
  }
}

module attributes {stable_mosaic.version = 11 : i64} {
  func.func @_decoder_kernel(%arg0: memref<8x2x32xf32, #tpu.memory_space<vmem>>, %arg1: memref<2x8x64xbf16, #tpu.memory_space<vmem>>, %arg2: memref<2x8x128xf32, #tpu.memory_space<vmem>>, %arg3: memref<2x8xf32, #tpu.memory_space<vmem>>, %arg4: memref<2x128xf32, #tpu.memory_space<vmem>>, %arg5: memref<128x512xbf16, #tpu.memory_space<vmem>>, %arg6: memref<64x512xbf16, #tpu.memory_space<vmem>>, %arg7: memref<32x384xbf16, #tpu.memory_space<vmem>>, %arg8: memref<32x128xbf16, #tpu.memory_space<vmem>>, %arg9: memref<128x128xbf16, #tpu.memory_space<vmem>>, %arg10: memref<128x1xbf16, #tpu.memory_space<vmem>>, %arg11: memref<1x384xf32, #tpu.memory_space<vmem>>, %arg12: memref<1x128xf32, #tpu.memory_space<vmem>>, %arg13: memref<1x128xf32, #tpu.memory_space<vmem>>, %arg14: memref<8x2x128xf32, #tpu.memory_space<vmem>>, %arg15: memref<8x2x128xf32, #tpu.memory_space<vmem>>, %arg16: memref<2x128xf32, #tpu.memory_space<vmem>>, %arg17: memref<8x2x384xf32, #tpu.memory_space<vmem>>, %arg18: memref<8x2x128xf32, #tpu.memory_space<vmem>>) attributes {dimension_semantics = [], scalar_prefetch = 0 : i64, scratch_operands = 2 : i64, tpu.core_type = #tpu.core_type<tc>} {
    %c0 = arith.constant 0 : index
    %c0_0 = arith.constant 0 : index
    %c0_1 = arith.constant 0 : index
    %0 = vector.load %arg0[%c0, %c0_0, %c0_1] : memref<8x2x32xf32, #tpu.memory_space<vmem>>, vector<8x2x32xf32>
    %1 = vector.shape_cast %0 : vector<8x2x32xf32> to vector<16x32xf32>
    %2 = arith.truncf %1 : vector<16x32xf32> to vector<16x32xbf16>
    %c0_2 = arith.constant 0 : index
    %c0_3 = arith.constant 0 : index
    %3 = vector.load %arg7[%c0_2, %c0_3] : memref<32x384xbf16, #tpu.memory_space<vmem>>, vector<32x384xbf16>
    %cst = arith.constant dense<0.000000e+00> : vector<16x384xf32>
    %4 = tpu.matmul %2, %3, %cst {dimension_numbers = #tpu.dot_dimension_numbers<[1], [0], [0], [1], [0, 0, 1, 1], [], []>} : vector<16x32xbf16>, vector<32x384xbf16>, vector<16x384xf32> -> vector<16x384xf32>
    %c0_4 = arith.constant 0 : index
    %c0_5 = arith.constant 0 : index
    %5 = vector.load %arg11[%c0_4, %c0_5] : memref<1x384xf32, #tpu.memory_space<vmem>>, vector<1x384xf32>
    %6 = vector.broadcast %5 : vector<1x384xf32> to vector<16x384xf32>
    %7 = arith.addf %4, %6 : vector<16x384xf32>
    %8 = vector.shape_cast %7 : vector<16x384xf32> to vector<8x2x384xf32>
    %c0_6 = arith.constant 0 : index
    %c0_7 = arith.constant 0 : index
    %c0_8 = arith.constant 0 : index
    %9 = vector.load %arg17[%c0_6, %c0_7, %c0_8] : memref<8x2x384xf32, #tpu.memory_space<vmem>>, vector<8x2x384xf32>
    tpu.vector_store %arg17[%c0_6, %c0_7, %c0_8], %8 {strides = array<i32>} : memref<8x2x384xf32, #tpu.memory_space<vmem>>, vector<8x2x384xf32>,
    %c0_9 = arith.constant 0 : index
    %c0_10 = arith.constant 0 : index
    %10 = vector.load %arg8[%c0_9, %c0_10] : memref<32x128xbf16, #tpu.memory_space<vmem>>, vector<32x128xbf16>
    %cst_11 = arith.constant dense<0.000000e+00> : vector<16x128xf32>
    %11 = tpu.matmul %2, %10, %cst_11 {dimension_numbers = #tpu.dot_dimension_numbers<[1], [0], [0], [1], [0, 0, 1, 1], [], []>} : vector<16x32xbf16>, vector<32x128xbf16>, vector<16x128xf32> -> vector<16x128xf32>
    %c0_12 = arith.constant 0 : index
    %c0_13 = arith.constant 0 : index
    %12 = vector.load %arg13[%c0_12, %c0_13] : memref<1x128xf32, #tpu.memory_space<vmem>>, vector<1x128xf32>
    %13 = vector.broadcast %12 : vector<1x128xf32> to vector<16x128xf32>
    %14 = arith.addf %11, %13 : vector<16x128xf32>
    %15 = vector.shape_cast %14 : vector<16x128xf32> to vector<8x2x128xf32>
    %c0_14 = arith.constant 0 : index
    %c0_15 = arith.constant 0 : index
    %c0_16 = arith.constant 0 : index
    %16 = vector.load %arg18[%c0_14, %c0_15, %c0_16] : memref<8x2x128xf32, #tpu.memory_space<vmem>>, vector<8x2x128xf32>
    tpu.vector_store %arg18[%c0_14, %c0_15, %c0_16], %15 {strides = array<i32>} : memref<8x2x128xf32, #tpu.memory_space<vmem>>, vector<8x2x128xf32>,
    %c0_17 = arith.constant 0 : index
    %c0_18 = arith.constant 0 : index
    %c0_19 = arith.constant 0 : index
    %17 = vector.load %arg2[%c0_17, %c0_18, %c0_19] : memref<2x8x128xf32, #tpu.memory_space<vmem>>, vector<2x8x128xf32>
    %c0_20 = arith.constant 0 : index
    %c0_21 = arith.constant 0 : index
    %18 = vector.load %arg3[%c0_20, %c0_21] : memref<2x8xf32, #tpu.memory_space<vmem>>, vector<2x8xf32>
    %c0_22 = arith.constant 0 : index
    %c0_23 = arith.constant 0 : index
    %19 = vector.load %arg12[%c0_22, %c0_23] : memref<1x128xf32, #tpu.memory_space<vmem>>, vector<1x128xf32>
    %20 = vector.shape_cast %19 : vector<1x128xf32> to vector<1x128xf32>
    %21 = vector.broadcast %20 : vector<1x128xf32> to vector<2x128xf32>
    %c0_24 = arith.constant 0 : index
    %c0_25 = arith.constant 0 : index
    %22 = vector.load %arg4[%c0_24, %c0_25] : memref<2x128xf32, #tpu.memory_space<vmem>>, vector<2x128xf32>
    %c0_i32 = arith.constant 0 : i32
    %23 = arith.truncf %22 : vector<2x128xf32> to vector<2x128xbf16>
    %c0_26 = arith.constant 0 : index
    %c0_27 = arith.constant 0 : index
    %24 = vector.load %arg5[%c0_26, %c0_27] : memref<128x512xbf16, #tpu.memory_space<vmem>>, vector<128x512xbf16>
    %cst_28 = arith.constant dense<0.000000e+00> : vector<2x512xf32>
    %25 = tpu.matmul %23, %24, %cst_28 {dimension_numbers = #tpu.dot_dimension_numbers<[1], [0], [0], [1], [0, 0, 1, 1], [], []>} : vector<2x128xbf16>, vector<128x512xbf16>, vector<2x512xf32> -> vector<2x512xf32>
    %26 = vector.extract_strided_slice %25 {offsets = [0, 0], sizes = [2, 384], strides = [1, 1]} : vector<2x512xf32> to vector<2x384xf32>
    %27 = vector.extract_strided_slice %25 {offsets = [0, 384], sizes = [2, 128], strides = [1, 1]} : vector<2x512xf32> to vector<2x128xf32>
    %28 = vector.shape_cast %27 : vector<2x128xf32> to vector<2x1x128xf32>
    %29 = vector.broadcast %28 : vector<2x1x128xf32> to vector<2x8x128xf32>
    %30 = arith.addf %29, %17 : vector<2x8x128xf32>
    %31 = math.tanh %30 : vector<2x8x128xf32>
    %32 = vector.shape_cast %31 : vector<2x8x128xf32> to vector<16x128xf32>
    %33 = arith.truncf %32 : vector<16x128xf32> to vector<16x128xbf16>
    %c0_29 = arith.constant 0 : index
    %c0_30 = arith.constant 0 : index
    %34 = vector.load %arg10[%c0_29, %c0_30] : memref<128x1xbf16, #tpu.memory_space<vmem>>, vector<128x1xbf16>
    %cst_31 = arith.constant dense<0.000000e+00> : vector<16x1xf32>
    %35 = tpu.matmul %33, %34, %cst_31 {dimension_numbers = #tpu.dot_dimension_numbers<[1], [0], [0], [1], [0, 0, 1, 1], [], []>} : vector<16x128xbf16>, vector<128x1xbf16>, vector<16x1xf32> -> vector<16x1xf32>
    %36 = vector.shape_cast %35 : vector<16x1xf32> to vector<2x8xf32>
    %cst_32 = arith.constant 0.000000e+00 : f32
    %37 = vector.broadcast %cst_32 : f32 to vector<2x8xf32>
    %38 = arith.cmpf ogt, %18, %37 : vector<2x8xf32>
    %cst_33 = arith.constant -1.000000e+09 : f32
    %39 = vector.broadcast %cst_33 : f32 to vector<2x8xf32>
    %40 = arith.select %38, %36, %39 : vector<2x8xi1>, vector<2x8xf32>
    %cst_34 = arith.constant dense<0xFF800000> : vector<2xf32>
    %41 = vector.multi_reduction <maximumf>, %40, %cst_34 [1] : vector<2x8xf32> to vector<2xf32>
    %42 = vector.shape_cast %41 : vector<2xf32> to vector<2x1xf32>
    %43 = vector.broadcast %42 : vector<2x1xf32> to vector<2x8xf32>
    %44 = arith.subf %40, %43 : vector<2x8xf32>
    %45 = math.exp %44 : vector<2x8xf32>
    %cst_35 = arith.constant dense<0.000000e+00> : vector<2xf32>
    %46 = vector.multi_reduction <add>, %45, %cst_35 [1] : vector<2x8xf32> to vector<2xf32>
    %47 = vector.shape_cast %46 : vector<2xf32> to vector<2x1xf32>
    %48 = tpu.reciprocal %47 {approx = true} : vector<2x1xf32> -> vector<2x1xf32>
    %49 = vector.broadcast %48 : vector<2x1xf32> to vector<2x8xf32>
    %50 = arith.mulf %45, %49 : vector<2x8xf32>
    %51 = vector.shape_cast %50 : vector<2x8xf32> to vector<2x1x8xf32>
    %52 = arith.truncf %51 : vector<2x1x8xf32> to vector<2x1x8xbf16>
    %c0_36 = arith.constant 0 : index
    %c0_37 = arith.constant 0 : index
    %c0_38 = arith.constant 0 : index
    %53 = vector.load %arg1[%c0_36, %c0_37, %c0_38] : memref<2x8x64xbf16, #tpu.memory_space<vmem>>, vector<2x8x64xbf16>
    "tpu.trace_start"() <{level = 10 : i32, message = "bqs,bsd->bqd"}> : () -> ()
    %cst_39 = arith.constant dense<0.000000e+00> : vector<2x1x64xf32>
    %54 = tpu.matmul %52, %53, %cst_39 {dimension_numbers = #tpu.dot_dimension_numbers<[2], [1], [1], [2], [0, 0, 0, 1, 1, 2], [0], [0]>} : vector<2x1x8xbf16>, vector<2x8x64xbf16>, vector<2x1x64xf32> -> vector<2x1x64xf32>
    "tpu.trace_stop"() : () -> ()
    %55 = vector.shape_cast %54 : vector<2x1x64xf32> to vector<2x64xf32>
    %56 = arith.truncf %55 : vector<2x64xf32> to vector<2x64xbf16>
    %c0_40 = arith.constant 0 : index
    %c0_41 = arith.constant 0 : index
    %57 = vector.load %arg6[%c0_40, %c0_41] : memref<64x512xbf16, #tpu.memory_space<vmem>>, vector<64x512xbf16>
    %cst_42 = arith.constant dense<0.000000e+00> : vector<2x512xf32>
    %58 = tpu.matmul %56, %57, %cst_42 {dimension_numbers = #tpu.dot_dimension_numbers<[1], [0], [0], [1], [0, 0, 1, 1], [], []>} : vector<2x64xbf16>, vector<64x512xbf16>, vector<2x512xf32> -> vector<2x512xf32>
    %59 = arith.index_cast %c0_i32 : i32 to index
    %c0_43 = arith.constant 0 : index
    %c0_44 = arith.constant 0 : index
    %60 = vector.load %arg17[%59, %c0_43, %c0_44] : memref<8x2x384xf32, #tpu.memory_space<vmem>>, vector<1x2x384xf32>
    %61 = vector.shape_cast %60 : vector<1x2x384xf32> to vector<2x384xf32>
    %62 = vector.extract_strided_slice %58 {offsets = [0, 0], sizes = [2, 384], strides = [1, 1]} : vector<2x512xf32> to vector<2x384xf32>
    %63 = arith.addf %61, %62 : vector<2x384xf32>
    %64 = vector.extract_strided_slice %63 {offsets = [0, 0], sizes = [2, 128], strides = [1, 1]} : vector<2x384xf32> to vector<2x128xf32>
    %65 = vector.extract_strided_slice %26 {offsets = [0, 0], sizes = [2, 128], strides = [1, 1]} : vector<2x384xf32> to vector<2x128xf32>
    %66 = arith.addf %64, %65 : vector<2x128xf32>
    %67 = arith.negf %66 : vector<2x128xf32>
    %68 = math.exp %67 : vector<2x128xf32>
    %cst_45 = arith.constant 1.000000e+00 : f32
    %69 = vector.broadcast %cst_45 : f32 to vector<2x128xf32>
    %70 = arith.addf %69, %68 : vector<2x128xf32>
    %71 = arith.divf %69, %70 : vector<2x128xf32>
    %72 = vector.extract_strided_slice %63 {offsets = [0, 128], sizes = [2, 128], strides = [1, 1]} : vector<2x384xf32> to vector<2x128xf32>
    %73 = vector.extract_strided_slice %26 {offsets = [0, 128], sizes = [2, 128], strides = [1, 1]} : vector<2x384xf32> to vector<2x128xf32>
    %74 = arith.addf %72, %73 : vector<2x128xf32>
    %75 = arith.negf %74 : vector<2x128xf32>
    %76 = math.exp %75 : vector<2x128xf32>
    %cst_46 = arith.constant 1.000000e+00 : f32
    %77 = vector.broadcast %cst_46 : f32 to vector<2x128xf32>
    %78 = arith.addf %77, %76 : vector<2x128xf32>
    %79 = arith.divf %77, %78 : vector<2x128xf32>
    %80 = vector.extract_strided_slice %63 {offsets = [0, 256], sizes = [2, 128], strides = [1, 1]} : vector<2x384xf32> to vector<2x128xf32>
    %81 = vector.extract_strided_slice %26 {offsets = [0, 256], sizes = [2, 128], strides = [1, 1]} : vector<2x384xf32> to vector<2x128xf32>
    %82 = arith.addf %81, %21 : vector<2x128xf32>
    %83 = arith.mulf %71, %82 : vector<2x128xf32>
    %84 = arith.addf %80, %83 : vector<2x128xf32>
    %85 = math.tanh %84 : vector<2x128xf32>
    %cst_47 = arith.constant 1.000000e+00 : f32
    %86 = vector.broadcast %cst_47 : f32 to vector<2x128xf32>
    %87 = arith.subf %86, %79 : vector<2x128xf32>
    %88 = arith.mulf %87, %85 : vector<2x128xf32>
    %89 = arith.mulf %79, %22 : vector<2x128xf32>
    %90 = arith.addf %88, %89 : vector<2x128xf32>
    %91 = arith.index_cast %c0_i32 : i32 to index
    %c0_48 = arith.constant 0 : index
    %c0_49 = arith.constant 0 : index
    %92 = vector.load %arg18[%91, %c0_48, %c0_49] : memref<8x2x128xf32, #tpu.memory_space<vmem>>, vector<1x2x128xf32>
    %93 = vector.shape_cast %92 : vector<1x2x128xf32> to vector<2x128xf32>
    %94 = vector.extract_strided_slice %58 {offsets = [0, 384], sizes = [2, 128], strides = [1, 1]} : vector<2x512xf32> to vector<2x128xf32>
    %95 = arith.addf %93, %94 : vector<2x128xf32>
    %96 = arith.truncf %90 : vector<2x128xf32> to vector<2x128xbf16>
    %c0_50 = arith.constant 0 : index
    %c0_51 = arith.constant 0 : index
    %97 = vector.load %arg9[%c0_50, %c0_51] : memref<128x128xbf16, #tpu.memory_space<vmem>>, vector<128x128xbf16>
    %cst_52 = arith.constant dense<0.000000e+00> : vector<2x128xf32>
    %98 = tpu.matmul %96, %97, %cst_52 {dimension_numbers = #tpu.dot_dimension_numbers<[1], [0], [0], [1], [0, 0, 1, 1], [], []>} : vector<2x128xbf16>, vector<128x128xbf16>, vector<2x128xf32> -> vector<2x128xf32>
    %99 = arith.addf %95, %98 : vector<2x128xf32>
    %100 = arith.index_cast %c0_i32 : i32 to index
    %c0_53 = arith.constant 0 : index
    %c0_54 = arith.constant 0 : index
    %101 = vector.load %arg14[%100, %c0_53, %c0_54] : memref<8x2x128xf32, #tpu.memory_space<vmem>>, vector<1x2x128xf32>
    %102 = vector.shape_cast %101 : vector<1x2x128xf32> to vector<2x128xf32>
    %103 = vector.shape_cast %90 : vector<2x128xf32> to vector<1x2x128xf32>
    tpu.vector_store %arg14[%100, %c0_53, %c0_54], %103 {strides = array<i32>} : memref<8x2x128xf32, #tpu.memory_space<vmem>>, vector<1x2x128xf32>,
    %104 = arith.index_cast %c0_i32 : i32 to index
    %c0_55 = arith.constant 0 : index
    %c0_56 = arith.constant 0 : index
    %105 = vector.load %arg15[%104, %c0_55, %c0_56] : memref<8x2x128xf32, #tpu.memory_space<vmem>>, vector<1x2x128xf32>
    %106 = vector.shape_cast %105 : vector<1x2x128xf32> to vector<2x128xf32>
    %107 = vector.shape_cast %99 : vector<2x128xf32> to vector<1x2x128xf32>
    tpu.vector_store %arg15[%104, %c0_55, %c0_56], %107 {strides = array<i32>} : memref<8x2x128xf32, #tpu.memory_space<vmem>>, vector<1x2x128xf32>,
    %c1_i32 = arith.constant 1 : i32
    %108 = arith.truncf %90 : vector<2x128xf32> to vector<2x128xbf16>
    %c0_57 = arith.constant 0 : index
    %c0_58 = arith.constant 0 : index
    %109 = vector.load %arg5[%c0_57, %c0_58] : memref<128x512xbf16, #tpu.memory_space<vmem>>, vector<128x512xbf16>
    %cst_59 = arith.constant dense<0.000000e+00> : vector<2x512xf32>
    %110 = tpu.matmul %108, %109, %cst_59 {dimension_numbers = #tpu.dot_dimension_numbers<[1], [0], [0], [1], [0, 0, 1, 1], [], []>} : vector<2x128xbf16>, vector<128x512xbf16>, vector<2x512xf32> -> vector<2x512xf32>
    %111 = vector.extract_strided_slice %110 {offsets = [0, 0], sizes = [2, 384], strides = [1, 1]} : vector<2x512xf32> to vector<2x384xf32>
    %112 = vector.extract_strided_slice %110 {offsets = [0, 384], sizes = [2, 128], strides = [1, 1]} : vector<2x512xf32> to vector<2x128xf32>
    %113 = vector.shape_cast %112 : vector<2x128xf32> to vector<2x1x128xf32>
    %114 = vector.broadcast %113 : vector<2x1x128xf32> to vector<2x8x128xf32>
    %115 = arith.addf %114, %17 : vector<2x8x128xf32>
    %116 = math.tanh %115 : vector<2x8x128xf32>
    %117 = vector.shape_cast %116 : vector<2x8x128xf32> to vector<16x128xf32>
    %118 = arith.truncf %117 : vector<16x128xf32> to vector<16x128xbf16>
    %c0_60 = arith.constant 0 : index
    %c0_61 = arith.constant 0 : index
    %119 = vector.load %arg10[%c0_60, %c0_61] : memref<128x1xbf16, #tpu.memory_space<vmem>>, vector<128x1xbf16>
    %cst_62 = arith.constant dense<0.000000e+00> : vector<16x1xf32>
    %120 = tpu.matmul %118, %119, %cst_62 {dimension_numbers = #tpu.dot_dimension_numbers<[1], [0], [0], [1], [0, 0, 1, 1], [], []>} : vector<16x128xbf16>, vector<128x1xbf16>, vector<16x1xf32> -> vector<16x1xf32>
    %121 = vector.shape_cast %120 : vector<16x1xf32> to vector<2x8xf32>
    %cst_63 = arith.constant 0.000000e+00 : f32
    %122 = vector.broadcast %cst_63 : f32 to vector<2x8xf32>
    %123 = arith.cmpf ogt, %18, %122 : vector<2x8xf32>
    %cst_64 = arith.constant -1.000000e+09 : f32
    %124 = vector.broadcast %cst_64 : f32 to vector<2x8xf32>
    %125 = arith.select %123, %121, %124 : vector<2x8xi1>, vector<2x8xf32>
    %cst_65 = arith.constant dense<0xFF800000> : vector<2xf32>
    %126 = vector.multi_reduction <maximumf>, %125, %cst_65 [1] : vector<2x8xf32> to vector<2xf32>
    %127 = vector.shape_cast %126 : vector<2xf32> to vector<2x1xf32>
    %128 = vector.broadcast %127 : vector<2x1xf32> to vector<2x8xf32>
    %129 = arith.subf %125, %128 : vector<2x8xf32>
    %130 = math.exp %129 : vector<2x8xf32>
    %cst_66 = arith.constant dense<0.000000e+00> : vector<2xf32>
    %131 = vector.multi_reduction <add>, %130, %cst_66 [1] : vector<2x8xf32> to vector<2xf32>
    %132 = vector.shape_cast %131 : vector<2xf32> to vector<2x1xf32>
    %133 = tpu.reciprocal %132 {approx = true} : vector<2x1xf32> -> vector<2x1xf32>
    %134 = vector.broadcast %133 : vector<2x1xf32> to vector<2x8xf32>
    %135 = arith.mulf %130, %134 : vector<2x8xf32>
    %136 = vector.shape_cast %135 : vector<2x8xf32> to vector<2x1x8xf32>
    %137 = arith.truncf %136 : vector<2x1x8xf32> to vector<2x1x8xbf16>
    %c0_67 = arith.constant 0 : index
    %c0_68 = arith.constant 0 : index
    %c0_69 = arith.constant 0 : index
    %138 = vector.load %arg1[%c0_67, %c0_68, %c0_69] : memref<2x8x64xbf16, #tpu.memory_space<vmem>>, vector<2x8x64xbf16>
    "tpu.trace_start"() <{level = 10 : i32, message = "bqs,bsd->bqd"}> : () -> ()
    %cst_70 = arith.constant dense<0.000000e+00> : vector<2x1x64xf32>
    %139 = tpu.matmul %137, %138, %cst_70 {dimension_numbers = #tpu.dot_dimension_numbers<[2], [1], [1], [2], [0, 0, 0, 1, 1, 2], [0], [0]>} : vector<2x1x8xbf16>, vector<2x8x64xbf16>, vector<2x1x64xf32> -> vector<2x1x64xf32>
    "tpu.trace_stop"() : () -> ()
    %140 = vector.shape_cast %139 : vector<2x1x64xf32> to vector<2x64xf32>
    %141 = arith.truncf %140 : vector<2x64xf32> to vector<2x64xbf16>
    %c0_71 = arith.constant 0 : index
    %c0_72 = arith.constant 0 : index
    %142 = vector.load %arg6[%c0_71, %c0_72] : memref<64x512xbf16, #tpu.memory_space<vmem>>, vector<64x512xbf16>
    %cst_73 = arith.constant dense<0.000000e+00> : vector<2x512xf32>
    %143 = tpu.matmul %141, %142, %cst_73 {dimension_numbers = #tpu.dot_dimension_numbers<[1], [0], [0], [1], [0, 0, 1, 1], [], []>} : vector<2x64xbf16>, vector<64x512xbf16>, vector<2x512xf32> -> vector<2x512xf32>
    %144 = arith.index_cast %c1_i32 : i32 to index
    %c0_74 = arith.constant 0 : index
    %c0_75 = arith.constant 0 : index
    %145 = vector.load %arg17[%144, %c0_74, %c0_75] : memref<8x2x384xf32, #tpu.memory_space<vmem>>, vector<1x2x384xf32>
    %146 = vector.shape_cast %145 : vector<1x2x384xf32> to vector<2x384xf32>
    %147 = vector.extract_strided_slice %143 {offsets = [0, 0], sizes = [2, 384], strides = [1, 1]} : vector<2x512xf32> to vector<2x384xf32>
    %148 = arith.addf %146, %147 : vector<2x384xf32>
    %149 = vector.extract_strided_slice %148 {offsets = [0, 0], sizes = [2, 128], strides = [1, 1]} : vector<2x384xf32> to vector<2x128xf32>
    %150 = vector.extract_strided_slice %111 {offsets = [0, 0], sizes = [2, 128], strides = [1, 1]} : vector<2x384xf32> to vector<2x128xf32>
    %151 = arith.addf %149, %150 : vector<2x128xf32>
    %152 = arith.negf %151 : vector<2x128xf32>
    %153 = math.exp %152 : vector<2x128xf32>
    %cst_76 = arith.constant 1.000000e+00 : f32
    %154 = vector.broadcast %cst_76 : f32 to vector<2x128xf32>
    %155 = arith.addf %154, %153 : vector<2x128xf32>
    %156 = arith.divf %154, %155 : vector<2x128xf32>
    %157 = vector.extract_strided_slice %148 {offsets = [0, 128], sizes = [2, 128], strides = [1, 1]} : vector<2x384xf32> to vector<2x128xf32>
    %158 = vector.extract_strided_slice %111 {offsets = [0, 128], sizes = [2, 128], strides = [1, 1]} : vector<2x384xf32> to vector<2x128xf32>
    %159 = arith.addf %157, %158 : vector<2x128xf32>
    %160 = arith.negf %159 : vector<2x128xf32>
    %161 = math.exp %160 : vector<2x128xf32>
    %cst_77 = arith.constant 1.000000e+00 : f32
    %162 = vector.broadcast %cst_77 : f32 to vector<2x128xf32>
    %163 = arith.addf %162, %161 : vector<2x128xf32>
    %164 = arith.divf %162, %163 : vector<2x128xf32>
    %165 = vector.extract_strided_slice %148 {offsets = [0, 256], sizes = [2, 128], strides = [1, 1]} : vector<2x384xf32> to vector<2x128xf32>
    %166 = vector.extract_strided_slice %111 {offsets = [0, 256], sizes = [2, 128], strides = [1, 1]} : vector<2x384xf32> to vector<2x128xf32>
    %167 = arith.addf %166, %21 : vector<2x128xf32>
    %168 = arith.mulf %156, %167 : vector<2x128xf32>
    %169 = arith.addf %165, %168 : vector<2x128xf32>
    %170 = math.tanh %169 : vector<2x128xf32>
    %cst_78 = arith.constant 1.000000e+00 : f32
    %171 = vector.broadcast %cst_78 : f32 to vector<2x128xf32>
    %172 = arith.subf %171, %164 : vector<2x128xf32>
    %173 = arith.mulf %172, %170 : vector<2x128xf32>
    %174 = arith.mulf %164, %90 : vector<2x128xf32>
    %175 = arith.addf %173, %174 : vector<2x128xf32>
    %176 = arith.index_cast %c1_i32 : i32 to index
    %c0_79 = arith.constant 0 : index
    %c0_80 = arith.constant 0 : index
    %177 = vector.load %arg18[%176, %c0_79, %c0_80] : memref<8x2x128xf32, #tpu.memory_space<vmem>>, vector<1x2x128xf32>
    %178 = vector.shape_cast %177 : vector<1x2x128xf32> to vector<2x128xf32>
    %179 = vector.extract_strided_slice %143 {offsets = [0, 384], sizes = [2, 128], strides = [1, 1]} : vector<2x512xf32> to vector<2x128xf32>
    %180 = arith.addf %178, %179 : vector<2x128xf32>
    %181 = arith.truncf %175 : vector<2x128xf32> to vector<2x128xbf16>
    %c0_81 = arith.constant 0 : index
    %c0_82 = arith.constant 0 : index
    %182 = vector.load %arg9[%c0_81, %c0_82] : memref<128x128xbf16, #tpu.memory_space<vmem>>, vector<128x128xbf16>
    %cst_83 = arith.constant dense<0.000000e+00> : vector<2x128xf32>
    %183 = tpu.matmul %181, %182, %cst_83 {dimension_numbers = #tpu.dot_dimension_numbers<[1], [0], [0], [1], [0, 0, 1, 1], [], []>} : vector<2x128xbf16>, vector<128x128xbf16>, vector<2x128xf32> -> vector<2x128xf32>
    %184 = arith.addf %180, %183 : vector<2x128xf32>
    %185 = arith.index_cast %c1_i32 : i32 to index
    %c0_84 = arith.constant 0 : index
    %c0_85 = arith.constant 0 : index
    %186 = vector.load %arg14[%185, %c0_84, %c0_85] : memref<8x2x128xf32, #tpu.memory_space<vmem>>, vector<1x2x128xf32>
    %187 = vector.shape_cast %186 : vector<1x2x128xf32> to vector<2x128xf32>
    %188 = vector.shape_cast %175 : vector<2x128xf32> to vector<1x2x128xf32>
    tpu.vector_store %arg14[%185, %c0_84, %c0_85], %188 {strides = array<i32>} : memref<8x2x128xf32, #tpu.memory_space<vmem>>, vector<1x2x128xf32>,
    %189 = arith.index_cast %c1_i32 : i32 to index
    %c0_86 = arith.constant 0 : index
    %c0_87 = arith.constant 0 : index
    %190 = vector.load %arg15[%189, %c0_86, %c0_87] : memref<8x2x128xf32, #tpu.memory_space<vmem>>, vector<1x2x128xf32>
    %191 = vector.shape_cast %190 : vector<1x2x128xf32> to vector<2x128xf32>
    %192 = vector.shape_cast %184 : vector<2x128xf32> to vector<1x2x128xf32>
    tpu.vector_store %arg15[%189, %c0_86, %c0_87], %192 {strides = array<i32>} : memref<8x2x128xf32, #tpu.memory_space<vmem>>, vector<1x2x128xf32>,
    %c2_i32 = arith.constant 2 : i32
    %193 = arith.truncf %175 : vector<2x128xf32> to vector<2x128xbf16>
    %c0_88 = arith.constant 0 : index
    %c0_89 = arith.constant 0 : index
    %194 = vector.load %arg5[%c0_88, %c0_89] : memref<128x512xbf16, #tpu.memory_space<vmem>>, vector<128x512xbf16>
    %cst_90 = arith.constant dense<0.000000e+00> : vector<2x512xf32>
    %195 = tpu.matmul %193, %194, %cst_90 {dimension_numbers = #tpu.dot_dimension_numbers<[1], [0], [0], [1], [0, 0, 1, 1], [], []>} : vector<2x128xbf16>, vector<128x512xbf16>, vector<2x512xf32> -> vector<2x512xf32>
    %196 = vector.extract_strided_slice %195 {offsets = [0, 0], sizes = [2, 384], strides = [1, 1]} : vector<2x512xf32> to vector<2x384xf32>
    %197 = vector.extract_strided_slice %195 {offsets = [0, 384], sizes = [2, 128], strides = [1, 1]} : vector<2x512xf32> to vector<2x128xf32>
    %198 = vector.shape_cast %197 : vector<2x128xf32> to vector<2x1x128xf32>
    %199 = vector.broadcast %198 : vector<2x1x128xf32> to vector<2x8x128xf32>
    %200 = arith.addf %199, %17 : vector<2x8x128xf32>
    %201 = math.tanh %200 : vector<2x8x128xf32>
    %202 = vector.shape_cast %201 : vector<2x8x128xf32> to vector<16x128xf32>
    %203 = arith.truncf %202 : vector<16x128xf32> to vector<16x128xbf16>
    %c0_91 = arith.constant 0 : index
    %c0_92 = arith.constant 0 : index
    %204 = vector.load %arg10[%c0_91, %c0_92] : memref<128x1xbf16, #tpu.memory_space<vmem>>, vector<128x1xbf16>
    %cst_93 = arith.constant dense<0.000000e+00> : vector<16x1xf32>
    %205 = tpu.matmul %203, %204, %cst_93 {dimension_numbers = #tpu.dot_dimension_numbers<[1], [0], [0], [1], [0, 0, 1, 1], [], []>} : vector<16x128xbf16>, vector<128x1xbf16>, vector<16x1xf32> -> vector<16x1xf32>
    %206 = vector.shape_cast %205 : vector<16x1xf32> to vector<2x8xf32>
    %cst_94 = arith.constant 0.000000e+00 : f32
    %207 = vector.broadcast %cst_94 : f32 to vector<2x8xf32>
    %208 = arith.cmpf ogt, %18, %207 : vector<2x8xf32>
    %cst_95 = arith.constant -1.000000e+09 : f32
    %209 = vector.broadcast %cst_95 : f32 to vector<2x8xf32>
    %210 = arith.select %208, %206, %209 : vector<2x8xi1>, vector<2x8xf32>
    %cst_96 = arith.constant dense<0xFF800000> : vector<2xf32>
    %211 = vector.multi_reduction <maximumf>, %210, %cst_96 [1] : vector<2x8xf32> to vector<2xf32>
    %212 = vector.shape_cast %211 : vector<2xf32> to vector<2x1xf32>
    %213 = vector.broadcast %212 : vector<2x1xf32> to vector<2x8xf32>
    %214 = arith.subf %210, %213 : vector<2x8xf32>
    %215 = math.exp %214 : vector<2x8xf32>
    %cst_97 = arith.constant dense<0.000000e+00> : vector<2xf32>
    %216 = vector.multi_reduction <add>, %215, %cst_97 [1] : vector<2x8xf32> to vector<2xf32>
    %217 = vector.shape_cast %216 : vector<2xf32> to vector<2x1xf32>
    %218 = tpu.reciprocal %217 {approx = true} : vector<2x1xf32> -> vector<2x1xf32>
    %219 = vector.broadcast %218 : vector<2x1xf32> to vector<2x8xf32>
    %220 = arith.mulf %215, %219 : vector<2x8xf32>
    %221 = vector.shape_cast %220 : vector<2x8xf32> to vector<2x1x8xf32>
    %222 = arith.truncf %221 : vector<2x1x8xf32> to vector<2x1x8xbf16>
    %c0_98 = arith.constant 0 : index
    %c0_99 = arith.constant 0 : index
    %c0_100 = arith.constant 0 : index
    %223 = vector.load %arg1[%c0_98, %c0_99, %c0_100] : memref<2x8x64xbf16, #tpu.memory_space<vmem>>, vector<2x8x64xbf16>
    "tpu.trace_start"() <{level = 10 : i32, message = "bqs,bsd->bqd"}> : () -> ()
    %cst_101 = arith.constant dense<0.000000e+00> : vector<2x1x64xf32>
    %224 = tpu.matmul %222, %223, %cst_101 {dimension_numbers = #tpu.dot_dimension_numbers<[2], [1], [1], [2], [0, 0, 0, 1, 1, 2], [0], [0]>} : vector<2x1x8xbf16>, vector<2x8x64xbf16>, vector<2x1x64xf32> -> vector<2x1x64xf32>
    "tpu.trace_stop"() : () -> ()
    %225 = vector.shape_cast %224 : vector<2x1x64xf32> to vector<2x64xf32>
    %226 = arith.truncf %225 : vector<2x64xf32> to vector<2x64xbf16>
    %c0_102 = arith.constant 0 : index
    %c0_103 = arith.constant 0 : index
    %227 = vector.load %arg6[%c0_102, %c0_103] : memref<64x512xbf16, #tpu.memory_space<vmem>>, vector<64x512xbf16>
    %cst_104 = arith.constant dense<0.000000e+00> : vector<2x512xf32>
    %228 = tpu.matmul %226, %227, %cst_104 {dimension_numbers = #tpu.dot_dimension_numbers<[1], [0], [0], [1], [0, 0, 1, 1], [], []>} : vector<2x64xbf16>, vector<64x512xbf16>, vector<2x512xf32> -> vector<2x512xf32>
    %229 = arith.index_cast %c2_i32 : i32 to index
    %c0_105 = arith.constant 0 : index
    %c0_106 = arith.constant 0 : index
    %230 = vector.load %arg17[%229, %c0_105, %c0_106] : memref<8x2x384xf32, #tpu.memory_space<vmem>>, vector<1x2x384xf32>
    %231 = vector.shape_cast %230 : vector<1x2x384xf32> to vector<2x384xf32>
    %232 = vector.extract_strided_slice %228 {offsets = [0, 0], sizes = [2, 384], strides = [1, 1]} : vector<2x512xf32> to vector<2x384xf32>
    %233 = arith.addf %231, %232 : vector<2x384xf32>
    %234 = vector.extract_strided_slice %233 {offsets = [0, 0], sizes = [2, 128], strides = [1, 1]} : vector<2x384xf32> to vector<2x128xf32>
    %235 = vector.extract_strided_slice %196 {offsets = [0, 0], sizes = [2, 128], strides = [1, 1]} : vector<2x384xf32> to vector<2x128xf32>
    %236 = arith.addf %234, %235 : vector<2x128xf32>
    %237 = arith.negf %236 : vector<2x128xf32>
    %238 = math.exp %237 : vector<2x128xf32>
    %cst_107 = arith.constant 1.000000e+00 : f32
    %239 = vector.broadcast %cst_107 : f32 to vector<2x128xf32>
    %240 = arith.addf %239, %238 : vector<2x128xf32>
    %241 = arith.divf %239, %240 : vector<2x128xf32>
    %242 = vector.extract_strided_slice %233 {offsets = [0, 128], sizes = [2, 128], strides = [1, 1]} : vector<2x384xf32> to vector<2x128xf32>
    %243 = vector.extract_strided_slice %196 {offsets = [0, 128], sizes = [2, 128], strides = [1, 1]} : vector<2x384xf32> to vector<2x128xf32>
    %244 = arith.addf %242, %243 : vector<2x128xf32>
    %245 = arith.negf %244 : vector<2x128xf32>
    %246 = math.exp %245 : vector<2x128xf32>
    %cst_108 = arith.constant 1.000000e+00 : f32
    %247 = vector.broadcast %cst_108 : f32 to vector<2x128xf32>
    %248 = arith.addf %247, %246 : vector<2x128xf32>
    %249 = arith.divf %247, %248 : vector<2x128xf32>
    %250 = vector.extract_strided_slice %233 {offsets = [0, 256], sizes = [2, 128], strides = [1, 1]} : vector<2x384xf32> to vector<2x128xf32>
    %251 = vector.extract_strided_slice %196 {offsets = [0, 256], sizes = [2, 128], strides = [1, 1]} : vector<2x384xf32> to vector<2x128xf32>
    %252 = arith.addf %251, %21 : vector<2x128xf32>
    %253 = arith.mulf %241, %252 : vector<2x128xf32>
    %254 = arith.addf %250, %253 : vector<2x128xf32>
    %255 = math.tanh %254 : vector<2x128xf32>
    %cst_109 = arith.constant 1.000000e+00 : f32
    %256 = vector.broadcast %cst_109 : f32 to vector<2x128xf32>
    %257 = arith.subf %256, %249 : vector<2x128xf32>
    %258 = arith.mulf %257, %255 : vector<2x128xf32>
    %259 = arith.mulf %249, %175 : vector<2x128xf32>
    %260 = arith.addf %258, %259 : vector<2x128xf32>
    %261 = arith.index_cast %c2_i32 : i32 to index
    %c0_110 = arith.constant 0 : index
    %c0_111 = arith.constant 0 : index
    %262 = vector.load %arg18[%261, %c0_110, %c0_111] : memref<8x2x128xf32, #tpu.memory_space<vmem>>, vector<1x2x128xf32>
    %263 = vector.shape_cast %262 : vector<1x2x128xf32> to vector<2x128xf32>
    %264 = vector.extract_strided_slice %228 {offsets = [0, 384], sizes = [2, 128], strides = [1, 1]} : vector<2x512xf32> to vector<2x128xf32>
    %265 = arith.addf %263, %264 : vector<2x128xf32>
    %266 = arith.truncf %260 : vector<2x128xf32> to vector<2x128xbf16>
    %c0_112 = arith.constant 0 : index
    %c0_113 = arith.constant 0 : index
    %267 = vector.load %arg9[%c0_112, %c0_113] : memref<128x128xbf16, #tpu.memory_space<vmem>>, vector<128x128xbf16>
    %cst_114 = arith.constant dense<0.000000e+00> : vector<2x128xf32>
    %268 = tpu.matmul %266, %267, %cst_114 {dimension_numbers = #tpu.dot_dimension_numbers<[1], [0], [0], [1], [0, 0, 1, 1], [], []>} : vector<2x128xbf16>, vector<128x128xbf16>, vector<2x128xf32> -> vector<2x128xf32>
    %269 = arith.addf %265, %268 : vector<2x128xf32>
    %270 = arith.index_cast %c2_i32 : i32 to index
    %c0_115 = arith.constant 0 : index
    %c0_116 = arith.constant 0 : index
    %271 = vector.load %arg14[%270, %c0_115, %c0_116] : memref<8x2x128xf32, #tpu.memory_space<vmem>>, vector<1x2x128xf32>
    %272 = vector.shape_cast %271 : vector<1x2x128xf32> to vector<2x128xf32>
    %273 = vector.shape_cast %260 : vector<2x128xf32> to vector<1x2x128xf32>
    tpu.vector_store %arg14[%270, %c0_115, %c0_116], %273 {strides = array<i32>} : memref<8x2x128xf32, #tpu.memory_space<vmem>>, vector<1x2x128xf32>,
    %274 = arith.index_cast %c2_i32 : i32 to index
    %c0_117 = arith.constant 0 : index
    %c0_118 = arith.constant 0 : index
    %275 = vector.load %arg15[%274, %c0_117, %c0_118] : memref<8x2x128xf32, #tpu.memory_space<vmem>>, vector<1x2x128xf32>
    %276 = vector.shape_cast %275 : vector<1x2x128xf32> to vector<2x128xf32>
    %277 = vector.shape_cast %269 : vector<2x128xf32> to vector<1x2x128xf32>
    tpu.vector_store %arg15[%274, %c0_117, %c0_118], %277 {strides = array<i32>} : memref<8x2x128xf32, #tpu.memory_space<vmem>>, vector<1x2x128xf32>,
    %c3_i32 = arith.constant 3 : i32
    %278 = arith.truncf %260 : vector<2x128xf32> to vector<2x128xbf16>
    %c0_119 = arith.constant 0 : index
    %c0_120 = arith.constant 0 : index
    %279 = vector.load %arg5[%c0_119, %c0_120] : memref<128x512xbf16, #tpu.memory_space<vmem>>, vector<128x512xbf16>
    %cst_121 = arith.constant dense<0.000000e+00> : vector<2x512xf32>
    %280 = tpu.matmul %278, %279, %cst_121 {dimension_numbers = #tpu.dot_dimension_numbers<[1], [0], [0], [1], [0, 0, 1, 1], [], []>} : vector<2x128xbf16>, vector<128x512xbf16>, vector<2x512xf32> -> vector<2x512xf32>
    %281 = vector.extract_strided_slice %280 {offsets = [0, 0], sizes = [2, 384], strides = [1, 1]} : vector<2x512xf32> to vector<2x384xf32>
    %282 = vector.extract_strided_slice %280 {offsets = [0, 384], sizes = [2, 128], strides = [1, 1]} : vector<2x512xf32> to vector<2x128xf32>
    %283 = vector.shape_cast %282 : vector<2x128xf32> to vector<2x1x128xf32>
    %284 = vector.broadcast %283 : vector<2x1x128xf32> to vector<2x8x128xf32>
    %285 = arith.addf %284, %17 : vector<2x8x128xf32>
    %286 = math.tanh %285 : vector<2x8x128xf32>
    %287 = vector.shape_cast %286 : vector<2x8x128xf32> to vector<16x128xf32>
    %288 = arith.truncf %287 : vector<16x128xf32> to vector<16x128xbf16>
    %c0_122 = arith.constant 0 : index
    %c0_123 = arith.constant 0 : index
    %289 = vector.load %arg10[%c0_122, %c0_123] : memref<128x1xbf16, #tpu.memory_space<vmem>>, vector<128x1xbf16>
    %cst_124 = arith.constant dense<0.000000e+00> : vector<16x1xf32>
    %290 = tpu.matmul %288, %289, %cst_124 {dimension_numbers = #tpu.dot_dimension_numbers<[1], [0], [0], [1], [0, 0, 1, 1], [], []>} : vector<16x128xbf16>, vector<128x1xbf16>, vector<16x1xf32> -> vector<16x1xf32>
    %291 = vector.shape_cast %290 : vector<16x1xf32> to vector<2x8xf32>
    %cst_125 = arith.constant 0.000000e+00 : f32
    %292 = vector.broadcast %cst_125 : f32 to vector<2x8xf32>
    %293 = arith.cmpf ogt, %18, %292 : vector<2x8xf32>
    %cst_126 = arith.constant -1.000000e+09 : f32
    %294 = vector.broadcast %cst_126 : f32 to vector<2x8xf32>
    %295 = arith.select %293, %291, %294 : vector<2x8xi1>, vector<2x8xf32>
    %cst_127 = arith.constant dense<0xFF800000> : vector<2xf32>
    %296 = vector.multi_reduction <maximumf>, %295, %cst_127 [1] : vector<2x8xf32> to vector<2xf32>
    %297 = vector.shape_cast %296 : vector<2xf32> to vector<2x1xf32>
    %298 = vector.broadcast %297 : vector<2x1xf32> to vector<2x8xf32>
    %299 = arith.subf %295, %298 : vector<2x8xf32>
    %300 = math.exp %299 : vector<2x8xf32>
    %cst_128 = arith.constant dense<0.000000e+00> : vector<2xf32>
    %301 = vector.multi_reduction <add>, %300, %cst_128 [1] : vector<2x8xf32> to vector<2xf32>
    %302 = vector.shape_cast %301 : vector<2xf32> to vector<2x1xf32>
    %303 = tpu.reciprocal %302 {approx = true} : vector<2x1xf32> -> vector<2x1xf32>
    %304 = vector.broadcast %303 : vector<2x1xf32> to vector<2x8xf32>
    %305 = arith.mulf %300, %304 : vector<2x8xf32>
    %306 = vector.shape_cast %305 : vector<2x8xf32> to vector<2x1x8xf32>
    %307 = arith.truncf %306 : vector<2x1x8xf32> to vector<2x1x8xbf16>
    %c0_129 = arith.constant 0 : index
    %c0_130 = arith.constant 0 : index
    %c0_131 = arith.constant 0 : index
    %308 = vector.load %arg1[%c0_129, %c0_130, %c0_131] : memref<2x8x64xbf16, #tpu.memory_space<vmem>>, vector<2x8x64xbf16>
    "tpu.trace_start"() <{level = 10 : i32, message = "bqs,bsd->bqd"}> : () -> ()
    %cst_132 = arith.constant dense<0.000000e+00> : vector<2x1x64xf32>
    %309 = tpu.matmul %307, %308, %cst_132 {dimension_numbers = #tpu.dot_dimension_numbers<[2], [1], [1], [2], [0, 0, 0, 1, 1, 2], [0], [0]>} : vector<2x1x8xbf16>, vector<2x8x64xbf16>, vector<2x1x64xf32> -> vector<2x1x64xf32>
    "tpu.trace_stop"() : () -> ()
    %310 = vector.shape_cast %309 : vector<2x1x64xf32> to vector<2x64xf32>
    %311 = arith.truncf %310 : vector<2x64xf32> to vector<2x64xbf16>
    %c0_133 = arith.constant 0 : index
    %c0_134 = arith.constant 0 : index
    %312 = vector.load %arg6[%c0_133, %c0_134] : memref<64x512xbf16, #tpu.memory_space<vmem>>, vector<64x512xbf16>
    %cst_135 = arith.constant dense<0.000000e+00> : vector<2x512xf32>
    %313 = tpu.matmul %311, %312, %cst_135 {dimension_numbers = #tpu.dot_dimension_numbers<[1], [0], [0], [1], [0, 0, 1, 1], [], []>} : vector<2x64xbf16>, vector<64x512xbf16>, vector<2x512xf32> -> vector<2x512xf32>
    %314 = arith.index_cast %c3_i32 : i32 to index
    %c0_136 = arith.constant 0 : index
    %c0_137 = arith.constant 0 : index
    %315 = vector.load %arg17[%314, %c0_136, %c0_137] : memref<8x2x384xf32, #tpu.memory_space<vmem>>, vector<1x2x384xf32>
    %316 = vector.shape_cast %315 : vector<1x2x384xf32> to vector<2x384xf32>
    %317 = vector.extract_strided_slice %313 {offsets = [0, 0], sizes = [2, 384], strides = [1, 1]} : vector<2x512xf32> to vector<2x384xf32>
    %318 = arith.addf %316, %317 : vector<2x384xf32>
    %319 = vector.extract_strided_slice %318 {offsets = [0, 0], sizes = [2, 128], strides = [1, 1]} : vector<2x384xf32> to vector<2x128xf32>
    %320 = vector.extract_strided_slice %281 {offsets = [0, 0], sizes = [2, 128], strides = [1, 1]} : vector<2x384xf32> to vector<2x128xf32>
    %321 = arith.addf %319, %320 : vector<2x128xf32>
    %322 = arith.negf %321 : vector<2x128xf32>
    %323 = math.exp %322 : vector<2x128xf32>
    %cst_138 = arith.constant 1.000000e+00 : f32
    %324 = vector.broadcast %cst_138 : f32 to vector<2x128xf32>
    %325 = arith.addf %324, %323 : vector<2x128xf32>
    %326 = arith.divf %324, %325 : vector<2x128xf32>
    %327 = vector.extract_strided_slice %318 {offsets = [0, 128], sizes = [2, 128], strides = [1, 1]} : vector<2x384xf32> to vector<2x128xf32>
    %328 = vector.extract_strided_slice %281 {offsets = [0, 128], sizes = [2, 128], strides = [1, 1]} : vector<2x384xf32> to vector<2x128xf32>
    %329 = arith.addf %327, %328 : vector<2x128xf32>
    %330 = arith.negf %329 : vector<2x128xf32>
    %331 = math.exp %330 : vector<2x128xf32>
    %cst_139 = arith.constant 1.000000e+00 : f32
    %332 = vector.broadcast %cst_139 : f32 to vector<2x128xf32>
    %333 = arith.addf %332, %331 : vector<2x128xf32>
    %334 = arith.divf %332, %333 : vector<2x128xf32>
    %335 = vector.extract_strided_slice %318 {offsets = [0, 256], sizes = [2, 128], strides = [1, 1]} : vector<2x384xf32> to vector<2x128xf32>
    %336 = vector.extract_strided_slice %281 {offsets = [0, 256], sizes = [2, 128], strides = [1, 1]} : vector<2x384xf32> to vector<2x128xf32>
    %337 = arith.addf %336, %21 : vector<2x128xf32>
    %338 = arith.mulf %326, %337 : vector<2x128xf32>
    %339 = arith.addf %335, %338 : vector<2x128xf32>
    %340 = math.tanh %339 : vector<2x128xf32>
    %cst_140 = arith.constant 1.000000e+00 : f32
    %341 = vector.broadcast %cst_140 : f32 to vector<2x128xf32>
    %342 = arith.subf %341, %334 : vector<2x128xf32>
    %343 = arith.mulf %342, %340 : vector<2x128xf32>
    %344 = arith.mulf %334, %260 : vector<2x128xf32>
    %345 = arith.addf %343, %344 : vector<2x128xf32>
    %346 = arith.index_cast %c3_i32 : i32 to index
    %c0_141 = arith.constant 0 : index
    %c0_142 = arith.constant 0 : index
    %347 = vector.load %arg18[%346, %c0_141, %c0_142] : memref<8x2x128xf32, #tpu.memory_space<vmem>>, vector<1x2x128xf32>
    %348 = vector.shape_cast %347 : vector<1x2x128xf32> to vector<2x128xf32>
    %349 = vector.extract_strided_slice %313 {offsets = [0, 384], sizes = [2, 128], strides = [1, 1]} : vector<2x512xf32> to vector<2x128xf32>
    %350 = arith.addf %348, %349 : vector<2x128xf32>
    %351 = arith.truncf %345 : vector<2x128xf32> to vector<2x128xbf16>
    %c0_143 = arith.constant 0 : index
    %c0_144 = arith.constant 0 : index
    %352 = vector.load %arg9[%c0_143, %c0_144] : memref<128x128xbf16, #tpu.memory_space<vmem>>, vector<128x128xbf16>
    %cst_145 = arith.constant dense<0.000000e+00> : vector<2x128xf32>
    %353 = tpu.matmul %351, %352, %cst_145 {dimension_numbers = #tpu.dot_dimension_numbers<[1], [0], [0], [1], [0, 0, 1, 1], [], []>} : vector<2x128xbf16>, vector<128x128xbf16>, vector<2x128xf32> -> vector<2x128xf32>
    %354 = arith.addf %350, %353 : vector<2x128xf32>
    %355 = arith.index_cast %c3_i32 : i32 to index
    %c0_146 = arith.constant 0 : index
    %c0_147 = arith.constant 0 : index
    %356 = vector.load %arg14[%355, %c0_146, %c0_147] : memref<8x2x128xf32, #tpu.memory_space<vmem>>, vector<1x2x128xf32>
    %357 = vector.shape_cast %356 : vector<1x2x128xf32> to vector<2x128xf32>
    %358 = vector.shape_cast %345 : vector<2x128xf32> to vector<1x2x128xf32>
    tpu.vector_store %arg14[%355, %c0_146, %c0_147], %358 {strides = array<i32>} : memref<8x2x128xf32, #tpu.memory_space<vmem>>, vector<1x2x128xf32>,
    %359 = arith.index_cast %c3_i32 : i32 to index
    %c0_148 = arith.constant 0 : index
    %c0_149 = arith.constant 0 : index
    %360 = vector.load %arg15[%359, %c0_148, %c0_149] : memref<8x2x128xf32, #tpu.memory_space<vmem>>, vector<1x2x128xf32>
    %361 = vector.shape_cast %360 : vector<1x2x128xf32> to vector<2x128xf32>
    %362 = vector.shape_cast %354 : vector<2x128xf32> to vector<1x2x128xf32>
    tpu.vector_store %arg15[%359, %c0_148, %c0_149], %362 {strides = array<i32>} : memref<8x2x128xf32, #tpu.memory_space<vmem>>, vector<1x2x128xf32>,
    %c4_i32 = arith.constant 4 : i32
    %363 = arith.truncf %345 : vector<2x128xf32> to vector<2x128xbf16>
    %c0_150 = arith.constant 0 : index
    %c0_151 = arith.constant 0 : index
    %364 = vector.load %arg5[%c0_150, %c0_151] : memref<128x512xbf16, #tpu.memory_space<vmem>>, vector<128x512xbf16>
    %cst_152 = arith.constant dense<0.000000e+00> : vector<2x512xf32>
    %365 = tpu.matmul %363, %364, %cst_152 {dimension_numbers = #tpu.dot_dimension_numbers<[1], [0], [0], [1], [0, 0, 1, 1], [], []>} : vector<2x128xbf16>, vector<128x512xbf16>, vector<2x512xf32> -> vector<2x512xf32>
    %366 = vector.extract_strided_slice %365 {offsets = [0, 0], sizes = [2, 384], strides = [1, 1]} : vector<2x512xf32> to vector<2x384xf32>
    %367 = vector.extract_strided_slice %365 {offsets = [0, 384], sizes = [2, 128], strides = [1, 1]} : vector<2x512xf32> to vector<2x128xf32>
    %368 = vector.shape_cast %367 : vector<2x128xf32> to vector<2x1x128xf32>
    %369 = vector.broadcast %368 : vector<2x1x128xf32> to vector<2x8x128xf32>
    %370 = arith.addf %369, %17 : vector<2x8x128xf32>
    %371 = math.tanh %370 : vector<2x8x128xf32>
    %372 = vector.shape_cast %371 : vector<2x8x128xf32> to vector<16x128xf32>
    %373 = arith.truncf %372 : vector<16x128xf32> to vector<16x128xbf16>
    %c0_153 = arith.constant 0 : index
    %c0_154 = arith.constant 0 : index
    %374 = vector.load %arg10[%c0_153, %c0_154] : memref<128x1xbf16, #tpu.memory_space<vmem>>, vector<128x1xbf16>
    %cst_155 = arith.constant dense<0.000000e+00> : vector<16x1xf32>
    %375 = tpu.matmul %373, %374, %cst_155 {dimension_numbers = #tpu.dot_dimension_numbers<[1], [0], [0], [1], [0, 0, 1, 1], [], []>} : vector<16x128xbf16>, vector<128x1xbf16>, vector<16x1xf32> -> vector<16x1xf32>
    %376 = vector.shape_cast %375 : vector<16x1xf32> to vector<2x8xf32>
    %cst_156 = arith.constant 0.000000e+00 : f32
    %377 = vector.broadcast %cst_156 : f32 to vector<2x8xf32>
    %378 = arith.cmpf ogt, %18, %377 : vector<2x8xf32>
    %cst_157 = arith.constant -1.000000e+09 : f32
    %379 = vector.broadcast %cst_157 : f32 to vector<2x8xf32>
    %380 = arith.select %378, %376, %379 : vector<2x8xi1>, vector<2x8xf32>
    %cst_158 = arith.constant dense<0xFF800000> : vector<2xf32>
    %381 = vector.multi_reduction <maximumf>, %380, %cst_158 [1] : vector<2x8xf32> to vector<2xf32>
    %382 = vector.shape_cast %381 : vector<2xf32> to vector<2x1xf32>
    %383 = vector.broadcast %382 : vector<2x1xf32> to vector<2x8xf32>
    %384 = arith.subf %380, %383 : vector<2x8xf32>
    %385 = math.exp %384 : vector<2x8xf32>
    %cst_159 = arith.constant dense<0.000000e+00> : vector<2xf32>
    %386 = vector.multi_reduction <add>, %385, %cst_159 [1] : vector<2x8xf32> to vector<2xf32>
    %387 = vector.shape_cast %386 : vector<2xf32> to vector<2x1xf32>
    %388 = tpu.reciprocal %387 {approx = true} : vector<2x1xf32> -> vector<2x1xf32>
    %389 = vector.broadcast %388 : vector<2x1xf32> to vector<2x8xf32>
    %390 = arith.mulf %385, %389 : vector<2x8xf32>
    %391 = vector.shape_cast %390 : vector<2x8xf32> to vector<2x1x8xf32>
    %392 = arith.truncf %391 : vector<2x1x8xf32> to vector<2x1x8xbf16>
    %c0_160 = arith.constant 0 : index
    %c0_161 = arith.constant 0 : index
    %c0_162 = arith.constant 0 : index
    %393 = vector.load %arg1[%c0_160, %c0_161, %c0_162] : memref<2x8x64xbf16, #tpu.memory_space<vmem>>, vector<2x8x64xbf16>
    "tpu.trace_start"() <{level = 10 : i32, message = "bqs,bsd->bqd"}> : () -> ()
    %cst_163 = arith.constant dense<0.000000e+00> : vector<2x1x64xf32>
    %394 = tpu.matmul %392, %393, %cst_163 {dimension_numbers = #tpu.dot_dimension_numbers<[2], [1], [1], [2], [0, 0, 0, 1, 1, 2], [0], [0]>} : vector<2x1x8xbf16>, vector<2x8x64xbf16>, vector<2x1x64xf32> -> vector<2x1x64xf32>
    "tpu.trace_stop"() : () -> ()
    %395 = vector.shape_cast %394 : vector<2x1x64xf32> to vector<2x64xf32>
    %396 = arith.truncf %395 : vector<2x64xf32> to vector<2x64xbf16>
    %c0_164 = arith.constant 0 : index
    %c0_165 = arith.constant 0 : index
    %397 = vector.load %arg6[%c0_164, %c0_165] : memref<64x512xbf16, #tpu.memory_space<vmem>>, vector<64x512xbf16>
    %cst_166 = arith.constant dense<0.000000e+00> : vector<2x512xf32>
    %398 = tpu.matmul %396, %397, %cst_166 {dimension_numbers = #tpu.dot_dimension_numbers<[1], [0], [0], [1], [0, 0, 1, 1], [], []>} : vector<2x64xbf16>, vector<64x512xbf16>, vector<2x512xf32> -> vector<2x512xf32>
    %399 = arith.index_cast %c4_i32 : i32 to index
    %c0_167 = arith.constant 0 : index
    %c0_168 = arith.constant 0 : index
    %400 = vector.load %arg17[%399, %c0_167, %c0_168] : memref<8x2x384xf32, #tpu.memory_space<vmem>>, vector<1x2x384xf32>
    %401 = vector.shape_cast %400 : vector<1x2x384xf32> to vector<2x384xf32>
    %402 = vector.extract_strided_slice %398 {offsets = [0, 0], sizes = [2, 384], strides = [1, 1]} : vector<2x512xf32> to vector<2x384xf32>
    %403 = arith.addf %401, %402 : vector<2x384xf32>
    %404 = vector.extract_strided_slice %403 {offsets = [0, 0], sizes = [2, 128], strides = [1, 1]} : vector<2x384xf32> to vector<2x128xf32>
    %405 = vector.extract_strided_slice %366 {offsets = [0, 0], sizes = [2, 128], strides = [1, 1]} : vector<2x384xf32> to vector<2x128xf32>
    %406 = arith.addf %404, %405 : vector<2x128xf32>
    %407 = arith.negf %406 : vector<2x128xf32>
    %408 = math.exp %407 : vector<2x128xf32>
    %cst_169 = arith.constant 1.000000e+00 : f32
    %409 = vector.broadcast %cst_169 : f32 to vector<2x128xf32>
    %410 = arith.addf %409, %408 : vector<2x128xf32>
    %411 = arith.divf %409, %410 : vector<2x128xf32>
    %412 = vector.extract_strided_slice %403 {offsets = [0, 128], sizes = [2, 128], strides = [1, 1]} : vector<2x384xf32> to vector<2x128xf32>
    %413 = vector.extract_strided_slice %366 {offsets = [0, 128], sizes = [2, 128], strides = [1, 1]} : vector<2x384xf32> to vector<2x128xf32>
    %414 = arith.addf %412, %413 : vector<2x128xf32>
    %415 = arith.negf %414 : vector<2x128xf32>
    %416 = math.exp %415 : vector<2x128xf32>
    %cst_170 = arith.constant 1.000000e+00 : f32
    %417 = vector.broadcast %cst_170 : f32 to vector<2x128xf32>
    %418 = arith.addf %417, %416 : vector<2x128xf32>
    %419 = arith.divf %417, %418 : vector<2x128xf32>
    %420 = vector.extract_strided_slice %403 {offsets = [0, 256], sizes = [2, 128], strides = [1, 1]} : vector<2x384xf32> to vector<2x128xf32>
    %421 = vector.extract_strided_slice %366 {offsets = [0, 256], sizes = [2, 128], strides = [1, 1]} : vector<2x384xf32> to vector<2x128xf32>
    %422 = arith.addf %421, %21 : vector<2x128xf32>
    %423 = arith.mulf %411, %422 : vector<2x128xf32>
    %424 = arith.addf %420, %423 : vector<2x128xf32>
    %425 = math.tanh %424 : vector<2x128xf32>
    %cst_171 = arith.constant 1.000000e+00 : f32
    %426 = vector.broadcast %cst_171 : f32 to vector<2x128xf32>
    %427 = arith.subf %426, %419 : vector<2x128xf32>
    %428 = arith.mulf %427, %425 : vector<2x128xf32>
    %429 = arith.mulf %419, %345 : vector<2x128xf32>
    %430 = arith.addf %428, %429 : vector<2x128xf32>
    %431 = arith.index_cast %c4_i32 : i32 to index
    %c0_172 = arith.constant 0 : index
    %c0_173 = arith.constant 0 : index
    %432 = vector.load %arg18[%431, %c0_172, %c0_173] : memref<8x2x128xf32, #tpu.memory_space<vmem>>, vector<1x2x128xf32>
    %433 = vector.shape_cast %432 : vector<1x2x128xf32> to vector<2x128xf32>
    %434 = vector.extract_strided_slice %398 {offsets = [0, 384], sizes = [2, 128], strides = [1, 1]} : vector<2x512xf32> to vector<2x128xf32>
    %435 = arith.addf %433, %434 : vector<2x128xf32>
    %436 = arith.truncf %430 : vector<2x128xf32> to vector<2x128xbf16>
    %c0_174 = arith.constant 0 : index
    %c0_175 = arith.constant 0 : index
    %437 = vector.load %arg9[%c0_174, %c0_175] : memref<128x128xbf16, #tpu.memory_space<vmem>>, vector<128x128xbf16>
    %cst_176 = arith.constant dense<0.000000e+00> : vector<2x128xf32>
    %438 = tpu.matmul %436, %437, %cst_176 {dimension_numbers = #tpu.dot_dimension_numbers<[1], [0], [0], [1], [0, 0, 1, 1], [], []>} : vector<2x128xbf16>, vector<128x128xbf16>, vector<2x128xf32> -> vector<2x128xf32>
    %439 = arith.addf %435, %438 : vector<2x128xf32>
    %440 = arith.index_cast %c4_i32 : i32 to index
    %c0_177 = arith.constant 0 : index
    %c0_178 = arith.constant 0 : index
    %441 = vector.load %arg14[%440, %c0_177, %c0_178] : memref<8x2x128xf32, #tpu.memory_space<vmem>>, vector<1x2x128xf32>
    %442 = vector.shape_cast %441 : vector<1x2x128xf32> to vector<2x128xf32>
    %443 = vector.shape_cast %430 : vector<2x128xf32> to vector<1x2x128xf32>
    tpu.vector_store %arg14[%440, %c0_177, %c0_178], %443 {strides = array<i32>} : memref<8x2x128xf32, #tpu.memory_space<vmem>>, vector<1x2x128xf32>,
    %444 = arith.index_cast %c4_i32 : i32 to index
    %c0_179 = arith.constant 0 : index
    %c0_180 = arith.constant 0 : index
    %445 = vector.load %arg15[%444, %c0_179, %c0_180] : memref<8x2x128xf32, #tpu.memory_space<vmem>>, vector<1x2x128xf32>
    %446 = vector.shape_cast %445 : vector<1x2x128xf32> to vector<2x128xf32>
    %447 = vector.shape_cast %439 : vector<2x128xf32> to vector<1x2x128xf32>
    tpu.vector_store %arg15[%444, %c0_179, %c0_180], %447 {strides = array<i32>} : memref<8x2x128xf32, #tpu.memory_space<vmem>>, vector<1x2x128xf32>,
    %c5_i32 = arith.constant 5 : i32
    %448 = arith.truncf %430 : vector<2x128xf32> to vector<2x128xbf16>
    %c0_181 = arith.constant 0 : index
    %c0_182 = arith.constant 0 : index
    %449 = vector.load %arg5[%c0_181, %c0_182] : memref<128x512xbf16, #tpu.memory_space<vmem>>, vector<128x512xbf16>
    %cst_183 = arith.constant dense<0.000000e+00> : vector<2x512xf32>
    %450 = tpu.matmul %448, %449, %cst_183 {dimension_numbers = #tpu.dot_dimension_numbers<[1], [0], [0], [1], [0, 0, 1, 1], [], []>} : vector<2x128xbf16>, vector<128x512xbf16>, vector<2x512xf32> -> vector<2x512xf32>
    %451 = vector.extract_strided_slice %450 {offsets = [0, 0], sizes = [2, 384], strides = [1, 1]} : vector<2x512xf32> to vector<2x384xf32>
    %452 = vector.extract_strided_slice %450 {offsets = [0, 384], sizes = [2, 128], strides = [1, 1]} : vector<2x512xf32> to vector<2x128xf32>
    %453 = vector.shape_cast %452 : vector<2x128xf32> to vector<2x1x128xf32>
    %454 = vector.broadcast %453 : vector<2x1x128xf32> to vector<2x8x128xf32>
    %455 = arith.addf %454, %17 : vector<2x8x128xf32>
    %456 = math.tanh %455 : vector<2x8x128xf32>
    %457 = vector.shape_cast %456 : vector<2x8x128xf32> to vector<16x128xf32>
    %458 = arith.truncf %457 : vector<16x128xf32> to vector<16x128xbf16>
    %c0_184 = arith.constant 0 : index
    %c0_185 = arith.constant 0 : index
    %459 = vector.load %arg10[%c0_184, %c0_185] : memref<128x1xbf16, #tpu.memory_space<vmem>>, vector<128x1xbf16>
    %cst_186 = arith.constant dense<0.000000e+00> : vector<16x1xf32>
    %460 = tpu.matmul %458, %459, %cst_186 {dimension_numbers = #tpu.dot_dimension_numbers<[1], [0], [0], [1], [0, 0, 1, 1], [], []>} : vector<16x128xbf16>, vector<128x1xbf16>, vector<16x1xf32> -> vector<16x1xf32>
    %461 = vector.shape_cast %460 : vector<16x1xf32> to vector<2x8xf32>
    %cst_187 = arith.constant 0.000000e+00 : f32
    %462 = vector.broadcast %cst_187 : f32 to vector<2x8xf32>
    %463 = arith.cmpf ogt, %18, %462 : vector<2x8xf32>
    %cst_188 = arith.constant -1.000000e+09 : f32
    %464 = vector.broadcast %cst_188 : f32 to vector<2x8xf32>
    %465 = arith.select %463, %461, %464 : vector<2x8xi1>, vector<2x8xf32>
    %cst_189 = arith.constant dense<0xFF800000> : vector<2xf32>
    %466 = vector.multi_reduction <maximumf>, %465, %cst_189 [1] : vector<2x8xf32> to vector<2xf32>
    %467 = vector.shape_cast %466 : vector<2xf32> to vector<2x1xf32>
    %468 = vector.broadcast %467 : vector<2x1xf32> to vector<2x8xf32>
    %469 = arith.subf %465, %468 : vector<2x8xf32>
    %470 = math.exp %469 : vector<2x8xf32>
    %cst_190 = arith.constant dense<0.000000e+00> : vector<2xf32>
    %471 = vector.multi_reduction <add>, %470, %cst_190 [1] : vector<2x8xf32> to vector<2xf32>
    %472 = vector.shape_cast %471 : vector<2xf32> to vector<2x1xf32>
    %473 = tpu.reciprocal %472 {approx = true} : vector<2x1xf32> -> vector<2x1xf32>
    %474 = vector.broadcast %473 : vector<2x1xf32> to vector<2x8xf32>
    %475 = arith.mulf %470, %474 : vector<2x8xf32>
    %476 = vector.shape_cast %475 : vector<2x8xf32> to vector<2x1x8xf32>
    %477 = arith.truncf %476 : vector<2x1x8xf32> to vector<2x1x8xbf16>
    %c0_191 = arith.constant 0 : index
    %c0_192 = arith.constant 0 : index
    %c0_193 = arith.constant 0 : index
    %478 = vector.load %arg1[%c0_191, %c0_192, %c0_193] : memref<2x8x64xbf16, #tpu.memory_space<vmem>>, vector<2x8x64xbf16>
    "tpu.trace_start"() <{level = 10 : i32, message = "bqs,bsd->bqd"}> : () -> ()
    %cst_194 = arith.constant dense<0.000000e+00> : vector<2x1x64xf32>
    %479 = tpu.matmul %477, %478, %cst_194 {dimension_numbers = #tpu.dot_dimension_numbers<[2], [1], [1], [2], [0, 0, 0, 1, 1, 2], [0], [0]>} : vector<2x1x8xbf16>, vector<2x8x64xbf16>, vector<2x1x64xf32> -> vector<2x1x64xf32>
    "tpu.trace_stop"() : () -> ()
    %480 = vector.shape_cast %479 : vector<2x1x64xf32> to vector<2x64xf32>
    %481 = arith.truncf %480 : vector<2x64xf32> to vector<2x64xbf16>
    %c0_195 = arith.constant 0 : index
    %c0_196 = arith.constant 0 : index
    %482 = vector.load %arg6[%c0_195, %c0_196] : memref<64x512xbf16, #tpu.memory_space<vmem>>, vector<64x512xbf16>
    %cst_197 = arith.constant dense<0.000000e+00> : vector<2x512xf32>
    %483 = tpu.matmul %481, %482, %cst_197 {dimension_numbers = #tpu.dot_dimension_numbers<[1], [0], [0], [1], [0, 0, 1, 1], [], []>} : vector<2x64xbf16>, vector<64x512xbf16>, vector<2x512xf32> -> vector<2x512xf32>
    %484 = arith.index_cast %c5_i32 : i32 to index
    %c0_198 = arith.constant 0 : index
    %c0_199 = arith.constant 0 : index
    %485 = vector.load %arg17[%484, %c0_198, %c0_199] : memref<8x2x384xf32, #tpu.memory_space<vmem>>, vector<1x2x384xf32>
    %486 = vector.shape_cast %485 : vector<1x2x384xf32> to vector<2x384xf32>
    %487 = vector.extract_strided_slice %483 {offsets = [0, 0], sizes = [2, 384], strides = [1, 1]} : vector<2x512xf32> to vector<2x384xf32>
    %488 = arith.addf %486, %487 : vector<2x384xf32>
    %489 = vector.extract_strided_slice %488 {offsets = [0, 0], sizes = [2, 128], strides = [1, 1]} : vector<2x384xf32> to vector<2x128xf32>
    %490 = vector.extract_strided_slice %451 {offsets = [0, 0], sizes = [2, 128], strides = [1, 1]} : vector<2x384xf32> to vector<2x128xf32>
    %491 = arith.addf %489, %490 : vector<2x128xf32>
    %492 = arith.negf %491 : vector<2x128xf32>
    %493 = math.exp %492 : vector<2x128xf32>
    %cst_200 = arith.constant 1.000000e+00 : f32
    %494 = vector.broadcast %cst_200 : f32 to vector<2x128xf32>
    %495 = arith.addf %494, %493 : vector<2x128xf32>
    %496 = arith.divf %494, %495 : vector<2x128xf32>
    %497 = vector.extract_strided_slice %488 {offsets = [0, 128], sizes = [2, 128], strides = [1, 1]} : vector<2x384xf32> to vector<2x128xf32>
    %498 = vector.extract_strided_slice %451 {offsets = [0, 128], sizes = [2, 128], strides = [1, 1]} : vector<2x384xf32> to vector<2x128xf32>
    %499 = arith.addf %497, %498 : vector<2x128xf32>
    %500 = arith.negf %499 : vector<2x128xf32>
    %501 = math.exp %500 : vector<2x128xf32>
    %cst_201 = arith.constant 1.000000e+00 : f32
    %502 = vector.broadcast %cst_201 : f32 to vector<2x128xf32>
    %503 = arith.addf %502, %501 : vector<2x128xf32>
    %504 = arith.divf %502, %503 : vector<2x128xf32>
    %505 = vector.extract_strided_slice %488 {offsets = [0, 256], sizes = [2, 128], strides = [1, 1]} : vector<2x384xf32> to vector<2x128xf32>
    %506 = vector.extract_strided_slice %451 {offsets = [0, 256], sizes = [2, 128], strides = [1, 1]} : vector<2x384xf32> to vector<2x128xf32>
    %507 = arith.addf %506, %21 : vector<2x128xf32>
    %508 = arith.mulf %496, %507 : vector<2x128xf32>
    %509 = arith.addf %505, %508 : vector<2x128xf32>
    %510 = math.tanh %509 : vector<2x128xf32>
    %cst_202 = arith.constant 1.000000e+00 : f32
    %511 = vector.broadcast %cst_202 : f32 to vector<2x128xf32>
    %512 = arith.subf %511, %504 : vector<2x128xf32>
    %513 = arith.mulf %512, %510 : vector<2x128xf32>
    %514 = arith.mulf %504, %430 : vector<2x128xf32>
    %515 = arith.addf %513, %514 : vector<2x128xf32>
    %516 = arith.index_cast %c5_i32 : i32 to index
    %c0_203 = arith.constant 0 : index
    %c0_204 = arith.constant 0 : index
    %517 = vector.load %arg18[%516, %c0_203, %c0_204] : memref<8x2x128xf32, #tpu.memory_space<vmem>>, vector<1x2x128xf32>
    %518 = vector.shape_cast %517 : vector<1x2x128xf32> to vector<2x128xf32>
    %519 = vector.extract_strided_slice %483 {offsets = [0, 384], sizes = [2, 128], strides = [1, 1]} : vector<2x512xf32> to vector<2x128xf32>
    %520 = arith.addf %518, %519 : vector<2x128xf32>
    %521 = arith.truncf %515 : vector<2x128xf32> to vector<2x128xbf16>
    %c0_205 = arith.constant 0 : index
    %c0_206 = arith.constant 0 : index
    %522 = vector.load %arg9[%c0_205, %c0_206] : memref<128x128xbf16, #tpu.memory_space<vmem>>, vector<128x128xbf16>
    %cst_207 = arith.constant dense<0.000000e+00> : vector<2x128xf32>
    %523 = tpu.matmul %521, %522, %cst_207 {dimension_numbers = #tpu.dot_dimension_numbers<[1], [0], [0], [1], [0, 0, 1, 1], [], []>} : vector<2x128xbf16>, vector<128x128xbf16>, vector<2x128xf32> -> vector<2x128xf32>
    %524 = arith.addf %520, %523 : vector<2x128xf32>
    %525 = arith.index_cast %c5_i32 : i32 to index
    %c0_208 = arith.constant 0 : index
    %c0_209 = arith.constant 0 : index
    %526 = vector.load %arg14[%525, %c0_208, %c0_209] : memref<8x2x128xf32, #tpu.memory_space<vmem>>, vector<1x2x128xf32>
    %527 = vector.shape_cast %526 : vector<1x2x128xf32> to vector<2x128xf32>
    %528 = vector.shape_cast %515 : vector<2x128xf32> to vector<1x2x128xf32>
    tpu.vector_store %arg14[%525, %c0_208, %c0_209], %528 {strides = array<i32>} : memref<8x2x128xf32, #tpu.memory_space<vmem>>, vector<1x2x128xf32>,
    %529 = arith.index_cast %c5_i32 : i32 to index
    %c0_210 = arith.constant 0 : index
    %c0_211 = arith.constant 0 : index
    %530 = vector.load %arg15[%529, %c0_210, %c0_211] : memref<8x2x128xf32, #tpu.memory_space<vmem>>, vector<1x2x128xf32>
    %531 = vector.shape_cast %530 : vector<1x2x128xf32> to vector<2x128xf32>
    %532 = vector.shape_cast %524 : vector<2x128xf32> to vector<1x2x128xf32>
    tpu.vector_store %arg15[%529, %c0_210, %c0_211], %532 {strides = array<i32>} : memref<8x2x128xf32, #tpu.memory_space<vmem>>, vector<1x2x128xf32>,
    %c6_i32 = arith.constant 6 : i32
    %533 = arith.truncf %515 : vector<2x128xf32> to vector<2x128xbf16>
    %c0_212 = arith.constant 0 : index
    %c0_213 = arith.constant 0 : index
    %534 = vector.load %arg5[%c0_212, %c0_213] : memref<128x512xbf16, #tpu.memory_space<vmem>>, vector<128x512xbf16>
    %cst_214 = arith.constant dense<0.000000e+00> : vector<2x512xf32>
    %535 = tpu.matmul %533, %534, %cst_214 {dimension_numbers = #tpu.dot_dimension_numbers<[1], [0], [0], [1], [0, 0, 1, 1], [], []>} : vector<2x128xbf16>, vector<128x512xbf16>, vector<2x512xf32> -> vector<2x512xf32>
    %536 = vector.extract_strided_slice %535 {offsets = [0, 0], sizes = [2, 384], strides = [1, 1]} : vector<2x512xf32> to vector<2x384xf32>
    %537 = vector.extract_strided_slice %535 {offsets = [0, 384], sizes = [2, 128], strides = [1, 1]} : vector<2x512xf32> to vector<2x128xf32>
    %538 = vector.shape_cast %537 : vector<2x128xf32> to vector<2x1x128xf32>
    %539 = vector.broadcast %538 : vector<2x1x128xf32> to vector<2x8x128xf32>
    %540 = arith.addf %539, %17 : vector<2x8x128xf32>
    %541 = math.tanh %540 : vector<2x8x128xf32>
    %542 = vector.shape_cast %541 : vector<2x8x128xf32> to vector<16x128xf32>
    %543 = arith.truncf %542 : vector<16x128xf32> to vector<16x128xbf16>
    %c0_215 = arith.constant 0 : index
    %c0_216 = arith.constant 0 : index
    %544 = vector.load %arg10[%c0_215, %c0_216] : memref<128x1xbf16, #tpu.memory_space<vmem>>, vector<128x1xbf16>
    %cst_217 = arith.constant dense<0.000000e+00> : vector<16x1xf32>
    %545 = tpu.matmul %543, %544, %cst_217 {dimension_numbers = #tpu.dot_dimension_numbers<[1], [0], [0], [1], [0, 0, 1, 1], [], []>} : vector<16x128xbf16>, vector<128x1xbf16>, vector<16x1xf32> -> vector<16x1xf32>
    %546 = vector.shape_cast %545 : vector<16x1xf32> to vector<2x8xf32>
    %cst_218 = arith.constant 0.000000e+00 : f32
    %547 = vector.broadcast %cst_218 : f32 to vector<2x8xf32>
    %548 = arith.cmpf ogt, %18, %547 : vector<2x8xf32>
    %cst_219 = arith.constant -1.000000e+09 : f32
    %549 = vector.broadcast %cst_219 : f32 to vector<2x8xf32>
    %550 = arith.select %548, %546, %549 : vector<2x8xi1>, vector<2x8xf32>
    %cst_220 = arith.constant dense<0xFF800000> : vector<2xf32>
    %551 = vector.multi_reduction <maximumf>, %550, %cst_220 [1] : vector<2x8xf32> to vector<2xf32>
    %552 = vector.shape_cast %551 : vector<2xf32> to vector<2x1xf32>
    %553 = vector.broadcast %552 : vector<2x1xf32> to vector<2x8xf32>
    %554 = arith.subf %550, %553 : vector<2x8xf32>
    %555 = math.exp %554 : vector<2x8xf32>
    %cst_221 = arith.constant dense<0.000000e+00> : vector<2xf32>
    %556 = vector.multi_reduction <add>, %555, %cst_221 [1] : vector<2x8xf32> to vector<2xf32>
    %557 = vector.shape_cast %556 : vector<2xf32> to vector<2x1xf32>
    %558 = tpu.reciprocal %557 {approx = true} : vector<2x1xf32> -> vector<2x1xf32>
    %559 = vector.broadcast %558 : vector<2x1xf32> to vector<2x8xf32>
    %560 = arith.mulf %555, %559 : vector<2x8xf32>
    %561 = vector.shape_cast %560 : vector<2x8xf32> to vector<2x1x8xf32>
    %562 = arith.truncf %561 : vector<2x1x8xf32> to vector<2x1x8xbf16>
    %c0_222 = arith.constant 0 : index
    %c0_223 = arith.constant 0 : index
    %c0_224 = arith.constant 0 : index
    %563 = vector.load %arg1[%c0_222, %c0_223, %c0_224] : memref<2x8x64xbf16, #tpu.memory_space<vmem>>, vector<2x8x64xbf16>
    "tpu.trace_start"() <{level = 10 : i32, message = "bqs,bsd->bqd"}> : () -> ()
    %cst_225 = arith.constant dense<0.000000e+00> : vector<2x1x64xf32>
    %564 = tpu.matmul %562, %563, %cst_225 {dimension_numbers = #tpu.dot_dimension_numbers<[2], [1], [1], [2], [0, 0, 0, 1, 1, 2], [0], [0]>} : vector<2x1x8xbf16>, vector<2x8x64xbf16>, vector<2x1x64xf32> -> vector<2x1x64xf32>
    "tpu.trace_stop"() : () -> ()
    %565 = vector.shape_cast %564 : vector<2x1x64xf32> to vector<2x64xf32>
    %566 = arith.truncf %565 : vector<2x64xf32> to vector<2x64xbf16>
    %c0_226 = arith.constant 0 : index
    %c0_227 = arith.constant 0 : index
    %567 = vector.load %arg6[%c0_226, %c0_227] : memref<64x512xbf16, #tpu.memory_space<vmem>>, vector<64x512xbf16>
    %cst_228 = arith.constant dense<0.000000e+00> : vector<2x512xf32>
    %568 = tpu.matmul %566, %567, %cst_228 {dimension_numbers = #tpu.dot_dimension_numbers<[1], [0], [0], [1], [0, 0, 1, 1], [], []>} : vector<2x64xbf16>, vector<64x512xbf16>, vector<2x512xf32> -> vector<2x512xf32>
    %569 = arith.index_cast %c6_i32 : i32 to index
    %c0_229 = arith.constant 0 : index
    %c0_230 = arith.constant 0 : index
    %570 = vector.load %arg17[%569, %c0_229, %c0_230] : memref<8x2x384xf32, #tpu.memory_space<vmem>>, vector<1x2x384xf32>
    %571 = vector.shape_cast %570 : vector<1x2x384xf32> to vector<2x384xf32>
    %572 = vector.extract_strided_slice %568 {offsets = [0, 0], sizes = [2, 384], strides = [1, 1]} : vector<2x512xf32> to vector<2x384xf32>
    %573 = arith.addf %571, %572 : vector<2x384xf32>
    %574 = vector.extract_strided_slice %573 {offsets = [0, 0], sizes = [2, 128], strides = [1, 1]} : vector<2x384xf32> to vector<2x128xf32>
    %575 = vector.extract_strided_slice %536 {offsets = [0, 0], sizes = [2, 128], strides = [1, 1]} : vector<2x384xf32> to vector<2x128xf32>
    %576 = arith.addf %574, %575 : vector<2x128xf32>
    %577 = arith.negf %576 : vector<2x128xf32>
    %578 = math.exp %577 : vector<2x128xf32>
    %cst_231 = arith.constant 1.000000e+00 : f32
    %579 = vector.broadcast %cst_231 : f32 to vector<2x128xf32>
    %580 = arith.addf %579, %578 : vector<2x128xf32>
    %581 = arith.divf %579, %580 : vector<2x128xf32>
    %582 = vector.extract_strided_slice %573 {offsets = [0, 128], sizes = [2, 128], strides = [1, 1]} : vector<2x384xf32> to vector<2x128xf32>
    %583 = vector.extract_strided_slice %536 {offsets = [0, 128], sizes = [2, 128], strides = [1, 1]} : vector<2x384xf32> to vector<2x128xf32>
    %584 = arith.addf %582, %583 : vector<2x128xf32>
    %585 = arith.negf %584 : vector<2x128xf32>
    %586 = math.exp %585 : vector<2x128xf32>
    %cst_232 = arith.constant 1.000000e+00 : f32
    %587 = vector.broadcast %cst_232 : f32 to vector<2x128xf32>
    %588 = arith.addf %587, %586 : vector<2x128xf32>
    %589 = arith.divf %587, %588 : vector<2x128xf32>
    %590 = vector.extract_strided_slice %573 {offsets = [0, 256], sizes = [2, 128], strides = [1, 1]} : vector<2x384xf32> to vector<2x128xf32>
    %591 = vector.extract_strided_slice %536 {offsets = [0, 256], sizes = [2, 128], strides = [1, 1]} : vector<2x384xf32> to vector<2x128xf32>
    %592 = arith.addf %591, %21 : vector<2x128xf32>
    %593 = arith.mulf %581, %592 : vector<2x128xf32>
    %594 = arith.addf %590, %593 : vector<2x128xf32>
    %595 = math.tanh %594 : vector<2x128xf32>
    %cst_233 = arith.constant 1.000000e+00 : f32
    %596 = vector.broadcast %cst_233 : f32 to vector<2x128xf32>
    %597 = arith.subf %596, %589 : vector<2x128xf32>
    %598 = arith.mulf %597, %595 : vector<2x128xf32>
    %599 = arith.mulf %589, %515 : vector<2x128xf32>
    %600 = arith.addf %598, %599 : vector<2x128xf32>
    %601 = arith.index_cast %c6_i32 : i32 to index
    %c0_234 = arith.constant 0 : index
    %c0_235 = arith.constant 0 : index
    %602 = vector.load %arg18[%601, %c0_234, %c0_235] : memref<8x2x128xf32, #tpu.memory_space<vmem>>, vector<1x2x128xf32>
    %603 = vector.shape_cast %602 : vector<1x2x128xf32> to vector<2x128xf32>
    %604 = vector.extract_strided_slice %568 {offsets = [0, 384], sizes = [2, 128], strides = [1, 1]} : vector<2x512xf32> to vector<2x128xf32>
    %605 = arith.addf %603, %604 : vector<2x128xf32>
    %606 = arith.truncf %600 : vector<2x128xf32> to vector<2x128xbf16>
    %c0_236 = arith.constant 0 : index
    %c0_237 = arith.constant 0 : index
    %607 = vector.load %arg9[%c0_236, %c0_237] : memref<128x128xbf16, #tpu.memory_space<vmem>>, vector<128x128xbf16>
    %cst_238 = arith.constant dense<0.000000e+00> : vector<2x128xf32>
    %608 = tpu.matmul %606, %607, %cst_238 {dimension_numbers = #tpu.dot_dimension_numbers<[1], [0], [0], [1], [0, 0, 1, 1], [], []>} : vector<2x128xbf16>, vector<128x128xbf16>, vector<2x128xf32> -> vector<2x128xf32>
    %609 = arith.addf %605, %608 : vector<2x128xf32>
    %610 = arith.index_cast %c6_i32 : i32 to index
    %c0_239 = arith.constant 0 : index
    %c0_240 = arith.constant 0 : index
    %611 = vector.load %arg14[%610, %c0_239, %c0_240] : memref<8x2x128xf32, #tpu.memory_space<vmem>>, vector<1x2x128xf32>
    %612 = vector.shape_cast %611 : vector<1x2x128xf32> to vector<2x128xf32>
    %613 = vector.shape_cast %600 : vector<2x128xf32> to vector<1x2x128xf32>
    tpu.vector_store %arg14[%610, %c0_239, %c0_240], %613 {strides = array<i32>} : memref<8x2x128xf32, #tpu.memory_space<vmem>>, vector<1x2x128xf32>,
    %614 = arith.index_cast %c6_i32 : i32 to index
    %c0_241 = arith.constant 0 : index
    %c0_242 = arith.constant 0 : index
    %615 = vector.load %arg15[%614, %c0_241, %c0_242] : memref<8x2x128xf32, #tpu.memory_space<vmem>>, vector<1x2x128xf32>
    %616 = vector.shape_cast %615 : vector<1x2x128xf32> to vector<2x128xf32>
    %617 = vector.shape_cast %609 : vector<2x128xf32> to vector<1x2x128xf32>
    tpu.vector_store %arg15[%614, %c0_241, %c0_242], %617 {strides = array<i32>} : memref<8x2x128xf32, #tpu.memory_space<vmem>>, vector<1x2x128xf32>,
    %c7_i32 = arith.constant 7 : i32
    %618 = arith.truncf %600 : vector<2x128xf32> to vector<2x128xbf16>
    %c0_243 = arith.constant 0 : index
    %c0_244 = arith.constant 0 : index
    %619 = vector.load %arg5[%c0_243, %c0_244] : memref<128x512xbf16, #tpu.memory_space<vmem>>, vector<128x512xbf16>
    %cst_245 = arith.constant dense<0.000000e+00> : vector<2x512xf32>
    %620 = tpu.matmul %618, %619, %cst_245 {dimension_numbers = #tpu.dot_dimension_numbers<[1], [0], [0], [1], [0, 0, 1, 1], [], []>} : vector<2x128xbf16>, vector<128x512xbf16>, vector<2x512xf32> -> vector<2x512xf32>
    %621 = vector.extract_strided_slice %620 {offsets = [0, 0], sizes = [2, 384], strides = [1, 1]} : vector<2x512xf32> to vector<2x384xf32>
    %622 = vector.extract_strided_slice %620 {offsets = [0, 384], sizes = [2, 128], strides = [1, 1]} : vector<2x512xf32> to vector<2x128xf32>
    %623 = vector.shape_cast %622 : vector<2x128xf32> to vector<2x1x128xf32>
    %624 = vector.broadcast %623 : vector<2x1x128xf32> to vector<2x8x128xf32>
    %625 = arith.addf %624, %17 : vector<2x8x128xf32>
    %626 = math.tanh %625 : vector<2x8x128xf32>
    %627 = vector.shape_cast %626 : vector<2x8x128xf32> to vector<16x128xf32>
    %628 = arith.truncf %627 : vector<16x128xf32> to vector<16x128xbf16>
    %c0_246 = arith.constant 0 : index
    %c0_247 = arith.constant 0 : index
    %629 = vector.load %arg10[%c0_246, %c0_247] : memref<128x1xbf16, #tpu.memory_space<vmem>>, vector<128x1xbf16>
    %cst_248 = arith.constant dense<0.000000e+00> : vector<16x1xf32>
    %630 = tpu.matmul %628, %629, %cst_248 {dimension_numbers = #tpu.dot_dimension_numbers<[1], [0], [0], [1], [0, 0, 1, 1], [], []>} : vector<16x128xbf16>, vector<128x1xbf16>, vector<16x1xf32> -> vector<16x1xf32>
    %631 = vector.shape_cast %630 : vector<16x1xf32> to vector<2x8xf32>
    %cst_249 = arith.constant 0.000000e+00 : f32
    %632 = vector.broadcast %cst_249 : f32 to vector<2x8xf32>
    %633 = arith.cmpf ogt, %18, %632 : vector<2x8xf32>
    %cst_250 = arith.constant -1.000000e+09 : f32
    %634 = vector.broadcast %cst_250 : f32 to vector<2x8xf32>
    %635 = arith.select %633, %631, %634 : vector<2x8xi1>, vector<2x8xf32>
    %cst_251 = arith.constant dense<0xFF800000> : vector<2xf32>
    %636 = vector.multi_reduction <maximumf>, %635, %cst_251 [1] : vector<2x8xf32> to vector<2xf32>
    %637 = vector.shape_cast %636 : vector<2xf32> to vector<2x1xf32>
    %638 = vector.broadcast %637 : vector<2x1xf32> to vector<2x8xf32>
    %639 = arith.subf %635, %638 : vector<2x8xf32>
    %640 = math.exp %639 : vector<2x8xf32>
    %cst_252 = arith.constant dense<0.000000e+00> : vector<2xf32>
    %641 = vector.multi_reduction <add>, %640, %cst_252 [1] : vector<2x8xf32> to vector<2xf32>
    %642 = vector.shape_cast %641 : vector<2xf32> to vector<2x1xf32>
    %643 = tpu.reciprocal %642 {approx = true} : vector<2x1xf32> -> vector<2x1xf32>
    %644 = vector.broadcast %643 : vector<2x1xf32> to vector<2x8xf32>
    %645 = arith.mulf %640, %644 : vector<2x8xf32>
    %646 = vector.shape_cast %645 : vector<2x8xf32> to vector<2x1x8xf32>
    %647 = arith.truncf %646 : vector<2x1x8xf32> to vector<2x1x8xbf16>
    %c0_253 = arith.constant 0 : index
    %c0_254 = arith.constant 0 : index
    %c0_255 = arith.constant 0 : index
    %648 = vector.load %arg1[%c0_253, %c0_254, %c0_255] : memref<2x8x64xbf16, #tpu.memory_space<vmem>>, vector<2x8x64xbf16>
    "tpu.trace_start"() <{level = 10 : i32, message = "bqs,bsd->bqd"}> : () -> ()
    %cst_256 = arith.constant dense<0.000000e+00> : vector<2x1x64xf32>
    %649 = tpu.matmul %647, %648, %cst_256 {dimension_numbers = #tpu.dot_dimension_numbers<[2], [1], [1], [2], [0, 0, 0, 1, 1, 2], [0], [0]>} : vector<2x1x8xbf16>, vector<2x8x64xbf16>, vector<2x1x64xf32> -> vector<2x1x64xf32>
    "tpu.trace_stop"() : () -> ()
    %650 = vector.shape_cast %649 : vector<2x1x64xf32> to vector<2x64xf32>
    %651 = arith.truncf %650 : vector<2x64xf32> to vector<2x64xbf16>
    %c0_257 = arith.constant 0 : index
    %c0_258 = arith.constant 0 : index
    %652 = vector.load %arg6[%c0_257, %c0_258] : memref<64x512xbf16, #tpu.memory_space<vmem>>, vector<64x512xbf16>
    %cst_259 = arith.constant dense<0.000000e+00> : vector<2x512xf32>
    %653 = tpu.matmul %651, %652, %cst_259 {dimension_numbers = #tpu.dot_dimension_numbers<[1], [0], [0], [1], [0, 0, 1, 1], [], []>} : vector<2x64xbf16>, vector<64x512xbf16>, vector<2x512xf32> -> vector<2x512xf32>
    %654 = arith.index_cast %c7_i32 : i32 to index
    %c0_260 = arith.constant 0 : index
    %c0_261 = arith.constant 0 : index
    %655 = vector.load %arg17[%654, %c0_260, %c0_261] : memref<8x2x384xf32, #tpu.memory_space<vmem>>, vector<1x2x384xf32>
    %656 = vector.shape_cast %655 : vector<1x2x384xf32> to vector<2x384xf32>
    %657 = vector.extract_strided_slice %653 {offsets = [0, 0], sizes = [2, 384], strides = [1, 1]} : vector<2x512xf32> to vector<2x384xf32>
    %658 = arith.addf %656, %657 : vector<2x384xf32>
    %659 = vector.extract_strided_slice %658 {offsets = [0, 0], sizes = [2, 128], strides = [1, 1]} : vector<2x384xf32> to vector<2x128xf32>
    %660 = vector.extract_strided_slice %621 {offsets = [0, 0], sizes = [2, 128], strides = [1, 1]} : vector<2x384xf32> to vector<2x128xf32>
    %661 = arith.addf %659, %660 : vector<2x128xf32>
    %662 = arith.negf %661 : vector<2x128xf32>
    %663 = math.exp %662 : vector<2x128xf32>
    %cst_262 = arith.constant 1.000000e+00 : f32
    %664 = vector.broadcast %cst_262 : f32 to vector<2x128xf32>
    %665 = arith.addf %664, %663 : vector<2x128xf32>
    %666 = arith.divf %664, %665 : vector<2x128xf32>
    %667 = vector.extract_strided_slice %658 {offsets = [0, 128], sizes = [2, 128], strides = [1, 1]} : vector<2x384xf32> to vector<2x128xf32>
    %668 = vector.extract_strided_slice %621 {offsets = [0, 128], sizes = [2, 128], strides = [1, 1]} : vector<2x384xf32> to vector<2x128xf32>
    %669 = arith.addf %667, %668 : vector<2x128xf32>
    %670 = arith.negf %669 : vector<2x128xf32>
    %671 = math.exp %670 : vector<2x128xf32>
    %cst_263 = arith.constant 1.000000e+00 : f32
    %672 = vector.broadcast %cst_263 : f32 to vector<2x128xf32>
    %673 = arith.addf %672, %671 : vector<2x128xf32>
    %674 = arith.divf %672, %673 : vector<2x128xf32>
    %675 = vector.extract_strided_slice %658 {offsets = [0, 256], sizes = [2, 128], strides = [1, 1]} : vector<2x384xf32> to vector<2x128xf32>
    %676 = vector.extract_strided_slice %621 {offsets = [0, 256], sizes = [2, 128], strides = [1, 1]} : vector<2x384xf32> to vector<2x128xf32>
    %677 = arith.addf %676, %21 : vector<2x128xf32>
    %678 = arith.mulf %666, %677 : vector<2x128xf32>
    %679 = arith.addf %675, %678 : vector<2x128xf32>
    %680 = math.tanh %679 : vector<2x128xf32>
    %cst_264 = arith.constant 1.000000e+00 : f32
    %681 = vector.broadcast %cst_264 : f32 to vector<2x128xf32>
    %682 = arith.subf %681, %674 : vector<2x128xf32>
    %683 = arith.mulf %682, %680 : vector<2x128xf32>
    %684 = arith.mulf %674, %600 : vector<2x128xf32>
    %685 = arith.addf %683, %684 : vector<2x128xf32>
    %686 = arith.index_cast %c7_i32 : i32 to index
    %c0_265 = arith.constant 0 : index
    %c0_266 = arith.constant 0 : index
    %687 = vector.load %arg18[%686, %c0_265, %c0_266] : memref<8x2x128xf32, #tpu.memory_space<vmem>>, vector<1x2x128xf32>
    %688 = vector.shape_cast %687 : vector<1x2x128xf32> to vector<2x128xf32>
    %689 = vector.extract_strided_slice %653 {offsets = [0, 384], sizes = [2, 128], strides = [1, 1]} : vector<2x512xf32> to vector<2x128xf32>
    %690 = arith.addf %688, %689 : vector<2x128xf32>
    %691 = arith.truncf %685 : vector<2x128xf32> to vector<2x128xbf16>
    %c0_267 = arith.constant 0 : index
    %c0_268 = arith.constant 0 : index
    %692 = vector.load %arg9[%c0_267, %c0_268] : memref<128x128xbf16, #tpu.memory_space<vmem>>, vector<128x128xbf16>
    %cst_269 = arith.constant dense<0.000000e+00> : vector<2x128xf32>
    %693 = tpu.matmul %691, %692, %cst_269 {dimension_numbers = #tpu.dot_dimension_numbers<[1], [0], [0], [1], [0, 0, 1, 1], [], []>} : vector<2x128xbf16>, vector<128x128xbf16>, vector<2x128xf32> -> vector<2x128xf32>
    %694 = arith.addf %690, %693 : vector<2x128xf32>
    %695 = arith.index_cast %c7_i32 : i32 to index
    %c0_270 = arith.constant 0 : index
    %c0_271 = arith.constant 0 : index
    %696 = vector.load %arg14[%695, %c0_270, %c0_271] : memref<8x2x128xf32, #tpu.memory_space<vmem>>, vector<1x2x128xf32>
    %697 = vector.shape_cast %696 : vector<1x2x128xf32> to vector<2x128xf32>
    %698 = vector.shape_cast %685 : vector<2x128xf32> to vector<1x2x128xf32>
    tpu.vector_store %arg14[%695, %c0_270, %c0_271], %698 {strides = array<i32>} : memref<8x2x128xf32, #tpu.memory_space<vmem>>, vector<1x2x128xf32>,
    %699 = arith.index_cast %c7_i32 : i32 to index
    %c0_272 = arith.constant 0 : index
    %c0_273 = arith.constant 0 : index
    %700 = vector.load %arg15[%699, %c0_272, %c0_273] : memref<8x2x128xf32, #tpu.memory_space<vmem>>, vector<1x2x128xf32>
    %701 = vector.shape_cast %700 : vector<1x2x128xf32> to vector<2x128xf32>
    %702 = vector.shape_cast %694 : vector<2x128xf32> to vector<1x2x128xf32>
    tpu.vector_store %arg15[%699, %c0_272, %c0_273], %702 {strides = array<i32>} : memref<8x2x128xf32, #tpu.memory_space<vmem>>, vector<1x2x128xf32>,
    %c8_i32 = arith.constant 8 : i32
    %c0_274 = arith.constant 0 : index
    %c0_275 = arith.constant 0 : index
    %703 = vector.load %arg16[%c0_274, %c0_275] : memref<2x128xf32, #tpu.memory_space<vmem>>, vector<2x128xf32>
    tpu.vector_store %arg16[%c0_274, %c0_275], %685 {strides = array<i32>} : memref<2x128xf32, #tpu.memory_space<vmem>>, vector<2x128xf32>,
    return
  }
}

</mosaic_0001>

<bundles_post_ra>
// kernel: encoder_decoder_forward.5
= control target key start
LH: loop header
LB: loop body
LE: loop exit
PB: predicated region body
PF: predicated region fallthrough
CT: control target
= control target key end

     0   :  { %v134_v0 = vmov 0.0   ;;  %vm135_vm0 = vmmov 0   ;;  %vm56_vm1 = vcmask 523264   ;;  %s177_s1 = inlined_call_operand.vmem [shape: bf16[64,128], index: 1, kind: input, shape index: {}]   ;;  %s178_s0 = inlined_call_operand.vmem [shape: f32[2,64], index: 0, kind: input, shape index: {}]   ;;  %s179_s2 = inlined_call_operand.vmem [shape: f32[1,128], index: 2, kind: input, shape index: {}]   ;;  %s180_s3 = inlined_call_operand.vmem [shape: f32[2,128], index: 3, kind: output, shape index: {}]  }
   0x1   :  { %116 = vmatprep.subr.bf16.mxu0 %v134_v0  ;;  %v130_v1 = vld [vmem:[%s177_s1] sm:$0xff]   ;;  %124 = vmatprep.mubr.msk.bf16.mxu0 %vm135_vm0, %v134_v0  ;;  %v131_v2 = vld [vmem:[%s177_s1 + $0x8] sm:$0xff]   ;;  %v132_v3 = vld [vmem:[%s177_s1 + $0x10] sm:$0xff]  }
   0x2   :  { %117 = vmatpush3.bf16.msra.mxu0 %v130_v1  ;;  %v133_v4 = vld [vmem:[%s177_s1 + $0x18] sm:$0xff]   ;;  %v15_v5 = vld [vmem:[%s178_s0] sm:$0x3] }
   0x3   :  { %118 = vmatprep.subr.bf16.mxu0 %v134_v0  ;;  %v16_v6 = vpack.c.bf16 %v15_v5, %v15_v5  ;;  %v105_v7 = vld [vmem:[%s179_s2] ss:$0 sm:$0xff] }
   0x6   :  { %119 = vmatpush3.bf16.msra.mxu0 %v131_v2 }
   0x7   :  { %120 = vmatprep.subr.bf16.mxu0 %v134_v0 }
   0xa   :  { %121 = vmatpush3.bf16.msra.mxu0 %v132_v3 }
   0xb   :  { %122 = vmatprep.subr.bf16.mxu0 %v134_v0 }
   0xe   :  { %123 = vmatpush3.bf16.msra.mxu0 %v133_v4 }
  0x11   :  { %125 = vmatmul.mubr.msk.bf16.vlgmr.msra.gmra.mrb[0].mxu0 %vm56_vm1, %v16_v6 }
  0xe4   :  { %v94_v8 = vpop.f32.mrb[0].mxu0 }
  0xe5   :  { %v95_v9 = vadd.f32 %v105_v7, %v94_v8  ;;  %v126_v10 = vpop.f32.mrb[1].mxu0 }
  0xe6   :  { %v97_v11 = vpop.f32.mrb[2].mxu0 }
  0xe7   :  { %100 = vst [vmem:[%s180_s3] sm:$0x3] %v95_v9  ;;  %v127_v12 = vpop.f32.mrb[3].mxu0 }

// kernel: encoder_decoder_forward.6
= control target key start
LH: loop header
LB: loop body
LE: loop exit
PB: predicated region body
PF: predicated region fallthrough
CT: control target
= control target key end

     0   :  { %v126_v0 = vmov 0.0   ;;  %vm127_vm0 = vmmov 0   ;;  %vm47_vm1 = vcmask 523264   ;;  %s167_s1 = inlined_call_operand.vmem [shape: bf16[64,128], index: 1, kind: input, shape index: {}]   ;;  %s168_s0 = inlined_call_operand.vmem [shape: f32[16,64], index: 0, kind: input, shape index: {}]   ;;  %s169_s2 = inlined_call_operand.vmem [shape: f32[16,128], index: 2, kind: output, shape index: {}]  }
   0x1   :  { %108 = vmatprep.subr.bf16.mxu0 %v126_v0  ;;  %v122_v1 = vld [vmem:[%s167_s1] sm:$0xff]   ;;  %116 = vmatprep.mubr.msk.bf16.mxu0 %vm127_vm0, %v126_v0  ;;  %v123_v2 = vld [vmem:[%s167_s1 + $0x8] sm:$0xff]   ;;  %v124_v3 = vld [vmem:[%s167_s1 + $0x10] sm:$0xff]  }
   0x2   :  { %109 = vmatpush3.bf16.msra.mxu0 %v122_v1  ;;  %v125_v4 = vld [vmem:[%s167_s1 + $0x18] sm:$0xff]   ;;  %v12_v5 = vld [vmem:[%s168_s0] sm:$0xff]  ;;  %v13_v6 = vld [vmem:[%s168_s0 + $0x8] sm:$0xff] }
   0x3   :  { %110 = vmatprep.subr.bf16.mxu0 %v126_v0  ;;  %v14_v7 = vpack.c.bf16 %v13_v6, %v12_v5 }
   0x6   :  { %111 = vmatpush3.bf16.msra.mxu0 %v123_v2 }
   0x7   :  { %112 = vmatprep.subr.bf16.mxu0 %v126_v0 }
   0xa   :  { %113 = vmatpush3.bf16.msra.mxu0 %v124_v3 }
   0xb   :  { %114 = vmatprep.subr.bf16.mxu0 %v126_v0 }
   0xe   :  { %115 = vmatpush3.bf16.msra.mxu0 %v125_v4 }
  0x11   :  { %117 = vmatmul.mubr.msk.bf16.vlgmr.msra.gmra.mrb[0].mxu0 %vm47_vm1, %v14_v7 }
  0xe4   :  { %v85_v8 = vpop.f32.mrb[0].mxu0 }
  0xe5   :  { %92 = vst [vmem:[%s169_s2] sm:$0xff] %v85_v8  ;;  %v118_v9 = vpop.f32.mrb[1].mxu0 }
  0xe6   :  { %v88_v10 = vpop.f32.mrb[2].mxu0 }
  0xe7   :  { %93 = vst [vmem:[%s169_s2 + $0x8] sm:$0xff] %v88_v10  ;;  %v119_v11 = vpop.f32.mrb[3].mxu0 }

// kernel: encoder_decoder_forward.4
= control target key start
LH: loop header
LB: loop body
LE: loop exit
PB: predicated region body
PF: predicated region fallthrough
CT: control target
= control target key end

     0   :  { %s3910_s27 = smov 0   ;;  %s4464_s0 = inlined_call_operand.vmem [shape: bf16[2,8,2,32], index: 0, kind: input, shape index: {}]   ;;  %s4465_s1 = inlined_call_operand.vmem [shape: f32[8,2,1], index: 1, kind: input, shape index: {}]   ;;  %s4466_s2 = inlined_call_operand.vmem [shape: f32[2,128], index: 2, kind: input, shape index: {}]   ;;  %s4467_s3 = inlined_call_operand.vmem [shape: bf16[2,32,384], index: 3, kind: input, shape index: {}]   ;;  %s4468_s4 = inlined_call_operand.vmem [shape: bf16[2,128,384], index: 4, kind: input, shape index: {}]   ;;  %s4469_s5 = inlined_call_operand.vmem [shape: f32[2,1,384], index: 5, kind: input, shape index: {}]   ;;  %s4470_s6 = inlined_call_operand.vmem [shape: f32[2,1,128], index: 6, kind: input, shape index: {}]   ;;  %s4471_s7 = inlined_call_operand.vmem [shape: f32[2,8,2,128], index: 7, kind: output, shape index: {0}]   ;;  %s4472_s8 = inlined_call_operand.vmem [shape: f32[2,2,128], index: 8, kind: output, shape index: {1}]  }
   0x1 LB: > { %s3145_s28 = sadd.s32 4294967295, %s3858_s27   ;;  %p3149_p0 = scmp.ge.s32.totalorder %s3858_s27, 1  ;;  %s3858_s27 = sphi %s3910_s27, %s19_s27  }
   0x2   : > { %p301_p1 = scmp.lt.s32.totalorder %s3858_s27, 3 }
   0x4   : > { %p302_p2 = pnand %p3149_p0, %p301_p1 }
   0x5   : > { %p355_p3 = scmp.lt.s32.totalorder (!%p302_p2), %s3145_s28, 1  ;;  %v404_v0 = vlaneseq (!%p302_p2)  ;;  %v3860_v1 = vmov (!%p302_p2), 0.0   ;;  %v3861_v2 = vmov (!%p302_p2), 0   ;;  %v3862_v3 = vmov (!%p302_p2), 1966171168  }
   0x6   : > { %305 = sbr.rel (%p302_p2) target bundleno = 2184 (0x888), region = 48  ;;  %3465 = vmatprep.subr.bf16.mxu1 (!%p302_p2), %v3860_v1  ;;  %544 = vmatprep.mubr.bf16.mxu0 (!%p302_p2), %v3861_v2  ;;  %v432_v4 = vunpack.c.l.s4 (!%p302_p2), %v3862_v3  ;;  %v966_v5 = vld [vmem:[%s4465_s1] sm:$0x3] (!%p302_p2)  ;;  %vm3863_vm0 = vmmov (!%p302_p2), 0   ;;  %v3942_v11 = vld [vmem:[%s4465_s1 + $0x4] sm:$0x3] (!%p302_p2) }
   0x7   : > { %3469 = vmatprep.mubr.msk.bf16.mxu1 (!%p302_p2), %vm3863_vm0, %v3860_v1  ;;  %3649 = vset.pattern.permute.xlu0 (!%p302_p2), %v3861_v2  ;;  %v973_v6 = vsub.f32 (!%p302_p2), 1.0, %v966_v5  ;;  %v3931_v7 = vshrl.u32 (!%p302_p2), %v404_v0, 7  ;;  %v3949_v20 = vld [vmem:[%s4465_s1 + $0x6] sm:$0x3] (!%p302_p2)  ;;  %v3967_v36 = vld [vmem:[%s4465_s1 + $0x8] sm:$0x3] (!%p302_p2) }
   0x8   : > { %969 = vperm.xlu0 (!%p302_p2), %3649, %v966_v5   ;;  %3650 = vset.pattern.permute.xlu1 (!%p302_p2), %v3861_v2  ;;  %v433_v8 = vunpack.c.0.s8 (!%p302_p2), %v432_v4  ;;  %v3973_v40 = vld [vmem:[%s4465_s1 + $0xa] sm:$0x3] (!%p302_p2)  ;;  %vm508_vm1 = vcmask (!%p302_p2), 261120   ;;  %v1552_v45 = vsub.f32 (!%p302_p2), 1.0, %v3942_v11  ;;  %v1842_v47 = vsub.f32 (!%p302_p2), 1.0, %v3949_v20 }
   0x9   : > { %v3991_v48 = vld [vmem:[%s4465_s1 + $0xc] sm:$0x3] (!%p302_p2)  ;;  %v4006_v51 = vld [vmem:[%s4465_s1 + $0xe] sm:$0x3] (!%p302_p2)  ;;  %v3217_v58 = vld [vmem:[%s4465_s1 + $0x2] sm:$0x3] (!%p302_p2) }
   0xa   : > { %v436_v16 = vsub.s32 (!%p302_p2), %v433_v8, %v3931_v7  ;;  %v1262_v59 = vsub.f32 (!%p302_p2), 1.0, %v3217_v58  ;;  %1258 = vperm.xlu1 (!%p302_p2), %3650, %v3217_v58  }
   0xc   : > { %976 = vperm.xlu0 (!%p302_p2), %3649, %v973_v6  }
   0xd   : > { %s4474_s28 = smov (!%p355_p3, %s3145_s28), 1 }
   0xe   : > { %s3633_s9 = smul.u32 48, %s4474_s28  ;;  %s3150_s10 = sshll.u32 %s4474_s28, 3  ;;  %1265 = vperm.xlu1 %3650, %v1262_v59  }
   0xf   : > { %s358_s13 = scalar_lea.vmem %s4464_s0, %s3150_s10  ;;  %s3634_s19 = smul.u32 192, %s4474_s28 }
  0x10   : > { %s363_s16 = scalar_lea.vmem %s4467_s3, %s3633_s9  ;;  %v386_v9 = vld [vmem:[%s358_s13] sm:$0x1]  ;;  %v387_v10 = vld [vmem:[%s358_s13 + $0x1] sm:$0x1]  ;;  %v388_v13 = vld [vmem:[%s358_s13 + $0x2] sm:$0x1]  ;;  %1548 = vperm.xlu0 %3649, %v3942_v11   ;;  %s4131_s23 = scalar_lea.vmem %s4470_s6, %s4474_s28 }
  0x11   : > { %v3651_v12 = vld [vmem:[%s363_s16 + $0x4] ss:$12 sps:$4 sm:$0xff]   ;;  %v3653_v14 = vld [vmem:[%s363_s16] ss:$12 sps:$4 sm:$0xff]   ;;  %v427_v15 = vcombine.low %v386_v9, %v387_v10  ;;  %v3654_v17 = vld [vmem:[%s363_s16 + $0x8] ss:$12 sps:$4 sm:$0xff]   ;;  %s3954_s24 = scalar_lea.vmem %s4468_s4, %s3634_s19 }
  0x12   : > { %512 = vmatprep.subr.bf16.mxu0 %v3651_v12  ;;  %v3655_v18 = vld [vmem:[%s363_s16 + $0x1c] ss:$12 sps:$4 sm:$0xff]   ;;  %v3657_v19 = vld [vmem:[%s363_s16 + $0x18] ss:$12 sps:$4 sm:$0xff]   ;;  %3466 = vmatpush3.bf16.msra.mxu1 %v3654_v17  ;;  %v3658_v21 = vld [vmem:[%s363_s16 + $0x20] ss:$12 sps:$4 sm:$0xff]  }
  0x13   : > { %513 = vmatpush1.bf16.msra.mxu0 %v3653_v14  ;;  %v389_v22 = vld [vmem:[%s358_s13 + $0x3] sm:$0x1]  ;;  %3467 = vmatprep.subr.bf16.mxu1 %v3860_v1  ;;  %v390_v23 = vld [vmem:[%s358_s13 + $0x4] sm:$0x1]  ;;  %v391_v24 = vld [vmem:[%s358_s13 + $0x5] sm:$0x1]  ;;  %v437_v27 = vrot.slane %v427_v15, %v436_v16 }
  0x14   : > { %514 = vmatprep.subr.bf16.mxu0 %v3655_v18  ;;  %v392_v25 = vld [vmem:[%s358_s13 + $0x6] sm:$0x1]  ;;  %v428_v26 = vcombine.low %v388_v13, %v389_v22  ;;  %v393_v28 = vld [vmem:[%s358_s13 + $0x7] sm:$0x1]  ;;  %v429_v29 = vcombine.low %v390_v23, %v391_v24  ;;  %1838 = vperm.xlu0 %3649, %v3949_v20   ;;  %v3976_v41 = vld [vmem:[%s3954_s24] ss:$12 sps:$4 sm:$0xff]  }
  0x15   : > { %v430_v30 = vcombine.low %v392_v25, %v393_v28  ;;  %v3959_v32 = vld [vmem:[%s3954_s24 + $0x4] ss:$12 sps:$4 sm:$0xff]   ;;  %v3979_v43 = vld [vmem:[%s3954_s24 + $0x1c] ss:$12 sps:$4 sm:$0xff]   ;;  %v3684_v49 = vld [vmem:[%s3954_s24 + $0x20] ss:$12 sps:$4 sm:$0xff]   ;;  %1555 = vperm.xlu1 %3650, %v1552_v45  }
  0x16   : > { %v444_v31 = vrot.slane %v428_v26, %v436_v16  ;;  %3468 = vmatpush3.bf16.msra.mxu1 %v3658_v21  ;;  %v451_v33 = vrot.slane %v429_v29, %v436_v16  ;;  %v3680_v44 = vld [vmem:[%s3954_s24 + $0x8] ss:$12 sps:$4 sm:$0xff]   ;;  %v3985_v46 = vld [vmem:[%s3954_s24 + $0x18] ss:$12 sps:$4 sm:$0xff]   ;;  %v4009_v52 = vld [vmem:[%s3954_s24 + $0x30] ss:$12 sps:$4 sm:$0xff]  }
  0x17   : > { %515 = vmatpush1.bf16.msra.mxu0 %v3657_v19  ;;  %v458_v34 = vrot.slane %v430_v30, %v436_v16  ;;  %3473 = vmatprep.subr.bf16.mxu1 %v3860_v1  ;;  %v3997_v50 = vld [vmem:[%s3954_s24 + $0x34] ss:$12 sps:$4 sm:$0xff]   ;;  %v3685_v53 = vld [vmem:[%s3954_s24 + $0x38] ss:$12 sps:$4 sm:$0xff]   ;;  %v3686_v57 = vld [vmem:[%s3954_s24 + $0x50] ss:$12 sps:$4 sm:$0xff]  }
  0x18   : > { %v459_v35 = vcombine.low %v437_v27, %v444_v31  ;;  %858 = vmatprep.subr.bf16.mxu0 %v3959_v32  ;;  %2128 = vperm.xlu0 %3649, %v3967_v36   ;;  %v4016_v54 = vld [vmem:[%s3954_s24 + $0x4c] ss:$12 sps:$4 sm:$0xff]   ;;  %v4020_v55 = vld [vmem:[%s3954_s24 + $0x48] ss:$12 sps:$4 sm:$0xff]   ;;  %v4023_v56 = vld [vmem:[%s3954_s24 + $0x64] ss:$12 sps:$4 sm:$0xff]  }
  0x19   : > { %v460_v37 = vcombine.low %v451_v33, %v458_v34  ;;  %v4034_v60 = vld [vmem:[%s3954_s24 + $0x60] ss:$12 sps:$4 sm:$0xff]   ;;  %v3687_v61 = vld [vmem:[%s3954_s24 + $0x68] ss:$12 sps:$4 sm:$0xff]   ;;  %v4044_v63 = vld [vmem:[%s3954_s24 + $0x78] ss:$12 sps:$4 sm:$0xff]   ;;  %1845 = vperm.xlu1 %3650, %v1842_v47  }
  0x1a   : > { %v467_v38 = vrot.slane %v459_v35, %v436_v16  ;;  %v4038_v62 = vld [vmem:[%s3954_s24 + $0x7c] ss:$12 sps:$4 sm:$0xff]   ;;  %v3688_v0 = vld [vmem:[%s3954_s24 + $0x80] ss:$12 sps:$4 sm:$0xff]   ;;  %v3689_v5 = vld [vmem:[%s3954_s24 + $0x98] ss:$12 sps:$4 sm:$0xff]  }
  0x1b   : > { %v474_v39 = vrot.slane %v460_v37, %v436_v16  ;;  %v4048_v3 = vld [vmem:[%s3954_s24 + $0x94] ss:$12 sps:$4 sm:$0xff]   ;;  %v4054_v4 = vld [vmem:[%s3954_s24 + $0x90] ss:$12 sps:$4 sm:$0xff]   ;;  %v4058_v6 = vld [vmem:[%s3954_s24 + $0xac] ss:$12 sps:$4 sm:$0xff]  }
  0x1c   : > { %2418 = vperm.xlu0 %3649, %v3973_v40   ;;  %v4064_v8 = vld [vmem:[%s3954_s24 + $0xa8] ss:$12 sps:$4 sm:$0xff]   ;;  %v4069_v9 = vld [vmem:[%s4466_s2] sm:$0x3]  ;;  %v3690_v10 = vld [vmem:[%s3954_s24 + $0xb0] ss:$12 sps:$4 sm:$0xff]  }
  0x1d   : > { %v475_v42 = vcombine.low %v467_v38, %v474_v39  ;;  %v2132_v11 = vsub.f32 1.0, %v3967_v36  ;;  %v2422_v12 = vsub.f32 1.0, %v3973_v40  ;;  %v697_v13 = vpack.c.bf16 %v4069_v9, %v4069_v9  ;;  %v3691_v16 = vld [vmem:[%s3954_s24 + $0x8] ss:$12 sps:$4 sm:$0xff]   ;;  %v3692_v17 = vld [vmem:[%s3954_s24 + $0x20] ss:$12 sps:$4 sm:$0xff]  }
  0x1e   : > { %v2712_v14 = vsub.f32 1.0, %v3991_v48  ;;  %v3002_v15 = vsub.f32 1.0, %v4006_v51  ;;  %v3693_v18 = vld [vmem:[%s3954_s24 + $0x38] ss:$12 sps:$4 sm:$0xff]   ;;  %v3694_v19 = vld [vmem:[%s3954_s24 + $0x50] ss:$12 sps:$4 sm:$0xff]  }
  0x1f   : > { %3162 = vmatmul.mubr.msk.bf16.vlgmr.msra.gmra.mrb[0].mxu0 %vm508_vm1, %v475_v42  ;;  %3470 = vmatmul.mubr.msk.bf16.vlgmr.msra.gmra.mrb[0].mxu1 %vm508_vm1, %v475_v42  ;;  %v3695_v20 = vld [vmem:[%s3954_s24 + $0x68] ss:$12 sps:$4 sm:$0xff]   ;;  %v3696_v21 = vld [vmem:[%s3954_s24 + $0x80] ss:$12 sps:$4 sm:$0xff]   ;;  %v3697_v22 = vld [vmem:[%s3954_s24 + $0x98] ss:$12 sps:$4 sm:$0xff]  }
  0x20   : > { %859 = vmatpush1.bf16.msra.mxu0 %v3976_v41  ;;  %3474 = vmatpush3.bf16.msra.mxu1 %v3680_v44  ;;  %v3698_v23 = vld [vmem:[%s3954_s24 + $0xb0] ss:$12 sps:$4 sm:$0xff]   ;;  %s3635_s17 = smul.u32 3, %s4474_s28  ;;  %v3864_v24 = vmov 1983009808   ;;  %v406_v26 = vsub.s32 0, %v3931_v7 }
  0x21   : > { %860 = vmatprep.subr.bf16.mxu0 %v3979_v43  ;;  %3475 = vmatprep.subr.bf16.mxu1 %v3860_v1  ;;  %v606_v25 = vunpack.c.l.s4 %v3864_v24  ;;  %v414_v27 = vsub.s32 2, %v3931_v7  ;;  %v410_v29 = vsub.s32 1, %v3931_v7  ;;  %s3389_s25 = sshll.u32 %s4474_s28, 4 }
  0x22   : > { %890 = vmatprep.mubr.bf16.mxu0 %v3861_v2  ;;  %3489 = vmatprep.mubr.msk.bf16.mxu1 %vm3863_vm0, %v3860_v1  ;;  %s372_s20 = scalar_lea.vmem %s4469_s5, %s3635_s17  ;;  %s4145_s30 = scalar_lea.vmem %s4471_s7, %s3389_s25 }
  0x23   : > { %2708 = vperm.xlu0 %3649, %v3991_v48   ;;  %2135 = vperm.xlu1 %3650, %v2132_v11   ;;  %v402_v28 = vld [vmem:[%s372_s20] sm:$0x7]  ;;  %v607_v30 = vunpack.c.0.s8 %v606_v25 }
  0x24   : > { %861 = vmatpush1.bf16.msra.mxu0 %v3985_v46  ;;  %3476 = vmatpush3.bf16.msra.mxu1 %v3684_v49  ;;  %v407_v31 = vrot.slane %v402_v28, %v406_v26  ;;  %v415_v33 = vrot.slane %v402_v28, %v414_v27  ;;  %v411_v34 = vrot.slane %v402_v28, %v410_v29 }
  0x25   : > { %862 = vmatprep.subr.bf16.mxu0 %v3997_v50  ;;  %3477 = vmatprep.subr.bf16.mxu1 %v3860_v1  ;;  %v610_v36 = vsub.s32 %v607_v30, %v3931_v7 }
  0x27   : > { %2998 = vperm.xlu0 %3649, %v4006_v51   ;;  %2425 = vperm.xlu1 %3650, %v2422_v12  }
  0x28   : > { %863 = vmatpush1.bf16.msra.mxu0 %v4009_v52  ;;  %3478 = vmatpush3.bf16.msra.mxu1 %v3685_v53 }
  0x29   : > { %864 = vmatprep.subr.bf16.mxu0 %v4016_v54  ;;  %3479 = vmatprep.subr.bf16.mxu1 %v3860_v1 }
  0x2b   : > { %2715 = vperm.xlu1 %3650, %v2712_v14  }
  0x2c   : > { %865 = vmatpush1.bf16.msra.mxu0 %v4020_v55  ;;  %3480 = vmatpush3.bf16.msra.mxu1 %v3686_v57 }
  0x2d   : > { %866 = vmatprep.subr.bf16.mxu0 %v4023_v56  ;;  %3481 = vmatprep.subr.bf16.mxu1 %v3860_v1 }
  0x2f   : > { %3005 = vperm.xlu1 %3650, %v3002_v15  }
  0x30   : > { %867 = vmatpush1.bf16.msra.mxu0 %v4034_v60  ;;  %3482 = vmatpush3.bf16.msra.mxu1 %v3687_v61 }
  0x31   : > { %868 = vmatprep.subr.bf16.mxu0 %v4038_v62  ;;  %3483 = vmatprep.subr.bf16.mxu1 %v3860_v1 }
  0x34   : > { %869 = vmatpush1.bf16.msra.mxu0 %v4044_v63  ;;  %3484 = vmatpush3.bf16.msra.mxu1 %v3688_v0 }
  0x35   : > { %870 = vmatprep.subr.bf16.mxu0 %v4048_v3  ;;  %3485 = vmatprep.subr.bf16.mxu1 %v3860_v1 }
  0x38   : > { %871 = vmatpush1.bf16.msra.mxu0 %v4054_v4  ;;  %3486 = vmatpush3.bf16.msra.mxu1 %v3689_v5 }
  0x39   : > { %872 = vmatprep.subr.bf16.mxu0 %v4058_v6  ;;  %3487 = vmatprep.subr.bf16.mxu1 %v3860_v1 }
  0x3c   : > { %873 = vmatpush1.bf16.msra.mxu0 %v4064_v8  ;;  %3488 = vmatpush3.bf16.msra.mxu1 %v3690_v10 }
  0x3d   : > { %1146 = vmatprep.subr.bf16.mxu0 %v3959_v32  ;;  %3493 = vmatprep.subr.bf16.mxu1 %v3860_v1 }
  0x3f   : > { %891 = vmatmul.mubr.bf16.vlgmr.msra.gmra.mrb[4].mxu0 %v697_v13  ;;  %3490 = vmatmul.mubr.bf16.vlgmr.msra.gmra.mrb[4].mxu1 %v697_v13 }
  0x40   : > { %1147 = vmatpush1.bf16.msra.mxu0 %v3976_v41  ;;  %1178 = vmatprep.mubr.bf16.mxu0 %v3861_v2 }
  0x41   : > { %1148 = vmatprep.subr.bf16.mxu0 %v3979_v43  ;;  %3509 = vmatprep.mubr.msk.bf16.mxu1 %vm3863_vm0, %v3860_v1 }
  0x42   : > { %3494 = vmatpush3.bf16.msra.mxu1 %v3691_v16 }
  0x43   : > { %3495 = vmatprep.subr.bf16.mxu1 %v3860_v1 }
  0x44   : > { %1149 = vmatpush1.bf16.msra.mxu0 %v3985_v46 }
  0x45   : > { %1150 = vmatprep.subr.bf16.mxu0 %v3997_v50 }
  0x46   : > { %3496 = vmatpush3.bf16.msra.mxu1 %v3692_v17 }
  0x47   : > { %3497 = vmatprep.subr.bf16.mxu1 %v3860_v1 }
  0x48   : > { %1151 = vmatpush1.bf16.msra.mxu0 %v4009_v52 }
  0x49   : > { %1152 = vmatprep.subr.bf16.mxu0 %v4016_v54 }
  0x4a   : > { %3498 = vmatpush3.bf16.msra.mxu1 %v3693_v18 }
  0x4b   : > { %3499 = vmatprep.subr.bf16.mxu1 %v3860_v1 }
  0x4c   : > { %1153 = vmatpush1.bf16.msra.mxu0 %v4020_v55 }
  0x4d   : > { %1154 = vmatprep.subr.bf16.mxu0 %v4023_v56 }
  0x4e   : > { %3500 = vmatpush3.bf16.msra.mxu1 %v3694_v19 }
  0x4f   : > { %3501 = vmatprep.subr.bf16.mxu1 %v3860_v1 }
  0x50   : > { %1155 = vmatpush1.bf16.msra.mxu0 %v4034_v60 }
  0x51   : > { %1156 = vmatprep.subr.bf16.mxu0 %v4038_v62 }
  0x52   : > { %3502 = vmatpush3.bf16.msra.mxu1 %v3695_v20 }
  0x53   : > { %3503 = vmatprep.subr.bf16.mxu1 %v3860_v1 }
  0x54   : > { %1157 = vmatpush1.bf16.msra.mxu0 %v4044_v63 }
  0x55   : > { %1158 = vmatprep.subr.bf16.mxu0 %v4048_v3 }
  0x56   : > { %3504 = vmatpush3.bf16.msra.mxu1 %v3696_v21 }
  0x57   : > { %3505 = vmatprep.subr.bf16.mxu1 %v3860_v1 }
  0x58   : > { %1159 = vmatpush1.bf16.msra.mxu0 %v4054_v4 }
  0x59   : > { %1160 = vmatprep.subr.bf16.mxu0 %v4058_v6 }
  0x5a   : > { %3506 = vmatpush3.bf16.msra.mxu1 %v3697_v22 }
  0x5b   : > { %3507 = vmatprep.subr.bf16.mxu1 %v3860_v1 }
  0x5c   : > { %1161 = vmatpush1.bf16.msra.mxu0 %v4064_v8 }
  0x5d   : > { %1436 = vmatprep.subr.bf16.mxu0 %v3959_v32 }
  0x5e   : > { %3508 = vmatpush3.bf16.msra.mxu1 %v3698_v23 }
  0x5f   : > { %3513 = vmatprep.subr.bf16.mxu1 %v3860_v1 }
  0xf2   : > { %v546_v35 = vpop.f32.mrb[0].mxu0  ;;  %v589_v37 = vpop.f32.mrb[0].mxu1 }
  0xf3   : > { %v547_v38 = vadd.f32 %v546_v35, %v407_v31  ;;  %v548_v39 = vpop.f32.mrb[1].mxu0  ;;  %v590_v40 = vadd.f32 %v589_v37, %v415_v33  ;;  %v3471_v42 = vpop.f32.mrb[1].mxu1 }
  0xf4   : > { %v549_v44 = vadd.f32 %v548_v39, %v411_v34  ;;  %v550_v45 = vpop.f32.mrb[2].mxu0  ;;  %v592_v47 = vpop.f32.mrb[2].mxu1 }
  0xf5   : > { %v604_v48 = vcombine.high %v590_v40, %v590_v40  ;;  %v551_v49 = vadd.f32 %v550_v45, %v407_v31  ;;  %v552_v51 = vpop.f32.mrb[3].mxu0  ;;  %v593_v53 = vadd.f32 %v592_v47, %v415_v33  ;;  %v3472_v57 = vpop.f32.mrb[3].mxu1  ;;  %v625_v61 = vrot.slane %v590_v40, %v610_v36  ;;  %v4134_v47 = vld [vmem:[%s4131_s23] ss:$0 sm:$0xff] }
  0xf6   : > { %v602_v58 = vcombine.low %v547_v38, %v549_v44  ;;  %v603_v59 = vcombine.high %v547_v38, %v549_v44  ;;  %v553_v0 = vadd.f32 %v552_v51, %v411_v34 }
  0xf7   : > { %v632_v5 = vrot.slane %v604_v48, %v610_v36  ;;  %v639_v10 = vcombine.high %v593_v53, %v593_v53  ;;  %v660_v14 = vrot.slane %v593_v53, %v610_v36 }
  0xf8   : > { %v611_v7 = vrot.slane %v602_v58, %v610_v36  ;;  %v618_v11 = vrot.slane %v603_v59, %v610_v36  ;;  %v637_v12 = vcombine.low %v551_v49, %v553_v0  ;;  %v638_v13 = vcombine.high %v551_v49, %v553_v0 }
  0xf9   : > { %v667_v15 = vrot.slane %v639_v10, %v610_v36 }
  0xfa   : > { %v633_v16 = vcombine.low %v611_v7, %v625_v61  ;;  %v634_v17 = vcombine.high %v611_v7, %v625_v61  ;;  %v635_v18 = vcombine.low %v618_v11, %v632_v5  ;;  %v636_v19 = vcombine.high %v618_v11, %v632_v5  ;;  %v970_v61 = vpop.permute.xlu0 %969 }
  0xfb   : > { %v646_v20 = vrot.slane %v637_v12, %v610_v36  ;;  %v653_v21 = vrot.slane %v638_v13, %v610_v36 }
  0xfc   : > { %680 = vst [vmem:[#allocation2] sm:$0x3f] %v633_v16  ;;  %681 = vst [vmem:[#allocation2 + $0x6] sm:$0x3f] %v634_v17 }
  0xfd   : > { %682 = vst [vmem:[#allocation2 + $0xc] sm:$0x3f] %v635_v18  ;;  %683 = vst [vmem:[#allocation2 + $0x12] sm:$0x3f] %v636_v19  ;;  %v668_v22 = vcombine.low %v646_v20, %v660_v14  ;;  %v669_v23 = vcombine.high %v646_v20, %v660_v14  ;;  %v670_v24 = vcombine.low %v653_v21, %v667_v15 }
  0xfe   : > { %v671_v25 = vcombine.high %v653_v21, %v667_v15  ;;  %v977_v12 = vpop.permute.xlu0 %976 }
  0xff   : > { %684 = vst [vmem:[#allocation2 + $0x18] sm:$0x3f] %v668_v22  ;;  %685 = vst [vmem:[#allocation2 + $0x1e] sm:$0x3f] %v669_v23  ;;  %v979_v13 = vmul.f32 %v977_v12, %v4069_v9  ;;  %v4236_v12 = vld [vmem:[%s3954_s24 + $0xac] ss:$12 sps:$4 sm:$0xff]  }
 0x100   : > { %686 = vst [vmem:[#allocation2 + $0x24] sm:$0x3f] %v670_v24  ;;  %687 = vst [vmem:[#allocation2 + $0x2a] sm:$0x3f] %v671_v25 }
 0x103   : > { %v696_v26 = vld [vmem:[#allocation2] sm:$0x3f]  ;;  %v984_v18 = vld [vmem:[#allocation2 + $0x6] sm:$0x3f] }
 0x104   : > { %v947_v33 = vrot.slane %v696_v26, 2  ;;  %v958_v53 = vrot.slane %v696_v26, 4  ;;  %v1235_v24 = vrot.slane %v984_v18, 2 }
 0x112   : > { %v892_v27 = vpop.f32.mrb[4].mxu0  ;;  %v933_v28 = vpop.f32.mrb[4].mxu1 }
 0x113   : > { %v939_v29 = vadd.f32 %v892_v27, %v696_v26  ;;  %v894_v30 = vpop.f32.mrb[5].mxu0  ;;  %v3491_v31 = vpop.f32.mrb[5].mxu1  ;;  %v956_v49 = vadd.f32 %v4134_v47, %v933_v28 }
 0x114   : > { %v896_v34 = vpop.f32.mrb[6].mxu0  ;;  %v936_v35 = vpop.f32.mrb[6].mxu1  ;;  %v949_v39 = vadd.f32 %v947_v33, %v894_v30 }
 0x115   : > { %v3189_v36 = vmul.f32 -1.442695, %v939_v29  ;;  %v897_v37 = vpop.f32.mrb[7].mxu0  ;;  %v3492_v38 = vpop.f32.mrb[7].mxu1 }
 0x116   : > { %v3190_v40 = vmul.f32 -1.442695, %v949_v39  ;;  %v1246_v39 = vrot.slane %v984_v18, 4 }
 0x117   : > { %3771 = vpow2.f32 %v3189_v36 }
 0x118   : > { %3773 = vpow2.f32 %v3190_v40 }
 0x121   : > { %v3772_v42 = vpop.eup %3771 }
 0x122   : > { %v943_v44 = vadd.f32 1.0, %v3772_v42  ;;  %v3774_v45 = vpop.eup %3773 }
 0x123   : > { %v953_v48 = vadd.f32 1.0, %v3774_v45  ;;  %v1259_v45 = vpop.permute.xlu1 %1258 }
 0x124   : > { %3775 = vrcp.f32 %v943_v44 }
 0x125   : > { %3777 = vrcp.f32 %v953_v48 }
 0x12e   : > { %v3776_v51 = vpop.eup %3775 }
 0x12f   : > { %v957_v57 = vmul.f32 %v3776_v51, %v956_v49  ;;  %v3778_v59 = vpop.eup %3777 }
 0x130   : > { %v962_v0 = vsub.f32 1.0, %v3778_v59  ;;  %v964_v7 = vmul.f32 %v3778_v59, %v4069_v9  ;;  %v3699_v9 = vld [vmem:[%s3954_s24 + $0x8] ss:$12 sps:$4 sm:$0xff]  }
 0x131   : > { %v960_v58 = vadd.f32 %v958_v53, %v957_v57  ;;  %v1266_v57 = vpop.permute.xlu1 %1265 }
 0x133   : > { %3779 = vtanh.f32 %v960_v58 }
 0x13d   : > { %v3780_v5 = vpop.eup %3779 }
 0x13e   : > { %v963_v10 = vmul.f32 %v3780_v5, %v962_v0 }
 0x140   : > { %v965_v11 = vadd.f32 %v964_v7, %v963_v10  ;;  %v4231_v7 = vld [vmem:[%s3954_s24 + $0x90] ss:$12 sps:$4 sm:$0xff]  }
 0x142   : > { %v972_v14 = vmul.f32 %v970_v61, %v965_v11  ;;  %v3719_v11 = vld [vmem:[%s3954_s24 + $0x98] ss:$12 sps:$4 sm:$0xff]  }
 0x144   : > { %v4140_v15 = vadd.f32 %v979_v13, %v972_v14  ;;  %v4240_v13 = vld [vmem:[%s3954_s24 + $0xa8] ss:$12 sps:$4 sm:$0xff]   ;;  %v3723_v14 = vld [vmem:[%s3954_s24 + $0xb0] ss:$12 sps:$4 sm:$0xff]  }
 0x146   : > { %v981_v16 = vmul.f32 %v4140_v15, %v970_v61  ;;  %v985_v17 = vpack.c.bf16 %v4140_v15, %v4140_v15  ;;  %v1268_v59 = vmul.f32 %v1266_v57, %v4140_v15  ;;  %v4273_v57 = vld [vmem:[%s3954_s24 + $0x18] ss:$12 sps:$4 sm:$0xff]  }
 0x148   : > { %982 = vst [vmem:[%s4145_s30] sm:$0x3] %v981_v16  ;;  %1179 = vmatmul.mubr.bf16.vlgmr.msra.gmra.mrb[8].mxu0 %v985_v17  ;;  %3510 = vmatmul.mubr.bf16.vlgmr.msra.gmra.mrb[8].mxu1 %v985_v17 }
 0x149   : > { %1437 = vmatpush1.bf16.msra.mxu0 %v3976_v41  ;;  %1468 = vmatprep.mubr.bf16.mxu0 %v3861_v2 }
 0x14a   : > { %1438 = vmatprep.subr.bf16.mxu0 %v3979_v43  ;;  %3529 = vmatprep.mubr.msk.bf16.mxu1 %vm3863_vm0, %v3860_v1 }
 0x14b   : > { %3514 = vmatpush3.bf16.msra.mxu1 %v3699_v9 }
 0x14c   : > { %3515 = vmatprep.subr.bf16.mxu1 %v3860_v1 }
 0x14d   : > { %1439 = vmatpush1.bf16.msra.mxu0 %v3985_v46 }
 0x14e   : > { %1440 = vmatprep.subr.bf16.mxu0 %v3997_v50 }
 0x151   : > { %1441 = vmatpush1.bf16.msra.mxu0 %v4009_v52 }
 0x152   : > { %1442 = vmatprep.subr.bf16.mxu0 %v4016_v54 }
 0x155   : > { %1443 = vmatpush1.bf16.msra.mxu0 %v4020_v55 }
 0x156   : > { %1444 = vmatprep.subr.bf16.mxu0 %v4023_v56 }
 0x159   : > { %1445 = vmatpush1.bf16.msra.mxu0 %v4034_v60 }
 0x15a   : > { %1446 = vmatprep.subr.bf16.mxu0 %v4038_v62  ;;  %v3700_v62 = vld [vmem:[%s3954_s24 + $0x20] ss:$12 sps:$4 sm:$0xff]  }
 0x15b   : > { %3516 = vmatpush3.bf16.msra.mxu1 %v3700_v62 }
 0x15c   : > { %3517 = vmatprep.subr.bf16.mxu1 %v3860_v1 }
 0x15d   : > { %1447 = vmatpush1.bf16.msra.mxu0 %v4044_v63  ;;  %v3701_v63 = vld [vmem:[%s3954_s24 + $0x38] ss:$12 sps:$4 sm:$0xff]  }
 0x15e   : > { %1448 = vmatprep.subr.bf16.mxu0 %v4048_v3  ;;  %v3702_v3 = vld [vmem:[%s3954_s24 + $0x50] ss:$12 sps:$4 sm:$0xff]  }
 0x15f   : > { %3518 = vmatpush3.bf16.msra.mxu1 %v3701_v63 }
 0x160   : > { %3519 = vmatprep.subr.bf16.mxu1 %v3860_v1 }
 0x161   : > { %1449 = vmatpush1.bf16.msra.mxu0 %v4054_v4  ;;  %v3704_v4 = vld [vmem:[%s3954_s24 + $0x80] ss:$12 sps:$4 sm:$0xff]  }
 0x162   : > { %1450 = vmatprep.subr.bf16.mxu0 %v4058_v6  ;;  %v3705_v6 = vld [vmem:[%s3954_s24 + $0x98] ss:$12 sps:$4 sm:$0xff]  }
 0x163   : > { %3520 = vmatpush3.bf16.msra.mxu1 %v3702_v3 }
 0x164   : > { %3521 = vmatprep.subr.bf16.mxu1 %v3860_v1 }
 0x165   : > { %1451 = vmatpush1.bf16.msra.mxu0 %v4064_v8  ;;  %v3706_v8 = vld [vmem:[%s3954_s24 + $0xb0] ss:$12 sps:$4 sm:$0xff]  }
 0x166   : > { %1726 = vmatprep.subr.bf16.mxu0 %v3959_v32  ;;  %v3703_v32 = vld [vmem:[%s3954_s24 + $0x68] ss:$12 sps:$4 sm:$0xff]  }
 0x167   : > { %3522 = vmatpush3.bf16.msra.mxu1 %v3703_v32 }
 0x168   : > { %3523 = vmatprep.subr.bf16.mxu1 %v3860_v1 }
 0x16b   : > { %3524 = vmatpush3.bf16.msra.mxu1 %v3704_v4 }
 0x16c   : > { %3525 = vmatprep.subr.bf16.mxu1 %v3860_v1 }
 0x16f   : > { %3526 = vmatpush3.bf16.msra.mxu1 %v3705_v6 }
 0x170   : > { %3527 = vmatprep.subr.bf16.mxu1 %v3860_v1 }
 0x173   : > { %3528 = vmatpush3.bf16.msra.mxu1 %v3706_v8 }
 0x174   : > { %3533 = vmatprep.subr.bf16.mxu1 %v3860_v1 }
 0x21b   : > { %v1180_v19 = vpop.f32.mrb[8].mxu0  ;;  %v1221_v20 = vpop.f32.mrb[8].mxu1 }
 0x21c   : > { %v1227_v21 = vadd.f32 %v1180_v19, %v984_v18  ;;  %v1182_v22 = vpop.f32.mrb[9].mxu0  ;;  %v3511_v23 = vpop.f32.mrb[9].mxu1  ;;  %v1244_v37 = vadd.f32 %v4134_v47, %v1221_v20 }
 0x21d   : > { %v1184_v25 = vpop.f32.mrb[10].mxu0  ;;  %v1224_v26 = vpop.f32.mrb[10].mxu1  ;;  %v1237_v30 = vadd.f32 %v1235_v24, %v1182_v22 }
 0x21e   : > { %v3215_v27 = vmul.f32 -1.442695, %v1227_v21  ;;  %v1185_v28 = vpop.f32.mrb[11].mxu0  ;;  %v3512_v29 = vpop.f32.mrb[11].mxu1 }
 0x21f   : > { %v3216_v31 = vmul.f32 -1.442695, %v1237_v30 }
 0x220   : > { %3781 = vpow2.f32 %v3215_v27 }
 0x221   : > { %3783 = vpow2.f32 %v3216_v31 }
 0x22a   : > { %v3782_v33 = vpop.eup %3781 }
 0x22b   : > { %v1231_v34 = vadd.f32 1.0, %v3782_v33  ;;  %v3784_v35 = vpop.eup %3783 }
 0x22c   : > { %v1241_v36 = vadd.f32 1.0, %v3784_v35 }
 0x22d   : > { %3785 = vrcp.f32 %v1231_v34 }
 0x22e   : > { %3787 = vrcp.f32 %v1241_v36 }
 0x237   : > { %v3786_v38 = vpop.eup %3785 }
 0x238   : > { %v1245_v40 = vmul.f32 %v3786_v38, %v1244_v37  ;;  %v3788_v44 = vpop.eup %3787  ;;  %v1549_v37 = vpop.permute.xlu0 %1548 }
 0x239   : > { %v1250_v48 = vsub.f32 1.0, %v3788_v44  ;;  %v1252_v53 = vmul.f32 %v3788_v44, %v4140_v15  ;;  %v1274_v15 = vld [vmem:[#allocation2 + $0xc] sm:$0x3f]  ;;  %v1556_v38 = vpop.permute.xlu1 %1555 }
 0x23a   : > { %v1248_v42 = vadd.f32 %v1246_v39, %v1245_v40  ;;  %v1525_v3 = vrot.slane %v1274_v15, 2  ;;  %v1536_v27 = vrot.slane %v1274_v15, 4 }
 0x23c   : > { %3789 = vtanh.f32 %v1248_v42 }
 0x246   : > { %v3790_v49 = vpop.eup %3789 }
 0x247   : > { %v1251_v51 = vmul.f32 %v3790_v49, %v1250_v48  ;;  %v4260_v48 = vld [vmem:[%s3954_s24 + $0x4] ss:$12 sps:$4 sm:$0xff]   ;;  %v4263_v49 = vld [vmem:[%s3954_s24] ss:$12 sps:$4 sm:$0xff]  }
 0x249   : > { %v1253_v58 = vadd.f32 %v1252_v53, %v1251_v51  ;;  %v3727_v51 = vld [vmem:[%s3954_s24 + $0x8] ss:$12 sps:$4 sm:$0xff]  }
 0x24a   : > { %v4269_v53 = vld [vmem:[%s3954_s24 + $0x1c] ss:$12 sps:$4 sm:$0xff]  }
 0x24b   : > { %v1261_v61 = vmul.f32 %v1259_v45, %v1253_v58  ;;  %v3731_v58 = vld [vmem:[%s3954_s24 + $0x20] ss:$12 sps:$4 sm:$0xff]  }
 0x24d   : > { %v4189_v0 = vadd.f32 %v1268_v59, %v1261_v61  ;;  %v4279_v59 = vld [vmem:[%s3954_s24 + $0x34] ss:$12 sps:$4 sm:$0xff]   ;;  %v4283_v61 = vld [vmem:[%s3954_s24 + $0x30] ss:$12 sps:$4 sm:$0xff]  }
 0x24f   : > { %v1270_v5 = vmul.f32 %v4189_v0, %v1259_v45  ;;  %v1275_v10 = vpack.c.bf16 %v4189_v0, %v4189_v0  ;;  %v1558_v39 = vmul.f32 %v1556_v38, %v4189_v0 }
 0x251   : > { %3218 = vst [vmem:[%s4145_s30 + $0x2] sm:$0x3] %v1270_v5  ;;  %1469 = vmatmul.mubr.bf16.vlgmr.msra.gmra.mrb[12].mxu0 %v1275_v10  ;;  %3530 = vmatmul.mubr.bf16.vlgmr.msra.gmra.mrb[12].mxu1 %v1275_v10  ;;  %v4289_v5 = vld [vmem:[%s3954_s24 + $0x4c] ss:$12 sps:$4 sm:$0xff]   ;;  %v4293_v10 = vld [vmem:[%s3954_s24 + $0x48] ss:$12 sps:$4 sm:$0xff]  }
 0x252   : > { %1727 = vmatpush1.bf16.msra.mxu0 %v3976_v41  ;;  %1758 = vmatprep.mubr.bf16.mxu0 %v3861_v2  ;;  %v3707_v41 = vld [vmem:[%s3954_s24 + $0x8] ss:$12 sps:$4 sm:$0xff]  }
 0x253   : > { %1728 = vmatprep.subr.bf16.mxu0 %v3979_v43  ;;  %3549 = vmatprep.mubr.msk.bf16.mxu1 %vm3863_vm0, %v3860_v1  ;;  %v3708_v43 = vld [vmem:[%s3954_s24 + $0x20] ss:$12 sps:$4 sm:$0xff]  }
 0x254   : > { %3534 = vmatpush3.bf16.msra.mxu1 %v3707_v41  ;;  %v3739_v41 = vld [vmem:[%s3954_s24 + $0x50] ss:$12 sps:$4 sm:$0xff]  }
 0x255   : > { %3535 = vmatprep.subr.bf16.mxu1 %v3860_v1 }
 0x256   : > { %1729 = vmatpush1.bf16.msra.mxu0 %v3985_v46  ;;  %v3709_v46 = vld [vmem:[%s3954_s24 + $0x38] ss:$12 sps:$4 sm:$0xff]  }
 0x257   : > { %1730 = vmatprep.subr.bf16.mxu0 %v3997_v50  ;;  %v3710_v50 = vld [vmem:[%s3954_s24 + $0x50] ss:$12 sps:$4 sm:$0xff]  }
 0x258   : > { %3536 = vmatpush3.bf16.msra.mxu1 %v3708_v43  ;;  %v4299_v43 = vld [vmem:[%s3954_s24 + $0x64] ss:$12 sps:$4 sm:$0xff]  }
 0x259   : > { %3537 = vmatprep.subr.bf16.mxu1 %v3860_v1 }
 0x25a   : > { %1731 = vmatpush1.bf16.msra.mxu0 %v4009_v52  ;;  %v3711_v52 = vld [vmem:[%s3954_s24 + $0x68] ss:$12 sps:$4 sm:$0xff]  }
 0x25b   : > { %1732 = vmatprep.subr.bf16.mxu0 %v4016_v54  ;;  %v4217_v54 = vld [vmem:[%s3954_s24 + $0x7c] ss:$12 sps:$4 sm:$0xff]  }
 0x25c   : > { %3538 = vmatpush3.bf16.msra.mxu1 %v3709_v46  ;;  %v4303_v46 = vld [vmem:[%s3954_s24 + $0x60] ss:$12 sps:$4 sm:$0xff]  }
 0x25d   : > { %3539 = vmatprep.subr.bf16.mxu1 %v3860_v1 }
 0x25e   : > { %1733 = vmatpush1.bf16.msra.mxu0 %v4020_v55  ;;  %v4221_v55 = vld [vmem:[%s3954_s24 + $0x78] ss:$12 sps:$4 sm:$0xff]  }
 0x25f   : > { %1734 = vmatprep.subr.bf16.mxu0 %v4023_v56  ;;  %v3715_v56 = vld [vmem:[%s3954_s24 + $0x80] ss:$12 sps:$4 sm:$0xff]  }
 0x260   : > { %3540 = vmatpush3.bf16.msra.mxu1 %v3710_v50  ;;  %v3743_v50 = vld [vmem:[%s3954_s24 + $0x68] ss:$12 sps:$4 sm:$0xff]  }
 0x261   : > { %3541 = vmatprep.subr.bf16.mxu1 %v3860_v1 }
 0x262   : > { %1735 = vmatpush1.bf16.msra.mxu0 %v4034_v60  ;;  %v4227_v60 = vld [vmem:[%s3954_s24 + $0x94] ss:$12 sps:$4 sm:$0xff]  }
 0x263   : > { %1736 = vmatprep.subr.bf16.mxu0 %v4217_v54 }
 0x264   : > { %3542 = vmatpush3.bf16.msra.mxu1 %v3711_v52  ;;  %v3744_v52 = vld [vmem:[%s3954_s24 + $0x80] ss:$12 sps:$4 sm:$0xff]  }
 0x265   : > { %3543 = vmatprep.subr.bf16.mxu1 %v3860_v1 }
 0x266   : > { %1737 = vmatpush1.bf16.msra.mxu0 %v4221_v55 }
 0x267   : > { %1738 = vmatprep.subr.bf16.mxu0 %v4227_v60 }
 0x268   : > { %3544 = vmatpush3.bf16.msra.mxu1 %v3715_v56  ;;  %v3745_v56 = vld [vmem:[%s3954_s24 + $0x98] ss:$12 sps:$4 sm:$0xff]  }
 0x269   : > { %3545 = vmatprep.subr.bf16.mxu1 %v3860_v1 }
 0x26a   : > { %1739 = vmatpush1.bf16.msra.mxu0 %v4231_v7 }
 0x26b   : > { %1740 = vmatprep.subr.bf16.mxu0 %v4236_v12 }
 0x26c   : > { %3546 = vmatpush3.bf16.msra.mxu1 %v3719_v11  ;;  %v3746_v11 = vld [vmem:[%s3954_s24 + $0xb0] ss:$12 sps:$4 sm:$0xff]  }
 0x26d   : > { %3547 = vmatprep.subr.bf16.mxu1 %v3860_v1 }
 0x26e   : > { %1741 = vmatpush1.bf16.msra.mxu0 %v4240_v13 }
 0x26f   : > { %2016 = vmatprep.subr.bf16.mxu0 %v4260_v48 }
 0x270   : > { %3548 = vmatpush3.bf16.msra.mxu1 %v3723_v14  ;;  %v1564_v14 = vld [vmem:[#allocation2 + $0x12] sm:$0x3f] }
 0x271   : > { %3553 = vmatprep.subr.bf16.mxu1 %v3860_v1 }
 0x324   : > { %v1470_v16 = vpop.f32.mrb[12].mxu0  ;;  %v1511_v17 = vpop.f32.mrb[12].mxu1 }
 0x325   : > { %v1517_v9 = vadd.f32 %v1470_v16, %v1274_v15  ;;  %v1472_v62 = vpop.f32.mrb[13].mxu0  ;;  %v3531_v63 = vpop.f32.mrb[13].mxu1  ;;  %v1534_v25 = vadd.f32 %v4134_v47, %v1511_v17 }
 0x326   : > { %v1474_v32 = vpop.f32.mrb[14].mxu0  ;;  %v1514_v4 = vpop.f32.mrb[14].mxu1  ;;  %v1527_v19 = vadd.f32 %v1525_v3, %v1472_v62  ;;  %v1815_v63 = vrot.slane %v1564_v14, 2 }
 0x327   : > { %v3243_v6 = vmul.f32 -1.442695, %v1517_v9  ;;  %v1475_v8 = vpop.f32.mrb[15].mxu0  ;;  %v3532_v18 = vpop.f32.mrb[15].mxu1 }
 0x328   : > { %v3244_v20 = vmul.f32 -1.442695, %v1527_v19 }
 0x329   : > { %3791 = vpow2.f32 %v3243_v6 }
 0x32a   : > { %3793 = vpow2.f32 %v3244_v20 }
 0x333   : > { %v3792_v21 = vpop.eup %3791 }
 0x334   : > { %v1521_v22 = vadd.f32 1.0, %v3792_v21  ;;  %v3794_v23 = vpop.eup %3793 }
 0x335   : > { %v1531_v24 = vadd.f32 1.0, %v3794_v23 }
 0x336   : > { %3795 = vrcp.f32 %v1521_v22 }
 0x337   : > { %3797 = vrcp.f32 %v1531_v24 }
 0x340   : > { %v3796_v26 = vpop.eup %3795 }
 0x341   : > { %v1535_v28 = vmul.f32 %v3796_v26, %v1534_v25  ;;  %v3798_v30 = vpop.eup %3797  ;;  %v1826_v26 = vrot.slane %v1564_v14, 4 }
 0x342   : > { %v1540_v31 = vsub.f32 1.0, %v3798_v30  ;;  %v1542_v35 = vmul.f32 %v3798_v30, %v4189_v0  ;;  %v3735_v0 = vld [vmem:[%s3954_s24 + $0x38] ss:$12 sps:$4 sm:$0xff]  }
 0x343   : > { %v1538_v29 = vadd.f32 %v1536_v27, %v1535_v28 }
 0x345   : > { %3799 = vtanh.f32 %v1538_v29 }
 0x34f   : > { %v3800_v33 = vpop.eup %3799 }
 0x350   : > { %v1541_v34 = vmul.f32 %v3800_v33, %v1540_v31 }
 0x352   : > { %v1543_v36 = vadd.f32 %v1542_v35, %v1541_v34 }
 0x354   : > { %v1551_v40 = vmul.f32 %v1549_v37, %v1543_v36  ;;  %v1839_v36 = vpop.permute.xlu0 %1838 }
 0x356   : > { %v4250_v42 = vadd.f32 %v1558_v39, %v1551_v40 }
 0x358   : > { %v1560_v44 = vmul.f32 %v4250_v42, %v1549_v37  ;;  %v1565_v45 = vpack.c.bf16 %v4250_v42, %v4250_v42  ;;  %v1846_v37 = vpop.permute.xlu1 %1845 }
 0x359   : > { %v1848_v39 = vmul.f32 %v1846_v37, %v4250_v42 }
 0x35a   : > { %3246 = vst [vmem:[%s4145_s30 + $0x4] sm:$0x3] %v1560_v44  ;;  %1759 = vmatmul.mubr.bf16.vlgmr.msra.gmra.mrb[16].mxu0 %v1565_v45  ;;  %3550 = vmatmul.mubr.bf16.vlgmr.msra.gmra.mrb[16].mxu1 %v1565_v45 }
 0x35b   : > { %2048 = vmatprep.mubr.bf16.mxu0 %v3861_v2  ;;  %3569 = vmatprep.mubr.msk.bf16.mxu1 %vm3863_vm0, %v3860_v1 }
 0x35c   : > { %2017 = vmatpush1.bf16.msra.mxu0 %v4263_v49  ;;  %3554 = vmatpush3.bf16.msra.mxu1 %v3727_v51  ;;  %v3748_v51 = vld [vmem:[%s3954_s24 + $0x20] ss:$12 sps:$4 sm:$0xff]  }
 0x35d   : > { %3555 = vmatprep.subr.bf16.mxu1 %v3860_v1  ;;  %2018 = vmatprep.subr.bf16.mxu0 %v4269_v53 }
 0x360   : > { %2019 = vmatpush1.bf16.msra.mxu0 %v4273_v57  ;;  %3556 = vmatpush3.bf16.msra.mxu1 %v3731_v58  ;;  %v3749_v58 = vld [vmem:[%s3954_s24 + $0x38] ss:$12 sps:$4 sm:$0xff]  }
 0x361   : > { %3557 = vmatprep.subr.bf16.mxu1 %v3860_v1  ;;  %2020 = vmatprep.subr.bf16.mxu0 %v4279_v59 }
 0x364   : > { %2021 = vmatpush1.bf16.msra.mxu0 %v4283_v61  ;;  %3558 = vmatpush3.bf16.msra.mxu1 %v3735_v0  ;;  %v3750_v0 = vld [vmem:[%s3954_s24 + $0x50] ss:$12 sps:$4 sm:$0xff]  }
 0x365   : > { %3559 = vmatprep.subr.bf16.mxu1 %v3860_v1  ;;  %2022 = vmatprep.subr.bf16.mxu0 %v4289_v5 }
 0x368   : > { %2023 = vmatpush1.bf16.msra.mxu0 %v4293_v10  ;;  %3560 = vmatpush3.bf16.msra.mxu1 %v3739_v41  ;;  %v3751_v41 = vld [vmem:[%s3954_s24 + $0x68] ss:$12 sps:$4 sm:$0xff]  }
 0x369   : > { %3561 = vmatprep.subr.bf16.mxu1 %v3860_v1  ;;  %2024 = vmatprep.subr.bf16.mxu0 %v4299_v43 }
 0x36c   : > { %2025 = vmatpush1.bf16.msra.mxu0 %v4303_v46  ;;  %3562 = vmatpush3.bf16.msra.mxu1 %v3743_v50  ;;  %v3752_v50 = vld [vmem:[%s3954_s24 + $0x80] ss:$12 sps:$4 sm:$0xff]  }
 0x36d   : > { %2026 = vmatprep.subr.bf16.mxu0 %v4217_v54  ;;  %3563 = vmatprep.subr.bf16.mxu1 %v3860_v1 }
 0x370   : > { %2027 = vmatpush1.bf16.msra.mxu0 %v4221_v55  ;;  %3564 = vmatpush3.bf16.msra.mxu1 %v3744_v52  ;;  %v3753_v52 = vld [vmem:[%s3954_s24 + $0x98] ss:$12 sps:$4 sm:$0xff]  }
 0x371   : > { %2028 = vmatprep.subr.bf16.mxu0 %v4227_v60  ;;  %3565 = vmatprep.subr.bf16.mxu1 %v3860_v1 }
 0x374   : > { %2029 = vmatpush1.bf16.msra.mxu0 %v4231_v7  ;;  %3566 = vmatpush3.bf16.msra.mxu1 %v3745_v56  ;;  %v3754_v56 = vld [vmem:[%s3954_s24 + $0xb0] ss:$12 sps:$4 sm:$0xff]  }
 0x375   : > { %2030 = vmatprep.subr.bf16.mxu0 %v4236_v12  ;;  %3567 = vmatprep.subr.bf16.mxu1 %v3860_v1 }
 0x378   : > { %2031 = vmatpush1.bf16.msra.mxu0 %v4240_v13  ;;  %3568 = vmatpush3.bf16.msra.mxu1 %v3746_v11  ;;  %v1854_v11 = vld [vmem:[#allocation2 + $0x18] sm:$0x3f] }
 0x379   : > { %2306 = vmatprep.subr.bf16.mxu0 %v4260_v48  ;;  %3573 = vmatprep.subr.bf16.mxu1 %v3860_v1 }
 0x42d   : > { %v1760_v15 = vpop.f32.mrb[16].mxu0  ;;  %v1801_v16 = vpop.f32.mrb[16].mxu1 }
 0x42e   : > { %v1807_v17 = vadd.f32 %v1760_v15, %v1564_v14  ;;  %v1762_v9 = vpop.f32.mrb[17].mxu0  ;;  %v3551_v62 = vpop.f32.mrb[17].mxu1  ;;  %v1824_v24 = vadd.f32 %v4134_v47, %v1801_v16 }
 0x42f   : > { %v1764_v3 = vpop.f32.mrb[18].mxu0  ;;  %v1804_v32 = vpop.f32.mrb[18].mxu1  ;;  %v1817_v18 = vadd.f32 %v1815_v63, %v1762_v9  ;;  %v2105_v62 = vrot.slane %v1854_v11, 2 }
 0x430   : > { %v3271_v4 = vmul.f32 -1.442695, %v1807_v17  ;;  %v1765_v6 = vpop.f32.mrb[19].mxu0  ;;  %v3552_v8 = vpop.f32.mrb[19].mxu1 }
 0x431   : > { %v3272_v19 = vmul.f32 -1.442695, %v1817_v18 }
 0x432   : > { %3801 = vpow2.f32 %v3271_v4 }
 0x433   : > { %3803 = vpow2.f32 %v3272_v19 }
 0x43c   : > { %v3802_v20 = vpop.eup %3801 }
 0x43d   : > { %v1811_v21 = vadd.f32 1.0, %v3802_v20  ;;  %v3804_v22 = vpop.eup %3803 }
 0x43e   : > { %v1821_v23 = vadd.f32 1.0, %v3804_v22 }
 0x43f   : > { %3805 = vrcp.f32 %v1811_v21 }
 0x440   : > { %3807 = vrcp.f32 %v1821_v23 }
 0x449   : > { %v3806_v25 = vpop.eup %3805 }
 0x44a   : > { %v1825_v27 = vmul.f32 %v3806_v25, %v1824_v24  ;;  %v3808_v29 = vpop.eup %3807  ;;  %v2116_v25 = vrot.slane %v1854_v11, 4 }
 0x44b   : > { %v1830_v30 = vsub.f32 1.0, %v3808_v29  ;;  %v1832_v34 = vmul.f32 %v3808_v29, %v4250_v42  ;;  %v3747_v42 = vld [vmem:[%s3954_s24 + $0x8] ss:$12 sps:$4 sm:$0xff]  }
 0x44c   : > { %v1828_v28 = vadd.f32 %v1826_v26, %v1825_v27 }
 0x44e   : > { %3809 = vtanh.f32 %v1828_v28 }
 0x458   : > { %v3810_v31 = vpop.eup %3809 }
 0x459   : > { %v1831_v33 = vmul.f32 %v3810_v31, %v1830_v30 }
 0x45b   : > { %v1833_v35 = vadd.f32 %v1832_v34, %v1831_v33 }
 0x45d   : > { %v1841_v38 = vmul.f32 %v1839_v36, %v1833_v35  ;;  %v2129_v35 = vpop.permute.xlu0 %2128 }
 0x45f   : > { %v4325_v40 = vadd.f32 %v1848_v39, %v1841_v38 }
 0x461   : > { %v1850_v44 = vmul.f32 %v4325_v40, %v1839_v36  ;;  %v1855_v45 = vpack.c.bf16 %v4325_v40, %v4325_v40  ;;  %v2136_v36 = vpop.permute.xlu1 %2135 }
 0x462   : > { %v2138_v38 = vmul.f32 %v2136_v36, %v4325_v40 }
 0x463   : > { %3274 = vst [vmem:[%s4145_s30 + $0x6] sm:$0x3] %v1850_v44  ;;  %2049 = vmatmul.mubr.bf16.vlgmr.msra.gmra.mrb[20].mxu0 %v1855_v45  ;;  %3570 = vmatmul.mubr.bf16.vlgmr.msra.gmra.mrb[20].mxu1 %v1855_v45 }
 0x464   : > { %2307 = vmatpush1.bf16.msra.mxu0 %v4263_v49  ;;  %2338 = vmatprep.mubr.bf16.mxu0 %v3861_v2 }
 0x465   : > { %2308 = vmatprep.subr.bf16.mxu0 %v4269_v53  ;;  %3589 = vmatprep.mubr.msk.bf16.mxu1 %vm3863_vm0, %v3860_v1 }
 0x466   : > { %3574 = vmatpush3.bf16.msra.mxu1 %v3747_v42  ;;  %v3756_v42 = vld [vmem:[%s3954_s24 + $0x20] ss:$12 sps:$4 sm:$0xff]  }
 0x467   : > { %3575 = vmatprep.subr.bf16.mxu1 %v3860_v1 }
 0x468   : > { %2309 = vmatpush1.bf16.msra.mxu0 %v4273_v57 }
 0x469   : > { %2310 = vmatprep.subr.bf16.mxu0 %v4279_v59 }
 0x46a   : > { %3576 = vmatpush3.bf16.msra.mxu1 %v3748_v51  ;;  %v3757_v51 = vld [vmem:[%s3954_s24 + $0x38] ss:$12 sps:$4 sm:$0xff]  }
 0x46b   : > { %3577 = vmatprep.subr.bf16.mxu1 %v3860_v1 }
 0x46c   : > { %2311 = vmatpush1.bf16.msra.mxu0 %v4283_v61 }
 0x46d   : > { %2312 = vmatprep.subr.bf16.mxu0 %v4289_v5 }
 0x46e   : > { %3578 = vmatpush3.bf16.msra.mxu1 %v3749_v58  ;;  %v3758_v58 = vld [vmem:[%s3954_s24 + $0x50] ss:$12 sps:$4 sm:$0xff]  }
 0x46f   : > { %3579 = vmatprep.subr.bf16.mxu1 %v3860_v1 }
 0x470   : > { %2313 = vmatpush1.bf16.msra.mxu0 %v4293_v10 }
 0x471   : > { %2314 = vmatprep.subr.bf16.mxu0 %v4299_v43 }
 0x472   : > { %3580 = vmatpush3.bf16.msra.mxu1 %v3750_v0  ;;  %v3760_v0 = vld [vmem:[%s3954_s24 + $0x80] ss:$12 sps:$4 sm:$0xff]  }
 0x473   : > { %3581 = vmatprep.subr.bf16.mxu1 %v3860_v1 }
 0x474   : > { %2315 = vmatpush1.bf16.msra.mxu0 %v4303_v46 }
 0x475   : > { %2316 = vmatprep.subr.bf16.mxu0 %v4217_v54 }
 0x476   : > { %3582 = vmatpush3.bf16.msra.mxu1 %v3751_v41  ;;  %v3761_v41 = vld [vmem:[%s3954_s24 + $0x98] ss:$12 sps:$4 sm:$0xff]  }
 0x477   : > { %3583 = vmatprep.subr.bf16.mxu1 %v3860_v1 }
 0x478   : > { %2317 = vmatpush1.bf16.msra.mxu0 %v4221_v55 }
 0x479   : > { %2318 = vmatprep.subr.bf16.mxu0 %v4227_v60 }
 0x47a   : > { %3584 = vmatpush3.bf16.msra.mxu1 %v3752_v50  ;;  %v3762_v50 = vld [vmem:[%s3954_s24 + $0xb0] ss:$12 sps:$4 sm:$0xff]  }
 0x47b   : > { %3585 = vmatprep.subr.bf16.mxu1 %v3860_v1 }
 0x47c   : > { %2319 = vmatpush1.bf16.msra.mxu0 %v4231_v7 }
 0x47d   : > { %2320 = vmatprep.subr.bf16.mxu0 %v4236_v12 }
 0x47e   : > { %3586 = vmatpush3.bf16.msra.mxu1 %v3753_v52  ;;  %v2144_v52 = vld [vmem:[#allocation2 + $0x1e] sm:$0x3f] }
 0x47f   : > { %3587 = vmatprep.subr.bf16.mxu1 %v3860_v1 }
 0x480   : > { %2321 = vmatpush1.bf16.msra.mxu0 %v4240_v13 }
 0x481   : > { %2596 = vmatprep.subr.bf16.mxu0 %v4260_v48 }
 0x482   : > { %3588 = vmatpush3.bf16.msra.mxu1 %v3754_v56 }
 0x483   : > { %3593 = vmatprep.subr.bf16.mxu1 %v3860_v1 }
 0x536   : > { %v2050_v14 = vpop.f32.mrb[20].mxu0  ;;  %v2091_v15 = vpop.f32.mrb[20].mxu1 }
 0x537   : > { %v2097_v16 = vadd.f32 %v2050_v14, %v1854_v11  ;;  %v2052_v17 = vpop.f32.mrb[21].mxu0  ;;  %v3571_v9 = vpop.f32.mrb[21].mxu1  ;;  %v2114_v23 = vadd.f32 %v4134_v47, %v2091_v15 }
 0x538   : > { %v2054_v63 = vpop.f32.mrb[22].mxu0  ;;  %v2094_v3 = vpop.f32.mrb[22].mxu1  ;;  %v2107_v8 = vadd.f32 %v2105_v62, %v2052_v17  ;;  %v2395_v17 = vrot.slane %v2144_v52, 2 }
 0x539   : > { %v3299_v32 = vmul.f32 -1.442695, %v2097_v16  ;;  %v2055_v4 = vpop.f32.mrb[23].mxu0  ;;  %v3572_v6 = vpop.f32.mrb[23].mxu1 }
 0x53a   : > { %v3300_v18 = vmul.f32 -1.442695, %v2107_v8 }
 0x53b   : > { %3811 = vpow2.f32 %v3299_v32 }
 0x53c   : > { %3813 = vpow2.f32 %v3300_v18 }
 0x545   : > { %v3812_v19 = vpop.eup %3811 }
 0x546   : > { %v2101_v20 = vadd.f32 1.0, %v3812_v19  ;;  %v3814_v21 = vpop.eup %3813 }
 0x547   : > { %v2111_v22 = vadd.f32 1.0, %v3814_v21 }
 0x548   : > { %3815 = vrcp.f32 %v2101_v20 }
 0x549   : > { %3817 = vrcp.f32 %v2111_v22 }
 0x552   : > { %v3816_v24 = vpop.eup %3815 }
 0x553   : > { %v2115_v26 = vmul.f32 %v3816_v24, %v2114_v23  ;;  %v3818_v28 = vpop.eup %3817  ;;  %v2406_v23 = vrot.slane %v2144_v52, 4 }
 0x554   : > { %v2120_v29 = vsub.f32 1.0, %v3818_v28  ;;  %v2122_v33 = vmul.f32 %v3818_v28, %v4325_v40  ;;  %v3755_v40 = vld [vmem:[%s3954_s24 + $0x8] ss:$12 sps:$4 sm:$0xff]  }
 0x555   : > { %v2118_v27 = vadd.f32 %v2116_v25, %v2115_v26 }
 0x557   : > { %3819 = vtanh.f32 %v2118_v27 }
 0x561   : > { %v3820_v30 = vpop.eup %3819 }
 0x562   : > { %v2121_v31 = vmul.f32 %v3820_v30, %v2120_v29 }
 0x564   : > { %v2123_v34 = vadd.f32 %v2122_v33, %v2121_v31  ;;  %v2419_v33 = vpop.permute.xlu0 %2418 }
 0x566   : > { %v2131_v37 = vmul.f32 %v2129_v35, %v2123_v34  ;;  %v2426_v34 = vpop.permute.xlu1 %2425 }
 0x568   : > { %v4369_v39 = vadd.f32 %v2138_v38, %v2131_v37 }
 0x56a   : > { %v2140_v44 = vmul.f32 %v4369_v39, %v2129_v35  ;;  %v2145_v45 = vpack.c.bf16 %v4369_v39, %v4369_v39  ;;  %v2428_v36 = vmul.f32 %v2426_v34, %v4369_v39 }
 0x56c   : > { %3302 = vst [vmem:[%s4145_s30 + $0x8] sm:$0x3] %v2140_v44  ;;  %2339 = vmatmul.mubr.bf16.vlgmr.msra.gmra.mrb[24].mxu0 %v2145_v45  ;;  %3590 = vmatmul.mubr.bf16.vlgmr.msra.gmra.mrb[24].mxu1 %v2145_v45 }
 0x56d   : > { %2597 = vmatpush1.bf16.msra.mxu0 %v4263_v49  ;;  %2628 = vmatprep.mubr.bf16.mxu0 %v3861_v2 }
 0x56e   : > { %2598 = vmatprep.subr.bf16.mxu0 %v4269_v53  ;;  %3609 = vmatprep.mubr.msk.bf16.mxu1 %vm3863_vm0, %v3860_v1 }
 0x56f   : > { %3594 = vmatpush3.bf16.msra.mxu1 %v3755_v40 }
 0x570   : > { %3595 = vmatprep.subr.bf16.mxu1 %v3860_v1 }
 0x571   : > { %2599 = vmatpush1.bf16.msra.mxu0 %v4273_v57 }
 0x572   : > { %2600 = vmatprep.subr.bf16.mxu0 %v4279_v59 }
 0x573   : > { %3596 = vmatpush3.bf16.msra.mxu1 %v3756_v42 }
 0x574   : > { %3597 = vmatprep.subr.bf16.mxu1 %v3860_v1 }
 0x575   : > { %2601 = vmatpush1.bf16.msra.mxu0 %v4283_v61 }
 0x576   : > { %2602 = vmatprep.subr.bf16.mxu0 %v4289_v5 }
 0x577   : > { %3598 = vmatpush3.bf16.msra.mxu1 %v3757_v51 }
 0x578   : > { %3599 = vmatprep.subr.bf16.mxu1 %v3860_v1 }
 0x579   : > { %2603 = vmatpush1.bf16.msra.mxu0 %v4293_v10 }
 0x57a   : > { %2604 = vmatprep.subr.bf16.mxu0 %v4299_v43 }
 0x57b   : > { %3600 = vmatpush3.bf16.msra.mxu1 %v3758_v58 }
 0x57c   : > { %3601 = vmatprep.subr.bf16.mxu1 %v3860_v1 }
 0x57d   : > { %2605 = vmatpush1.bf16.msra.mxu0 %v4303_v46 }
 0x57e   : > { %2606 = vmatprep.subr.bf16.mxu0 %v4217_v54 }
 0x581   : > { %2607 = vmatpush1.bf16.msra.mxu0 %v4221_v55 }
 0x582   : > { %2608 = vmatprep.subr.bf16.mxu0 %v4227_v60 }
 0x585   : > { %2609 = vmatpush1.bf16.msra.mxu0 %v4231_v7 }
 0x586   : > { %2610 = vmatprep.subr.bf16.mxu0 %v4236_v12 }
 0x589   : > { %2611 = vmatpush1.bf16.msra.mxu0 %v4240_v13 }
 0x58a   : > { %2886 = vmatprep.subr.bf16.mxu0 %v4260_v48  ;;  %v3759_v48 = vld [vmem:[%s3954_s24 + $0x68] ss:$12 sps:$4 sm:$0xff]  }
 0x58b   : > { %3602 = vmatpush3.bf16.msra.mxu1 %v3759_v48 }
 0x58c   : > { %3603 = vmatprep.subr.bf16.mxu1 %v3860_v1 }
 0x58f   : > { %3604 = vmatpush3.bf16.msra.mxu1 %v3760_v0 }
 0x590   : > { %3605 = vmatprep.subr.bf16.mxu1 %v3860_v1 }
 0x593   : > { %3606 = vmatpush3.bf16.msra.mxu1 %v3761_v41  ;;  %v3851_v41 = vld [vmem:[%s4131_s23] ss:$0 sm:$0xff] }
 0x594   : > { %3607 = vmatprep.subr.bf16.mxu1 %v3860_v1 }
 0x597   : > { %3608 = vmatpush3.bf16.msra.mxu1 %v3762_v50 }
 0x598   : > { %3613 = vmatprep.subr.bf16.mxu1 %v3860_v1 }
 0x63f   : > { %v2340_v56 = vpop.f32.mrb[24].mxu0  ;;  %v2381_v11 = vpop.f32.mrb[24].mxu1 }
 0x640   : > { %v2387_v14 = vadd.f32 %v2340_v56, %v2144_v52  ;;  %v2342_v15 = vpop.f32.mrb[25].mxu0  ;;  %v3591_v16 = vpop.f32.mrb[25].mxu1  ;;  %v2404_v21 = vadd.f32 %v4134_v47, %v2381_v11 }
 0x641   : > { %v2344_v9 = vpop.f32.mrb[26].mxu0  ;;  %v2384_v62 = vpop.f32.mrb[26].mxu1  ;;  %v2397_v4 = vadd.f32 %v2395_v17, %v2342_v15 }
 0x642   : > { %v3327_v63 = vmul.f32 -1.442695, %v2387_v14  ;;  %v2345_v3 = vpop.f32.mrb[27].mxu0  ;;  %v3592_v32 = vpop.f32.mrb[27].mxu1 }
 0x643   : > { %v3328_v6 = vmul.f32 -1.442695, %v2397_v4  ;;  %v2709_v3 = vpop.permute.xlu0 %2708  ;;  %v2716_v32 = vpop.permute.xlu1 %2715 }
 0x644   : > { %3821 = vpow2.f32 %v3327_v63 }
 0x645   : > { %3823 = vpow2.f32 %v3328_v6 }
 0x64e   : > { %v3822_v8 = vpop.eup %3821 }
 0x64f   : > { %v2391_v18 = vadd.f32 1.0, %v3822_v8  ;;  %v3824_v19 = vpop.eup %3823 }
 0x650   : > { %v2401_v20 = vadd.f32 1.0, %v3824_v19 }
 0x651   : > { %3825 = vrcp.f32 %v2391_v18 }
 0x652   : > { %3827 = vrcp.f32 %v2401_v20  ;;  %v2724_v20 = vld [vmem:[#allocation2 + $0x2a] sm:$0x3f] }
 0x65b   : > { %v3826_v22 = vpop.eup %3825 }
 0x65c   : > { %v2405_v24 = vmul.f32 %v3826_v22, %v2404_v21  ;;  %v3828_v26 = vpop.eup %3827 }
 0x65d   : > { %v2410_v27 = vsub.f32 1.0, %v3828_v26  ;;  %v2412_v30 = vmul.f32 %v3828_v26, %v4369_v39  ;;  %v2975_v26 = vrot.slane %v2724_v20, 2 }
 0x65e   : > { %v2408_v25 = vadd.f32 %v2406_v23, %v2405_v24 }
 0x660   : > { %3829 = vtanh.f32 %v2408_v25 }
 0x66a   : > { %v3830_v28 = vpop.eup %3829 }
 0x66b   : > { %v2411_v29 = vmul.f32 %v3830_v28, %v2410_v27 }
 0x66d   : > { %v2413_v31 = vadd.f32 %v2412_v30, %v2411_v29 }
 0x66f   : > { %v2421_v35 = vmul.f32 %v2419_v33, %v2413_v31 }
 0x671   : > { %v4413_v47 = vadd.f32 %v2428_v36, %v2421_v35 }
 0x673   : > { %v2430_v37 = vmul.f32 %v4413_v47, %v2419_v33  ;;  %v2435_v38 = vpack.c.bf16 %v4413_v47, %v4413_v47  ;;  %v2718_v6 = vmul.f32 %v2716_v32, %v4413_v47 }
 0x675   : > { %3330 = vst [vmem:[%s4145_s30 + $0xa] sm:$0x3] %v2430_v37  ;;  %2629 = vmatmul.mubr.bf16.vlgmr.msra.gmra.mrb[28].mxu0 %v2435_v38  ;;  %3610 = vmatmul.mubr.bf16.vlgmr.msra.gmra.mrb[28].mxu1 %v2435_v38 }
 0x676   : > { %2887 = vmatpush1.bf16.msra.mxu0 %v4263_v49  ;;  %2918 = vmatprep.mubr.bf16.mxu0 %v3861_v2  ;;  %v3763_v2 = vld [vmem:[%s3954_s24 + $0x8] ss:$12 sps:$4 sm:$0xff]   ;;  %v3764_v49 = vld [vmem:[%s3954_s24 + $0x20] ss:$12 sps:$4 sm:$0xff]  }
 0x677   : > { %2888 = vmatprep.subr.bf16.mxu0 %v4269_v53  ;;  %3629 = vmatprep.mubr.msk.bf16.mxu1 %vm3863_vm0, %v3860_v1  ;;  %v2434_v53 = vld [vmem:[#allocation2 + $0x24] sm:$0x3f] }
 0x678   : > { %3614 = vmatpush3.bf16.msra.mxu1 %v3763_v2  ;;  %v2696_v56 = vrot.slane %v2434_v53, 4 }
 0x679   : > { %3615 = vmatprep.subr.bf16.mxu1 %v3860_v1 }
 0x67a   : > { %2889 = vmatpush1.bf16.msra.mxu0 %v4273_v57 }
 0x67b   : > { %2890 = vmatprep.subr.bf16.mxu0 %v4279_v59 }
 0x67c   : > { %3616 = vmatpush3.bf16.msra.mxu1 %v3764_v49  ;;  %v2986_v49 = vrot.slane %v2724_v20, 4 }
 0x67d   : > { %3617 = vmatprep.subr.bf16.mxu1 %v3860_v1 }
 0x67e   : > { %2891 = vmatpush1.bf16.msra.mxu0 %v4283_v61 }
 0x67f   : > { %2892 = vmatprep.subr.bf16.mxu0 %v4289_v5 }
 0x682   : > { %2893 = vmatpush1.bf16.msra.mxu0 %v4293_v10 }
 0x683   : > { %2894 = vmatprep.subr.bf16.mxu0 %v4299_v43  ;;  %v2685_v43 = vrot.slane %v2434_v53, 2 }
 0x686   : > { %2895 = vmatpush1.bf16.msra.mxu0 %v4303_v46 }
 0x687   : > { %2896 = vmatprep.subr.bf16.mxu0 %v4217_v54  ;;  %v3765_v54 = vld [vmem:[%s3954_s24 + $0x38] ss:$12 sps:$4 sm:$0xff]  }
 0x688   : > { %3618 = vmatpush3.bf16.msra.mxu1 %v3765_v54 }
 0x689   : > { %3619 = vmatprep.subr.bf16.mxu1 %v3860_v1 }
 0x68a   : > { %2897 = vmatpush1.bf16.msra.mxu0 %v4221_v55  ;;  %v3766_v55 = vld [vmem:[%s3954_s24 + $0x50] ss:$12 sps:$4 sm:$0xff]  }
 0x68b   : > { %2898 = vmatprep.subr.bf16.mxu0 %v4227_v60  ;;  %v3767_v60 = vld [vmem:[%s3954_s24 + $0x68] ss:$12 sps:$4 sm:$0xff]  }
 0x68c   : > { %3620 = vmatpush3.bf16.msra.mxu1 %v3766_v55 }
 0x68d   : > { %3621 = vmatprep.subr.bf16.mxu1 %v3860_v1 }
 0x68e   : > { %2899 = vmatpush1.bf16.msra.mxu0 %v4231_v7  ;;  %v3768_v7 = vld [vmem:[%s3954_s24 + $0x80] ss:$12 sps:$4 sm:$0xff]  }
 0x68f   : > { %2900 = vmatprep.subr.bf16.mxu0 %v4236_v12  ;;  %v3769_v12 = vld [vmem:[%s3954_s24 + $0x98] ss:$12 sps:$4 sm:$0xff]  }
 0x690   : > { %3622 = vmatpush3.bf16.msra.mxu1 %v3767_v60 }
 0x691   : > { %3623 = vmatprep.subr.bf16.mxu1 %v3860_v1 }
 0x692   : > { %2901 = vmatpush1.bf16.msra.mxu0 %v4240_v13  ;;  %v3770_v13 = vld [vmem:[%s3954_s24 + $0xb0] ss:$12 sps:$4 sm:$0xff]   ;;  %s3155_s24 = sshll.u32 %s4474_s28, 1 }
 0x693   : > { %s384_s11 = scalar_lea.vmem %s4472_s8, %s3155_s24 }
 0x694   : > { %3624 = vmatpush3.bf16.msra.mxu1 %v3768_v7 }
 0x695   : > { %3625 = vmatprep.subr.bf16.mxu1 %v3860_v1 }
 0x698   : > { %3626 = vmatpush3.bf16.msra.mxu1 %v3769_v12 }
 0x699   : > { %3627 = vmatprep.subr.bf16.mxu1 %v3860_v1 }
 0x69c   : > { %3628 = vmatpush3.bf16.msra.mxu1 %v3770_v13 }
 0x748   : > { %v2630_v57 = vpop.f32.mrb[28].mxu0  ;;  %v2671_v59 = vpop.f32.mrb[28].mxu1 }
 0x749   : > { %v2677_v61 = vadd.f32 %v2630_v57, %v2434_v53  ;;  %v2632_v5 = vpop.f32.mrb[29].mxu0  ;;  %v3611_v10 = vpop.f32.mrb[29].mxu1  ;;  %v2694_v50 = vadd.f32 %v3851_v41, %v2671_v59 }
 0x74a   : > { %v2634_v46 = vpop.f32.mrb[30].mxu0  ;;  %v2674_v39 = vpop.f32.mrb[30].mxu1  ;;  %v2687_v42 = vadd.f32 %v2685_v43, %v2632_v5 }
 0x74b   : > { %v3355_v44 = vmul.f32 -1.442695, %v2677_v61  ;;  %v2635_v45 = vpop.f32.mrb[31].mxu0  ;;  %v3612_v40 = vpop.f32.mrb[31].mxu1 }
 0x74c   : > { %v3356_v51 = vmul.f32 -1.442695, %v2687_v42  ;;  %v2999_v59 = vpop.permute.xlu0 %2998  ;;  %v3006_v61 = vpop.permute.xlu1 %3005 }
 0x74d   : > { %3831 = vpow2.f32 %v3355_v44 }
 0x74e   : > { %3833 = vpow2.f32 %v3356_v51 }
 0x757   : > { %v3832_v58 = vpop.eup %3831 }
 0x758   : > { %v2681_v1 = vadd.f32 1.0, %v3832_v58  ;;  %v3834_v48 = vpop.eup %3833 }
 0x759   : > { %v2691_v0 = vadd.f32 1.0, %v3834_v48 }
 0x75a   : > { %3835 = vrcp.f32 %v2681_v1 }
 0x75b   : > { %3837 = vrcp.f32 %v2691_v0 }
 0x764   : > { %v3836_v52 = vpop.eup %3835 }
 0x765   : > { %v2695_v11 = vmul.f32 %v3836_v52, %v2694_v50  ;;  %v3838_v15 = vpop.eup %3837 }
 0x766   : > { %v2700_v16 = vsub.f32 1.0, %v3838_v15  ;;  %v2702_v62 = vmul.f32 %v3838_v15, %v4413_v47 }
 0x767   : > { %v2698_v14 = vadd.f32 %v2696_v56, %v2695_v11 }
 0x769   : > { %3839 = vtanh.f32 %v2698_v14 }
 0x773   : > { %v3840_v17 = vpop.eup %3839 }
 0x774   : > { %v2701_v9 = vmul.f32 %v3840_v17, %v2700_v16 }
 0x776   : > { %v2703_v63 = vadd.f32 %v2702_v62, %v2701_v9 }
 0x778   : > { %v2711_v4 = vmul.f32 %v2709_v3, %v2703_v63 }
 0x77a   : > { %v2719_v8 = vadd.f32 %v2718_v6, %v2711_v4 }
 0x77c   : > { %v2720_v18 = vmul.f32 %v2719_v8, %v2709_v3  ;;  %v2725_v19 = vpack.c.bf16 %v2719_v8, %v2719_v8  ;;  %v3008_v5 = vmul.f32 %v3006_v61, %v2719_v8 }
 0x77e   : > { %3358 = vst [vmem:[%s4145_s30 + $0xc] sm:$0x3] %v2720_v18  ;;  %2919 = vmatmul.mubr.bf16.vlgmr.msra.gmra.mrb[32].mxu0 %v2725_v19  ;;  %3630 = vmatmul.mubr.bf16.vlgmr.msra.gmra.mrb[32].mxu1 %v2725_v19 }
 0x851   : > { %v2920_v21 = vpop.f32.mrb[32].mxu0  ;;  %v2961_v22 = vpop.f32.mrb[32].mxu1 }
 0x852   : > { %v2967_v23 = vadd.f32 %v2920_v21, %v2724_v20  ;;  %v2922_v24 = vpop.f32.mrb[33].mxu0  ;;  %v3631_v25 = vpop.f32.mrb[33].mxu1  ;;  %v2984_v38 = vadd.f32 %v3851_v41, %v2961_v22 }
 0x853   : > { %v2924_v27 = vpop.f32.mrb[34].mxu0  ;;  %v2964_v28 = vpop.f32.mrb[34].mxu1  ;;  %v2977_v33 = vadd.f32 %v2975_v26, %v2922_v24 }
 0x854   : > { %v3383_v29 = vmul.f32 -1.442695, %v2967_v23  ;;  %v2925_v30 = vpop.f32.mrb[35].mxu0  ;;  %v3632_v31 = vpop.f32.mrb[35].mxu1 }
 0x855   : > { %v3384_v34 = vmul.f32 -1.442695, %v2977_v33 }
 0x856   : > { %3841 = vpow2.f32 %v3383_v29 }
 0x857   : > { %3843 = vpow2.f32 %v3384_v34 }
 0x860   : > { %v3842_v35 = vpop.eup %3841 }
 0x861   : > { %v2971_v36 = vadd.f32 1.0, %v3842_v35  ;;  %v3844_v47 = vpop.eup %3843 }
 0x862   : > { %v2981_v37 = vadd.f32 1.0, %v3844_v47 }
 0x863   : > { %3845 = vrcp.f32 %v2971_v36 }
 0x864   : > { %3847 = vrcp.f32 %v2981_v37 }
 0x86d   : > { %v3846_v2 = vpop.eup %3845 }
 0x86e   : > { %v2985_v54 = vmul.f32 %v3846_v2, %v2984_v38  ;;  %v3848_v60 = vpop.eup %3847 }
 0x86f   : > { %v2990_v7 = vsub.f32 1.0, %v3848_v60  ;;  %v2992_v53 = vmul.f32 %v3848_v60, %v2719_v8 }
 0x870   : > { %v2988_v55 = vadd.f32 %v2986_v49, %v2985_v54 }
 0x872   : > { %3849 = vtanh.f32 %v2988_v55 }
 0x87c   : > { %v3850_v12 = vpop.eup %3849 }
 0x87d   : > { %v2991_v13 = vmul.f32 %v3850_v12, %v2990_v7 }
 0x87f   : > { %v2993_v57 = vadd.f32 %v2992_v53, %v2991_v13 }
 0x881   : > { %v3001_v10 = vmul.f32 %v2999_v59, %v2993_v57 }
 0x883   : > { %v3009_v43 = vadd.f32 %v3008_v5, %v3001_v10 }
 0x885   : > { %v3010_v46 = vmul.f32 %v3009_v43, %v2999_v59  ;;  %3013 = vst [vmem:[%s384_s11] sm:$0x3] %v3009_v43 }
 0x887   : > { %3386 = vst [vmem:[%s4145_s30 + $0xe] sm:$0x3] %v3010_v46 }
 0x888 PF: > { %s19_s27 = sadd.s32 1, %s3858_s27  }
 0x889   : > { %p16_p4 = scmp.ge.s32.totalorder %s19_s27, 4  }
 0x88b   :  { %18 = sbr.rel (!%p16_p4) target bundleno = 1 (0x1), region = 123 }

// kernel: encoder_decoder_forward.7
= control target key start
LH: loop header
LB: loop body
LE: loop exit
PB: predicated region body
PF: predicated region fallthrough
CT: control target
= control target key end

     0   :  { %s12375_s0 = inlined_call_operand.vmem [shape: f32[8,2,32], index: 0, kind: input, shape index: {}]   ;;  %s12376_s1 = inlined_call_operand.vmem [shape: bf16[2,8,64], index: 1, kind: input, shape index: {}]   ;;  %s12377_s2 = inlined_call_operand.vmem [shape: f32[2,8,128], index: 2, kind: input, shape index: {}]   ;;  %s12378_s3 = inlined_call_operand.vmem [shape: f32[2,8], index: 3, kind: input, shape index: {}]   ;;  %s12379_s4 = inlined_call_operand.vmem [shape: f32[2,128], index: 4, kind: input, shape index: {}]   ;;  %s12380_s5 = inlined_call_operand.vmem [shape: bf16[128,512], index: 5, kind: input, shape index: {}]   ;;  %s12381_s6 = inlined_call_operand.vmem [shape: bf16[64,512], index: 6, kind: input, shape index: {}]   ;;  %s12382_s7 = inlined_call_operand.vmem [shape: bf16[32,384], index: 7, kind: input, shape index: {}]   ;;  %s12383_s8 = inlined_call_operand.vmem [shape: bf16[32,128], index: 8, kind: input, shape index: {}]   ;;  %s12384_s9 = inlined_call_operand.vmem [shape: bf16[128,128], index: 9, kind: input, shape index: {}]   ;;  %s12385_s10 = inlined_call_operand.vmem [shape: bf16[128,1], index: 10, kind: input, shape index: {}]   ;;  %s12386_s11 = inlined_call_operand.vmem [shape: f32[1,384], index: 11, kind: input, shape index: {}]   ;;  %s12387_s12 = inlined_call_operand.vmem [shape: f32[1,128], index: 12, kind: input, shape index: {}]   ;;  %s12388_s13 = inlined_call_operand.vmem [shape: f32[1,128], index: 13, kind: input, shape index: {}]   ;;  %s12389_s14 = inlined_call_operand.vmem [shape: f32[8,2,128], index: 14, kind: output, shape index: {0}]   ;;  %s12390_s15 = inlined_call_operand.vmem [shape: f32[8,2,128], index: 15, kind: output, shape index: {1}]   ;;  %s12391_s16 = inlined_call_operand.hbm [shape: f32[2,128], index: 16, kind: output, shape index: {2}]  }
   0x1   :  { %12430 = sst [smem:[#allocation19_spill]] %s12375_s0 }
   0x2   :  { %v9078_v0 = vld [vmem:[%s12382_s7 + $0x4] ss:$12 sps:$4 sm:$0xff]   ;;  %v9080_v1 = vld [vmem:[%s12382_s7] ss:$12 sps:$4 sm:$0xff]   ;;  %v12393_v2 = vmov 0   ;;  %v73_v3 = vlaneseq  ;;  %s12431_s0 = sld [smem:[#allocation19_spill]] }
   0x3   :  { %198 = vmatprep.mubr.bf16.mxu0 %v12393_v2  ;;  %694 = vmatprep.mubr.bf16.mxu1 %v12393_v2  ;;  %v9081_v4 = vld [vmem:[%s12382_s7 + $0x1c] ss:$12 sps:$4 sm:$0xff]   ;;  %v9083_v5 = vld [vmem:[%s12382_s7 + $0x18] ss:$12 sps:$4 sm:$0xff]   ;;  %v9699_v7 = vmov 1983009808  }
   0x4   :  { %166 = vmatprep.subr.bf16.mxu0 %v9078_v0  ;;  %v71_v8 = vunpack.c.l.s4 %v9699_v7  ;;  %9076 = vset.pattern.permute.xlu0 %v12393_v2  ;;  %v9830_v19 = vshrl.u32 %v73_v3, 7  ;;  %v9700_v23 = vmov 0.0   ;;  %vm162_vm0 = vcmask 261120   ;;  %v9084_v30 = vld [vmem:[%s12382_s7 + $0x8] ss:$12 sps:$4 sm:$0xff]   ;;  %v9086_v33 = vld [vmem:[%s12383_s8] sm:$0xff]  }
   0x5   :  { %167 = vmatpush1.bf16.msra.mxu0 %v9080_v1  ;;  %9077 = vset.pattern.permute.xlu1 %v12393_v2  ;;  %v9085_v32 = vld [vmem:[%s12382_s7 + $0x20] ss:$12 sps:$4 sm:$0xff]   ;;  %vm9701_vm1 = vmmov 0   ;;  %v9088_v36 = vld [vmem:[%s12380_s5 + $0x8] ss:$16 sps:$4 sm:$0xff]  }
   0x6   :  { %168 = vmatprep.subr.bf16.mxu0 %v9081_v4  ;;  %v72_v15 = vunpack.c.0.s8 %v71_v8  ;;  %v9087_v34 = vld [vmem:[%s12383_s8 + $0x8] sm:$0xff]   ;;  %v468_v51 = vld [vmem:[%s12379_s4] sm:$0x3]  ;;  %v9920_v53 = vld [vmem:[%s12380_s5 + $0x4] ss:$16 sps:$4 sm:$0xff]  }
   0x7   :  { %v9090_v35 = vld [vmem:[%s12380_s5 + $0xc] ss:$16 sps:$4 sm:$0xff]   ;;  %v9091_v38 = vld [vmem:[%s12380_s5 + $0x28] ss:$16 sps:$4 sm:$0xff]   ;;  %v469_v52 = vpack.c.bf16 %v468_v51, %v468_v51  ;;  %v9925_v54 = vld [vmem:[%s12380_s5] ss:$16 sps:$4 sm:$0xff]   ;;  %662 = vmatprep.subr.bf16.mxu1 %v9920_v53 }
   0x8   :  { %v52_v6 = vld [vmem:[%s12431_s0] sm:$0x3]  ;;  %v53_v9 = vld [vmem:[%s12431_s0 + $0x2] sm:$0x3]  ;;  %v54_v10 = vld [vmem:[%s12431_s0 + $0x4] sm:$0x3]  ;;  %v9833_v22 = vsub.s32 %v72_v15, %v9830_v19  ;;  %663 = vmatpush1.bf16.msra.mxu1 %v9925_v54 }
   0x9   :  { %v55_v11 = vld [vmem:[%s12431_s0 + $0x6] sm:$0x3]  ;;  %v56_v12 = vld [vmem:[%s12431_s0 + $0x8] sm:$0x3]  ;;  %v57_v13 = vld [vmem:[%s12431_s0 + $0xa] sm:$0x3]  ;;  %v68_v17 = vcombine.low %v52_v6, %v53_v9  ;;  %169 = vmatpush1.bf16.msra.mxu0 %v9083_v5 }
   0xa   :  { %v58_v14 = vld [vmem:[%s12431_s0 + $0xc] sm:$0x3]  ;;  %v59_v16 = vld [vmem:[%s12431_s0 + $0xe] sm:$0x3]  ;;  %v69_v18 = vcombine.low %v54_v10, %v55_v11  ;;  %v85_v20 = vcombine.low %v56_v12, %v57_v13  ;;  %8638 = vmatprep.subr.bf16.mxu0 %v9700_v23  ;;  %v9094_v40 = vld [vmem:[%s12380_s5 + $0x48] ss:$16 sps:$4 sm:$0xff]  }
   0xb   :  { %v86_v21 = vcombine.low %v58_v14, %v59_v16  ;;  %v76_v24 = vrot.slane %v68_v17, %v9833_v22  ;;  %v9093_v37 = vld [vmem:[%s12380_s5 + $0x2c] ss:$16 sps:$4 sm:$0xff]   ;;  %v9097_v42 = vld [vmem:[%s12380_s5 + $0x68] ss:$16 sps:$4 sm:$0xff]   ;;  %v9932_v55 = vld [vmem:[%s12380_s5 + $0x24] ss:$16 sps:$4 sm:$0xff]  }
   0xc   :  { %v83_v25 = vrot.slane %v69_v18, %v9833_v22  ;;  %v93_v26 = vrot.slane %v85_v20, %v9833_v22  ;;  %v9096_v39 = vld [vmem:[%s12380_s5 + $0x4c] ss:$16 sps:$4 sm:$0xff]   ;;  %v9100_v44 = vld [vmem:[%s12380_s5 + $0x88] ss:$16 sps:$4 sm:$0xff]   ;;  %v9937_v56 = vld [vmem:[%s12380_s5 + $0x20] ss:$16 sps:$4 sm:$0xff]   ;;  %664 = vmatprep.subr.bf16.mxu1 %v9932_v55 }
   0xd   :  { %v100_v27 = vrot.slane %v86_v21, %v9833_v22  ;;  %v9099_v41 = vld [vmem:[%s12380_s5 + $0x6c] ss:$16 sps:$4 sm:$0xff]   ;;  %v9103_v46 = vld [vmem:[%s12380_s5 + $0xa8] ss:$16 sps:$4 sm:$0xff]   ;;  %665 = vmatpush1.bf16.msra.mxu1 %v9937_v56  ;;  %v9944_v57 = vld [vmem:[%s12380_s5 + $0x44] ss:$16 sps:$4 sm:$0xff]  }
   0xe   :  { %v84_v28 = vcombine.low %v76_v24, %v83_v25  ;;  %v9102_v43 = vld [vmem:[%s12380_s5 + $0x8c] ss:$16 sps:$4 sm:$0xff]   ;;  %v9106_v48 = vld [vmem:[%s12380_s5 + $0xc8] ss:$16 sps:$4 sm:$0xff]   ;;  %v9949_v58 = vld [vmem:[%s12380_s5 + $0x40] ss:$16 sps:$4 sm:$0xff]   ;;  %666 = vmatprep.subr.bf16.mxu1 %v9944_v57 }
   0xf   :  { %v101_v29 = vcombine.low %v93_v26, %v100_v27  ;;  %v9105_v45 = vld [vmem:[%s12380_s5 + $0xac] ss:$16 sps:$4 sm:$0xff]   ;;  %v9109_v50 = vld [vmem:[%s12380_s5 + $0xe8] ss:$16 sps:$4 sm:$0xff]   ;;  %v9956_v59 = vld [vmem:[%s12380_s5 + $0x64] ss:$16 sps:$4 sm:$0xff]  }
  0x10   :  { %v9108_v47 = vld [vmem:[%s12380_s5 + $0xcc] ss:$16 sps:$4 sm:$0xff]   ;;  %v9961_v60 = vld [vmem:[%s12380_s5 + $0x60] ss:$16 sps:$4 sm:$0xff]   ;;  %v9968_v61 = vld [vmem:[%s12380_s5 + $0x84] ss:$16 sps:$4 sm:$0xff]  }
  0x11   :  { %v104_v31 = vpack.c.bf16 %v101_v29, %v84_v28  ;;  %v9111_v49 = vld [vmem:[%s12380_s5 + $0xec] ss:$16 sps:$4 sm:$0xff]   ;;  %667 = vmatpush1.bf16.msra.mxu1 %v9949_v58  ;;  %v9973_v62 = vld [vmem:[%s12380_s5 + $0x80] ss:$16 sps:$4 sm:$0xff]   ;;  %v9980_v63 = vld [vmem:[%s12380_s5 + $0xa4] ss:$16 sps:$4 sm:$0xff]  }
  0x12   :  { %668 = vmatprep.subr.bf16.mxu1 %v9956_v59  ;;  %v9985_v0 = vld [vmem:[%s12380_s5 + $0xa0] ss:$16 sps:$4 sm:$0xff]   ;;  %v9991_v1 = vld [vmem:[%s12380_s5 + $0xc4] ss:$16 sps:$4 sm:$0xff]   ;;  %v9137_v8 = vld [vmem:[%s12385_s10 + $0x8] sm:$0xff]  }
  0x13   :  { %7871 = vmatmul.mubr.msk.bf16.vlgmr.msra.gmra.mrb[0].mxu0 %vm162_vm0, %v104_v31  ;;  %v9997_v4 = vld [vmem:[%s12380_s5 + $0xc0] ss:$16 sps:$4 sm:$0xff]   ;;  %v10003_v5 = vld [vmem:[%s12380_s5 + $0xe4] ss:$16 sps:$4 sm:$0xff]   ;;  %v9139_v10 = vld [vmem:[%s12385_s10 + $0x18] sm:$0xff]  }
  0x14   :  { %8639 = vmatpush3.bf16.msra.mxu0 %v9084_v30  ;;  %8642 = vmatprep.mubr.msk.bf16.mxu0 %vm9701_vm1, %v9700_v23  ;;  %v10008_v6 = vld [vmem:[%s12380_s5 + $0xe0] ss:$16 sps:$4 sm:$0xff]   ;;  %v9141_v12 = vld [vmem:[%s12385_s10 + $0x28] sm:$0xff]   ;;  %v9143_v14 = vld [vmem:[%s12385_s10 + $0x38] sm:$0xff]  }
  0x15   :  { %8640 = vmatprep.subr.bf16.mxu0 %v9700_v23  ;;  %669 = vmatpush1.bf16.msra.mxu1 %v9961_v60  ;;  %v9136_v7 = vld [vmem:[%s12385_s10] sm:$0xff]   ;;  %v9138_v9 = vld [vmem:[%s12385_s10 + $0x10] sm:$0xff]  }
  0x16   :  { %670 = vmatprep.subr.bf16.mxu1 %v9968_v61  ;;  %v9140_v11 = vld [vmem:[%s12385_s10 + $0x20] sm:$0xff]   ;;  %v9142_v13 = vld [vmem:[%s12385_s10 + $0x30] sm:$0xff]  }
  0x18   :  { %8641 = vmatpush3.bf16.msra.mxu0 %v9085_v32 }
  0x19   :  { %8646 = vmatprep.subr.bf16.mxu0 %v9700_v23  ;;  %671 = vmatpush1.bf16.msra.mxu1 %v9973_v62 }
  0x1a   :  { %672 = vmatprep.subr.bf16.mxu1 %v9980_v63 }
  0x1b   :  { %8643 = vmatmul.mubr.msk.bf16.vlgmr.msra.gmra.mrb[4].mxu0 %vm162_vm0, %v104_v31 }
  0x1c   :  { %8647 = vmatpush3.bf16.msra.mxu0 %v9086_v33  ;;  %8650 = vmatprep.mubr.msk.bf16.mxu0 %vm9701_vm1, %v9700_v23 }
  0x1d   :  { %8648 = vmatprep.subr.bf16.mxu0 %v9700_v23  ;;  %673 = vmatpush1.bf16.msra.mxu1 %v9985_v0 }
  0x1e   :  { %674 = vmatprep.subr.bf16.mxu1 %v9991_v1 }
  0x20   :  { %8649 = vmatpush3.bf16.msra.mxu0 %v9087_v34 }
  0x21   :  { %703 = vmatprep.subr.bf16.mxu0 %v9090_v35  ;;  %675 = vmatpush1.bf16.msra.mxu1 %v9997_v4 }
  0x22   :  { %676 = vmatprep.subr.bf16.mxu1 %v10003_v5 }
  0x23   :  { %8651 = vmatmul.mubr.msk.bf16.vlgmr.msra.gmra.mrb[8].mxu0 %vm162_vm0, %v104_v31 }
  0x24   :  { %704 = vmatpush1.bf16.msra.mxu0 %v9088_v36  ;;  %735 = vmatprep.mubr.bf16.mxu0 %v12393_v2 }
  0x25   :  { %705 = vmatprep.subr.bf16.mxu0 %v9093_v37  ;;  %677 = vmatpush1.bf16.msra.mxu1 %v10008_v6 }
  0x26   :  { %8654 = vmatprep.subr.bf16.mxu1 %v9700_v23 }
  0x28   :  { %706 = vmatpush1.bf16.msra.mxu0 %v9091_v38  ;;  %695 = vmatmul.mubr.bf16.vlgmr.msra.gmra.mrb[0].mxu1 %v469_v52 }
  0x29   :  { %707 = vmatprep.subr.bf16.mxu0 %v9096_v39  ;;  %8655 = vmatpush3.bf16.msra.mxu1 %v9136_v7 }
  0x2a   :  { %8670 = vmatprep.mubr.msk.bf16.mxu1 %vm9701_vm1, %v9700_v23  ;;  %8656 = vmatprep.subr.bf16.mxu1 %v9700_v23 }
  0x2c   :  { %708 = vmatpush1.bf16.msra.mxu0 %v9094_v40 }
  0x2d   :  { %709 = vmatprep.subr.bf16.mxu0 %v9099_v41  ;;  %8657 = vmatpush3.bf16.msra.mxu1 %v9137_v8 }
  0x2e   :  { %8658 = vmatprep.subr.bf16.mxu1 %v9700_v23 }
  0x30   :  { %710 = vmatpush1.bf16.msra.mxu0 %v9097_v42 }
  0x31   :  { %711 = vmatprep.subr.bf16.mxu0 %v9102_v43  ;;  %8659 = vmatpush3.bf16.msra.mxu1 %v9138_v9 }
  0x32   :  { %8660 = vmatprep.subr.bf16.mxu1 %v9700_v23 }
  0x34   :  { %712 = vmatpush1.bf16.msra.mxu0 %v9100_v44 }
  0x35   :  { %713 = vmatprep.subr.bf16.mxu0 %v9105_v45  ;;  %8661 = vmatpush3.bf16.msra.mxu1 %v9139_v10 }
  0x36   :  { %8662 = vmatprep.subr.bf16.mxu1 %v9700_v23 }
  0x38   :  { %714 = vmatpush1.bf16.msra.mxu0 %v9103_v46 }
  0x39   :  { %715 = vmatprep.subr.bf16.mxu0 %v9108_v47  ;;  %8663 = vmatpush3.bf16.msra.mxu1 %v9140_v11 }
  0x3a   :  { %8664 = vmatprep.subr.bf16.mxu1 %v9700_v23 }
  0x3c   :  { %716 = vmatpush1.bf16.msra.mxu0 %v9106_v48 }
  0x3d   :  { %717 = vmatprep.subr.bf16.mxu0 %v9111_v49  ;;  %8665 = vmatpush3.bf16.msra.mxu1 %v9141_v12 }
  0x3e   :  { %8666 = vmatprep.subr.bf16.mxu1 %v9700_v23 }
  0x40   :  { %718 = vmatpush1.bf16.msra.mxu0 %v9109_v50 }
  0x41   :  { %8674 = vmatprep.subr.bf16.mxu0 %v9700_v23  ;;  %8667 = vmatpush3.bf16.msra.mxu1 %v9142_v13 }
  0x42   :  { %8668 = vmatprep.subr.bf16.mxu1 %v9700_v23 }
  0x43   :  { %736 = vmatmul.mubr.bf16.vlgmr.msra.gmra.mrb[12].mxu0 %v469_v52 }
  0x44   :  { %8676 = vmatprep.mubr.msk.bf16.mxu0 %vm9701_vm1, %v9700_v23 }
  0x45   :  { %8669 = vmatpush3.bf16.msra.mxu1 %v9143_v14 }
  0x46   :  { %22 = vsyncpa [#allocation5], 0  ;;  %v10048_v15 = vsub.s32 0, %v9830_v19  ;;  %v113_v16 = vld [vmem:[%s12386_s11] sm:$0x7]  ;;  %v121_v17 = vsub.s32 1, %v9830_v19 }
  0x47   :  { %v125_v26 = vsub.s32 2, %v9830_v19  ;;  %v7873_v7 = vld [vmem:[%s12388_s13] ss:$0 sm:$0xff]  ;;  %vm906_vm2 = vcmask 1041409   ;;  %vm910_vm4 = vcmask 58368   ;;  %vm955_vm5 = vcmask 1043456  }
  0x48   :  { %v118_v18 = vrot.slane %v113_v16, %v10048_v15  ;;  %v122_v20 = vrot.slane %v113_v16, %v121_v17  ;;  %vm951_vm6 = vcmask 64512   ;;  %vm1150_vm7 = vcmask 523264   ;;  %s9703_s21 = smov [#allocation4]  }
  0x49   :  { %v126_v34 = vrot.slane %v113_v16, %v125_v26  ;;  %s7853_s22 = sshll.u32 %s9703_s21, 4  ;;  %s7854_s22 = int_to_ptr.vmem [resolvable:$true] %s7853_s22 }
  0x4a   :  { %s9674_s11 = scalar_lea.vmem %s7854_s22, 32  ;;  %p9679_p1 = scmp.lt.s32.totalorder %s7854_s22, %s7854_s22 }
  0x4b   :  { %p9675_p0 = scmp.ne.s32.totalorder %s7854_s22, %s9674_s11  ;;  %p9680_p2 = scmp.lt.s32.totalorder %s9674_s11, %s9674_s11 }
  0x4d   :  { %p9681_p3 = por %p9680_p2, %p9679_p1 }
  0x4f   :  { %p9682_p4 = pnand %p9681_p3, %p9675_p0 }
  0xe6   :  { %v200_v21 = vpop.f32.mrb[0].mxu0 }
  0xe7   :  { %v201_v24 = vadd.f32 %v200_v21, %v118_v18  ;;  %v202_v25 = vpop.f32.mrb[1].mxu0 }
  0xe8   :  { %v203_v27 = vadd.f32 %v202_v25, %v122_v20  ;;  %v204_v28 = vpop.f32.mrb[2].mxu0 }
  0xe9   :  { %v205_v29 = vadd.f32 %v204_v28, %v118_v18  ;;  %v206_v30 = vpop.f32.mrb[3].mxu0 }
  0xea   :  { %v256_v31 = vcombine.low %v201_v24, %v203_v27  ;;  %v257_v32 = vcombine.high %v201_v24, %v203_v27  ;;  %v207_v33 = vadd.f32 %v206_v30, %v122_v20 }
  0xec   :  { %v291_v35 = vcombine.low %v205_v29, %v207_v33  ;;  %v292_v36 = vcombine.high %v205_v29, %v207_v33  ;;  %v265_v41 = vrot.slane %v256_v31, %v9833_v22  ;;  %v272_v46 = vrot.slane %v257_v32, %v9833_v22 }
  0xee   :  { %v243_v37 = vpop.f32.mrb[4].mxu0  ;;  %v300_v51 = vrot.slane %v291_v35, %v9833_v22  ;;  %v307_v8 = vrot.slane %v292_v36, %v9833_v22  ;;  %v9702_v36 = vmov 1966171168  }
  0xef   :  { %v244_v38 = vadd.f32 %v243_v37, %v126_v34  ;;  %v8644_v39 = vpop.f32.mrb[5].mxu0  ;;  %v746_v37 = vunpack.c.l.s4 %v9702_v36  ;;  %v949_v36 = vld [vmem:[%s12376_s1] sm:$0xf] }
  0xf0   :  { %v246_v40 = vpop.f32.mrb[6].mxu0 }
  0xf1   :  { %v258_v42 = vcombine.high %v244_v38, %v244_v38  ;;  %v279_v43 = vrot.slane %v244_v38, %v9833_v22  ;;  %v247_v44 = vadd.f32 %v246_v40, %v126_v34  ;;  %v8645_v45 = vpop.f32.mrb[7].mxu0  ;;  %v747_v38 = vunpack.c.0.s8 %v746_v37 }
  0xf2   :  { %v957_v37 = vsel %vm955_vm5, %v949_v36, 0 }
  0xf3   :  { %v286_v47 = vrot.slane %v258_v42, %v9833_v22  ;;  %v287_v48 = vcombine.low %v265_v41, %v279_v43  ;;  %v288_v49 = vcombine.high %v265_v41, %v279_v43  ;;  %v293_v50 = vcombine.high %v247_v44, %v247_v44  ;;  %8675 = vmatpush3.bf16.msra.mxu0 %v957_v37 }
  0xf4   :  { %v314_v52 = vrot.slane %v247_v44, %v9833_v22  ;;  %v10072_v39 = vsub.s32 %v747_v38, %v9830_v19  ;;  %8680 = vmatprep.subr.bf16.mxu0 %v9700_v23 }
  0xf5   :  { %v289_v9 = vcombine.low %v272_v46, %v286_v47  ;;  %v290_v10 = vcombine.high %v272_v46, %v286_v47  ;;  %334 = vst [vmem:[#allocation2] sm:$0x3f] %v287_v48  ;;  %335 = vst [vmem:[#allocation2 + $0x6] sm:$0x3f] %v288_v49  ;;  %v321_v11 = vrot.slane %v293_v50, %v9833_v22  ;;  %v10081_v47 = vld [vmem:[%s12377_s2] sm:$0xff]  ;;  %v10088_v50 = vld [vmem:[%s12377_s2 + $0x8] sm:$0xff] }
  0xf6   :  { %v322_v12 = vcombine.low %v300_v51, %v314_v52  ;;  %v323_v13 = vcombine.high %v300_v51, %v314_v52  ;;  %v399_v14 = vpop.f32.mrb[8].mxu0 }
  0xf7   :  { %336 = vst [vmem:[#allocation2 + $0xc] sm:$0x3f] %v289_v9  ;;  %337 = vst [vmem:[#allocation2 + $0x12] sm:$0x3f] %v290_v10  ;;  %v324_v16 = vcombine.low %v307_v8, %v321_v11  ;;  %v325_v17 = vcombine.high %v307_v8, %v321_v11  ;;  %v400_v18 = vadd.f32 %v7873_v7, %v399_v14  ;;  %v8652_v20 = vpop.f32.mrb[9].mxu0 }
  0xf8   :  { %338 = vst [vmem:[#allocation2 + $0x18] sm:$0x3f] %v322_v12  ;;  %339 = vst [vmem:[#allocation2 + $0x1e] sm:$0x3f] %v323_v13  ;;  %v402_v21 = vpop.f32.mrb[10].mxu0 }
  0xf9   :  { %340 = vst [vmem:[#allocation2 + $0x24] sm:$0x3f] %v324_v16  ;;  %341 = vst [vmem:[#allocation2 + $0x2a] sm:$0x3f] %v325_v17  ;;  %v408_v24 = vcombine.high %v400_v18, %v400_v18  ;;  %v415_v25 = vrot.slane %v400_v18, %v9833_v22  ;;  %v403_v26 = vadd.f32 %v7873_v7, %v402_v21  ;;  %v8653_v27 = vpop.f32.mrb[11].mxu0  ;;  %v897_v21 = vand.u32 127, %v73_v3 }
  0xfa   :  { %7877 = vst.sshfl [vmem:[#allocation3] sm:$0x3 pattern:$0x76325410] %v400_v18 }
  0xfb   :  { %v422_v28 = vrot.slane %v408_v24, %v9833_v22  ;;  %v423_v29 = vcombine.high %v415_v25, %v415_v25  ;;  %7878 = vst.sshfl [vmem:[#allocation3 + $0x4] sm:$0x3 pattern:$0x76325410] %v408_v24  ;;  %v425_v30 = vcombine.high %v403_v26, %v403_v26  ;;  %v432_v31 = vrot.slane %v403_v26, %v9833_v22  ;;  %v10094_v11 = vpop.f32.mrb[0].mxu1 }
  0xfc   :  { %7879 = vst.sshfl [vmem:[#allocation3 + $0x8] sm:$0x3 pattern:$0x76325410] %v403_v26  ;;  %v10096_v12 = vpop.f32.mrb[1].mxu1  ;;  %v10100_v25 = vsub.s32 %v897_v21, %v9830_v19 }
  0xfd   :  { %v424_v32 = vcombine.high %v422_v28, %v422_v28  ;;  %451 = vst [vmem:[#allocation3 + $0x2] sm:$0x3] %v423_v29  ;;  %v439_v33 = vrot.slane %v425_v30, %v9833_v22  ;;  %v440_v34 = vcombine.high %v432_v31, %v432_v31  ;;  %7880 = vst.sshfl [vmem:[#allocation3 + $0xc] sm:$0x3 pattern:$0x76325410] %v425_v30 }
  0xfe   :  { %v700_v13 = vpop.f32.mrb[2].mxu1  ;;  %v10105_v26 = vld [vmem:[%s12378_s3] sm:$0x3] }
  0xff   :  { %453 = vst [vmem:[#allocation3 + $0x6] sm:$0x3] %v424_v32  ;;  %v441_v35 = vcombine.high %v439_v33, %v439_v33  ;;  %455 = vst [vmem:[#allocation3 + $0xa] sm:$0x3] %v440_v34  ;;  %v701_v14 = vpop.f32.mrb[3].mxu1  ;;  %vm887_vm3 = vcmp.gt.f32.partialorder %v10105_v26, 0.0 }
 0x100   :  { %v10159_v13 = vld [vmem:[%s12381_s6 + $0x20] ss:$16 sps:$4 sm:$0xff]   ;;  %v10164_v14 = vld [vmem:[%s12381_s6 + $0x24] ss:$16 sps:$4 sm:$0xff]  }
 0x101   :  { %457 = vst [vmem:[#allocation3 + $0xe] sm:$0x3] %v441_v35  ;;  %v10193_v21 = vld [vmem:[%s12381_s6 + $0x40] ss:$16 sps:$4 sm:$0xff]  }
 0x102   :  { %v7395_v26 = vld [vmem:[%s12376_s1] sm:$0xf] }
 0x116   :  { %v10074_v40 = vpop.f32.mrb[12].mxu0 }
 0x117   :  { %v739_v41 = vpop.f32.mrb[13].mxu0 }
 0x118   :  { %v751_v42 = vrot.slane %v739_v41, %v10072_v39  ;;  %v741_v43 = vpop.f32.mrb[14].mxu0 }
 0x119   :  { %v742_v44 = vpop.f32.mrb[15].mxu0 }
 0x11a   :  { %v752_v45 = vcombine.high %v751_v42, %v751_v42  ;;  %v759_v46 = vrot.slane %v751_v42, %v10072_v39  ;;  %v950_v44 = vld [vmem:[%s12376_s1 + $0x4] sm:$0xf] }
 0x11c   :  { %v766_v48 = vrot.slane %v752_v45, %v10072_v39  ;;  %v770_v49 = vrot.slane %v759_v46, %v10048_v15 }
 0x11e   :  { %v774_v51 = vrot.slane %v766_v48, %v10048_v15  ;;  %v777_v52 = vadd.f32 %v770_v49, %v10081_v47  ;;  %v1003_v48 = vsel %vm955_vm5, %v950_v44, 0 }
 0x120   :  { %v778_v7 = vadd.f32 %v774_v51, %v10088_v50  ;;  %9504 = vtanh.f32 %v777_v52 }
 0x122   :  { %9506 = vtanh.f32 %v778_v7  ;;  %v10135_v7 = vld [vmem:[%s12381_s6 + $0x4] ss:$16 sps:$4 sm:$0xff]  }
 0x12a   :  { %v9505_v8 = vpop.eup %9504 }
 0x12c   :  { %v9507_v9 = vpop.eup %9506 }
 0x12d   :  { %v781_v10 = vpack.c.bf16 %v9507_v9, %v9505_v8  ;;  %v10140_v8 = vld [vmem:[%s12381_s6 + $0xc] ss:$16 sps:$4 sm:$0xff]   ;;  %v10145_v9 = vld [vmem:[%s12381_s6] ss:$16 sps:$4 sm:$0xff]  }
 0x12e   :  { %1195 = vmatprep.subr.bf16.mxu1 %v10140_v8 }
 0x12f   :  { %8671 = vmatmul.mubr.bf16.vlgmr.msra.gmra.mrb[4].mxu1 %v781_v10  ;;  %v10150_v10 = vld [vmem:[%s12381_s6 + $0x8] ss:$16 sps:$4 sm:$0xff]  }
 0x130   :  { %1227 = vmatprep.mubr.bf16.mxu1 %v12393_v2  ;;  %1196 = vmatpush1.bf16.msra.mxu1 %v10150_v10 }
 0x202   :  { %v880_v16 = vpop.f32.mrb[4].mxu1 }
 0x203   :  { %891 = vperm.xlu0 %9076, %v880_v16   ;;  %v8672_v17 = vpop.f32.mrb[5].mxu1  ;;  %v10169_v16 = vld [vmem:[%s12381_s6 + $0x28] ss:$16 sps:$4 sm:$0xff]  }
 0x204   :  { %v883_v18 = vpop.f32.mrb[6].mxu1  ;;  %v10174_v17 = vld [vmem:[%s12381_s6 + $0x2c] ss:$16 sps:$4 sm:$0xff]  }
 0x205   :  { %v8673_v20 = vpop.f32.mrb[7].mxu1  ;;  %1197 = vmatprep.subr.bf16.mxu1 %v10174_v17 }
 0x206   :  { %1198 = vmatpush1.bf16.msra.mxu1 %v10169_v16  ;;  %v10188_v20 = vld [vmem:[%s12381_s6 + $0x4c] ss:$16 sps:$4 sm:$0xff]  }
 0x207   :  { %894 = vperm.xlu0 %9076, %v883_v18   ;;  %v10183_v18 = vld [vmem:[%s12381_s6 + $0x44] ss:$16 sps:$4 sm:$0xff]   ;;  %1199 = vmatprep.subr.bf16.mxu1 %v10188_v20 }
 0x282   :  { %v892_v24 = vpop.permute.xlu0 %891 }
 0x283   :  { %v901_v28 = vrot.slane %v892_v24, %v10100_v25  ;;  %v10198_v24 = vld [vmem:[%s12381_s6 + $0x48] ss:$16 sps:$4 sm:$0xff]  }
 0x284   :  { %1200 = vmatpush1.bf16.msra.mxu1 %v10198_v24 }
 0x286   :  { %v895_v27 = vpop.permute.xlu0 %894 }
 0x287   :  { %v905_v29 = vrot.slane %v895_v27, %v10100_v25  ;;  %v10207_v27 = vld [vmem:[%s12381_s6 + $0x64] ss:$16 sps:$4 sm:$0xff]  }
 0x289   :  { %v907_v3 = vsel %vm906_vm2, %v905_v29, %v901_v28  ;;  %v10212_v28 = vld [vmem:[%s12381_s6 + $0x6c] ss:$16 sps:$4 sm:$0xff]   ;;  %v10217_v29 = vld [vmem:[%s12381_s6 + $0x60] ss:$16 sps:$4 sm:$0xff]  }
 0x28a   :  { %v909_v19 = vsel %vm887_vm3, %v907_v3, -1e+09  ;;  %v10222_v3 = vld [vmem:[%s12381_s6 + $0x68] ss:$16 sps:$4 sm:$0xff]   ;;  %1201 = vmatprep.subr.bf16.mxu1 %v10212_v28 }
 0x28b   :  { %v911_v30 = vsel %vm910_vm4, %v909_v19, -inf  ;;  %1202 = vmatpush1.bf16.msra.mxu1 %v10222_v3 }
 0x28c   :  { %912 = vmax.xlane.f32.xlu1 %v911_v30  ;;  %1587 = vmatprep.subr.bf16.mxu1 %v9920_v53  ;;  %v9168_v53 = vld [vmem:[%s12384_s9] sm:$0xff]  }
 0x319   :  { %v913_v31 = vpop.xlane.xlu1 %912 }
 0x31a   :  { %v914_v32 = vsub.f32 %v909_v19, %v913_v31 }
 0x31c   :  { %v915_v33 = vmul.f32 1.442695, %v914_v32 }
 0x31e   :  { %9508 = vpow2.f32 %v915_v33 }
 0x328   :  { %v9509_v34 = vpop.eup %9508 }
 0x329   :  { %v917_v35 = vsel %vm910_vm4, %v9509_v34, 0.0 }
 0x32a   :  { %918 = vadd.xlane.f32.xlu1 %v917_v35 }
 0x3b7   :  { %v919_v38 = vpop.xlane.xlu1 %918 }
 0x3b8   :  { %9510 = vrcp.f32 %v919_v38 }
 0x3c2   :  { %v9511_v41 = vpop.eup %9510 }
 0x3c3   :  { %v921_v42 = vmul.f32 %v9511_v41, %v9509_v34 }
 0x3c5   :  { %v929_v43 = vrot.slane %v921_v42, %v10072_v39 }
 0x3c7   :  { %v937_v45 = vrot.slane %v929_v43, %v10072_v39  ;;  %v930_v49 = vcombine.high %v929_v43, %v929_v43 }
 0x3c9   :  { %v947_v46 = vpack.c.bf16 %v937_v45, %v937_v45  ;;  %v944_v51 = vrot.slane %v930_v49, %v10072_v39 }
 0x3cb   :  { %8677 = vmatmul.mubr.msk.bf16.vlgmr.msra.gmra.mrb[16].mxu0 %vm951_vm6, %v947_v46  ;;  %v948_v52 = vpack.c.bf16 %v944_v51, %v944_v51 }
 0x3cc   :  { %8681 = vmatpush3.bf16.msra.mxu0 %v1003_v48  ;;  %8682 = vmatprep.mubr.msk.bf16.mxu0 %vm9701_vm1, %v9700_v23 }
 0x3cd   :  { %1154 = vmatprep.subr.bf16.mxu0 %v10135_v7 }
 0x3d3   :  { %8683 = vmatmul.mubr.msk.bf16.vlgmr.msra.gmra.mrb[20].mxu0 %vm951_vm6, %v948_v52 }
 0x3d4   :  { %1186 = vmatprep.mubr.bf16.mxu0 %v12393_v2  ;;  %1155 = vmatpush1.bf16.msra.mxu0 %v10145_v9 }
 0x3d5   :  { %1156 = vmatprep.subr.bf16.mxu0 %v10164_v14 }
 0x3d8   :  { %1157 = vmatpush1.bf16.msra.mxu0 %v10159_v13 }
 0x3d9   :  { %1158 = vmatprep.subr.bf16.mxu0 %v10183_v18 }
 0x3dc   :  { %1159 = vmatpush1.bf16.msra.mxu0 %v10193_v21 }
 0x3dd   :  { %1160 = vmatprep.subr.bf16.mxu0 %v10207_v27 }
 0x3e0   :  { %1161 = vmatpush1.bf16.msra.mxu0 %v10217_v29 }
 0x3e1   :  { %8686 = vmatprep.subr.bf16.mxu0 %v9700_v23 }
 0x49e   :  { %v993_v19 = vpop.f32.mrb[16].mxu0 }
 0x49f   :  { %v8678_v30 = vpop.f32.mrb[17].mxu0  ;;  %v1045_v34 = vpack.c.bf16 %v993_v19, %v993_v19  ;;  %v1236_v19 = vld [vmem:[#allocation2] sm:$0x3f] }
 0x4a0   :  { %v996_v31 = vpop.f32.mrb[18].mxu0 }
 0x4a1   :  { %v8679_v32 = vpop.f32.mrb[19].mxu0  ;;  %v1065_v42 = vunpack.c.l.b16 %v1045_v34 }
 0x4a6   :  { %v1039_v33 = vpop.f32.mrb[20].mxu0 }
 0x4a7   :  { %v1046_v35 = vpack.c.bf16 %v1039_v33, %v1039_v33  ;;  %v8684_v36 = vpop.f32.mrb[21].mxu0 }
 0x4a8   :  { %v1042_v37 = vpop.f32.mrb[22].mxu0 }
 0x4a9   :  { %v1066_v38 = vunpack.c.l.b16 %v1046_v35  ;;  %v8685_v41 = vpop.f32.mrb[23].mxu0 }
 0x4aa   :  { %v10295_v41 = vld [vmem:[%s12387_s12] ss:$0 sm:$0xff] }
 0x4ab   :  { %v1067_v43 = vrot.slane %v1066_v38, 7 }
 0x4ad   :  { %v1068_v44 = vsel %vm906_vm2, %v1067_v43, %v1065_v42 }
 0x4ae   :  { %v1069_v45 = vpack.c.b16 %v1068_v44, %v1068_v44 }
 0x4b0   :  { %7940 = vmatmul.mubr.msk.bf16.vlgmr.msra.gmra.mrb[24].mxu0 %vm1150_vm7, %v1069_v45  ;;  %7941 = vmatmul.mubr.msk.bf16.vlgmr.msra.gmra.mrb[8].mxu1 %vm1150_vm7, %v1069_v45 }
 0x4b1   :  { %1588 = vmatpush1.bf16.msra.mxu1 %v9925_v54  ;;  %8702 = vmatprep.mubr.msk.bf16.mxu0 %vm9701_vm1, %v9700_v23  ;;  %v9169_v54 = vld [vmem:[%s12384_s9 + $0x8] sm:$0xff]  }
 0x4b2   :  { %1589 = vmatprep.subr.bf16.mxu1 %v9932_v55  ;;  %1619 = vmatprep.mubr.bf16.mxu1 %v12393_v2  ;;  %v9170_v55 = vld [vmem:[%s12384_s9 + $0x10] sm:$0xff]  }
 0x4b3   :  { %8687 = vmatpush3.bf16.msra.mxu0 %v9168_v53 }
 0x4b4   :  { %8688 = vmatprep.subr.bf16.mxu0 %v9700_v23 }
 0x4b5   :  { %1590 = vmatpush1.bf16.msra.mxu1 %v9937_v56  ;;  %v9171_v56 = vld [vmem:[%s12384_s9 + $0x18] sm:$0xff]  }
 0x4b6   :  { %1591 = vmatprep.subr.bf16.mxu1 %v9944_v57  ;;  %v9172_v57 = vld [vmem:[%s12384_s9 + $0x20] sm:$0xff]  }
 0x4b7   :  { %8689 = vmatpush3.bf16.msra.mxu0 %v9169_v54 }
 0x4b8   :  { %8690 = vmatprep.subr.bf16.mxu0 %v9700_v23 }
 0x4b9   :  { %1592 = vmatpush1.bf16.msra.mxu1 %v9949_v58  ;;  %v9173_v58 = vld [vmem:[%s12384_s9 + $0x28] sm:$0xff]  }
 0x4ba   :  { %1593 = vmatprep.subr.bf16.mxu1 %v9956_v59  ;;  %v9174_v59 = vld [vmem:[%s12384_s9 + $0x30] sm:$0xff]  }
 0x4bb   :  { %8691 = vmatpush3.bf16.msra.mxu0 %v9170_v55 }
 0x4bc   :  { %8692 = vmatprep.subr.bf16.mxu0 %v9700_v23 }
 0x4bd   :  { %1594 = vmatpush1.bf16.msra.mxu1 %v9961_v60  ;;  %v9175_v60 = vld [vmem:[%s12384_s9 + $0x38] sm:$0xff]  }
 0x4be   :  { %1595 = vmatprep.subr.bf16.mxu1 %v9968_v61  ;;  %v9648_v61 = vld [vmem:[%s12380_s5 + $0xc] ss:$16 sps:$4 sm:$0xff]  }
 0x4bf   :  { %8693 = vmatpush3.bf16.msra.mxu0 %v9171_v56 }
 0x4c0   :  { %8694 = vmatprep.subr.bf16.mxu0 %v9700_v23 }
 0x4c1   :  { %1596 = vmatpush1.bf16.msra.mxu1 %v9973_v62 }
 0x4c2   :  { %1597 = vmatprep.subr.bf16.mxu1 %v9980_v63 }
 0x4c3   :  { %8695 = vmatpush3.bf16.msra.mxu0 %v9172_v57  ;;  %v9649_v57 = vld [vmem:[%s12379_s4] sm:$0x3] }
 0x4c4   :  { %8696 = vmatprep.subr.bf16.mxu0 %v9700_v23 }
 0x4c5   :  { %1598 = vmatpush1.bf16.msra.mxu1 %v9985_v0 }
 0x4c6   :  { %1599 = vmatprep.subr.bf16.mxu1 %v9991_v1 }
 0x4c7   :  { %8697 = vmatpush3.bf16.msra.mxu0 %v9173_v58 }
 0x4c8   :  { %8698 = vmatprep.subr.bf16.mxu0 %v9700_v23 }
 0x4c9   :  { %1600 = vmatpush1.bf16.msra.mxu1 %v9997_v4 }
 0x4ca   :  { %1601 = vmatprep.subr.bf16.mxu1 %v10003_v5 }
 0x4cb   :  { %8699 = vmatpush3.bf16.msra.mxu0 %v9174_v59 }
 0x4cc   :  { %8700 = vmatprep.subr.bf16.mxu0 %v9700_v23 }
 0x4cd   :  { %1602 = vmatpush1.bf16.msra.mxu1 %v10008_v6 }
 0x4ce   :  { %8706 = vmatprep.subr.bf16.mxu1 %v9700_v23 }
 0x4cf   :  { %8701 = vmatpush3.bf16.msra.mxu0 %v9175_v60  ;;  %v9650_v60 = vld [vmem:[%s12380_s5 + $0x8] ss:$16 sps:$4 sm:$0xff]  }
 0x4d0   :  { %1628 = vmatprep.subr.bf16.mxu0 %v9648_v61  ;;  %v9651_v61 = vld [vmem:[%s12380_s5 + $0x2c] ss:$16 sps:$4 sm:$0xff]  }
 0x583   :  { %v1188_v62 = vpop.f32.mrb[24].mxu0  ;;  %v1229_v63 = vpop.f32.mrb[8].mxu1 }
 0x584   :  { %v1190_v0 = vpop.f32.mrb[25].mxu0  ;;  %v10286_v1 = vpop.f32.mrb[9].mxu1  ;;  %v1254_v49 = vrot.slane %v1229_v63, %v9833_v22  ;;  %v9653_v63 = vld [vmem:[%s12380_s5 + $0x4c] ss:$16 sps:$4 sm:$0xff]  }
 0x585   :  { %v1240_v4 = vcombine.low %v1188_v62, %v1190_v0  ;;  %v1192_v5 = vpop.f32.mrb[26].mxu0  ;;  %v1233_v6 = vpop.f32.mrb[10].mxu1  ;;  %v9652_v62 = vld [vmem:[%s12380_s5 + $0x28] ss:$16 sps:$4 sm:$0xff]  }
 0x586   :  { %v1193_v46 = vpop.f32.mrb[27].mxu0  ;;  %v1234_v48 = vpop.f32.mrb[11].mxu1  ;;  %v9654_v0 = vld [vmem:[%s12380_s5 + $0x48] ss:$16 sps:$4 sm:$0xff]   ;;  %v9657_v6 = vld [vmem:[%s12380_s5 + $0x8c] ss:$16 sps:$4 sm:$0xff]  }
 0x587   :  { %v1247_v51 = vrot.slane %v1240_v4, %v9833_v22  ;;  %v9655_v4 = vld [vmem:[%s12380_s5 + $0x6c] ss:$16 sps:$4 sm:$0xff]   ;;  %v9656_v5 = vld [vmem:[%s12380_s5 + $0x68] ss:$16 sps:$4 sm:$0xff]  }
 0x588   :  { %v9658_v46 = vld [vmem:[%s12380_s5 + $0x88] ss:$16 sps:$4 sm:$0xff]   ;;  %v9659_v48 = vld [vmem:[%s12380_s5 + $0xac] ss:$16 sps:$4 sm:$0xff]  }
 0x589   :  { %v1255_v52 = vcombine.low %v1247_v51, %v1254_v49  ;;  %v9660_v49 = vld [vmem:[%s12380_s5 + $0xa8] ss:$16 sps:$4 sm:$0xff]   ;;  %v9661_v51 = vld [vmem:[%s12380_s5 + $0xcc] ss:$16 sps:$4 sm:$0xff]  }
 0x58b   :  { %v1257_v30 = vadd.f32 %v1255_v52, %v1236_v19  ;;  %v9662_v52 = vld [vmem:[%s12380_s5 + $0xc8] ss:$16 sps:$4 sm:$0xff]   ;;  %v9663_v19 = vld [vmem:[%s12380_s5 + $0xec] ss:$16 sps:$4 sm:$0xff]  }
 0x58d   :  { %v1258_v31 = vadd.f32 %v1257_v30, %v10094_v11  ;;  %v1266_v32 = vrot.slane %v1257_v30, 2  ;;  %v1275_v11 = vadd.f32 %v10295_v41, %v10074_v40 }
 0x58f   :  { %v7942_v33 = vmul.f32 -1.442695, %v1258_v31  ;;  %v1268_v34 = vadd.f32 %v1266_v32, %v10096_v12  ;;  %v1277_v12 = vrot.slane %v1257_v30, 4  ;;  %v9664_v30 = vld [vmem:[%s12380_s5 + $0xe8] ss:$16 sps:$4 sm:$0xff]   ;;  %v9176_v31 = vld [vmem:[%s12385_s10] sm:$0xff]  }
 0x590   :  { %v9177_v32 = vld [vmem:[%s12385_s10 + $0x8] sm:$0xff]  }
 0x591   :  { %9512 = vpow2.f32 %v7942_v33  ;;  %v7943_v35 = vmul.f32 -1.442695, %v1268_v34  ;;  %v9178_v33 = vld [vmem:[%s12385_s10 + $0x10] sm:$0xff]   ;;  %v9179_v34 = vld [vmem:[%s12385_s10 + $0x18] sm:$0xff]  }
 0x593   :  { %9514 = vpow2.f32 %v7943_v35  ;;  %v9180_v35 = vld [vmem:[%s12385_s10 + $0x20] sm:$0xff]  }
 0x59b   :  { %v9513_v36 = vpop.eup %9512 }
 0x59c   :  { %v1262_v37 = vadd.f32 1.0, %v9513_v36  ;;  %v9181_v36 = vld [vmem:[%s12385_s10 + $0x28] sm:$0xff]  }
 0x59d   :  { %v9515_v38 = vpop.eup %9514 }
 0x59e   :  { %9516 = vrcp.f32 %v1262_v37  ;;  %v1272_v42 = vadd.f32 1.0, %v9515_v38  ;;  %v9182_v37 = vld [vmem:[%s12385_s10 + $0x30] sm:$0xff]   ;;  %v9183_v38 = vld [vmem:[%s12385_s10 + $0x38] sm:$0xff]  }
 0x5a0   :  { %9518 = vrcp.f32 %v1272_v42  ;;  %v1285_v42 = vld [vmem:[#allocation3] sm:$0x3] }
 0x5a8   :  { %v9517_v43 = vpop.eup %9516 }
 0x5a9   :  { %v1276_v44 = vmul.f32 %v9517_v43, %v1275_v11  ;;  %v1286_v11 = vadd.f32 %v1285_v42, %v10286_v1 }
 0x5aa   :  { %v9519_v53 = vpop.eup %9518 }
 0x5ab   :  { %v1279_v45 = vadd.f32 %v1277_v12, %v1276_v44  ;;  %v1281_v54 = vsub.f32 1.0, %v9519_v53  ;;  %v1283_v58 = vmul.f32 %v9649_v57, %v9519_v53 }
 0x5ad   :  { %9520 = vtanh.f32 %v1279_v45 }
 0x5b7   :  { %v9521_v55 = vpop.eup %9520 }
 0x5b8   :  { %v1282_v56 = vmul.f32 %v9521_v55, %v1281_v54 }
 0x5ba   :  { %v10302_v59 = vadd.f32 %v1283_v58, %v1282_v56 }
 0x5bc   :  { %v1287_v40 = vpack.c.bf16 %v10302_v59, %v10302_v59  ;;  %1393 = vst [vmem:[%s12389_s14] sm:$0x3] %v10302_v59 }
 0x5be   :  { %8703 = vmatmul.mubr.bf16.vlgmr.msra.gmra.mrb[28].mxu0 %v1287_v40  ;;  %1620 = vmatmul.mubr.bf16.vlgmr.msra.gmra.mrb[12].mxu1 %v1287_v40 }
 0x5bf   :  { %1629 = vmatpush1.bf16.msra.mxu0 %v9650_v60  ;;  %1660 = vmatprep.mubr.bf16.mxu0 %v12393_v2 }
 0x5c0   :  { %1630 = vmatprep.subr.bf16.mxu0 %v9651_v61  ;;  %8722 = vmatprep.mubr.msk.bf16.mxu1 %vm9701_vm1, %v9700_v23 }
 0x5c1   :  { %8707 = vmatpush3.bf16.msra.mxu1 %v9176_v31 }
 0x5c2   :  { %8708 = vmatprep.subr.bf16.mxu1 %v9700_v23 }
 0x5c3   :  { %1631 = vmatpush1.bf16.msra.mxu0 %v9652_v62 }
 0x5c4   :  { %1632 = vmatprep.subr.bf16.mxu0 %v9653_v63 }
 0x5c5   :  { %8709 = vmatpush3.bf16.msra.mxu1 %v9177_v32 }
 0x5c6   :  { %8710 = vmatprep.subr.bf16.mxu1 %v9700_v23 }
 0x5c7   :  { %1633 = vmatpush1.bf16.msra.mxu0 %v9654_v0 }
 0x5c8   :  { %1634 = vmatprep.subr.bf16.mxu0 %v9655_v4 }
 0x5c9   :  { %8711 = vmatpush3.bf16.msra.mxu1 %v9178_v33 }
 0x5ca   :  { %8712 = vmatprep.subr.bf16.mxu1 %v9700_v23 }
 0x5cb   :  { %1635 = vmatpush1.bf16.msra.mxu0 %v9656_v5 }
 0x5cc   :  { %1636 = vmatprep.subr.bf16.mxu0 %v9657_v6 }
 0x5cd   :  { %8713 = vmatpush3.bf16.msra.mxu1 %v9179_v34  ;;  %v1869_v34 = vld [vmem:[%s12376_s1] sm:$0xf] }
 0x5ce   :  { %8714 = vmatprep.subr.bf16.mxu1 %v9700_v23 }
 0x5cf   :  { %1637 = vmatpush1.bf16.msra.mxu0 %v9658_v46 }
 0x5d0   :  { %1638 = vmatprep.subr.bf16.mxu0 %v9659_v48 }
 0x5d1   :  { %8715 = vmatpush3.bf16.msra.mxu1 %v9180_v35  ;;  %v1875_v35 = vsel %vm955_vm5, %v1869_v34, 0  ;;  %v10585_v34 = vld [vmem:[%s12380_s5 + $0xc] ss:$16 sps:$4 sm:$0xff]  }
 0x5d2   :  { %8716 = vmatprep.subr.bf16.mxu1 %v9700_v23 }
 0x5d3   :  { %1639 = vmatpush1.bf16.msra.mxu0 %v9660_v49 }
 0x5d4   :  { %1640 = vmatprep.subr.bf16.mxu0 %v9661_v51 }
 0x5d5   :  { %8717 = vmatpush3.bf16.msra.mxu1 %v9181_v36 }
 0x5d6   :  { %8718 = vmatprep.subr.bf16.mxu1 %v9700_v23 }
 0x5d7   :  { %1641 = vmatpush1.bf16.msra.mxu0 %v9662_v52 }
 0x5d8   :  { %1642 = vmatprep.subr.bf16.mxu0 %v9663_v19 }
 0x5d9   :  { %8719 = vmatpush3.bf16.msra.mxu1 %v9182_v37 }
 0x5da   :  { %8720 = vmatprep.subr.bf16.mxu1 %v9700_v23 }
 0x5db   :  { %1643 = vmatpush1.bf16.msra.mxu0 %v9664_v30 }
 0x5dc   :  { %8726 = vmatprep.subr.bf16.mxu0 %v9700_v23 }
 0x5dd   :  { %8721 = vmatpush3.bf16.msra.mxu1 %v9183_v38 }
 0x5de   :  { %1661 = vmatmul.mubr.bf16.vlgmr.msra.gmra.mrb[32].mxu0 %v1287_v40  ;;  %2071 = vmatprep.subr.bf16.mxu1 %v10135_v7 }
 0x5df   :  { %8728 = vmatprep.mubr.msk.bf16.mxu0 %vm9701_vm1, %v9700_v23  ;;  %8727 = vmatpush3.bf16.msra.mxu0 %v1875_v35 }
 0x5e0   :  { %8732 = vmatprep.subr.bf16.mxu0 %v9700_v23 }
 0x691   :  { %v1386_v43 = vpop.f32.mrb[28].mxu0  ;;  %v10394_v44 = vpop.f32.mrb[12].mxu1 }
 0x692   :  { %v1392_v12 = vadd.f32 %v1386_v43, %v1286_v11  ;;  %v8704_v45 = vpop.f32.mrb[29].mxu0  ;;  %v10396_v53 = vpop.f32.mrb[13].mxu1  ;;  %v1870_v11 = vld [vmem:[%s12376_s1 + $0x4] sm:$0xf] }
 0x693   :  { %v1389_v54 = vpop.f32.mrb[30].mxu0  ;;  %v1625_v55 = vpop.f32.mrb[14].mxu1  ;;  %v1921_v45 = vsel %vm955_vm5, %v1870_v11, 0 }
 0x694   :  { %1394 = vst [vmem:[%s12390_s15] sm:$0x3] %v1392_v12  ;;  %v8705_v56 = vpop.f32.mrb[31].mxu0  ;;  %v1626_v57 = vpop.f32.mrb[15].mxu1 }
 0x6b1   :  { %v10401_v58 = vpop.f32.mrb[32].mxu0 }
 0x6b2   :  { %v1664_v7 = vpop.f32.mrb[33].mxu0 }
 0x6b3   :  { %v1676_v1 = vrot.slane %v1664_v7, %v10072_v39  ;;  %v1666_v40 = vpop.f32.mrb[34].mxu0 }
 0x6b4   :  { %v1667_v60 = vpop.f32.mrb[35].mxu0 }
 0x6b5   :  { %v1677_v61 = vcombine.high %v1676_v1, %v1676_v1  ;;  %v1684_v62 = vrot.slane %v1676_v1, %v10072_v39 }
 0x6b7   :  { %v1691_v63 = vrot.slane %v1677_v61, %v10072_v39  ;;  %v1695_v0 = vrot.slane %v1684_v62, %v10048_v15 }
 0x6b9   :  { %v1699_v4 = vrot.slane %v1691_v63, %v10048_v15  ;;  %v1702_v5 = vadd.f32 %v1695_v0, %v10081_v47 }
 0x6bb   :  { %v1703_v6 = vadd.f32 %v1699_v4, %v10088_v50  ;;  %9522 = vtanh.f32 %v1702_v5  ;;  %v10468_v4 = vld [vmem:[%s12380_s5] ss:$16 sps:$4 sm:$0xff]   ;;  %v9188_v5 = vld [vmem:[%s12384_s9 + $0x8] sm:$0xff]  }
 0x6bd   :  { %9524 = vtanh.f32 %v1703_v6  ;;  %v10479_v6 = vld [vmem:[%s12380_s5 + $0x24] ss:$16 sps:$4 sm:$0xff]  }
 0x6c5   :  { %v9523_v46 = vpop.eup %9522 }
 0x6c7   :  { %v9525_v48 = vpop.eup %9524 }
 0x6c8   :  { %v1706_v49 = vpack.c.bf16 %v9525_v48, %v9523_v46  ;;  %v10484_v46 = vld [vmem:[%s12380_s5 + $0x20] ss:$16 sps:$4 sm:$0xff]  }
 0x6c9   :  { %v9192_v48 = vld [vmem:[%s12384_s9 + $0x10] sm:$0xff]  }
 0x6ca   :  { %8723 = vmatmul.mubr.bf16.vlgmr.msra.gmra.mrb[16].mxu1 %v1706_v49  ;;  %v10495_v49 = vld [vmem:[%s12380_s5 + $0x44] ss:$16 sps:$4 sm:$0xff]  }
 0x6cb   :  { %2072 = vmatpush1.bf16.msra.mxu1 %v10145_v9  ;;  %2103 = vmatprep.mubr.bf16.mxu1 %v12393_v2 }
 0x6cc   :  { %2073 = vmatprep.subr.bf16.mxu1 %v10164_v14 }
 0x6cf   :  { %2074 = vmatpush1.bf16.msra.mxu1 %v10159_v13 }
 0x6d0   :  { %2075 = vmatprep.subr.bf16.mxu1 %v10183_v18 }
 0x6d3   :  { %2076 = vmatpush1.bf16.msra.mxu1 %v10193_v21 }
 0x6d4   :  { %2077 = vmatprep.subr.bf16.mxu1 %v10207_v27 }
 0x6d7   :  { %2078 = vmatpush1.bf16.msra.mxu1 %v10217_v29 }
 0x6d8   :  { %8738 = vmatprep.subr.bf16.mxu1 %v9700_v23 }
 0x79d   :  { %v1805_v47 = vpop.f32.mrb[16].mxu1 }
 0x79e   :  { %1815 = vperm.xlu0 %9076, %v1805_v47   ;;  %v8724_v50 = vpop.f32.mrb[17].mxu1  ;;  %v10500_v47 = vld [vmem:[%s12380_s5 + $0x40] ss:$16 sps:$4 sm:$0xff]  }
 0x79f   :  { %v1808_v9 = vpop.f32.mrb[18].mxu1  ;;  %v9196_v50 = vld [vmem:[%s12384_s9 + $0x18] sm:$0xff]  }
 0x7a0   :  { %1818 = vperm.xlu1 %9077, %v1808_v9   ;;  %v8725_v51 = vpop.f32.mrb[19].mxu1  ;;  %v10511_v9 = vld [vmem:[%s12380_s5 + $0x64] ss:$16 sps:$4 sm:$0xff]  }
 0x7a1   :  { %v10516_v51 = vld [vmem:[%s12380_s5 + $0x60] ss:$16 sps:$4 sm:$0xff]  }
 0x81d   :  { %v1816_v52 = vpop.permute.xlu0 %1815 }
 0x81e   :  { %v1823_v13 = vrot.slane %v1816_v52, %v10100_v25  ;;  %v9200_v52 = vld [vmem:[%s12384_s9 + $0x20] sm:$0xff]  }
 0x81f   :  { %v1819_v14 = vpop.permute.xlu1 %1818 }
 0x820   :  { %v1827_v18 = vrot.slane %v1819_v14, %v10100_v25  ;;  %v10527_v14 = vld [vmem:[%s12380_s5 + $0x84] ss:$16 sps:$4 sm:$0xff]  }
 0x822   :  { %v1828_v21 = vsel %vm906_vm2, %v1827_v18, %v1823_v13  ;;  %v10532_v13 = vld [vmem:[%s12380_s5 + $0x80] ss:$16 sps:$4 sm:$0xff]   ;;  %v9204_v18 = vld [vmem:[%s12384_s9 + $0x28] sm:$0xff]  }
 0x823   :  { %v1830_v27 = vsel %vm887_vm3, %v1828_v21, -1e+09  ;;  %v10541_v21 = vld [vmem:[%s12380_s5 + $0xa4] ss:$16 sps:$4 sm:$0xff]  }
 0x824   :  { %v1831_v29 = vsel %vm910_vm4, %v1830_v27, -inf }
 0x825   :  { %1832 = vmax.xlane.f32.xlu0 %v1831_v29  ;;  %v10554_v29 = vld [vmem:[%s12380_s5 + $0xc4] ss:$16 sps:$4 sm:$0xff]  }
 0x8b2   :  { %v1833_v19 = vpop.xlane.xlu0 %1832 }
 0x8b3   :  { %v1834_v30 = vsub.f32 %v1830_v27, %v1833_v19  ;;  %v10548_v27 = vld [vmem:[%s12380_s5 + $0xa0] ss:$16 sps:$4 sm:$0xff]  }
 0x8b4   :  { %v9208_v19 = vld [vmem:[%s12384_s9 + $0x30] sm:$0xff]  }
 0x8b5   :  { %v1835_v31 = vmul.f32 1.442695, %v1834_v30  ;;  %v10564_v30 = vld [vmem:[%s12380_s5 + $0xc0] ss:$16 sps:$4 sm:$0xff]  }
 0x8b7   :  { %9526 = vpow2.f32 %v1835_v31  ;;  %v10570_v31 = vld [vmem:[%s12380_s5 + $0xe4] ss:$16 sps:$4 sm:$0xff]  }
 0x8c1   :  { %v9527_v32 = vpop.eup %9526 }
 0x8c2   :  { %v1837_v33 = vsel %vm910_vm4, %v9527_v32, 0.0 }
 0x8c3   :  { %1838 = vadd.xlane.f32.xlu1 %v1837_v33  ;;  %v10580_v33 = vld [vmem:[%s12380_s5 + $0xe0] ss:$16 sps:$4 sm:$0xff]  }
 0x950   :  { %v1839_v36 = vpop.xlane.xlu1 %1838 }
 0x951   :  { %9528 = vrcp.f32 %v1839_v36 }
 0x95b   :  { %v9529_v37 = vpop.eup %9528 }
 0x95c   :  { %v1841_v38 = vmul.f32 %v9529_v37, %v9527_v32  ;;  %v9212_v32 = vld [vmem:[%s12384_s9 + $0x38] sm:$0xff]  }
 0x95e   :  { %v1849_v42 = vrot.slane %v1841_v38, %v10072_v39 }
 0x960   :  { %v1857_v43 = vrot.slane %v1849_v42, %v10072_v39  ;;  %v1850_v54 = vcombine.high %v1849_v42, %v1849_v42 }
 0x962   :  { %v1867_v12 = vpack.c.bf16 %v1857_v43, %v1857_v43  ;;  %v1864_v55 = vrot.slane %v1850_v54, %v10072_v39 }
 0x964   :  { %8729 = vmatmul.mubr.msk.bf16.vlgmr.msra.gmra.mrb[36].mxu0 %vm951_vm6, %v1867_v12  ;;  %v1868_v56 = vpack.c.bf16 %v1864_v55, %v1864_v55 }
 0x965   :  { %8733 = vmatpush3.bf16.msra.mxu0 %v1921_v45  ;;  %8734 = vmatprep.mubr.msk.bf16.mxu0 %vm9701_vm1, %v9700_v23 }
 0x966   :  { %2112 = vmatprep.subr.bf16.mxu0 %v10140_v8 }
 0x96c   :  { %8735 = vmatmul.mubr.msk.bf16.vlgmr.msra.gmra.mrb[40].mxu0 %vm951_vm6, %v1868_v56 }
 0x96d   :  { %2113 = vmatpush1.bf16.msra.mxu0 %v10150_v10  ;;  %2144 = vmatprep.mubr.bf16.mxu0 %v12393_v2 }
 0x96e   :  { %2114 = vmatprep.subr.bf16.mxu0 %v10174_v17 }
 0x971   :  { %2115 = vmatpush1.bf16.msra.mxu0 %v10169_v16 }
 0x972   :  { %2116 = vmatprep.subr.bf16.mxu0 %v10188_v20 }
 0x975   :  { %2117 = vmatpush1.bf16.msra.mxu0 %v10198_v24 }
 0x976   :  { %2118 = vmatprep.subr.bf16.mxu0 %v10212_v28  ;;  %v9184_v28 = vld [vmem:[%s12384_s9] sm:$0xff]  }
 0x979   :  { %2119 = vmatpush1.bf16.msra.mxu0 %v10222_v3  ;;  %v10463_v3 = vld [vmem:[%s12380_s5 + $0x4] ss:$16 sps:$4 sm:$0xff]  }
 0x97a   :  { %2508 = vmatprep.subr.bf16.mxu0 %v10463_v3 }
 0xa37   :  { %v1911_v8 = vpop.f32.mrb[36].mxu0 }
 0xa38   :  { %v8730_v57 = vpop.f32.mrb[37].mxu0  ;;  %v1963_v10 = vpack.c.bf16 %v1911_v8, %v1911_v8  ;;  %v2154_v8 = vld [vmem:[#allocation2 + $0x6] sm:$0x3f] }
 0xa39   :  { %v1914_v7 = vpop.f32.mrb[38].mxu0 }
 0xa3a   :  { %v8731_v1 = vpop.f32.mrb[39].mxu0  ;;  %v1983_v16 = vunpack.c.l.b16 %v1963_v10 }
 0xa3f   :  { %v1957_v40 = vpop.f32.mrb[40].mxu0 }
 0xa40   :  { %v1964_v60 = vpack.c.bf16 %v1957_v40, %v1957_v40  ;;  %v8736_v61 = vpop.f32.mrb[41].mxu0 }
 0xa41   :  { %v1960_v62 = vpop.f32.mrb[42].mxu0 }
 0xa42   :  { %v1984_v17 = vunpack.c.l.b16 %v1964_v60  ;;  %v8737_v63 = vpop.f32.mrb[43].mxu0 }
 0xa44   :  { %v1985_v0 = vrot.slane %v1984_v17, 7 }
 0xa46   :  { %v1986_v20 = vsel %vm906_vm2, %v1985_v0, %v1983_v16  ;;  %v2193_v16 = vadd.f32 %v10295_v41, %v10401_v58  ;;  %v10616_v58 = vld [vmem:[%s12380_s5 + $0x2c] ss:$16 sps:$4 sm:$0xff]  }
 0xa47   :  { %v1987_v24 = vpack.c.b16 %v1986_v20, %v1986_v20 }
 0xa49   :  { %8010 = vmatmul.mubr.msk.bf16.vlgmr.msra.gmra.mrb[20].mxu1 %vm1150_vm7, %v1987_v24  ;;  %8011 = vmatmul.mubr.msk.bf16.vlgmr.msra.gmra.mrb[44].mxu0 %vm1150_vm7, %v1987_v24 }
 0xa4a   :  { %8754 = vmatprep.mubr.msk.bf16.mxu1 %vm9701_vm1, %v9700_v23  ;;  %2540 = vmatprep.mubr.bf16.mxu0 %v12393_v2 }
 0xa4b   :  { %8739 = vmatpush3.bf16.msra.mxu1 %v9184_v28  ;;  %2509 = vmatpush1.bf16.msra.mxu0 %v10468_v4 }
 0xa4c   :  { %8740 = vmatprep.subr.bf16.mxu1 %v9700_v23  ;;  %2510 = vmatprep.subr.bf16.mxu0 %v10479_v6 }
 0xa4f   :  { %8741 = vmatpush3.bf16.msra.mxu1 %v9188_v5  ;;  %2511 = vmatpush1.bf16.msra.mxu0 %v10484_v46 }
 0xa50   :  { %8742 = vmatprep.subr.bf16.mxu1 %v9700_v23  ;;  %2512 = vmatprep.subr.bf16.mxu0 %v10495_v49 }
 0xa53   :  { %8743 = vmatpush3.bf16.msra.mxu1 %v9192_v48  ;;  %2513 = vmatpush1.bf16.msra.mxu0 %v10500_v47 }
 0xa54   :  { %8744 = vmatprep.subr.bf16.mxu1 %v9700_v23  ;;  %2514 = vmatprep.subr.bf16.mxu0 %v10511_v9 }
 0xa57   :  { %8745 = vmatpush3.bf16.msra.mxu1 %v9196_v50  ;;  %2515 = vmatpush1.bf16.msra.mxu0 %v10516_v51 }
 0xa58   :  { %8746 = vmatprep.subr.bf16.mxu1 %v9700_v23  ;;  %2516 = vmatprep.subr.bf16.mxu0 %v10527_v14 }
 0xa5b   :  { %8747 = vmatpush3.bf16.msra.mxu1 %v9200_v52  ;;  %2517 = vmatpush1.bf16.msra.mxu0 %v10532_v13 }
 0xa5c   :  { %8748 = vmatprep.subr.bf16.mxu1 %v9700_v23  ;;  %2518 = vmatprep.subr.bf16.mxu0 %v10541_v21 }
 0xa5f   :  { %8749 = vmatpush3.bf16.msra.mxu1 %v9204_v18  ;;  %2519 = vmatpush1.bf16.msra.mxu0 %v10548_v27  ;;  %v10605_v18 = vld [vmem:[%s12380_s5 + $0x8] ss:$16 sps:$4 sm:$0xff]  }
 0xa60   :  { %8750 = vmatprep.subr.bf16.mxu1 %v9700_v23  ;;  %2520 = vmatprep.subr.bf16.mxu0 %v10554_v29 }
 0xa63   :  { %8751 = vmatpush3.bf16.msra.mxu1 %v9208_v19  ;;  %2521 = vmatpush1.bf16.msra.mxu0 %v10564_v30  ;;  %v10629_v19 = vld [vmem:[%s12380_s5 + $0x4c] ss:$16 sps:$4 sm:$0xff]  }
 0xa64   :  { %8752 = vmatprep.subr.bf16.mxu1 %v9700_v23  ;;  %2522 = vmatprep.subr.bf16.mxu0 %v10570_v31 }
 0xa67   :  { %8753 = vmatpush3.bf16.msra.mxu1 %v9212_v32  ;;  %2523 = vmatpush1.bf16.msra.mxu0 %v10580_v33  ;;  %v10637_v32 = vld [vmem:[%s12380_s5 + $0x48] ss:$16 sps:$4 sm:$0xff]  }
 0xa68   :  { %2549 = vmatprep.subr.bf16.mxu1 %v10585_v34  ;;  %8758 = vmatprep.subr.bf16.mxu0 %v9700_v23 }
 0xb1c   :  { %v2105_v35 = vpop.f32.mrb[20].mxu1  ;;  %v2146_v36 = vpop.f32.mrb[44].mxu0 }
 0xb1d   :  { %v2107_v37 = vpop.f32.mrb[21].mxu1  ;;  %v10591_v38 = vpop.f32.mrb[45].mxu0  ;;  %v2172_v54 = vrot.slane %v2146_v36, %v9833_v22  ;;  %v10649_v36 = vld [vmem:[%s12380_s5 + $0x68] ss:$16 sps:$4 sm:$0xff]  }
 0xb1e   :  { %v2158_v42 = vcombine.low %v2105_v35, %v2107_v37  ;;  %v2109_v11 = vpop.f32.mrb[22].mxu1  ;;  %v2150_v43 = vpop.f32.mrb[46].mxu0  ;;  %v10643_v35 = vld [vmem:[%s12380_s5 + $0x6c] ss:$16 sps:$4 sm:$0xff]  }
 0xb1f   :  { %v2110_v12 = vpop.f32.mrb[23].mxu1  ;;  %v2151_v45 = vpop.f32.mrb[47].mxu0  ;;  %v10655_v37 = vld [vmem:[%s12380_s5 + $0x8c] ss:$16 sps:$4 sm:$0xff]   ;;  %v10673_v43 = vld [vmem:[%s12380_s5 + $0xa8] ss:$16 sps:$4 sm:$0xff]  }
 0xb20   :  { %v2165_v55 = vrot.slane %v2158_v42, %v9833_v22  ;;  %v10661_v42 = vld [vmem:[%s12380_s5 + $0x88] ss:$16 sps:$4 sm:$0xff]   ;;  %v10667_v11 = vld [vmem:[%s12380_s5 + $0xac] ss:$16 sps:$4 sm:$0xff]  }
 0xb21   :  { %v10679_v12 = vld [vmem:[%s12380_s5 + $0xcc] ss:$16 sps:$4 sm:$0xff]   ;;  %v10685_v45 = vld [vmem:[%s12380_s5 + $0xc8] ss:$16 sps:$4 sm:$0xff]  }
 0xb22   :  { %v2173_v56 = vcombine.low %v2165_v55, %v2172_v54  ;;  %v10691_v54 = vld [vmem:[%s12380_s5 + $0xec] ss:$16 sps:$4 sm:$0xff]   ;;  %v10697_v55 = vld [vmem:[%s12380_s5 + $0xe8] ss:$16 sps:$4 sm:$0xff]  }
 0xb24   :  { %v2175_v57 = vadd.f32 %v2173_v56, %v2154_v8  ;;  %v9240_v56 = vld [vmem:[%s12385_s10] sm:$0xff]   ;;  %v9241_v8 = vld [vmem:[%s12385_s10 + $0x8] sm:$0xff]  }
 0xb26   :  { %v2176_v7 = vadd.f32 %v2175_v57, %v10394_v44  ;;  %v2184_v1 = vrot.slane %v2175_v57, 2  ;;  %v2195_v24 = vrot.slane %v2175_v57, 4  ;;  %v9242_v57 = vld [vmem:[%s12385_s10 + $0x10] sm:$0xff]  }
 0xb28   :  { %v8012_v40 = vmul.f32 -1.442695, %v2176_v7  ;;  %v2186_v10 = vadd.f32 %v2184_v1, %v10396_v53  ;;  %v9243_v7 = vld [vmem:[%s12385_s10 + $0x18] sm:$0xff]   ;;  %v9244_v1 = vld [vmem:[%s12385_s10 + $0x20] sm:$0xff]  }
 0xb2a   :  { %9530 = vpow2.f32 %v8012_v40  ;;  %v8013_v60 = vmul.f32 -1.442695, %v2186_v10  ;;  %v9245_v40 = vld [vmem:[%s12385_s10 + $0x28] sm:$0xff]   ;;  %v9246_v10 = vld [vmem:[%s12385_s10 + $0x30] sm:$0xff]  }
 0xb2c   :  { %9532 = vpow2.f32 %v8013_v60  ;;  %v9247_v60 = vld [vmem:[%s12385_s10 + $0x38] sm:$0xff]  }
 0xb34   :  { %v9531_v61 = vpop.eup %9530 }
 0xb35   :  { %v2180_v62 = vadd.f32 1.0, %v9531_v61  ;;  %v2204_v61 = vld [vmem:[#allocation3 + $0x2] sm:$0x3] }
 0xb36   :  { %v9533_v17 = vpop.eup %9532 }
 0xb37   :  { %9534 = vrcp.f32 %v2180_v62  ;;  %v2190_v63 = vadd.f32 1.0, %v9533_v17  ;;  %v2205_v62 = vadd.f32 %v2204_v61, %v10591_v38 }
 0xb39   :  { %9536 = vrcp.f32 %v2190_v63 }
 0xb41   :  { %v9535_v0 = vpop.eup %9534 }
 0xb42   :  { %v2194_v20 = vmul.f32 %v9535_v0, %v2193_v16 }
 0xb43   :  { %v9537_v28 = vpop.eup %9536 }
 0xb44   :  { %v2197_v44 = vadd.f32 %v2195_v24, %v2194_v20  ;;  %v2199_v5 = vsub.f32 1.0, %v9537_v28  ;;  %v2201_v50 = vmul.f32 %v9537_v28, %v10302_v59  ;;  %v10622_v59 = vld [vmem:[%s12380_s5 + $0x28] ss:$16 sps:$4 sm:$0xff]  }
 0xb46   :  { %9538 = vtanh.f32 %v2197_v44 }
 0xb50   :  { %v9539_v53 = vpop.eup %9538 }
 0xb51   :  { %v2200_v48 = vmul.f32 %v9539_v53, %v2199_v5 }
 0xb53   :  { %v10600_v52 = vadd.f32 %v2201_v50, %v2200_v48 }
 0xb55   :  { %v2206_v41 = vpack.c.bf16 %v10600_v52, %v10600_v52  ;;  %8022 = vst [vmem:[%s12389_s14 + $0x2] sm:$0x3] %v10600_v52 }
 0xb57   :  { %8755 = vmatmul.mubr.bf16.vlgmr.msra.gmra.mrb[24].mxu1 %v2206_v41  ;;  %2541 = vmatmul.mubr.bf16.vlgmr.msra.gmra.mrb[48].mxu0 %v2206_v41 }
 0xb58   :  { %2550 = vmatpush1.bf16.msra.mxu1 %v10605_v18  ;;  %2581 = vmatprep.mubr.bf16.mxu1 %v12393_v2 }
 0xb59   :  { %2551 = vmatprep.subr.bf16.mxu1 %v10616_v58  ;;  %8774 = vmatprep.mubr.msk.bf16.mxu0 %vm9701_vm1, %v9700_v23 }
 0xb5a   :  { %8759 = vmatpush3.bf16.msra.mxu0 %v9240_v56 }
 0xb5b   :  { %8760 = vmatprep.subr.bf16.mxu0 %v9700_v23 }
 0xb5c   :  { %2552 = vmatpush1.bf16.msra.mxu1 %v10622_v59 }
 0xb5d   :  { %2553 = vmatprep.subr.bf16.mxu1 %v10629_v19 }
 0xb5e   :  { %8761 = vmatpush3.bf16.msra.mxu0 %v9241_v8 }
 0xb5f   :  { %8762 = vmatprep.subr.bf16.mxu0 %v9700_v23 }
 0xb60   :  { %2554 = vmatpush1.bf16.msra.mxu1 %v10637_v32 }
 0xb61   :  { %2555 = vmatprep.subr.bf16.mxu1 %v10643_v35 }
 0xb62   :  { %8763 = vmatpush3.bf16.msra.mxu0 %v9242_v57 }
 0xb63   :  { %8764 = vmatprep.subr.bf16.mxu0 %v9700_v23 }
 0xb64   :  { %2556 = vmatpush1.bf16.msra.mxu1 %v10649_v36 }
 0xb65   :  { %2557 = vmatprep.subr.bf16.mxu1 %v10655_v37 }
 0xb66   :  { %8765 = vmatpush3.bf16.msra.mxu0 %v9243_v7 }
 0xb67   :  { %8766 = vmatprep.subr.bf16.mxu0 %v9700_v23 }
 0xb68   :  { %2558 = vmatpush1.bf16.msra.mxu1 %v10661_v42 }
 0xb69   :  { %2559 = vmatprep.subr.bf16.mxu1 %v10667_v11 }
 0xb6a   :  { %8767 = vmatpush3.bf16.msra.mxu0 %v9244_v1 }
 0xb6b   :  { %8768 = vmatprep.subr.bf16.mxu0 %v9700_v23 }
 0xb6c   :  { %2560 = vmatpush1.bf16.msra.mxu1 %v10673_v43 }
 0xb6d   :  { %2561 = vmatprep.subr.bf16.mxu1 %v10679_v12 }
 0xb6e   :  { %8769 = vmatpush3.bf16.msra.mxu0 %v9245_v40  ;;  %v10754_v40 = vld [vmem:[%s12377_s2] sm:$0xff] }
 0xb6f   :  { %8770 = vmatprep.subr.bf16.mxu0 %v9700_v23 }
 0xb70   :  { %2562 = vmatpush1.bf16.msra.mxu1 %v10685_v45 }
 0xb71   :  { %2563 = vmatprep.subr.bf16.mxu1 %v10691_v54 }
 0xb72   :  { %8771 = vmatpush3.bf16.msra.mxu0 %v9246_v10 }
 0xb73   :  { %8772 = vmatprep.subr.bf16.mxu0 %v9700_v23 }
 0xb74   :  { %2564 = vmatpush1.bf16.msra.mxu1 %v10697_v55 }
 0xb75   :  { %8778 = vmatprep.subr.bf16.mxu1 %v9700_v23 }
 0xb76   :  { %8773 = vmatpush3.bf16.msra.mxu0 %v9247_v60  ;;  %v10760_v60 = vld [vmem:[%s12377_s2 + $0x8] sm:$0xff] }
 0xb77   :  { %2582 = vmatmul.mubr.bf16.vlgmr.msra.gmra.mrb[28].mxu1 %v2206_v41  ;;  %8784 = vmatprep.subr.bf16.mxu0 %v9700_v23 }
 0xb78   :  { %8780 = vmatprep.mubr.msk.bf16.mxu1 %vm9701_vm1, %v9700_v23 }
 0xc2a   :  { %v2305_v17 = vpop.f32.mrb[24].mxu1  ;;  %v10737_v63 = vpop.f32.mrb[48].mxu0 }
 0xc2b   :  { %v2311_v16 = vadd.f32 %v2305_v17, %v2205_v62  ;;  %v8756_v0 = vpop.f32.mrb[25].mxu1  ;;  %v10739_v20 = vpop.f32.mrb[49].mxu0 }
 0xc2c   :  { %v2308_v24 = vpop.f32.mrb[26].mxu1  ;;  %v2546_v44 = vpop.f32.mrb[50].mxu0 }
 0xc2d   :  { %8023 = vst [vmem:[%s12390_s15 + $0x2] sm:$0x3] %v2311_v16  ;;  %v8757_v28 = vpop.f32.mrb[27].mxu1  ;;  %v2547_v5 = vpop.f32.mrb[51].mxu0 }
 0xc4a   :  { %v10744_v53 = vpop.f32.mrb[28].mxu1 }
 0xc4b   :  { %v2585_v48 = vpop.f32.mrb[29].mxu1 }
 0xc4c   :  { %v2597_v38 = vrot.slane %v2585_v48, %v10072_v39  ;;  %v2587_v50 = vpop.f32.mrb[30].mxu1 }
 0xc4d   :  { %v2588_v41 = vpop.f32.mrb[31].mxu1 }
 0xc4e   :  { %v2598_v56 = vcombine.high %v2597_v38, %v2597_v38  ;;  %v2605_v8 = vrot.slane %v2597_v38, %v10072_v39 }
 0xc50   :  { %v2612_v57 = vrot.slane %v2598_v56, %v10072_v39  ;;  %v2616_v7 = vrot.slane %v2605_v8, %v10048_v15 }
 0xc52   :  { %v2620_v1 = vrot.slane %v2612_v57, %v10048_v15  ;;  %v2623_v10 = vadd.f32 %v10754_v40, %v2616_v7 }
 0xc54   :  { %v2624_v61 = vadd.f32 %v10760_v60, %v2620_v1  ;;  %9540 = vtanh.f32 %v2623_v10 }
 0xc56   :  { %9542 = vtanh.f32 %v2624_v61 }
 0xc5e   :  { %v9541_v62 = vpop.eup %9540 }
 0xc60   :  { %v9543_v17 = vpop.eup %9542 }
 0xc61   :  { %v2627_v16 = vpack.c.bf16 %v9543_v17, %v9541_v62  ;;  %v2791_v62 = vld [vmem:[%s12376_s1 + $0x4] sm:$0xf]  ;;  %v2790_v17 = vld [vmem:[%s12376_s1] sm:$0xf] }
 0xc63   :  { %8775 = vmatmul.mubr.bf16.vlgmr.msra.gmra.mrb[52].mxu0 %v2627_v16  ;;  %v2842_v16 = vsel %vm955_vm5, %v2791_v62, 0  ;;  %v10824_v62 = vld [vmem:[%s12381_s6 + $0x20] ss:$16 sps:$4 sm:$0xff]  }
 0xc64   :  { %8786 = vmatprep.mubr.msk.bf16.mxu0 %vm9701_vm1, %v9700_v23  ;;  %8785 = vmatpush3.bf16.msra.mxu0 %v2842_v16  ;;  %12433 = vst [vmem:[#allocation8_spill] sm:$0xff] %v10824_v62  ;;  %v10838_v16 = vld [vmem:[%s12381_s6 + $0x44] ss:$16 sps:$4 sm:$0xff]  }
 0xc65   :  { %12435 = vst [vmem:[#allocation10_spill] sm:$0xff] %v10838_v16 }
 0xd36   :  { %v2726_v0 = vpop.f32.mrb[52].mxu0 }
 0xd37   :  { %2736 = vperm.xlu0 %9076, %v2726_v0   ;;  %v8776_v24 = vpop.f32.mrb[53].mxu0  ;;  %v2796_v0 = vsel %vm955_vm5, %v2790_v17, 0  ;;  %v10829_v17 = vld [vmem:[%s12381_s6 + $0x28] ss:$16 sps:$4 sm:$0xff]  }
 0xd38   :  { %v2729_v44 = vpop.f32.mrb[54].mxu0  ;;  %8779 = vmatpush3.bf16.msra.mxu1 %v2796_v0  ;;  %v10783_v24 = vld [vmem:[%s12381_s6 + $0x4] ss:$16 sps:$4 sm:$0xff]   ;;  %12434 = vst [vmem:[#allocation9_spill] sm:$0xff] %v10829_v17  ;;  %v10843_v0 = vld [vmem:[%s12381_s6 + $0x4c] ss:$16 sps:$4 sm:$0xff]  }
 0xd39   :  { %2739 = vperm.xlu1 %9077, %v2729_v44   ;;  %v8777_v28 = vpop.f32.mrb[55].mxu0  ;;  %v10788_v44 = vld [vmem:[%s12381_s6 + $0xc] ss:$16 sps:$4 sm:$0xff]   ;;  %2992 = vmatprep.subr.bf16.mxu1 %v10783_v24  ;;  %12436 = vst [vmem:[#allocation11_spill] sm:$0xff] %v10843_v0 }
 0xd3a   :  { %3033 = vmatprep.subr.bf16.mxu0 %v10788_v44 }
 0xdb6   :  { %v2737_v5 = vpop.permute.xlu0 %2736 }
 0xdb7   :  { %v2744_v38 = vrot.slane %v2737_v5, %v10100_v25 }
 0xdb8   :  { %v2740_v48 = vpop.permute.xlu1 %2739 }
 0xdb9   :  { %v2748_v50 = vrot.slane %v2740_v48, %v10100_v25 }
 0xdbb   :  { %v2749_v41 = vsel %vm906_vm2, %v2748_v50, %v2744_v38 }
 0xdbc   :  { %v2751_v56 = vsel %vm887_vm3, %v2749_v41, -1e+09 }
 0xdbd   :  { %v2752_v8 = vsel %vm910_vm4, %v2751_v56, -inf }
 0xdbe   :  { %2753 = vmax.xlane.f32.xlu0 %v2752_v8 }
 0xe4b   :  { %v2754_v57 = vpop.xlane.xlu0 %2753 }
 0xe4c   :  { %v2755_v7 = vsub.f32 %v2751_v56, %v2754_v57  ;;  %v10797_v56 = vld [vmem:[%s12381_s6] ss:$16 sps:$4 sm:$0xff]  }
 0xe4e   :  { %v2756_v1 = vmul.f32 1.442695, %v2755_v7  ;;  %v10803_v7 = vld [vmem:[%s12381_s6 + $0x8] ss:$16 sps:$4 sm:$0xff]  }
 0xe50   :  { %9544 = vpow2.f32 %v2756_v1 }
 0xe5a   :  { %v9545_v10 = vpop.eup %9544 }
 0xe5b   :  { %v2758_v61 = vsel %vm910_vm4, %v9545_v10, 0.0 }
 0xe5c   :  { %2759 = vadd.xlane.f32.xlu1 %v2758_v61  ;;  %v10819_v61 = vld [vmem:[%s12381_s6 + $0x2c] ss:$16 sps:$4 sm:$0xff]  }
 0xe5d   :  { %12432 = vst [vmem:[#allocation7_spill] sm:$0xff] %v10819_v61 }
 0xee9   :  { %v2760_v28 = vpop.xlane.xlu1 %2759 }
 0xeea   :  { %9546 = vrcp.f32 %v2760_v28  ;;  %v10848_v28 = vld [vmem:[%s12381_s6 + $0x40] ss:$16 sps:$4 sm:$0xff]  }
 0xeeb   :  { %12437 = vst [vmem:[#allocation12_spill] sm:$0xff] %v10848_v28 }
 0xef4   :  { %v9547_v5 = vpop.eup %9546 }
 0xef5   :  { %v2762_v48 = vmul.f32 %v9547_v5, %v9545_v10  ;;  %v10814_v10 = vld [vmem:[%s12381_s6 + $0x24] ss:$16 sps:$4 sm:$0xff]   ;;  %v10853_v5 = vld [vmem:[%s12381_s6 + $0x48] ss:$16 sps:$4 sm:$0xff]  }
 0xef6   :  { %12438 = vst [vmem:[#allocation13_spill] sm:$0xff] %v10853_v5 }
 0xef7   :  { %v2770_v38 = vrot.slane %v2762_v48, %v10072_v39  ;;  %v10862_v48 = vld [vmem:[%s12381_s6 + $0x64] ss:$16 sps:$4 sm:$0xff]  }
 0xef8   :  { %12439 = vst [vmem:[#allocation14_spill] sm:$0xff] %v10862_v48 }
 0xef9   :  { %v2778_v50 = vrot.slane %v2770_v38, %v10072_v39  ;;  %v2771_v41 = vcombine.high %v2770_v38, %v2770_v38  ;;  %v10867_v38 = vld [vmem:[%s12381_s6 + $0x6c] ss:$16 sps:$4 sm:$0xff]  }
 0xefa   :  { %12440 = vst [vmem:[#allocation15_spill] sm:$0xff] %v10867_v38 }
 0xefb   :  { %v2788_v8 = vpack.c.bf16 %v2778_v50, %v2778_v50  ;;  %v2785_v57 = vrot.slane %v2771_v41, %v10072_v39  ;;  %v10872_v50 = vld [vmem:[%s12381_s6 + $0x60] ss:$16 sps:$4 sm:$0xff]   ;;  %v10877_v41 = vld [vmem:[%s12381_s6 + $0x68] ss:$16 sps:$4 sm:$0xff]  }
 0xefc   :  { %12441 = vst [vmem:[#allocation16_spill] sm:$0xff] %v10872_v50  ;;  %12442 = vst [vmem:[#allocation17_spill] sm:$0xff] %v10877_v41 }
 0xefd   :  { %8781 = vmatmul.mubr.msk.bf16.vlgmr.msra.gmra.mrb[32].mxu1 %vm951_vm6, %v2788_v8  ;;  %v2789_v1 = vpack.c.bf16 %v2785_v57, %v2785_v57 }
 0xefe   :  { %2993 = vmatpush1.bf16.msra.mxu1 %v10797_v56  ;;  %3024 = vmatprep.mubr.bf16.mxu1 %v12393_v2 }
 0xeff   :  { %8787 = vmatmul.mubr.msk.bf16.vlgmr.msra.gmra.mrb[56].mxu0 %vm951_vm6, %v2789_v1  ;;  %2994 = vmatprep.subr.bf16.mxu1 %v10814_v10 }
 0xf00   :  { %3034 = vmatpush1.bf16.msra.mxu0 %v10803_v7  ;;  %3065 = vmatprep.mubr.bf16.mxu0 %v12393_v2 }
 0xf01   :  { %3035 = vmatprep.subr.bf16.mxu0 %v10819_v61 }
 0xf02   :  { %2995 = vmatpush1.bf16.msra.mxu1 %v10824_v62 }
 0xf03   :  { %2996 = vmatprep.subr.bf16.mxu1 %v10838_v16 }
 0xf04   :  { %3036 = vmatpush1.bf16.msra.mxu0 %v10829_v17 }
 0xf05   :  { %3037 = vmatprep.subr.bf16.mxu0 %v10843_v0 }
 0xf06   :  { %2997 = vmatpush1.bf16.msra.mxu1 %v10848_v28 }
 0xf07   :  { %2998 = vmatprep.subr.bf16.mxu1 %v10862_v48 }
 0xf08   :  { %3038 = vmatpush1.bf16.msra.mxu0 %v10853_v5 }
 0xf09   :  { %3039 = vmatprep.subr.bf16.mxu0 %v10867_v38 }
 0xf0a   :  { %2999 = vmatpush1.bf16.msra.mxu1 %v10872_v50 }
 0xf0b   :  { %8790 = vmatprep.subr.bf16.mxu1 %v9700_v23 }
 0xf0c   :  { %3040 = vmatpush1.bf16.msra.mxu0 %v10877_v41 }
 0xf0d   :  { %3429 = vmatprep.subr.bf16.mxu0 %v10463_v3  ;;  %v9272_v3 = vld [vmem:[%s12384_s9] sm:$0xff]  }
 0xfd0   :  { %v2832_v8 = vpop.f32.mrb[32].mxu1 }
 0xfd1   :  { %v8782_v57 = vpop.f32.mrb[33].mxu1  ;;  %v2884_v5 = vpack.c.bf16 %v2832_v8, %v2832_v8 }
 0xfd2   :  { %v2835_v1 = vpop.f32.mrb[34].mxu1  ;;  %v2878_v2 = vpop.f32.mrb[56].mxu0 }
 0xfd3   :  { %v2885_v28 = vpack.c.bf16 %v2878_v2, %v2878_v2  ;;  %v8783_v0 = vpop.f32.mrb[35].mxu1  ;;  %v8788_v17 = vpop.f32.mrb[57].mxu0  ;;  %v2904_v38 = vunpack.c.l.b16 %v2884_v5  ;;  %v12443_v2 = vmov 0  }
 0xfd4   :  { %v2881_v16 = vpop.f32.mrb[58].mxu0  ;;  %v3075_v0 = vld [vmem:[#allocation2 + $0xc] sm:$0x3f] }
 0xfd5   :  { %v2905_v48 = vunpack.c.l.b16 %v2885_v28  ;;  %v8789_v62 = vpop.f32.mrb[59].mxu0 }
 0xfd7   :  { %v2906_v61 = vrot.slane %v2905_v48, 7 }
 0xfd9   :  { %v2907_v50 = vsel %vm906_vm2, %v2906_v61, %v2904_v38 }
 0xfda   :  { %v2908_v41 = vpack.c.b16 %v2907_v50, %v2907_v50 }
 0xfdc   :  { %8082 = vmatmul.mubr.msk.bf16.vlgmr.msra.gmra.mrb[36].mxu1 %vm1150_vm7, %v2908_v41  ;;  %8083 = vmatmul.mubr.msk.bf16.vlgmr.msra.gmra.mrb[60].mxu0 %vm1150_vm7, %v2908_v41 }
 0xfdd   :  { %3430 = vmatpush1.bf16.msra.mxu0 %v10468_v4  ;;  %8806 = vmatprep.mubr.msk.bf16.mxu1 %vm9701_vm1, %v9700_v23  ;;  %v9273_v4 = vld [vmem:[%s12384_s9 + $0x8] sm:$0xff]  }
 0xfde   :  { %3431 = vmatprep.subr.bf16.mxu0 %v10479_v6  ;;  %3461 = vmatprep.mubr.bf16.mxu0 %v12443_v2  ;;  %v9274_v6 = vld [vmem:[%s12384_s9 + $0x10] sm:$0xff]  }
 0xfdf   :  { %8791 = vmatpush3.bf16.msra.mxu1 %v9272_v3  ;;  %v10948_v3 = vld [vmem:[%s12387_s12] ss:$0 sm:$0xff] }
 0xfe0   :  { %8792 = vmatprep.subr.bf16.mxu1 %v9700_v23 }
 0xfe1   :  { %3432 = vmatpush1.bf16.msra.mxu0 %v10484_v46  ;;  %v9275_v46 = vld [vmem:[%s12384_s9 + $0x18] sm:$0xff]  }
 0xfe2   :  { %3433 = vmatprep.subr.bf16.mxu0 %v10495_v49  ;;  %v9276_v49 = vld [vmem:[%s12384_s9 + $0x20] sm:$0xff]  }
 0xfe3   :  { %8793 = vmatpush3.bf16.msra.mxu1 %v9273_v4 }
 0xfe4   :  { %8794 = vmatprep.subr.bf16.mxu1 %v9700_v23 }
 0xfe5   :  { %3434 = vmatpush1.bf16.msra.mxu0 %v10500_v47  ;;  %v9277_v47 = vld [vmem:[%s12384_s9 + $0x28] sm:$0xff]  }
 0xfe6   :  { %3435 = vmatprep.subr.bf16.mxu0 %v10511_v9  ;;  %v9278_v9 = vld [vmem:[%s12384_s9 + $0x30] sm:$0xff]  }
 0xfe7   :  { %8795 = vmatpush3.bf16.msra.mxu1 %v9274_v6 }
 0xfe8   :  { %8796 = vmatprep.subr.bf16.mxu1 %v9700_v23 }
 0xfe9   :  { %3436 = vmatpush1.bf16.msra.mxu0 %v10516_v51  ;;  %v9279_v51 = vld [vmem:[%s12384_s9 + $0x38] sm:$0xff]  }
 0xfea   :  { %3437 = vmatprep.subr.bf16.mxu0 %v10527_v14 }
 0xfeb   :  { %8797 = vmatpush3.bf16.msra.mxu1 %v9275_v46 }
 0xfec   :  { %8798 = vmatprep.subr.bf16.mxu1 %v9700_v23 }
 0xfed   :  { %3438 = vmatpush1.bf16.msra.mxu0 %v10532_v13 }
 0xfee   :  { %3439 = vmatprep.subr.bf16.mxu0 %v10541_v21 }
 0xfef   :  { %8799 = vmatpush3.bf16.msra.mxu1 %v9276_v49 }
 0xff0   :  { %8800 = vmatprep.subr.bf16.mxu1 %v9700_v23 }
 0xff1   :  { %3440 = vmatpush1.bf16.msra.mxu0 %v10548_v27 }
 0xff2   :  { %3441 = vmatprep.subr.bf16.mxu0 %v10554_v29 }
 0xff3   :  { %8801 = vmatpush3.bf16.msra.mxu1 %v9277_v47 }
 0xff4   :  { %8802 = vmatprep.subr.bf16.mxu1 %v9700_v23 }
 0xff5   :  { %3442 = vmatpush1.bf16.msra.mxu0 %v10564_v30 }
 0xff6   :  { %3443 = vmatprep.subr.bf16.mxu0 %v10570_v31 }
 0xff7   :  { %8803 = vmatpush3.bf16.msra.mxu1 %v9278_v9 }
 0xff8   :  { %8804 = vmatprep.subr.bf16.mxu1 %v9700_v23 }
 0xff9   :  { %3444 = vmatpush1.bf16.msra.mxu0 %v10580_v33 }
 0xffa   :  { %8810 = vmatprep.subr.bf16.mxu0 %v9700_v23 }
 0xffb   :  { %8805 = vmatpush3.bf16.msra.mxu1 %v9279_v51 }
 0xffc   :  { %3470 = vmatprep.subr.bf16.mxu1 %v10585_v34 }
0x10af   :  { %v3026_v14 = vpop.f32.mrb[36].mxu1  ;;  %v3067_v13 = vpop.f32.mrb[60].mxu0 }
0x10b0   :  { %v3028_v21 = vpop.f32.mrb[37].mxu1  ;;  %v10939_v27 = vpop.f32.mrb[61].mxu0  ;;  %v3093_v62 = vrot.slane %v3067_v13, %v9833_v22 }
0x10b1   :  { %v3079_v29 = vcombine.low %v3026_v14, %v3028_v21  ;;  %v3030_v30 = vpop.f32.mrb[38].mxu1  ;;  %v3071_v31 = vpop.f32.mrb[62].mxu0 }
0x10b2   :  { %v3031_v33 = vpop.f32.mrb[39].mxu1  ;;  %v3072_v61 = vpop.f32.mrb[63].mxu0 }
0x10b3   :  { %v3086_v17 = vrot.slane %v3079_v29, %v9833_v22 }
0x10b5   :  { %v3094_v16 = vcombine.low %v3086_v17, %v3093_v62 }
0x10b7   :  { %v3096_v28 = vadd.f32 %v3094_v16, %v3075_v0 }
0x10b9   :  { %v3097_v5 = vadd.f32 %v3096_v28, %v10737_v63  ;;  %v3105_v34 = vrot.slane %v3096_v28, 2  ;;  %v3114_v63 = vadd.f32 %v10948_v3, %v10744_v53 }
0x10bb   :  { %v8084_v48 = vmul.f32 -1.442695, %v3097_v5  ;;  %v3107_v38 = vadd.f32 %v3105_v34, %v10739_v20  ;;  %v3116_v20 = vrot.slane %v3096_v28, 4 }
0x10bd   :  { %9548 = vpow2.f32 %v8084_v48  ;;  %v8085_v50 = vmul.f32 -1.442695, %v3107_v38 }
0x10bf   :  { %9550 = vpow2.f32 %v8085_v50 }
0x10c7   :  { %v9549_v41 = vpop.eup %9548 }
0x10c8   :  { %v3101_v8 = vadd.f32 1.0, %v9549_v41 }
0x10c9   :  { %v9551_v57 = vpop.eup %9550 }
0x10ca   :  { %9552 = vrcp.f32 %v3101_v8  ;;  %v3111_v1 = vadd.f32 1.0, %v9551_v57 }
0x10cc   :  { %9554 = vrcp.f32 %v3111_v1 }
0x10d4   :  { %v9553_v4 = vpop.eup %9552 }
0x10d5   :  { %v3115_v6 = vmul.f32 %v9553_v4, %v3114_v63 }
0x10d6   :  { %v9555_v49 = vpop.eup %9554 }
0x10d7   :  { %v3118_v46 = vadd.f32 %v3116_v20, %v3115_v6  ;;  %v3120_v47 = vsub.f32 1.0, %v9555_v49  ;;  %v3122_v14 = vmul.f32 %v9555_v49, %v10600_v52  ;;  %v9280_v52 = vld [vmem:[%s12385_s10] sm:$0xff]  }
0x10d9   :  { %9556 = vtanh.f32 %v3118_v46 }
0x10e3   :  { %v9557_v9 = vpop.eup %9556 }
0x10e4   :  { %v3121_v51 = vmul.f32 %v9557_v9, %v3120_v47 }
0x10e6   :  { %v10953_v13 = vadd.f32 %v3122_v14, %v3121_v51 }
0x10e8   :  { %v3127_v21 = vpack.c.bf16 %v10953_v13, %v10953_v13  ;;  %8094 = vst [vmem:[%s12389_s14 + $0x4] sm:$0x3] %v10953_v13 }
0x10ea   :  { %8807 = vmatmul.mubr.bf16.vlgmr.msra.gmra.mrb[40].mxu1 %v3127_v21  ;;  %3462 = vmatmul.mubr.bf16.vlgmr.msra.gmra.mrb[64].mxu0 %v3127_v21 }
0x10eb   :  { %3471 = vmatpush1.bf16.msra.mxu1 %v10605_v18  ;;  %3502 = vmatprep.mubr.bf16.mxu1 %v12443_v2  ;;  %v9281_v18 = vld [vmem:[%s12385_s10 + $0x8] sm:$0xff]  }
0x10ec   :  { %3472 = vmatprep.subr.bf16.mxu1 %v10616_v58  ;;  %8826 = vmatprep.mubr.msk.bf16.mxu0 %vm9701_vm1, %v9700_v23  ;;  %v9282_v58 = vld [vmem:[%s12385_s10 + $0x10] sm:$0xff]  }
0x10ed   :  { %8811 = vmatpush3.bf16.msra.mxu0 %v9280_v52  ;;  %v3712_v52 = vld [vmem:[%s12376_s1 + $0x4] sm:$0xf] }
0x10ee   :  { %8812 = vmatprep.subr.bf16.mxu0 %v9700_v23 }
0x10ef   :  { %3473 = vmatpush1.bf16.msra.mxu1 %v10622_v59  ;;  %v9283_v59 = vld [vmem:[%s12385_s10 + $0x18] sm:$0xff]  }
0x10f0   :  { %3474 = vmatprep.subr.bf16.mxu1 %v10629_v19  ;;  %v9284_v19 = vld [vmem:[%s12385_s10 + $0x20] sm:$0xff]  }
0x10f1   :  { %8813 = vmatpush3.bf16.msra.mxu0 %v9281_v18  ;;  %v3711_v18 = vld [vmem:[%s12376_s1] sm:$0xf] }
0x10f2   :  { %8814 = vmatprep.subr.bf16.mxu0 %v9700_v23 }
0x10f3   :  { %3475 = vmatpush1.bf16.msra.mxu1 %v10637_v32  ;;  %v9285_v32 = vld [vmem:[%s12385_s10 + $0x28] sm:$0xff]  }
0x10f4   :  { %3476 = vmatprep.subr.bf16.mxu1 %v10643_v35  ;;  %v9286_v35 = vld [vmem:[%s12385_s10 + $0x30] sm:$0xff]  }
0x10f5   :  { %8815 = vmatpush3.bf16.msra.mxu0 %v9282_v58  ;;  %v3763_v58 = vsel %vm955_vm5, %v3712_v52, 0  ;;  %v11148_v52 = vld [vmem:[%s12380_s5 + $0x84] ss:$16 sps:$4 sm:$0xff]  }
0x10f6   :  { %8816 = vmatprep.subr.bf16.mxu0 %v9700_v23 }
0x10f7   :  { %3477 = vmatpush1.bf16.msra.mxu1 %v10649_v36  ;;  %v9287_v36 = vld [vmem:[%s12385_s10 + $0x38] sm:$0xff]  }
0x10f8   :  { %3478 = vmatprep.subr.bf16.mxu1 %v10655_v37  ;;  %v3125_v37 = vld [vmem:[#allocation3 + $0x4] sm:$0x3] }
0x10f9   :  { %8817 = vmatpush3.bf16.msra.mxu0 %v9283_v59  ;;  %v3717_v59 = vsel %vm955_vm5, %v3711_v18, 0  ;;  %v11153_v18 = vld [vmem:[%s12380_s5 + $0x80] ss:$16 sps:$4 sm:$0xff]  }
0x10fa   :  { %8818 = vmatprep.subr.bf16.mxu0 %v9700_v23 }
0x10fb   :  { %3479 = vmatpush1.bf16.msra.mxu1 %v10661_v42  ;;  %v3126_v42 = vadd.f32 %v3125_v37, %v10939_v27 }
0x10fc   :  { %3480 = vmatprep.subr.bf16.mxu1 %v10667_v11 }
0x10fd   :  { %8819 = vmatpush3.bf16.msra.mxu0 %v9284_v19 }
0x10fe   :  { %8820 = vmatprep.subr.bf16.mxu0 %v9700_v23 }
0x10ff   :  { %3481 = vmatpush1.bf16.msra.mxu1 %v10673_v43 }
0x1100   :  { %3482 = vmatprep.subr.bf16.mxu1 %v10679_v12 }
0x1101   :  { %8821 = vmatpush3.bf16.msra.mxu0 %v9285_v32 }
0x1102   :  { %8822 = vmatprep.subr.bf16.mxu0 %v9700_v23 }
0x1103   :  { %3483 = vmatpush1.bf16.msra.mxu1 %v10685_v45 }
0x1104   :  { %3484 = vmatprep.subr.bf16.mxu1 %v10691_v54 }
0x1105   :  { %8823 = vmatpush3.bf16.msra.mxu0 %v9286_v35 }
0x1106   :  { %8824 = vmatprep.subr.bf16.mxu0 %v9700_v23 }
0x1107   :  { %3485 = vmatpush1.bf16.msra.mxu1 %v10697_v55 }
0x1108   :  { %8830 = vmatprep.subr.bf16.mxu1 %v9700_v23 }
0x1109   :  { %8825 = vmatpush3.bf16.msra.mxu0 %v9287_v36 }
0x110a   :  { %3503 = vmatmul.mubr.bf16.vlgmr.msra.gmra.mrb[44].mxu1 %v3127_v21  ;;  %8836 = vmatprep.subr.bf16.mxu0 %v9700_v23 }
0x110b   :  { %8832 = vmatprep.mubr.msk.bf16.mxu1 %vm9701_vm1, %v9700_v23  ;;  %8831 = vmatpush3.bf16.msra.mxu1 %v3717_v59  ;;  %v11162_v59 = vld [vmem:[%s12380_s5 + $0xa4] ss:$16 sps:$4 sm:$0xff]  }
0x110c   :  { %3913 = vmatprep.subr.bf16.mxu1 %v10783_v24  ;;  %v12444_v24 = vld [vmem:[#allocation7_spill] sm:$0xff] }
0x11bd   :  { %v3226_v11 = vpop.f32.mrb[40].mxu1  ;;  %v11015_v43 = vpop.f32.mrb[64].mxu0 }
0x11be   :  { %v3232_v12 = vadd.f32 %v3226_v11, %v3126_v42  ;;  %v8808_v45 = vpop.f32.mrb[41].mxu1  ;;  %v11017_v54 = vpop.f32.mrb[65].mxu0 }
0x11bf   :  { %v3229_v55 = vpop.f32.mrb[42].mxu1  ;;  %v3467_v53 = vpop.f32.mrb[66].mxu0 }
0x11c0   :  { %8095 = vst [vmem:[%s12390_s15 + $0x4] sm:$0x3] %v3232_v12  ;;  %v8809_v29 = vpop.f32.mrb[43].mxu1  ;;  %v3468_v30 = vpop.f32.mrb[67].mxu0  ;;  %v12446_v55 = vld [vmem:[#allocation10_spill] sm:$0xff]  ;;  %v12447_v53 = vld [vmem:[#allocation9_spill] sm:$0xff] }
0x11c1   :  { %v12448_v29 = vld [vmem:[#allocation11_spill] sm:$0xff]  ;;  %v12450_v30 = vld [vmem:[#allocation14_spill] sm:$0xff] }
0x11dd   :  { %v11022_v31 = vpop.f32.mrb[44].mxu1 }
0x11de   :  { %v3506_v33 = vpop.f32.mrb[45].mxu1 }
0x11df   :  { %v3518_v27 = vrot.slane %v3506_v33, %v10072_v39  ;;  %v3508_v61 = vpop.f32.mrb[46].mxu1  ;;  %v12451_v33 = vld [vmem:[#allocation13_spill] sm:$0xff] }
0x11e0   :  { %v3509_v62 = vpop.f32.mrb[47].mxu1 }
0x11e1   :  { %v3519_v17 = vcombine.high %v3518_v27, %v3518_v27  ;;  %v3526_v16 = vrot.slane %v3518_v27, %v10072_v39  ;;  %v12454_v27 = vld [vmem:[#allocation17_spill] sm:$0xff] }
0x11e3   :  { %v3533_v0 = vrot.slane %v3519_v17, %v10072_v39  ;;  %v3537_v28 = vrot.slane %v3526_v16, %v10048_v15 }
0x11e5   :  { %v3541_v5 = vrot.slane %v3533_v0, %v10048_v15  ;;  %v3544_v34 = vadd.f32 %v10754_v40, %v3537_v28 }
0x11e7   :  { %v3545_v48 = vadd.f32 %v10760_v60, %v3541_v5  ;;  %9558 = vtanh.f32 %v3544_v34 }
0x11e9   :  { %9560 = vtanh.f32 %v3545_v48 }
0x11f1   :  { %v9559_v38 = vpop.eup %9558 }
0x11f3   :  { %v9561_v50 = vpop.eup %9560 }
0x11f4   :  { %v3548_v41 = vpack.c.bf16 %v9561_v50, %v9559_v38 }
0x11f6   :  { %8827 = vmatmul.mubr.bf16.vlgmr.msra.gmra.mrb[68].mxu0 %v3548_v41 }
0x11f7   :  { %8838 = vmatprep.mubr.msk.bf16.mxu0 %vm9701_vm1, %v9700_v23  ;;  %8837 = vmatpush3.bf16.msra.mxu0 %v3763_v58  ;;  %v9308_v58 = vld [vmem:[%s12384_s9 + $0x28] sm:$0xff]  }
0x11f8   :  { %3954 = vmatprep.subr.bf16.mxu0 %v10788_v44  ;;  %v12445_v44 = vld [vmem:[#allocation8_spill] sm:$0xff] }
0x12c9   :  { %v3647_v8 = vpop.f32.mrb[68].mxu0 }
0x12ca   :  { %3657 = vperm.xlu0 %9076, %v3647_v8   ;;  %v8828_v57 = vpop.f32.mrb[69].mxu0 }
0x12cb   :  { %v3650_v1 = vpop.f32.mrb[70].mxu0 }
0x12cc   :  { %3660 = vperm.xlu1 %9077, %v3650_v1   ;;  %v8829_v63 = vpop.f32.mrb[71].mxu0 }
0x12cd   :  { %v9288_v63 = vld [vmem:[%s12384_s9] sm:$0xff]  }
0x1349   :  { %v3658_v4 = vpop.permute.xlu0 %3657 }
0x134a   :  { %v3665_v40 = vrot.slane %v3658_v4, %v10100_v25  ;;  %v11084_v4 = vld [vmem:[%s12380_s5 + $0x4] ss:$16 sps:$4 sm:$0xff]  }
0x134b   :  { %v3661_v6 = vpop.permute.xlu1 %3660 }
0x134c   :  { %v3669_v60 = vrot.slane %v3661_v6, %v10100_v25  ;;  %v11089_v6 = vld [vmem:[%s12380_s5] ss:$16 sps:$4 sm:$0xff]  }
0x134e   :  { %v3670_v20 = vsel %vm906_vm2, %v3669_v60, %v3665_v40  ;;  %v9292_v40 = vld [vmem:[%s12384_s9 + $0x8] sm:$0xff]   ;;  %v11100_v60 = vld [vmem:[%s12380_s5 + $0x24] ss:$16 sps:$4 sm:$0xff]  }
0x134f   :  { %v3672_v46 = vsel %vm887_vm3, %v3670_v20, -1e+09  ;;  %v11105_v20 = vld [vmem:[%s12380_s5 + $0x20] ss:$16 sps:$4 sm:$0xff]  }
0x1350   :  { %v3673_v49 = vsel %vm910_vm4, %v3672_v46, -inf }
0x1351   :  { %3674 = vmax.xlane.f32.xlu0 %v3673_v49  ;;  %v11116_v49 = vld [vmem:[%s12380_s5 + $0x44] ss:$16 sps:$4 sm:$0xff]  }
0x13de   :  { %v3675_v47 = vpop.xlane.xlu0 %3674 }
0x13df   :  { %v3676_v9 = vsub.f32 %v3672_v46, %v3675_v47  ;;  %v9296_v46 = vld [vmem:[%s12384_s9 + $0x10] sm:$0xff]  }
0x13e0   :  { %v11121_v47 = vld [vmem:[%s12380_s5 + $0x40] ss:$16 sps:$4 sm:$0xff]  }
0x13e1   :  { %v3677_v51 = vmul.f32 1.442695, %v3676_v9  ;;  %v9300_v9 = vld [vmem:[%s12384_s9 + $0x18] sm:$0xff]  }
0x13e3   :  { %9562 = vpow2.f32 %v3677_v51  ;;  %v11132_v51 = vld [vmem:[%s12380_s5 + $0x64] ss:$16 sps:$4 sm:$0xff]  }
0x13ed   :  { %v9563_v14 = vpop.eup %9562 }
0x13ee   :  { %v3679_v21 = vsel %vm910_vm4, %v9563_v14, 0.0 }
0x13ef   :  { %3680 = vadd.xlane.f32.xlu1 %v3679_v21  ;;  %v9304_v21 = vld [vmem:[%s12384_s9 + $0x20] sm:$0xff]  }
0x147c   :  { %v3681_v19 = vpop.xlane.xlu1 %3680 }
0x147d   :  { %9564 = vrcp.f32 %v3681_v19  ;;  %v11169_v19 = vld [vmem:[%s12380_s5 + $0xa0] ss:$16 sps:$4 sm:$0xff]  }
0x1487   :  { %v9565_v32 = vpop.eup %9564 }
0x1488   :  { %v3683_v35 = vmul.f32 %v9565_v32, %v9563_v14  ;;  %v11137_v14 = vld [vmem:[%s12380_s5 + $0x60] ss:$16 sps:$4 sm:$0xff]   ;;  %v11175_v32 = vld [vmem:[%s12380_s5 + $0xc4] ss:$16 sps:$4 sm:$0xff]  }
0x148a   :  { %v3691_v36 = vrot.slane %v3683_v35, %v10072_v39  ;;  %v9312_v35 = vld [vmem:[%s12384_s9 + $0x30] sm:$0xff]  }
0x148c   :  { %v3699_v37 = vrot.slane %v3691_v36, %v10072_v39  ;;  %v3692_v42 = vcombine.high %v3691_v36, %v3691_v36  ;;  %v11185_v36 = vld [vmem:[%s12380_s5 + $0xc0] ss:$16 sps:$4 sm:$0xff]  }
0x148e   :  { %v3709_v11 = vpack.c.bf16 %v3699_v37, %v3699_v37  ;;  %v3706_v12 = vrot.slane %v3692_v42, %v10072_v39  ;;  %v11191_v37 = vld [vmem:[%s12380_s5 + $0xe4] ss:$16 sps:$4 sm:$0xff]   ;;  %v9316_v42 = vld [vmem:[%s12384_s9 + $0x38] sm:$0xff]  }
0x1490   :  { %8833 = vmatmul.mubr.msk.bf16.vlgmr.msra.gmra.mrb[48].mxu1 %vm951_vm6, %v3709_v11  ;;  %v3710_v45 = vpack.c.bf16 %v3706_v12, %v3706_v12  ;;  %v11201_v11 = vld [vmem:[%s12380_s5 + $0xe0] ss:$16 sps:$4 sm:$0xff]   ;;  %v11206_v12 = vld [vmem:[%s12380_s5 + $0xc] ss:$16 sps:$4 sm:$0xff]  }
0x1491   :  { %3914 = vmatpush1.bf16.msra.mxu1 %v10797_v56  ;;  %3945 = vmatprep.mubr.bf16.mxu1 %v12443_v2  ;;  %v12449_v56 = vld [vmem:[#allocation12_spill] sm:$0xff] }
0x1492   :  { %8839 = vmatmul.mubr.msk.bf16.vlgmr.msra.gmra.mrb[72].mxu0 %vm951_vm6, %v3710_v45  ;;  %3915 = vmatprep.subr.bf16.mxu1 %v10814_v10  ;;  %v12452_v10 = vld [vmem:[#allocation15_spill] sm:$0xff] }
0x1493   :  { %3955 = vmatpush1.bf16.msra.mxu0 %v10803_v7  ;;  %3986 = vmatprep.mubr.bf16.mxu0 %v12443_v2  ;;  %v12453_v7 = vld [vmem:[#allocation16_spill] sm:$0xff] }
0x1494   :  { %3956 = vmatprep.subr.bf16.mxu0 %v12444_v24 }
0x1495   :  { %3916 = vmatpush1.bf16.msra.mxu1 %v12445_v44 }
0x1496   :  { %3917 = vmatprep.subr.bf16.mxu1 %v12446_v55 }
0x1497   :  { %3957 = vmatpush1.bf16.msra.mxu0 %v12447_v53 }
0x1498   :  { %3958 = vmatprep.subr.bf16.mxu0 %v12448_v29 }
0x1499   :  { %3918 = vmatpush1.bf16.msra.mxu1 %v12449_v56 }
0x149a   :  { %3919 = vmatprep.subr.bf16.mxu1 %v12450_v30 }
0x149b   :  { %3959 = vmatpush1.bf16.msra.mxu0 %v12451_v33 }
0x149c   :  { %3960 = vmatprep.subr.bf16.mxu0 %v12452_v10 }
0x149d   :  { %3920 = vmatpush1.bf16.msra.mxu1 %v12453_v7 }
0x149e   :  { %8842 = vmatprep.subr.bf16.mxu1 %v9700_v23 }
0x149f   :  { %3961 = vmatpush1.bf16.msra.mxu0 %v12454_v27 }
0x14a0   :  { %4350 = vmatprep.subr.bf16.mxu0 %v11084_v4 }
0x1563   :  { %v3753_v61 = vpop.f32.mrb[48].mxu1 }
0x1564   :  { %v8834_v62 = vpop.f32.mrb[49].mxu1  ;;  %v3805_v0 = vpack.c.bf16 %v3753_v61, %v3753_v61  ;;  %v3996_v61 = vld [vmem:[#allocation2 + $0x12] sm:$0x3f] }
0x1565   :  { %v3756_v17 = vpop.f32.mrb[50].mxu1  ;;  %v3799_v16 = vpop.f32.mrb[72].mxu0 }
0x1566   :  { %v3806_v28 = vpack.c.bf16 %v3799_v16, %v3799_v16  ;;  %v8835_v5 = vpop.f32.mrb[51].mxu1  ;;  %v8840_v34 = vpop.f32.mrb[73].mxu0  ;;  %v3825_v41 = vunpack.c.l.b16 %v3805_v0 }
0x1567   :  { %v3802_v48 = vpop.f32.mrb[74].mxu0 }
0x1568   :  { %v3826_v38 = vunpack.c.l.b16 %v3806_v28  ;;  %v8841_v50 = vpop.f32.mrb[75].mxu0 }
0x156a   :  { %v3827_v8 = vrot.slane %v3826_v38, 7 }
0x156c   :  { %v3828_v57 = vsel %vm906_vm2, %v3827_v8, %v3825_v41  ;;  %v4035_v41 = vadd.f32 %v10948_v3, %v11022_v31  ;;  %v11237_v31 = vld [vmem:[%s12380_s5 + $0x2c] ss:$16 sps:$4 sm:$0xff]  }
0x156d   :  { %v3829_v1 = vpack.c.b16 %v3828_v57, %v3828_v57 }
0x156f   :  { %8154 = vmatmul.mubr.msk.bf16.vlgmr.msra.gmra.mrb[52].mxu1 %vm1150_vm7, %v3829_v1  ;;  %8155 = vmatmul.mubr.msk.bf16.vlgmr.msra.gmra.mrb[76].mxu0 %vm1150_vm7, %v3829_v1 }
0x1570   :  { %8858 = vmatprep.mubr.msk.bf16.mxu1 %vm9701_vm1, %v9700_v23  ;;  %4382 = vmatprep.mubr.bf16.mxu0 %v12443_v2 }
0x1571   :  { %8843 = vmatpush3.bf16.msra.mxu1 %v9288_v63  ;;  %4351 = vmatpush1.bf16.msra.mxu0 %v11089_v6 }
0x1572   :  { %8844 = vmatprep.subr.bf16.mxu1 %v9700_v23  ;;  %4352 = vmatprep.subr.bf16.mxu0 %v11100_v60 }
0x1575   :  { %8845 = vmatpush3.bf16.msra.mxu1 %v9292_v40  ;;  %4353 = vmatpush1.bf16.msra.mxu0 %v11105_v20 }
0x1576   :  { %8846 = vmatprep.subr.bf16.mxu1 %v9700_v23  ;;  %4354 = vmatprep.subr.bf16.mxu0 %v11116_v49 }
0x1579   :  { %8847 = vmatpush3.bf16.msra.mxu1 %v9296_v46  ;;  %4355 = vmatpush1.bf16.msra.mxu0 %v11121_v47 }
0x157a   :  { %8848 = vmatprep.subr.bf16.mxu1 %v9700_v23  ;;  %4356 = vmatprep.subr.bf16.mxu0 %v11132_v51 }
0x157d   :  { %8849 = vmatpush3.bf16.msra.mxu1 %v9300_v9  ;;  %4357 = vmatpush1.bf16.msra.mxu0 %v11137_v14 }
0x157e   :  { %8850 = vmatprep.subr.bf16.mxu1 %v9700_v23  ;;  %4358 = vmatprep.subr.bf16.mxu0 %v11148_v52 }
0x1581   :  { %8851 = vmatpush3.bf16.msra.mxu1 %v9304_v21  ;;  %4359 = vmatpush1.bf16.msra.mxu0 %v11153_v18 }
0x1582   :  { %8852 = vmatprep.subr.bf16.mxu1 %v9700_v23  ;;  %4360 = vmatprep.subr.bf16.mxu0 %v11162_v59 }
0x1585   :  { %8853 = vmatpush3.bf16.msra.mxu1 %v9308_v58  ;;  %4361 = vmatpush1.bf16.msra.mxu0 %v11169_v19  ;;  %v11226_v58 = vld [vmem:[%s12380_s5 + $0x8] ss:$16 sps:$4 sm:$0xff]  }
0x1586   :  { %8854 = vmatprep.subr.bf16.mxu1 %v9700_v23  ;;  %4362 = vmatprep.subr.bf16.mxu0 %v11175_v32 }
0x1589   :  { %8855 = vmatpush3.bf16.msra.mxu1 %v9312_v35  ;;  %4363 = vmatpush1.bf16.msra.mxu0 %v11185_v36  ;;  %v11250_v35 = vld [vmem:[%s12380_s5 + $0x4c] ss:$16 sps:$4 sm:$0xff]  }
0x158a   :  { %8856 = vmatprep.subr.bf16.mxu1 %v9700_v23  ;;  %4364 = vmatprep.subr.bf16.mxu0 %v11191_v37 }
0x158d   :  { %8857 = vmatpush3.bf16.msra.mxu1 %v9316_v42  ;;  %4365 = vmatpush1.bf16.msra.mxu0 %v11201_v11  ;;  %v11258_v42 = vld [vmem:[%s12380_s5 + $0x48] ss:$16 sps:$4 sm:$0xff]  }
0x158e   :  { %4391 = vmatprep.subr.bf16.mxu1 %v11206_v12  ;;  %8862 = vmatprep.subr.bf16.mxu0 %v9700_v23 }
0x1642   :  { %v3947_v45 = vpop.f32.mrb[52].mxu1  ;;  %v3988_v24 = vpop.f32.mrb[76].mxu0 }
0x1643   :  { %v3949_v44 = vpop.f32.mrb[53].mxu1  ;;  %v11212_v55 = vpop.f32.mrb[77].mxu0  ;;  %v4014_v10 = vrot.slane %v3988_v24, %v9833_v22  ;;  %v11270_v24 = vld [vmem:[%s12380_s5 + $0x68] ss:$16 sps:$4 sm:$0xff]  }
0x1644   :  { %v4000_v53 = vcombine.low %v3947_v45, %v3949_v44  ;;  %v3951_v29 = vpop.f32.mrb[54].mxu1  ;;  %v3992_v56 = vpop.f32.mrb[78].mxu0  ;;  %v11264_v45 = vld [vmem:[%s12380_s5 + $0x6c] ss:$16 sps:$4 sm:$0xff]  }
0x1645   :  { %v3952_v30 = vpop.f32.mrb[55].mxu1  ;;  %v3993_v33 = vpop.f32.mrb[79].mxu0  ;;  %v11276_v44 = vld [vmem:[%s12380_s5 + $0x8c] ss:$16 sps:$4 sm:$0xff]   ;;  %v11294_v56 = vld [vmem:[%s12380_s5 + $0xa8] ss:$16 sps:$4 sm:$0xff]  }
0x1646   :  { %v4007_v7 = vrot.slane %v4000_v53, %v9833_v22  ;;  %v11282_v53 = vld [vmem:[%s12380_s5 + $0x88] ss:$16 sps:$4 sm:$0xff]   ;;  %v11288_v29 = vld [vmem:[%s12380_s5 + $0xac] ss:$16 sps:$4 sm:$0xff]  }
0x1647   :  { %v11300_v30 = vld [vmem:[%s12380_s5 + $0xcc] ss:$16 sps:$4 sm:$0xff]   ;;  %v11306_v33 = vld [vmem:[%s12380_s5 + $0xc8] ss:$16 sps:$4 sm:$0xff]  }
0x1648   :  { %v4015_v27 = vcombine.low %v4007_v7, %v4014_v10  ;;  %v11312_v10 = vld [vmem:[%s12380_s5 + $0xec] ss:$16 sps:$4 sm:$0xff]   ;;  %v11318_v7 = vld [vmem:[%s12380_s5 + $0xe8] ss:$16 sps:$4 sm:$0xff]  }
0x164a   :  { %v4017_v62 = vadd.f32 %v4015_v27, %v3996_v61  ;;  %v9344_v27 = vld [vmem:[%s12385_s10] sm:$0xff]   ;;  %v9345_v61 = vld [vmem:[%s12385_s10 + $0x8] sm:$0xff]  }
0x164c   :  { %v4018_v17 = vadd.f32 %v4017_v62, %v11015_v43  ;;  %v4026_v16 = vrot.slane %v4017_v62, 2  ;;  %v4037_v1 = vrot.slane %v4017_v62, 4  ;;  %v9346_v62 = vld [vmem:[%s12385_s10 + $0x10] sm:$0xff]  }
0x164e   :  { %v8156_v0 = vmul.f32 -1.442695, %v4018_v17  ;;  %v4028_v28 = vadd.f32 %v4026_v16, %v11017_v54  ;;  %v9347_v17 = vld [vmem:[%s12385_s10 + $0x18] sm:$0xff]   ;;  %v9348_v16 = vld [vmem:[%s12385_s10 + $0x20] sm:$0xff]  }
0x1650   :  { %9566 = vpow2.f32 %v8156_v0  ;;  %v8157_v5 = vmul.f32 -1.442695, %v4028_v28  ;;  %v9349_v0 = vld [vmem:[%s12385_s10 + $0x28] sm:$0xff]   ;;  %v9350_v28 = vld [vmem:[%s12385_s10 + $0x30] sm:$0xff]  }
0x1652   :  { %9568 = vpow2.f32 %v8157_v5  ;;  %v9351_v5 = vld [vmem:[%s12385_s10 + $0x38] sm:$0xff]  }
0x165a   :  { %v9567_v34 = vpop.eup %9566 }
0x165b   :  { %v4022_v48 = vadd.f32 1.0, %v9567_v34  ;;  %v4046_v34 = vld [vmem:[#allocation3 + $0x6] sm:$0x3] }
0x165c   :  { %v9569_v38 = vpop.eup %9568 }
0x165d   :  { %9570 = vrcp.f32 %v4022_v48  ;;  %v4032_v50 = vadd.f32 1.0, %v9569_v38  ;;  %v4047_v48 = vadd.f32 %v4046_v34, %v11212_v55 }
0x165f   :  { %9572 = vrcp.f32 %v4032_v50 }
0x1667   :  { %v9571_v8 = vpop.eup %9570 }
0x1668   :  { %v4036_v57 = vmul.f32 %v9571_v8, %v4035_v41 }
0x1669   :  { %v9573_v63 = vpop.eup %9572 }
0x166a   :  { %v4039_v43 = vadd.f32 %v4037_v1, %v4036_v57  ;;  %v4041_v40 = vsub.f32 1.0, %v9573_v63  ;;  %v4043_v9 = vmul.f32 %v9573_v63, %v10953_v13  ;;  %v11243_v13 = vld [vmem:[%s12380_s5 + $0x28] ss:$16 sps:$4 sm:$0xff]  }
0x166c   :  { %9574 = vtanh.f32 %v4039_v43 }
0x1676   :  { %v9575_v54 = vpop.eup %9574 }
0x1677   :  { %v4042_v46 = vmul.f32 %v9575_v54, %v4041_v40 }
0x1679   :  { %v11221_v21 = vadd.f32 %v4043_v9, %v4042_v46 }
0x167b   :  { %v4048_v3 = vpack.c.bf16 %v11221_v21, %v11221_v21  ;;  %8166 = vst [vmem:[%s12389_s14 + $0x6] sm:$0x3] %v11221_v21 }
0x167d   :  { %8859 = vmatmul.mubr.bf16.vlgmr.msra.gmra.mrb[56].mxu1 %v4048_v3  ;;  %4383 = vmatmul.mubr.bf16.vlgmr.msra.gmra.mrb[80].mxu0 %v4048_v3 }
0x167e   :  { %4392 = vmatpush1.bf16.msra.mxu1 %v11226_v58  ;;  %4423 = vmatprep.mubr.bf16.mxu1 %v12443_v2 }
0x167f   :  { %4393 = vmatprep.subr.bf16.mxu1 %v11237_v31  ;;  %8878 = vmatprep.mubr.msk.bf16.mxu0 %vm9701_vm1, %v9700_v23 }
0x1680   :  { %8863 = vmatpush3.bf16.msra.mxu0 %v9344_v27 }
0x1681   :  { %8864 = vmatprep.subr.bf16.mxu0 %v9700_v23 }
0x1682   :  { %4394 = vmatpush1.bf16.msra.mxu1 %v11243_v13 }
0x1683   :  { %4395 = vmatprep.subr.bf16.mxu1 %v11250_v35 }
0x1684   :  { %8865 = vmatpush3.bf16.msra.mxu0 %v9345_v61 }
0x1685   :  { %8866 = vmatprep.subr.bf16.mxu0 %v9700_v23 }
0x1686   :  { %4396 = vmatpush1.bf16.msra.mxu1 %v11258_v42 }
0x1687   :  { %4397 = vmatprep.subr.bf16.mxu1 %v11264_v45 }
0x1688   :  { %8867 = vmatpush3.bf16.msra.mxu0 %v9346_v62 }
0x1689   :  { %8868 = vmatprep.subr.bf16.mxu0 %v9700_v23 }
0x168a   :  { %4398 = vmatpush1.bf16.msra.mxu1 %v11270_v24 }
0x168b   :  { %4399 = vmatprep.subr.bf16.mxu1 %v11276_v44 }
0x168c   :  { %8869 = vmatpush3.bf16.msra.mxu0 %v9347_v17 }
0x168d   :  { %8870 = vmatprep.subr.bf16.mxu0 %v9700_v23 }
0x168e   :  { %4400 = vmatpush1.bf16.msra.mxu1 %v11282_v53 }
0x168f   :  { %4401 = vmatprep.subr.bf16.mxu1 %v11288_v29 }
0x1690   :  { %8871 = vmatpush3.bf16.msra.mxu0 %v9348_v16 }
0x1691   :  { %8872 = vmatprep.subr.bf16.mxu0 %v9700_v23 }
0x1692   :  { %4402 = vmatpush1.bf16.msra.mxu1 %v11294_v56 }
0x1693   :  { %4403 = vmatprep.subr.bf16.mxu1 %v11300_v30 }
0x1694   :  { %8873 = vmatpush3.bf16.msra.mxu0 %v9349_v0  ;;  %v11375_v0 = vld [vmem:[%s12377_s2] sm:$0xff] }
0x1695   :  { %8874 = vmatprep.subr.bf16.mxu0 %v9700_v23 }
0x1696   :  { %4404 = vmatpush1.bf16.msra.mxu1 %v11306_v33 }
0x1697   :  { %4405 = vmatprep.subr.bf16.mxu1 %v11312_v10 }
0x1698   :  { %8875 = vmatpush3.bf16.msra.mxu0 %v9350_v28 }
0x1699   :  { %8876 = vmatprep.subr.bf16.mxu0 %v9700_v23 }
0x169a   :  { %4406 = vmatpush1.bf16.msra.mxu1 %v11318_v7 }
0x169b   :  { %8882 = vmatprep.subr.bf16.mxu1 %v9700_v23 }
0x169c   :  { %8877 = vmatpush3.bf16.msra.mxu0 %v9351_v5  ;;  %v11381_v5 = vld [vmem:[%s12377_s2 + $0x8] sm:$0xff] }
0x169d   :  { %4424 = vmatmul.mubr.bf16.vlgmr.msra.gmra.mrb[60].mxu1 %v4048_v3  ;;  %8888 = vmatprep.subr.bf16.mxu0 %v9700_v23 }
0x169e   :  { %8884 = vmatprep.mubr.msk.bf16.mxu1 %vm9701_vm1, %v9700_v23 }
0x1750   :  { %v4147_v38 = vpop.f32.mrb[56].mxu1  ;;  %v11358_v50 = vpop.f32.mrb[80].mxu0 }
0x1751   :  { %v4153_v41 = vadd.f32 %v4147_v38, %v4047_v48  ;;  %v8860_v8 = vpop.f32.mrb[57].mxu1  ;;  %v11360_v57 = vpop.f32.mrb[81].mxu0 }
0x1752   :  { %v4150_v1 = vpop.f32.mrb[58].mxu1  ;;  %v4388_v43 = vpop.f32.mrb[82].mxu0 }
0x1753   :  { %8167 = vst [vmem:[%s12390_s15 + $0x6] sm:$0x3] %v4153_v41  ;;  %v8861_v63 = vpop.f32.mrb[59].mxu1  ;;  %v4389_v40 = vpop.f32.mrb[83].mxu0 }
0x1770   :  { %v11365_v54 = vpop.f32.mrb[60].mxu1 }
0x1771   :  { %v4427_v46 = vpop.f32.mrb[61].mxu1 }
0x1772   :  { %v4439_v55 = vrot.slane %v4427_v46, %v10072_v39  ;;  %v4429_v9 = vpop.f32.mrb[62].mxu1 }
0x1773   :  { %v4430_v3 = vpop.f32.mrb[63].mxu1 }
0x1774   :  { %v4440_v27 = vcombine.high %v4439_v55, %v4439_v55  ;;  %v4447_v61 = vrot.slane %v4439_v55, %v10072_v39 }
0x1776   :  { %v4454_v62 = vrot.slane %v4440_v27, %v10072_v39  ;;  %v4458_v17 = vrot.slane %v4447_v61, %v10048_v15 }
0x1778   :  { %v4462_v16 = vrot.slane %v4454_v62, %v10048_v15  ;;  %v4465_v28 = vadd.f32 %v11375_v0, %v4458_v17 }
0x177a   :  { %v4466_v34 = vadd.f32 %v11381_v5, %v4462_v16  ;;  %9576 = vtanh.f32 %v4465_v28 }
0x177c   :  { %9578 = vtanh.f32 %v4466_v34 }
0x1784   :  { %v9577_v48 = vpop.eup %9576 }
0x1786   :  { %v9579_v38 = vpop.eup %9578 }
0x1787   :  { %v4469_v41 = vpack.c.bf16 %v9579_v38, %v9577_v48  ;;  %v4633_v48 = vld [vmem:[%s12376_s1 + $0x4] sm:$0xf]  ;;  %v4632_v38 = vld [vmem:[%s12376_s1] sm:$0xf] }
0x1789   :  { %8879 = vmatmul.mubr.bf16.vlgmr.msra.gmra.mrb[84].mxu0 %v4469_v41  ;;  %v4684_v41 = vsel %vm955_vm5, %v4633_v48, 0  ;;  %v11445_v48 = vld [vmem:[%s12381_s6 + $0x20] ss:$16 sps:$4 sm:$0xff]  }
0x178a   :  { %8890 = vmatprep.mubr.msk.bf16.mxu0 %vm9701_vm1, %v9700_v23  ;;  %8889 = vmatpush3.bf16.msra.mxu0 %v4684_v41  ;;  %12457 = vst [vmem:[#allocation10_spill] sm:$0xff] %v11445_v48  ;;  %v11459_v41 = vld [vmem:[%s12381_s6 + $0x44] ss:$16 sps:$4 sm:$0xff]  }
0x178b   :  { %12459 = vst [vmem:[#allocation11_spill] sm:$0xff] %v11459_v41 }
0x185c   :  { %v4568_v8 = vpop.f32.mrb[84].mxu0 }
0x185d   :  { %4578 = vperm.xlu0 %9076, %v4568_v8   ;;  %v8880_v1 = vpop.f32.mrb[85].mxu0  ;;  %v4638_v8 = vsel %vm955_vm5, %v4632_v38, 0  ;;  %v11450_v38 = vld [vmem:[%s12381_s6 + $0x28] ss:$16 sps:$4 sm:$0xff]  }
0x185e   :  { %v4571_v43 = vpop.f32.mrb[86].mxu0  ;;  %8883 = vmatpush3.bf16.msra.mxu1 %v4638_v8  ;;  %v11404_v1 = vld [vmem:[%s12381_s6 + $0x4] ss:$16 sps:$4 sm:$0xff]   ;;  %12458 = vst [vmem:[#allocation9_spill] sm:$0xff] %v11450_v38  ;;  %v11464_v8 = vld [vmem:[%s12381_s6 + $0x4c] ss:$16 sps:$4 sm:$0xff]  }
0x185f   :  { %4581 = vperm.xlu1 %9077, %v4571_v43   ;;  %v8881_v63 = vpop.f32.mrb[87].mxu0  ;;  %v11409_v43 = vld [vmem:[%s12381_s6 + $0xc] ss:$16 sps:$4 sm:$0xff]   ;;  %4834 = vmatprep.subr.bf16.mxu1 %v11404_v1  ;;  %12460 = vst [vmem:[#allocation12_spill] sm:$0xff] %v11464_v8 }
0x1860   :  { %4875 = vmatprep.subr.bf16.mxu0 %v11409_v43 }
0x18dc   :  { %v4579_v40 = vpop.permute.xlu0 %4578 }
0x18dd   :  { %v4586_v55 = vrot.slane %v4579_v40, %v10100_v25 }
0x18de   :  { %v4582_v46 = vpop.permute.xlu1 %4581 }
0x18df   :  { %v4590_v9 = vrot.slane %v4582_v46, %v10100_v25 }
0x18e1   :  { %v4591_v3 = vsel %vm906_vm2, %v4590_v9, %v4586_v55 }
0x18e2   :  { %v4593_v27 = vsel %vm887_vm3, %v4591_v3, -1e+09 }
0x18e3   :  { %v4594_v61 = vsel %vm910_vm4, %v4593_v27, -inf }
0x18e4   :  { %4595 = vmax.xlane.f32.xlu0 %v4594_v61 }
0x1971   :  { %v4596_v62 = vpop.xlane.xlu0 %4595 }
0x1972   :  { %v4597_v17 = vsub.f32 %v4593_v27, %v4596_v62  ;;  %v11418_v27 = vld [vmem:[%s12381_s6] ss:$16 sps:$4 sm:$0xff]  }
0x1974   :  { %v4598_v16 = vmul.f32 1.442695, %v4597_v17  ;;  %v11424_v17 = vld [vmem:[%s12381_s6 + $0x8] ss:$16 sps:$4 sm:$0xff]  }
0x1975   :  { %12455 = vst [vmem:[#allocation7_spill] sm:$0xff] %v11424_v17 }
0x1976   :  { %9580 = vpow2.f32 %v4598_v16 }
0x1980   :  { %v9581_v28 = vpop.eup %9580 }
0x1981   :  { %v4600_v34 = vsel %vm910_vm4, %v9581_v28, 0.0 }
0x1982   :  { %4601 = vadd.xlane.f32.xlu1 %v4600_v34  ;;  %v11440_v34 = vld [vmem:[%s12381_s6 + $0x2c] ss:$16 sps:$4 sm:$0xff]  }
0x1983   :  { %12456 = vst [vmem:[#allocation8_spill] sm:$0xff] %v11440_v34 }
0x1a0f   :  { %v4602_v63 = vpop.xlane.xlu1 %4601 }
0x1a10   :  { %9582 = vrcp.f32 %v4602_v63  ;;  %v11469_v63 = vld [vmem:[%s12381_s6 + $0x40] ss:$16 sps:$4 sm:$0xff]  }
0x1a11   :  { %12461 = vst [vmem:[#allocation14_spill] sm:$0xff] %v11469_v63 }
0x1a1a   :  { %v9583_v40 = vpop.eup %9582 }
0x1a1b   :  { %v4604_v46 = vmul.f32 %v9583_v40, %v9581_v28  ;;  %v11435_v28 = vld [vmem:[%s12381_s6 + $0x24] ss:$16 sps:$4 sm:$0xff]   ;;  %v11474_v40 = vld [vmem:[%s12381_s6 + $0x48] ss:$16 sps:$4 sm:$0xff]  }
0x1a1c   :  { %12462 = vst [vmem:[#allocation13_spill] sm:$0xff] %v11474_v40 }
0x1a1d   :  { %v4612_v55 = vrot.slane %v4604_v46, %v10072_v39  ;;  %v11483_v46 = vld [vmem:[%s12381_s6 + $0x64] ss:$16 sps:$4 sm:$0xff]  }
0x1a1e   :  { %12463 = vst [vmem:[#allocation15_spill] sm:$0xff] %v11483_v46 }
0x1a1f   :  { %v4620_v9 = vrot.slane %v4612_v55, %v10072_v39  ;;  %v4613_v3 = vcombine.high %v4612_v55, %v4612_v55  ;;  %v11488_v55 = vld [vmem:[%s12381_s6 + $0x6c] ss:$16 sps:$4 sm:$0xff]  }
0x1a20   :  { %12464 = vst [vmem:[#allocation16_spill] sm:$0xff] %v11488_v55 }
0x1a21   :  { %v4630_v61 = vpack.c.bf16 %v4620_v9, %v4620_v9  ;;  %v4627_v62 = vrot.slane %v4613_v3, %v10072_v39  ;;  %v11493_v9 = vld [vmem:[%s12381_s6 + $0x60] ss:$16 sps:$4 sm:$0xff]   ;;  %v11498_v3 = vld [vmem:[%s12381_s6 + $0x68] ss:$16 sps:$4 sm:$0xff]  }
0x1a22   :  { %12465 = vst [vmem:[#allocation17_spill] sm:$0xff] %v11493_v9  ;;  %12466 = vst [vmem:[#allocation18_spill] sm:$0xff] %v11498_v3 }
0x1a23   :  { %8885 = vmatmul.mubr.msk.bf16.vlgmr.msra.gmra.mrb[64].mxu1 %vm951_vm6, %v4630_v61  ;;  %v4631_v16 = vpack.c.bf16 %v4627_v62, %v4627_v62 }
0x1a24   :  { %4835 = vmatpush1.bf16.msra.mxu1 %v11418_v27  ;;  %4866 = vmatprep.mubr.bf16.mxu1 %v12443_v2 }
0x1a25   :  { %8891 = vmatmul.mubr.msk.bf16.vlgmr.msra.gmra.mrb[88].mxu0 %vm951_vm6, %v4631_v16  ;;  %4836 = vmatprep.subr.bf16.mxu1 %v11435_v28 }
0x1a26   :  { %4876 = vmatpush1.bf16.msra.mxu0 %v11424_v17  ;;  %4907 = vmatprep.mubr.bf16.mxu0 %v12443_v2 }
0x1a27   :  { %4877 = vmatprep.subr.bf16.mxu0 %v11440_v34 }
0x1a28   :  { %4837 = vmatpush1.bf16.msra.mxu1 %v11445_v48 }
0x1a29   :  { %4838 = vmatprep.subr.bf16.mxu1 %v11459_v41 }
0x1a2a   :  { %4878 = vmatpush1.bf16.msra.mxu0 %v11450_v38 }
0x1a2b   :  { %4879 = vmatprep.subr.bf16.mxu0 %v11464_v8 }
0x1a2c   :  { %4839 = vmatpush1.bf16.msra.mxu1 %v11469_v63 }
0x1a2d   :  { %4840 = vmatprep.subr.bf16.mxu1 %v11483_v46 }
0x1a2e   :  { %4880 = vmatpush1.bf16.msra.mxu0 %v11474_v40 }
0x1a2f   :  { %4881 = vmatprep.subr.bf16.mxu0 %v11488_v55 }
0x1a30   :  { %4841 = vmatpush1.bf16.msra.mxu1 %v11493_v9 }
0x1a31   :  { %8894 = vmatprep.subr.bf16.mxu1 %v9700_v23 }
0x1a32   :  { %4882 = vmatpush1.bf16.msra.mxu0 %v11498_v3 }
0x1a33   :  { %5271 = vmatprep.subr.bf16.mxu0 %v11084_v4  ;;  %v9376_v4 = vld [vmem:[%s12384_s9] sm:$0xff]  }
0x1af6   :  { %v4674_v61 = vpop.f32.mrb[64].mxu1 }
0x1af7   :  { %v8886_v62 = vpop.f32.mrb[65].mxu1  ;;  %v4726_v63 = vpack.c.bf16 %v4674_v61, %v4674_v61 }
0x1af8   :  { %v4677_v16 = vpop.f32.mrb[66].mxu1  ;;  %v4720_v40 = vpop.f32.mrb[88].mxu0 }
0x1af9   :  { %v4727_v8 = vpack.c.bf16 %v4720_v40, %v4720_v40  ;;  %v8887_v38 = vpop.f32.mrb[67].mxu1  ;;  %v8892_v41 = vpop.f32.mrb[89].mxu0  ;;  %v4746_v55 = vunpack.c.l.b16 %v4726_v63  ;;  %v11569_v16 = vld [vmem:[%s12387_s12] ss:$0 sm:$0xff] }
0x1afa   :  { %v4723_v48 = vpop.f32.mrb[90].mxu0  ;;  %v4917_v41 = vld [vmem:[#allocation2 + $0x18] sm:$0x3f] }
0x1afb   :  { %v4747_v46 = vunpack.c.l.b16 %v4727_v8  ;;  %v8893_v34 = vpop.f32.mrb[91].mxu0 }
0x1afd   :  { %v4748_v17 = vrot.slane %v4747_v46, 7 }
0x1aff   :  { %v4749_v9 = vsel %vm906_vm2, %v4748_v17, %v4746_v55 }
0x1b00   :  { %v4750_v3 = vpack.c.b16 %v4749_v9, %v4749_v9 }
0x1b02   :  { %8226 = vmatmul.mubr.msk.bf16.vlgmr.msra.gmra.mrb[68].mxu1 %vm1150_vm7, %v4750_v3  ;;  %8227 = vmatmul.mubr.msk.bf16.vlgmr.msra.gmra.mrb[92].mxu0 %vm1150_vm7, %v4750_v3 }
0x1b03   :  { %5272 = vmatpush1.bf16.msra.mxu0 %v11089_v6  ;;  %8910 = vmatprep.mubr.msk.bf16.mxu1 %vm9701_vm1, %v9700_v23  ;;  %v9377_v6 = vld [vmem:[%s12384_s9 + $0x8] sm:$0xff]  }
0x1b04   :  { %5273 = vmatprep.subr.bf16.mxu0 %v11100_v60  ;;  %5303 = vmatprep.mubr.bf16.mxu0 %v12443_v2  ;;  %v9378_v60 = vld [vmem:[%s12384_s9 + $0x10] sm:$0xff]  }
0x1b05   :  { %8895 = vmatpush3.bf16.msra.mxu1 %v9376_v4 }
0x1b06   :  { %8896 = vmatprep.subr.bf16.mxu1 %v9700_v23 }
0x1b07   :  { %5274 = vmatpush1.bf16.msra.mxu0 %v11105_v20  ;;  %v9379_v20 = vld [vmem:[%s12384_s9 + $0x18] sm:$0xff]  }
0x1b08   :  { %5275 = vmatprep.subr.bf16.mxu0 %v11116_v49  ;;  %v9380_v49 = vld [vmem:[%s12384_s9 + $0x20] sm:$0xff]  }
0x1b09   :  { %8897 = vmatpush3.bf16.msra.mxu1 %v9377_v6 }
0x1b0a   :  { %8898 = vmatprep.subr.bf16.mxu1 %v9700_v23 }
0x1b0b   :  { %5276 = vmatpush1.bf16.msra.mxu0 %v11121_v47  ;;  %v9381_v47 = vld [vmem:[%s12384_s9 + $0x28] sm:$0xff]  }
0x1b0c   :  { %5277 = vmatprep.subr.bf16.mxu0 %v11132_v51  ;;  %v9382_v51 = vld [vmem:[%s12384_s9 + $0x30] sm:$0xff]  }
0x1b0d   :  { %8899 = vmatpush3.bf16.msra.mxu1 %v9378_v60 }
0x1b0e   :  { %8900 = vmatprep.subr.bf16.mxu1 %v9700_v23 }
0x1b0f   :  { %5278 = vmatpush1.bf16.msra.mxu0 %v11137_v14  ;;  %v9383_v14 = vld [vmem:[%s12384_s9 + $0x38] sm:$0xff]  }
0x1b10   :  { %5279 = vmatprep.subr.bf16.mxu0 %v11148_v52 }
0x1b11   :  { %8901 = vmatpush3.bf16.msra.mxu1 %v9379_v20 }
0x1b12   :  { %8902 = vmatprep.subr.bf16.mxu1 %v9700_v23 }
0x1b13   :  { %5280 = vmatpush1.bf16.msra.mxu0 %v11153_v18 }
0x1b14   :  { %5281 = vmatprep.subr.bf16.mxu0 %v11162_v59 }
0x1b15   :  { %8903 = vmatpush3.bf16.msra.mxu1 %v9380_v49 }
0x1b16   :  { %8904 = vmatprep.subr.bf16.mxu1 %v9700_v23 }
0x1b17   :  { %5282 = vmatpush1.bf16.msra.mxu0 %v11169_v19 }
0x1b18   :  { %5283 = vmatprep.subr.bf16.mxu0 %v11175_v32 }
0x1b19   :  { %8905 = vmatpush3.bf16.msra.mxu1 %v9381_v47 }
0x1b1a   :  { %8906 = vmatprep.subr.bf16.mxu1 %v9700_v23 }
0x1b1b   :  { %5284 = vmatpush1.bf16.msra.mxu0 %v11185_v36 }
0x1b1c   :  { %5285 = vmatprep.subr.bf16.mxu0 %v11191_v37 }
0x1b1d   :  { %8907 = vmatpush3.bf16.msra.mxu1 %v9382_v51 }
0x1b1e   :  { %8908 = vmatprep.subr.bf16.mxu1 %v9700_v23 }
0x1b1f   :  { %5286 = vmatpush1.bf16.msra.mxu0 %v11201_v11 }
0x1b20   :  { %8914 = vmatprep.subr.bf16.mxu0 %v9700_v23 }
0x1b21   :  { %8909 = vmatpush3.bf16.msra.mxu1 %v9383_v14 }
0x1b22   :  { %5312 = vmatprep.subr.bf16.mxu1 %v11206_v12 }
0x1bd5   :  { %v4868_v52 = vpop.f32.mrb[68].mxu1  ;;  %v4909_v18 = vpop.f32.mrb[92].mxu0 }
0x1bd6   :  { %v4870_v59 = vpop.f32.mrb[69].mxu1  ;;  %v11560_v19 = vpop.f32.mrb[93].mxu0  ;;  %v4935_v34 = vrot.slane %v4909_v18, %v9833_v22 }
0x1bd7   :  { %v4921_v32 = vcombine.low %v4868_v52, %v4870_v59  ;;  %v4872_v36 = vpop.f32.mrb[70].mxu1  ;;  %v4913_v37 = vpop.f32.mrb[94].mxu0 }
0x1bd8   :  { %v4873_v11 = vpop.f32.mrb[71].mxu1  ;;  %v4914_v17 = vpop.f32.mrb[95].mxu0 }
0x1bd9   :  { %v4928_v48 = vrot.slane %v4921_v32, %v9833_v22 }
0x1bdb   :  { %v4936_v38 = vcombine.low %v4928_v48, %v4935_v34 }
0x1bdd   :  { %v4938_v8 = vadd.f32 %v4936_v38, %v4917_v41 }
0x1bdf   :  { %v4939_v63 = vadd.f32 %v4938_v8, %v11358_v50  ;;  %v4947_v12 = vrot.slane %v4938_v8, 2  ;;  %v4956_v50 = vadd.f32 %v11569_v16, %v11365_v54 }
0x1be1   :  { %v8228_v40 = vmul.f32 -1.442695, %v4939_v63  ;;  %v4949_v46 = vadd.f32 %v4947_v12, %v11360_v57  ;;  %v4958_v57 = vrot.slane %v4938_v8, 4 }
0x1be3   :  { %9584 = vpow2.f32 %v8228_v40  ;;  %v8229_v55 = vmul.f32 -1.442695, %v4949_v46 }
0x1be5   :  { %9586 = vpow2.f32 %v8229_v55 }
0x1bed   :  { %v9585_v9 = vpop.eup %9584 }
0x1bee   :  { %v4943_v3 = vadd.f32 1.0, %v9585_v9 }
0x1bef   :  { %v9587_v61 = vpop.eup %9586 }
0x1bf0   :  { %9588 = vrcp.f32 %v4943_v3  ;;  %v4953_v62 = vadd.f32 1.0, %v9587_v61 }
0x1bf2   :  { %9590 = vrcp.f32 %v4953_v62 }
0x1bfa   :  { %v9589_v4 = vpop.eup %9588 }
0x1bfb   :  { %v4957_v6 = vmul.f32 %v9589_v4, %v4956_v50 }
0x1bfc   :  { %v9591_v20 = vpop.eup %9590 }
0x1bfd   :  { %v4960_v60 = vadd.f32 %v4958_v57, %v4957_v6  ;;  %v4962_v49 = vsub.f32 1.0, %v9591_v20  ;;  %v4964_v14 = vmul.f32 %v9591_v20, %v11221_v21  ;;  %v9384_v21 = vld [vmem:[%s12385_s10] sm:$0xff]  }
0x1bff   :  { %9592 = vtanh.f32 %v4960_v60 }
0x1c09   :  { %v9593_v47 = vpop.eup %9592 }
0x1c0a   :  { %v4963_v51 = vmul.f32 %v9593_v47, %v4962_v49 }
0x1c0c   :  { %v11574_v52 = vadd.f32 %v4964_v14, %v4963_v51 }
0x1c0e   :  { %v4969_v18 = vpack.c.bf16 %v11574_v52, %v11574_v52  ;;  %8238 = vst [vmem:[%s12389_s14 + $0x8] sm:$0x3] %v11574_v52 }
0x1c10   :  { %8911 = vmatmul.mubr.bf16.vlgmr.msra.gmra.mrb[72].mxu1 %v4969_v18  ;;  %5304 = vmatmul.mubr.bf16.vlgmr.msra.gmra.mrb[96].mxu0 %v4969_v18 }
0x1c11   :  { %5313 = vmatpush1.bf16.msra.mxu1 %v11226_v58  ;;  %5344 = vmatprep.mubr.bf16.mxu1 %v12443_v2  ;;  %v9385_v58 = vld [vmem:[%s12385_s10 + $0x8] sm:$0xff]  }
0x1c12   :  { %5314 = vmatprep.subr.bf16.mxu1 %v11237_v31  ;;  %8930 = vmatprep.mubr.msk.bf16.mxu0 %vm9701_vm1, %v9700_v23  ;;  %v9386_v31 = vld [vmem:[%s12385_s10 + $0x10] sm:$0xff]  }
0x1c13   :  { %8915 = vmatpush3.bf16.msra.mxu0 %v9384_v21  ;;  %v5553_v21 = vld [vmem:[%s12376_s1] sm:$0xf] }
0x1c14   :  { %8916 = vmatprep.subr.bf16.mxu0 %v9700_v23 }
0x1c15   :  { %5315 = vmatpush1.bf16.msra.mxu1 %v11243_v13  ;;  %v9387_v13 = vld [vmem:[%s12385_s10 + $0x18] sm:$0xff]  }
0x1c16   :  { %5316 = vmatprep.subr.bf16.mxu1 %v11250_v35  ;;  %v9388_v35 = vld [vmem:[%s12385_s10 + $0x20] sm:$0xff]  }
0x1c17   :  { %8917 = vmatpush3.bf16.msra.mxu0 %v9385_v58 }
0x1c18   :  { %8918 = vmatprep.subr.bf16.mxu0 %v9700_v23 }
0x1c19   :  { %5317 = vmatpush1.bf16.msra.mxu1 %v11258_v42  ;;  %v9389_v42 = vld [vmem:[%s12385_s10 + $0x28] sm:$0xff]  }
0x1c1a   :  { %5318 = vmatprep.subr.bf16.mxu1 %v11264_v45  ;;  %v9390_v45 = vld [vmem:[%s12385_s10 + $0x30] sm:$0xff]  }
0x1c1b   :  { %8919 = vmatpush3.bf16.msra.mxu0 %v9386_v31  ;;  %v5559_v31 = vsel %vm955_vm5, %v5553_v21, 0  ;;  %v11769_v21 = vld [vmem:[%s12380_s5 + $0x84] ss:$16 sps:$4 sm:$0xff]  }
0x1c1c   :  { %8920 = vmatprep.subr.bf16.mxu0 %v9700_v23 }
0x1c1d   :  { %5319 = vmatpush1.bf16.msra.mxu1 %v11270_v24  ;;  %v9391_v24 = vld [vmem:[%s12385_s10 + $0x38] sm:$0xff]  }
0x1c1e   :  { %5320 = vmatprep.subr.bf16.mxu1 %v11276_v44  ;;  %v4967_v44 = vld [vmem:[#allocation3 + $0x8] sm:$0x3] }
0x1c1f   :  { %8921 = vmatpush3.bf16.msra.mxu0 %v9387_v13 }
0x1c20   :  { %8922 = vmatprep.subr.bf16.mxu0 %v9700_v23 }
0x1c21   :  { %5321 = vmatpush1.bf16.msra.mxu1 %v11282_v53  ;;  %v4968_v53 = vadd.f32 %v4967_v44, %v11560_v19 }
0x1c22   :  { %5322 = vmatprep.subr.bf16.mxu1 %v11288_v29 }
0x1c23   :  { %8923 = vmatpush3.bf16.msra.mxu0 %v9388_v35 }
0x1c24   :  { %8924 = vmatprep.subr.bf16.mxu0 %v9700_v23 }
0x1c25   :  { %5323 = vmatpush1.bf16.msra.mxu1 %v11294_v56 }
0x1c26   :  { %5324 = vmatprep.subr.bf16.mxu1 %v11300_v30 }
0x1c27   :  { %8925 = vmatpush3.bf16.msra.mxu0 %v9389_v42 }
0x1c28   :  { %8926 = vmatprep.subr.bf16.mxu0 %v9700_v23 }
0x1c29   :  { %5325 = vmatpush1.bf16.msra.mxu1 %v11306_v33 }
0x1c2a   :  { %5326 = vmatprep.subr.bf16.mxu1 %v11312_v10 }
0x1c2b   :  { %8927 = vmatpush3.bf16.msra.mxu0 %v9390_v45 }
0x1c2c   :  { %8928 = vmatprep.subr.bf16.mxu0 %v9700_v23 }
0x1c2d   :  { %5327 = vmatpush1.bf16.msra.mxu1 %v11318_v7 }
0x1c2e   :  { %8934 = vmatprep.subr.bf16.mxu1 %v9700_v23 }
0x1c2f   :  { %8929 = vmatpush3.bf16.msra.mxu0 %v9391_v24 }
0x1c30   :  { %5345 = vmatmul.mubr.bf16.vlgmr.msra.gmra.mrb[76].mxu1 %v4969_v18  ;;  %8940 = vmatprep.subr.bf16.mxu0 %v9700_v23  ;;  %v5554_v18 = vld [vmem:[%s12376_s1 + $0x4] sm:$0xf] }
0x1c31   :  { %8936 = vmatprep.mubr.msk.bf16.mxu1 %vm9701_vm1, %v9700_v23  ;;  %v5605_v58 = vsel %vm955_vm5, %v5554_v18, 0  ;;  %8935 = vmatpush3.bf16.msra.mxu1 %v5559_v31  ;;  %v9408_v18 = vld [vmem:[%s12384_s9 + $0x20] sm:$0xff]   ;;  %v9412_v31 = vld [vmem:[%s12384_s9 + $0x28] sm:$0xff]  }
0x1c32   :  { %5755 = vmatprep.subr.bf16.mxu1 %v11404_v1  ;;  %v12467_v1 = vld [vmem:[#allocation7_spill] sm:$0xff] }
0x1ce3   :  { %v5068_v29 = vpop.f32.mrb[72].mxu1  ;;  %v11636_v56 = vpop.f32.mrb[96].mxu0 }
0x1ce4   :  { %v5074_v30 = vadd.f32 %v5068_v29, %v4968_v53  ;;  %v8912_v33 = vpop.f32.mrb[73].mxu1  ;;  %v11638_v10 = vpop.f32.mrb[97].mxu0 }
0x1ce5   :  { %v5071_v7 = vpop.f32.mrb[74].mxu1  ;;  %v5309_v54 = vpop.f32.mrb[98].mxu0  ;;  %v12469_v33 = vld [vmem:[#allocation10_spill] sm:$0xff] }
0x1ce6   :  { %8239 = vst [vmem:[%s12390_s15 + $0x8] sm:$0x3] %v5074_v30  ;;  %v8913_v59 = vpop.f32.mrb[75].mxu1  ;;  %v5310_v32 = vpop.f32.mrb[99].mxu0  ;;  %v12470_v7 = vld [vmem:[#allocation11_spill] sm:$0xff]  ;;  %v12471_v54 = vld [vmem:[#allocation9_spill] sm:$0xff] }
0x1ce7   :  { %v12472_v59 = vld [vmem:[#allocation12_spill] sm:$0xff]  ;;  %v12474_v32 = vld [vmem:[#allocation15_spill] sm:$0xff] }
0x1d03   :  { %v11643_v36 = vpop.f32.mrb[76].mxu1 }
0x1d04   :  { %v5348_v37 = vpop.f32.mrb[77].mxu1 }
0x1d05   :  { %v5360_v19 = vrot.slane %v5348_v37, %v10072_v39  ;;  %v5350_v11 = vpop.f32.mrb[78].mxu1  ;;  %v12475_v37 = vld [vmem:[#allocation13_spill] sm:$0xff] }
0x1d06   :  { %v5351_v17 = vpop.f32.mrb[79].mxu1  ;;  %v12478_v11 = vld [vmem:[#allocation18_spill] sm:$0xff] }
0x1d07   :  { %v5361_v34 = vcombine.high %v5360_v19, %v5360_v19  ;;  %v5368_v48 = vrot.slane %v5360_v19, %v10072_v39  ;;  %v12477_v19 = vld [vmem:[#allocation17_spill] sm:$0xff] }
0x1d09   :  { %v5375_v38 = vrot.slane %v5361_v34, %v10072_v39  ;;  %v5379_v41 = vrot.slane %v5368_v48, %v10048_v15 }
0x1d0b   :  { %v5383_v8 = vrot.slane %v5375_v38, %v10048_v15  ;;  %v5386_v63 = vadd.f32 %v11375_v0, %v5379_v41 }
0x1d0d   :  { %v5387_v12 = vadd.f32 %v11381_v5, %v5383_v8  ;;  %9594 = vtanh.f32 %v5386_v63 }
0x1d0f   :  { %9596 = vtanh.f32 %v5387_v12 }
0x1d17   :  { %v9595_v40 = vpop.eup %9594 }
0x1d19   :  { %v9597_v46 = vpop.eup %9596 }
0x1d1a   :  { %v5390_v55 = vpack.c.bf16 %v9597_v46, %v9595_v40 }
0x1d1c   :  { %8931 = vmatmul.mubr.bf16.vlgmr.msra.gmra.mrb[100].mxu0 %v5390_v55 }
0x1d1d   :  { %8942 = vmatprep.mubr.msk.bf16.mxu0 %vm9701_vm1, %v9700_v23  ;;  %8941 = vmatpush3.bf16.msra.mxu0 %v5605_v58  ;;  %v11774_v58 = vld [vmem:[%s12380_s5 + $0x80] ss:$16 sps:$4 sm:$0xff]  }
0x1d1e   :  { %5796 = vmatprep.subr.bf16.mxu0 %v11409_v43  ;;  %v12468_v43 = vld [vmem:[#allocation8_spill] sm:$0xff] }
0x1def   :  { %v5489_v9 = vpop.f32.mrb[100].mxu0 }
0x1df0   :  { %5499 = vperm.xlu0 %9076, %v5489_v9   ;;  %v8932_v3 = vpop.f32.mrb[101].mxu0 }
0x1df1   :  { %v5492_v61 = vpop.f32.mrb[102].mxu0 }
0x1df2   :  { %5502 = vperm.xlu1 %9077, %v5492_v61   ;;  %v8933_v62 = vpop.f32.mrb[103].mxu0 }
0x1e6f   :  { %v5500_v50 = vpop.permute.xlu0 %5499 }
0x1e70   :  { %v5507_v0 = vrot.slane %v5500_v50, %v10100_v25  ;;  %v9392_v50 = vld [vmem:[%s12384_s9] sm:$0xff]  }
0x1e71   :  { %v5503_v4 = vpop.permute.xlu1 %5502 }
0x1e72   :  { %v5511_v5 = vrot.slane %v5503_v4, %v10100_v25  ;;  %v11705_v4 = vld [vmem:[%s12380_s5 + $0x4] ss:$16 sps:$4 sm:$0xff]  }
0x1e74   :  { %v5512_v6 = vsel %vm906_vm2, %v5511_v5, %v5507_v0  ;;  %v11710_v0 = vld [vmem:[%s12380_s5] ss:$16 sps:$4 sm:$0xff]   ;;  %v9396_v5 = vld [vmem:[%s12384_s9 + $0x8] sm:$0xff]  }
0x1e75   :  { %v5514_v57 = vsel %vm887_vm3, %v5512_v6, -1e+09  ;;  %v11721_v6 = vld [vmem:[%s12380_s5 + $0x24] ss:$16 sps:$4 sm:$0xff]  }
0x1e76   :  { %v5515_v60 = vsel %vm910_vm4, %v5514_v57, -inf }
0x1e77   :  { %5516 = vmax.xlane.f32.xlu0 %v5515_v60  ;;  %v9400_v60 = vld [vmem:[%s12384_s9 + $0x10] sm:$0xff]  }
0x1f04   :  { %v5517_v20 = vpop.xlane.xlu0 %5516 }
0x1f05   :  { %v5518_v49 = vsub.f32 %v5514_v57, %v5517_v20  ;;  %v11726_v57 = vld [vmem:[%s12380_s5 + $0x20] ss:$16 sps:$4 sm:$0xff]   ;;  %v11737_v20 = vld [vmem:[%s12380_s5 + $0x44] ss:$16 sps:$4 sm:$0xff]  }
0x1f07   :  { %v5519_v47 = vmul.f32 1.442695, %v5518_v49  ;;  %v11742_v49 = vld [vmem:[%s12380_s5 + $0x40] ss:$16 sps:$4 sm:$0xff]  }
0x1f09   :  { %9598 = vpow2.f32 %v5519_v47  ;;  %v9404_v47 = vld [vmem:[%s12384_s9 + $0x18] sm:$0xff]  }
0x1f13   :  { %v9599_v51 = vpop.eup %9598 }
0x1f14   :  { %v5521_v14 = vsel %vm910_vm4, %v9599_v51, 0.0 }
0x1f15   :  { %5522 = vadd.xlane.f32.xlu1 %v5521_v14  ;;  %v11758_v14 = vld [vmem:[%s12380_s5 + $0x60] ss:$16 sps:$4 sm:$0xff]  }
0x1fa2   :  { %v5523_v13 = vpop.xlane.xlu1 %5522 }
0x1fa3   :  { %9600 = vrcp.f32 %v5523_v13  ;;  %v11783_v13 = vld [vmem:[%s12380_s5 + $0xa4] ss:$16 sps:$4 sm:$0xff]  }
0x1fad   :  { %v9601_v35 = vpop.eup %9600 }
0x1fae   :  { %v5525_v42 = vmul.f32 %v9601_v35, %v9599_v51  ;;  %v11753_v51 = vld [vmem:[%s12380_s5 + $0x64] ss:$16 sps:$4 sm:$0xff]   ;;  %v11790_v35 = vld [vmem:[%s12380_s5 + $0xa0] ss:$16 sps:$4 sm:$0xff]  }
0x1fb0   :  { %v5533_v45 = vrot.slane %v5525_v42, %v10072_v39  ;;  %v11796_v42 = vld [vmem:[%s12380_s5 + $0xc4] ss:$16 sps:$4 sm:$0xff]  }
0x1fb2   :  { %v5541_v24 = vrot.slane %v5533_v45, %v10072_v39  ;;  %v5534_v44 = vcombine.high %v5533_v45, %v5533_v45  ;;  %v9416_v45 = vld [vmem:[%s12384_s9 + $0x30] sm:$0xff]  }
0x1fb4   :  { %v5551_v53 = vpack.c.bf16 %v5541_v24, %v5541_v24  ;;  %v5548_v29 = vrot.slane %v5534_v44, %v10072_v39  ;;  %v11806_v24 = vld [vmem:[%s12380_s5 + $0xc0] ss:$16 sps:$4 sm:$0xff]   ;;  %v11812_v44 = vld [vmem:[%s12380_s5 + $0xe4] ss:$16 sps:$4 sm:$0xff]  }
0x1fb6   :  { %8937 = vmatmul.mubr.msk.bf16.vlgmr.msra.gmra.mrb[80].mxu1 %vm951_vm6, %v5551_v53  ;;  %v5552_v30 = vpack.c.bf16 %v5548_v29, %v5548_v29  ;;  %v9420_v53 = vld [vmem:[%s12384_s9 + $0x38] sm:$0xff]   ;;  %v11822_v29 = vld [vmem:[%s12380_s5 + $0xe0] ss:$16 sps:$4 sm:$0xff]  }
0x1fb7   :  { %5756 = vmatpush1.bf16.msra.mxu1 %v11418_v27  ;;  %5787 = vmatprep.mubr.bf16.mxu1 %v12443_v2  ;;  %v12473_v27 = vld [vmem:[#allocation14_spill] sm:$0xff] }
0x1fb8   :  { %8943 = vmatmul.mubr.msk.bf16.vlgmr.msra.gmra.mrb[104].mxu0 %vm951_vm6, %v5552_v30  ;;  %5757 = vmatprep.subr.bf16.mxu1 %v11435_v28  ;;  %v12476_v28 = vld [vmem:[#allocation16_spill] sm:$0xff] }
0x1fb9   :  { %5797 = vmatpush1.bf16.msra.mxu0 %v12467_v1  ;;  %5828 = vmatprep.mubr.bf16.mxu0 %v12443_v2  ;;  %v11827_v30 = vld [vmem:[%s12380_s5 + $0xc] ss:$16 sps:$4 sm:$0xff]  }
0x1fba   :  { %5798 = vmatprep.subr.bf16.mxu0 %v12468_v43 }
0x1fbb   :  { %5758 = vmatpush1.bf16.msra.mxu1 %v12469_v33 }
0x1fbc   :  { %5759 = vmatprep.subr.bf16.mxu1 %v12470_v7 }
0x1fbd   :  { %5799 = vmatpush1.bf16.msra.mxu0 %v12471_v54 }
0x1fbe   :  { %5800 = vmatprep.subr.bf16.mxu0 %v12472_v59 }
0x1fbf   :  { %5760 = vmatpush1.bf16.msra.mxu1 %v12473_v27 }
0x1fc0   :  { %5761 = vmatprep.subr.bf16.mxu1 %v12474_v32 }
0x1fc1   :  { %5801 = vmatpush1.bf16.msra.mxu0 %v12475_v37 }
0x1fc2   :  { %5802 = vmatprep.subr.bf16.mxu0 %v12476_v28 }
0x1fc3   :  { %5762 = vmatpush1.bf16.msra.mxu1 %v12477_v19 }
0x1fc4   :  { %8946 = vmatprep.subr.bf16.mxu1 %v9700_v23 }
0x1fc5   :  { %5803 = vmatpush1.bf16.msra.mxu0 %v12478_v11 }
0x1fc6   :  { %6192 = vmatprep.subr.bf16.mxu0 %v11705_v4 }
0x2089   :  { %v5595_v17 = vpop.f32.mrb[80].mxu1 }
0x208a   :  { %v8938_v34 = vpop.f32.mrb[81].mxu1  ;;  %v5647_v41 = vpack.c.bf16 %v5595_v17, %v5595_v17  ;;  %v5838_v17 = vld [vmem:[#allocation2 + $0x1e] sm:$0x3f] }
0x208b   :  { %v5598_v48 = vpop.f32.mrb[82].mxu1  ;;  %v5641_v38 = vpop.f32.mrb[104].mxu0 }
0x208c   :  { %v5648_v8 = vpack.c.bf16 %v5641_v38, %v5641_v38  ;;  %v8939_v63 = vpop.f32.mrb[83].mxu1  ;;  %v8944_v12 = vpop.f32.mrb[105].mxu0  ;;  %v5667_v9 = vunpack.c.l.b16 %v5647_v41 }
0x208d   :  { %v5644_v40 = vpop.f32.mrb[106].mxu0 }
0x208e   :  { %v5668_v46 = vunpack.c.l.b16 %v5648_v8  ;;  %v8945_v55 = vpop.f32.mrb[107].mxu0 }
0x2090   :  { %v5669_v3 = vrot.slane %v5668_v46, 7 }
0x2092   :  { %v5670_v61 = vsel %vm906_vm2, %v5669_v3, %v5667_v9  ;;  %v5877_v9 = vadd.f32 %v11569_v16, %v11643_v36  ;;  %v11858_v36 = vld [vmem:[%s12380_s5 + $0x2c] ss:$16 sps:$4 sm:$0xff]  }
0x2093   :  { %v5671_v62 = vpack.c.b16 %v5670_v61, %v5670_v61 }
0x2095   :  { %8298 = vmatmul.mubr.msk.bf16.vlgmr.msra.gmra.mrb[84].mxu1 %vm1150_vm7, %v5671_v62  ;;  %8299 = vmatmul.mubr.msk.bf16.vlgmr.msra.gmra.mrb[108].mxu0 %vm1150_vm7, %v5671_v62 }
0x2096   :  { %8962 = vmatprep.mubr.msk.bf16.mxu1 %vm9701_vm1, %v9700_v23  ;;  %6224 = vmatprep.mubr.bf16.mxu0 %v12443_v2 }
0x2097   :  { %8947 = vmatpush3.bf16.msra.mxu1 %v9392_v50  ;;  %6193 = vmatpush1.bf16.msra.mxu0 %v11710_v0 }
0x2098   :  { %8948 = vmatprep.subr.bf16.mxu1 %v9700_v23  ;;  %6194 = vmatprep.subr.bf16.mxu0 %v11721_v6 }
0x209b   :  { %8949 = vmatpush3.bf16.msra.mxu1 %v9396_v5  ;;  %6195 = vmatpush1.bf16.msra.mxu0 %v11726_v57 }
0x209c   :  { %8950 = vmatprep.subr.bf16.mxu1 %v9700_v23  ;;  %6196 = vmatprep.subr.bf16.mxu0 %v11737_v20 }
0x209f   :  { %8951 = vmatpush3.bf16.msra.mxu1 %v9400_v60  ;;  %6197 = vmatpush1.bf16.msra.mxu0 %v11742_v49 }
0x20a0   :  { %8952 = vmatprep.subr.bf16.mxu1 %v9700_v23  ;;  %6198 = vmatprep.subr.bf16.mxu0 %v11753_v51 }
0x20a3   :  { %8953 = vmatpush3.bf16.msra.mxu1 %v9404_v47  ;;  %6199 = vmatpush1.bf16.msra.mxu0 %v11758_v14 }
0x20a4   :  { %8954 = vmatprep.subr.bf16.mxu1 %v9700_v23  ;;  %6200 = vmatprep.subr.bf16.mxu0 %v11769_v21 }
0x20a7   :  { %8955 = vmatpush3.bf16.msra.mxu1 %v9408_v18  ;;  %6201 = vmatpush1.bf16.msra.mxu0 %v11774_v58 }
0x20a8   :  { %8956 = vmatprep.subr.bf16.mxu1 %v9700_v23  ;;  %6202 = vmatprep.subr.bf16.mxu0 %v11783_v13 }
0x20ab   :  { %8957 = vmatpush3.bf16.msra.mxu1 %v9412_v31  ;;  %6203 = vmatpush1.bf16.msra.mxu0 %v11790_v35  ;;  %v11847_v31 = vld [vmem:[%s12380_s5 + $0x8] ss:$16 sps:$4 sm:$0xff]  }
0x20ac   :  { %8958 = vmatprep.subr.bf16.mxu1 %v9700_v23  ;;  %6204 = vmatprep.subr.bf16.mxu0 %v11796_v42 }
0x20af   :  { %8959 = vmatpush3.bf16.msra.mxu1 %v9416_v45  ;;  %6205 = vmatpush1.bf16.msra.mxu0 %v11806_v24  ;;  %v11871_v45 = vld [vmem:[%s12380_s5 + $0x4c] ss:$16 sps:$4 sm:$0xff]  }
0x20b0   :  { %8960 = vmatprep.subr.bf16.mxu1 %v9700_v23  ;;  %6206 = vmatprep.subr.bf16.mxu0 %v11812_v44 }
0x20b3   :  { %8961 = vmatpush3.bf16.msra.mxu1 %v9420_v53  ;;  %6207 = vmatpush1.bf16.msra.mxu0 %v11822_v29  ;;  %v11879_v53 = vld [vmem:[%s12380_s5 + $0x48] ss:$16 sps:$4 sm:$0xff]  }
0x20b4   :  { %6233 = vmatprep.subr.bf16.mxu1 %v11827_v30  ;;  %8966 = vmatprep.subr.bf16.mxu0 %v9700_v23 }
0x2168   :  { %v5789_v1 = vpop.f32.mrb[84].mxu1  ;;  %v5830_v43 = vpop.f32.mrb[108].mxu0 }
0x2169   :  { %v5791_v33 = vpop.f32.mrb[85].mxu1  ;;  %v11833_v7 = vpop.f32.mrb[109].mxu0  ;;  %v5856_v28 = vrot.slane %v5830_v43, %v9833_v22  ;;  %v11891_v43 = vld [vmem:[%s12380_s5 + $0x68] ss:$16 sps:$4 sm:$0xff]  }
0x216a   :  { %v5842_v54 = vcombine.low %v5789_v1, %v5791_v33  ;;  %v5793_v59 = vpop.f32.mrb[86].mxu1  ;;  %v5834_v27 = vpop.f32.mrb[110].mxu0  ;;  %v11885_v1 = vld [vmem:[%s12380_s5 + $0x6c] ss:$16 sps:$4 sm:$0xff]  }
0x216b   :  { %v5794_v32 = vpop.f32.mrb[87].mxu1  ;;  %v5835_v37 = vpop.f32.mrb[111].mxu0  ;;  %v11897_v33 = vld [vmem:[%s12380_s5 + $0x8c] ss:$16 sps:$4 sm:$0xff]   ;;  %v11915_v27 = vld [vmem:[%s12380_s5 + $0xa8] ss:$16 sps:$4 sm:$0xff]  }
0x216c   :  { %v5849_v19 = vrot.slane %v5842_v54, %v9833_v22  ;;  %v11903_v54 = vld [vmem:[%s12380_s5 + $0x88] ss:$16 sps:$4 sm:$0xff]   ;;  %v11909_v59 = vld [vmem:[%s12380_s5 + $0xac] ss:$16 sps:$4 sm:$0xff]  }
0x216d   :  { %v11921_v32 = vld [vmem:[%s12380_s5 + $0xcc] ss:$16 sps:$4 sm:$0xff]   ;;  %v11927_v37 = vld [vmem:[%s12380_s5 + $0xc8] ss:$16 sps:$4 sm:$0xff]  }
0x216e   :  { %v5857_v11 = vcombine.low %v5849_v19, %v5856_v28  ;;  %v11933_v28 = vld [vmem:[%s12380_s5 + $0xec] ss:$16 sps:$4 sm:$0xff]   ;;  %v11939_v19 = vld [vmem:[%s12380_s5 + $0xe8] ss:$16 sps:$4 sm:$0xff]  }
0x2170   :  { %v5859_v34 = vadd.f32 %v5857_v11, %v5838_v17  ;;  %v9448_v11 = vld [vmem:[%s12385_s10] sm:$0xff]   ;;  %v9449_v17 = vld [vmem:[%s12385_s10 + $0x8] sm:$0xff]  }
0x2172   :  { %v5860_v48 = vadd.f32 %v5859_v34, %v11636_v56  ;;  %v5868_v38 = vrot.slane %v5859_v34, 2  ;;  %v5879_v62 = vrot.slane %v5859_v34, 4  ;;  %v9450_v34 = vld [vmem:[%s12385_s10 + $0x10] sm:$0xff]  }
0x2174   :  { %v8300_v41 = vmul.f32 -1.442695, %v5860_v48  ;;  %v5870_v8 = vadd.f32 %v5868_v38, %v11638_v10  ;;  %v9451_v48 = vld [vmem:[%s12385_s10 + $0x18] sm:$0xff]   ;;  %v9452_v38 = vld [vmem:[%s12385_s10 + $0x20] sm:$0xff]  }
0x2176   :  { %9602 = vpow2.f32 %v8300_v41  ;;  %v8301_v63 = vmul.f32 -1.442695, %v5870_v8  ;;  %v9453_v41 = vld [vmem:[%s12385_s10 + $0x28] sm:$0xff]   ;;  %v9454_v8 = vld [vmem:[%s12385_s10 + $0x30] sm:$0xff]  }
0x2178   :  { %9604 = vpow2.f32 %v8301_v63  ;;  %v9455_v63 = vld [vmem:[%s12385_s10 + $0x38] sm:$0xff]  }
0x2180   :  { %v9603_v12 = vpop.eup %9602 }
0x2181   :  { %v5864_v40 = vadd.f32 1.0, %v9603_v12  ;;  %v5888_v12 = vld [vmem:[#allocation3 + $0xa] sm:$0x3] }
0x2182   :  { %v9605_v46 = vpop.eup %9604 }
0x2183   :  { %9606 = vrcp.f32 %v5864_v40  ;;  %v5874_v55 = vadd.f32 1.0, %v9605_v46  ;;  %v5889_v40 = vadd.f32 %v5888_v12, %v11833_v7 }
0x2185   :  { %9608 = vrcp.f32 %v5874_v55 }
0x218d   :  { %v9607_v3 = vpop.eup %9606 }
0x218e   :  { %v5878_v61 = vmul.f32 %v9607_v3, %v5877_v9 }
0x218f   :  { %v9609_v50 = vpop.eup %9608 }
0x2190   :  { %v5881_v56 = vadd.f32 %v5879_v62, %v5878_v61  ;;  %v5883_v5 = vsub.f32 1.0, %v9609_v50  ;;  %v5885_v47 = vmul.f32 %v9609_v50, %v11574_v52  ;;  %v11864_v52 = vld [vmem:[%s12380_s5 + $0x28] ss:$16 sps:$4 sm:$0xff]  }
0x2192   :  { %9610 = vtanh.f32 %v5881_v56 }
0x219c   :  { %v9611_v10 = vpop.eup %9610 }
0x219d   :  { %v5884_v60 = vmul.f32 %v9611_v10, %v5883_v5 }
0x219f   :  { %v11842_v18 = vadd.f32 %v5885_v47, %v5884_v60 }
0x21a1   :  { %v5890_v16 = vpack.c.bf16 %v11842_v18, %v11842_v18  ;;  %8310 = vst [vmem:[%s12389_s14 + $0xa] sm:$0x3] %v11842_v18 }
0x21a3   :  { %8963 = vmatmul.mubr.bf16.vlgmr.msra.gmra.mrb[88].mxu1 %v5890_v16  ;;  %6225 = vmatmul.mubr.bf16.vlgmr.msra.gmra.mrb[112].mxu0 %v5890_v16 }
0x21a4   :  { %6234 = vmatpush1.bf16.msra.mxu1 %v11847_v31  ;;  %6265 = vmatprep.mubr.bf16.mxu1 %v12443_v2 }
0x21a5   :  { %6235 = vmatprep.subr.bf16.mxu1 %v11858_v36  ;;  %8982 = vmatprep.mubr.msk.bf16.mxu0 %vm9701_vm1, %v9700_v23 }
0x21a6   :  { %8967 = vmatpush3.bf16.msra.mxu0 %v9448_v11 }
0x21a7   :  { %8968 = vmatprep.subr.bf16.mxu0 %v9700_v23 }
0x21a8   :  { %6236 = vmatpush1.bf16.msra.mxu1 %v11864_v52 }
0x21a9   :  { %6237 = vmatprep.subr.bf16.mxu1 %v11871_v45 }
0x21aa   :  { %8969 = vmatpush3.bf16.msra.mxu0 %v9449_v17 }
0x21ab   :  { %8970 = vmatprep.subr.bf16.mxu0 %v9700_v23 }
0x21ac   :  { %6238 = vmatpush1.bf16.msra.mxu1 %v11879_v53 }
0x21ad   :  { %6239 = vmatprep.subr.bf16.mxu1 %v11885_v1 }
0x21ae   :  { %8971 = vmatpush3.bf16.msra.mxu0 %v9450_v34 }
0x21af   :  { %8972 = vmatprep.subr.bf16.mxu0 %v9700_v23 }
0x21b0   :  { %6240 = vmatpush1.bf16.msra.mxu1 %v11891_v43 }
0x21b1   :  { %6241 = vmatprep.subr.bf16.mxu1 %v11897_v33 }
0x21b2   :  { %8973 = vmatpush3.bf16.msra.mxu0 %v9451_v48 }
0x21b3   :  { %8974 = vmatprep.subr.bf16.mxu0 %v9700_v23 }
0x21b4   :  { %6242 = vmatpush1.bf16.msra.mxu1 %v11903_v54 }
0x21b5   :  { %6243 = vmatprep.subr.bf16.mxu1 %v11909_v59 }
0x21b6   :  { %8975 = vmatpush3.bf16.msra.mxu0 %v9452_v38 }
0x21b7   :  { %8976 = vmatprep.subr.bf16.mxu0 %v9700_v23 }
0x21b8   :  { %6244 = vmatpush1.bf16.msra.mxu1 %v11915_v27 }
0x21b9   :  { %6245 = vmatprep.subr.bf16.mxu1 %v11921_v32 }
0x21ba   :  { %8977 = vmatpush3.bf16.msra.mxu0 %v9453_v41  ;;  %v11996_v41 = vld [vmem:[%s12377_s2] sm:$0xff] }
0x21bb   :  { %8978 = vmatprep.subr.bf16.mxu0 %v9700_v23 }
0x21bc   :  { %6246 = vmatpush1.bf16.msra.mxu1 %v11927_v37 }
0x21bd   :  { %6247 = vmatprep.subr.bf16.mxu1 %v11933_v28 }
0x21be   :  { %8979 = vmatpush3.bf16.msra.mxu0 %v9454_v8 }
0x21bf   :  { %8980 = vmatprep.subr.bf16.mxu0 %v9700_v23 }
0x21c0   :  { %6248 = vmatpush1.bf16.msra.mxu1 %v11939_v19 }
0x21c1   :  { %8986 = vmatprep.subr.bf16.mxu1 %v9700_v23 }
0x21c2   :  { %8981 = vmatpush3.bf16.msra.mxu0 %v9455_v63  ;;  %v12002_v63 = vld [vmem:[%s12377_s2 + $0x8] sm:$0xff] }
0x21c3   :  { %6266 = vmatmul.mubr.bf16.vlgmr.msra.gmra.mrb[92].mxu1 %v5890_v16  ;;  %8992 = vmatprep.subr.bf16.mxu0 %v9700_v23 }
0x21c4   :  { %8988 = vmatprep.mubr.msk.bf16.mxu1 %vm9701_vm1, %v9700_v23 }
0x2276   :  { %v5989_v46 = vpop.f32.mrb[88].mxu1  ;;  %v11979_v55 = vpop.f32.mrb[112].mxu0 }
0x2277   :  { %v5995_v9 = vadd.f32 %v5989_v46, %v5889_v40  ;;  %v8964_v3 = vpop.f32.mrb[89].mxu1  ;;  %v11981_v61 = vpop.f32.mrb[113].mxu0 }
0x2278   :  { %v5992_v62 = vpop.f32.mrb[90].mxu1  ;;  %v6230_v56 = vpop.f32.mrb[114].mxu0 }
0x2279   :  { %8311 = vst [vmem:[%s12390_s15 + $0xa] sm:$0x3] %v5995_v9  ;;  %v8965_v50 = vpop.f32.mrb[91].mxu1  ;;  %v6231_v5 = vpop.f32.mrb[115].mxu0 }
0x2296   :  { %v11986_v10 = vpop.f32.mrb[92].mxu1 }
0x2297   :  { %v6269_v60 = vpop.f32.mrb[93].mxu1 }
0x2298   :  { %v6281_v7 = vrot.slane %v6269_v60, %v10072_v39  ;;  %v6271_v47 = vpop.f32.mrb[94].mxu1 }
0x2299   :  { %v6272_v16 = vpop.f32.mrb[95].mxu1 }
0x229a   :  { %v6282_v11 = vcombine.high %v6281_v7, %v6281_v7  ;;  %v6289_v17 = vrot.slane %v6281_v7, %v10072_v39 }
0x229c   :  { %v6296_v34 = vrot.slane %v6282_v11, %v10072_v39  ;;  %v6300_v48 = vrot.slane %v6289_v17, %v10048_v15 }
0x229e   :  { %v6304_v38 = vrot.slane %v6296_v34, %v10048_v15  ;;  %v6307_v8 = vadd.f32 %v11996_v41, %v6300_v48 }
0x22a0   :  { %v6308_v12 = vadd.f32 %v12002_v63, %v6304_v38  ;;  %9612 = vtanh.f32 %v6307_v8 }
0x22a2   :  { %9614 = vtanh.f32 %v6308_v12 }
0x22aa   :  { %v9613_v40 = vpop.eup %9612 }
0x22ac   :  { %v9615_v46 = vpop.eup %9614 }
0x22ad   :  { %v6311_v9 = vpack.c.bf16 %v9615_v46, %v9613_v40  ;;  %v6475_v40 = vld [vmem:[%s12376_s1 + $0x4] sm:$0xf]  ;;  %v6474_v46 = vld [vmem:[%s12376_s1] sm:$0xf] }
0x22af   :  { %8983 = vmatmul.mubr.bf16.vlgmr.msra.gmra.mrb[116].mxu0 %v6311_v9  ;;  %v6526_v9 = vsel %vm955_vm5, %v6475_v40, 0  ;;  %v12066_v40 = vld [vmem:[%s12381_s6 + $0x20] ss:$16 sps:$4 sm:$0xff]  }
0x22b0   :  { %8994 = vmatprep.mubr.msk.bf16.mxu0 %vm9701_vm1, %v9700_v23  ;;  %8993 = vmatpush3.bf16.msra.mxu0 %v6526_v9  ;;  %12481 = vst [vmem:[#allocation10_spill] sm:$0xff] %v12066_v40  ;;  %v12080_v9 = vld [vmem:[%s12381_s6 + $0x44] ss:$16 sps:$4 sm:$0xff]  }
0x22b1   :  { %12483 = vst [vmem:[#allocation9_spill] sm:$0xff] %v12080_v9 }
0x2382   :  { %v6410_v3 = vpop.f32.mrb[116].mxu0 }
0x2383   :  { %6420 = vperm.xlu0 %9076, %v6410_v3   ;;  %v8984_v62 = vpop.f32.mrb[117].mxu0  ;;  %v6480_v3 = vsel %vm955_vm5, %v6474_v46, 0  ;;  %v12071_v46 = vld [vmem:[%s12381_s6 + $0x28] ss:$16 sps:$4 sm:$0xff]  }
0x2384   :  { %v6413_v56 = vpop.f32.mrb[118].mxu0  ;;  %8987 = vmatpush3.bf16.msra.mxu1 %v6480_v3  ;;  %v12025_v62 = vld [vmem:[%s12381_s6 + $0x4] ss:$16 sps:$4 sm:$0xff]   ;;  %12482 = vst [vmem:[#allocation11_spill] sm:$0xff] %v12071_v46  ;;  %v12085_v3 = vld [vmem:[%s12381_s6 + $0x4c] ss:$16 sps:$4 sm:$0xff]  }
0x2385   :  { %6423 = vperm.xlu1 %9077, %v6413_v56   ;;  %v8985_v50 = vpop.f32.mrb[119].mxu0  ;;  %v12030_v56 = vld [vmem:[%s12381_s6 + $0xc] ss:$16 sps:$4 sm:$0xff]   ;;  %6676 = vmatprep.subr.bf16.mxu1 %v12025_v62  ;;  %12484 = vst [vmem:[#allocation12_spill] sm:$0xff] %v12085_v3 }
0x2386   :  { %6717 = vmatprep.subr.bf16.mxu0 %v12030_v56 }
0x2402   :  { %v6421_v5 = vpop.permute.xlu0 %6420 }
0x2403   :  { %v6428_v7 = vrot.slane %v6421_v5, %v10100_v25 }
0x2404   :  { %v6424_v60 = vpop.permute.xlu1 %6423 }
0x2405   :  { %v6432_v47 = vrot.slane %v6424_v60, %v10100_v25 }
0x2407   :  { %v6433_v16 = vsel %vm906_vm2, %v6432_v47, %v6428_v7 }
0x2408   :  { %v6435_v11 = vsel %vm887_vm3, %v6433_v16, -1e+09 }
0x2409   :  { %v6436_v17 = vsel %vm910_vm4, %v6435_v11, -inf }
0x240a   :  { %6437 = vmax.xlane.f32.xlu0 %v6436_v17 }
0x2497   :  { %v6438_v34 = vpop.xlane.xlu0 %6437 }
0x2498   :  { %v6439_v48 = vsub.f32 %v6435_v11, %v6438_v34  ;;  %v12039_v11 = vld [vmem:[%s12381_s6] ss:$16 sps:$4 sm:$0xff]  }
0x249a   :  { %v6440_v38 = vmul.f32 1.442695, %v6439_v48  ;;  %v12045_v48 = vld [vmem:[%s12381_s6 + $0x8] ss:$16 sps:$4 sm:$0xff]  }
0x249b   :  { %12479 = vst [vmem:[#allocation7_spill] sm:$0xff] %v12045_v48 }
0x249c   :  { %9616 = vpow2.f32 %v6440_v38 }
0x24a6   :  { %v9617_v8 = vpop.eup %9616 }
0x24a7   :  { %v6442_v12 = vsel %vm910_vm4, %v9617_v8, 0.0 }
0x24a8   :  { %6443 = vadd.xlane.f32.xlu1 %v6442_v12  ;;  %v12061_v12 = vld [vmem:[%s12381_s6 + $0x2c] ss:$16 sps:$4 sm:$0xff]  }
0x24a9   :  { %12480 = vst [vmem:[#allocation8_spill] sm:$0xff] %v12061_v12 }
0x2535   :  { %v6444_v50 = vpop.xlane.xlu1 %6443 }
0x2536   :  { %9618 = vrcp.f32 %v6444_v50  ;;  %v12090_v50 = vld [vmem:[%s12381_s6 + $0x40] ss:$16 sps:$4 sm:$0xff]  }
0x2537   :  { %12485 = vst [vmem:[#allocation14_spill] sm:$0xff] %v12090_v50 }
0x2540   :  { %v9619_v5 = vpop.eup %9618 }
0x2541   :  { %v6446_v60 = vmul.f32 %v9619_v5, %v9617_v8  ;;  %v12056_v8 = vld [vmem:[%s12381_s6 + $0x24] ss:$16 sps:$4 sm:$0xff]   ;;  %v12095_v5 = vld [vmem:[%s12381_s6 + $0x48] ss:$16 sps:$4 sm:$0xff]  }
0x2542   :  { %12486 = vst [vmem:[#allocation15_spill] sm:$0xff] %v12095_v5 }
0x2543   :  { %v6454_v7 = vrot.slane %v6446_v60, %v10072_v39  ;;  %v12104_v60 = vld [vmem:[%s12381_s6 + $0x64] ss:$16 sps:$4 sm:$0xff]  }
0x2544   :  { %12487 = vst [vmem:[#allocation13_spill] sm:$0xff] %v12104_v60 }
0x2545   :  { %v6462_v47 = vrot.slane %v6454_v7, %v10072_v39  ;;  %v6455_v16 = vcombine.high %v6454_v7, %v6454_v7  ;;  %v12109_v7 = vld [vmem:[%s12381_s6 + $0x6c] ss:$16 sps:$4 sm:$0xff]  }
0x2546   :  { %12488 = vst [vmem:[#allocation16_spill] sm:$0xff] %v12109_v7 }
0x2547   :  { %v6472_v17 = vpack.c.bf16 %v6462_v47, %v6462_v47  ;;  %v6469_v34 = vrot.slane %v6455_v16, %v10072_v39  ;;  %v12114_v47 = vld [vmem:[%s12381_s6 + $0x60] ss:$16 sps:$4 sm:$0xff]   ;;  %v12119_v16 = vld [vmem:[%s12381_s6 + $0x68] ss:$16 sps:$4 sm:$0xff]  }
0x2548   :  { %12489 = vst [vmem:[#allocation17_spill] sm:$0xff] %v12114_v47  ;;  %12490 = vst [vmem:[#allocation18_spill] sm:$0xff] %v12119_v16 }
0x2549   :  { %8989 = vmatmul.mubr.msk.bf16.vlgmr.msra.gmra.mrb[96].mxu1 %vm951_vm6, %v6472_v17  ;;  %v6473_v38 = vpack.c.bf16 %v6469_v34, %v6469_v34 }
0x254a   :  { %6677 = vmatpush1.bf16.msra.mxu1 %v12039_v11  ;;  %6708 = vmatprep.mubr.bf16.mxu1 %v12443_v2 }
0x254b   :  { %8995 = vmatmul.mubr.msk.bf16.vlgmr.msra.gmra.mrb[120].mxu0 %vm951_vm6, %v6473_v38  ;;  %6678 = vmatprep.subr.bf16.mxu1 %v12056_v8 }
0x254c   :  { %6718 = vmatpush1.bf16.msra.mxu0 %v12045_v48  ;;  %6749 = vmatprep.mubr.bf16.mxu0 %v12443_v2 }
0x254d   :  { %6719 = vmatprep.subr.bf16.mxu0 %v12061_v12 }
0x254e   :  { %6679 = vmatpush1.bf16.msra.mxu1 %v12066_v40 }
0x254f   :  { %6680 = vmatprep.subr.bf16.mxu1 %v12080_v9 }
0x2550   :  { %6720 = vmatpush1.bf16.msra.mxu0 %v12071_v46 }
0x2551   :  { %6721 = vmatprep.subr.bf16.mxu0 %v12085_v3 }
0x2552   :  { %6681 = vmatpush1.bf16.msra.mxu1 %v12090_v50 }
0x2553   :  { %6682 = vmatprep.subr.bf16.mxu1 %v12104_v60 }
0x2554   :  { %6722 = vmatpush1.bf16.msra.mxu0 %v12095_v5 }
0x2555   :  { %6723 = vmatprep.subr.bf16.mxu0 %v12109_v7 }
0x2556   :  { %6683 = vmatpush1.bf16.msra.mxu1 %v12114_v47 }
0x2557   :  { %8998 = vmatprep.subr.bf16.mxu1 %v9700_v23 }
0x2558   :  { %6724 = vmatpush1.bf16.msra.mxu0 %v12119_v16 }
0x2559   :  { %7113 = vmatprep.subr.bf16.mxu0 %v11705_v4  ;;  %v9480_v4 = vld [vmem:[%s12384_s9] sm:$0xff]  }
0x261c   :  { %v6516_v17 = vpop.f32.mrb[96].mxu1 }
0x261d   :  { %v8990_v34 = vpop.f32.mrb[97].mxu1  ;;  %v6568_v50 = vpack.c.bf16 %v6516_v17, %v6516_v17 }
0x261e   :  { %v6519_v38 = vpop.f32.mrb[98].mxu1  ;;  %v6562_v5 = vpop.f32.mrb[120].mxu0 }
0x261f   :  { %v6569_v3 = vpack.c.bf16 %v6562_v5, %v6562_v5  ;;  %v8991_v46 = vpop.f32.mrb[99].mxu1  ;;  %v8996_v9 = vpop.f32.mrb[121].mxu0  ;;  %v6588_v7 = vunpack.c.l.b16 %v6568_v50  ;;  %v12190_v38 = vld [vmem:[%s12387_s12] ss:$0 sm:$0xff] }
0x2620   :  { %v6565_v40 = vpop.f32.mrb[122].mxu0  ;;  %v6759_v9 = vld [vmem:[#allocation2 + $0x24] sm:$0x3f] }
0x2621   :  { %v6589_v60 = vunpack.c.l.b16 %v6569_v3  ;;  %v8997_v12 = vpop.f32.mrb[123].mxu0 }
0x2623   :  { %v6590_v48 = vrot.slane %v6589_v60, 7 }
0x2625   :  { %v6591_v47 = vsel %vm906_vm2, %v6590_v48, %v6588_v7 }
0x2626   :  { %v6592_v16 = vpack.c.b16 %v6591_v47, %v6591_v47 }
0x2628   :  { %8370 = vmatmul.mubr.msk.bf16.vlgmr.msra.gmra.mrb[100].mxu1 %vm1150_vm7, %v6592_v16  ;;  %8371 = vmatmul.mubr.msk.bf16.vlgmr.msra.gmra.mrb[124].mxu0 %vm1150_vm7, %v6592_v16 }
0x2629   :  { %7114 = vmatpush1.bf16.msra.mxu0 %v11710_v0  ;;  %9014 = vmatprep.mubr.msk.bf16.mxu1 %vm9701_vm1, %v9700_v23  ;;  %v9481_v0 = vld [vmem:[%s12384_s9 + $0x8] sm:$0xff]  }
0x262a   :  { %7115 = vmatprep.subr.bf16.mxu0 %v11721_v6  ;;  %7145 = vmatprep.mubr.bf16.mxu0 %v12443_v2  ;;  %v9482_v6 = vld [vmem:[%s12384_s9 + $0x10] sm:$0xff]  }
0x262b   :  { %8999 = vmatpush3.bf16.msra.mxu1 %v9480_v4 }
0x262c   :  { %9000 = vmatprep.subr.bf16.mxu1 %v9700_v23 }
0x262d   :  { %7116 = vmatpush1.bf16.msra.mxu0 %v11726_v57  ;;  %v9483_v57 = vld [vmem:[%s12384_s9 + $0x18] sm:$0xff]  }
0x262e   :  { %7117 = vmatprep.subr.bf16.mxu0 %v11737_v20  ;;  %v9484_v20 = vld [vmem:[%s12384_s9 + $0x20] sm:$0xff]  }
0x262f   :  { %9001 = vmatpush3.bf16.msra.mxu1 %v9481_v0 }
0x2630   :  { %9002 = vmatprep.subr.bf16.mxu1 %v9700_v23 }
0x2631   :  { %7118 = vmatpush1.bf16.msra.mxu0 %v11742_v49  ;;  %v9485_v49 = vld [vmem:[%s12384_s9 + $0x28] sm:$0xff]  }
0x2632   :  { %7119 = vmatprep.subr.bf16.mxu0 %v11753_v51  ;;  %v9486_v51 = vld [vmem:[%s12384_s9 + $0x30] sm:$0xff]  }
0x2633   :  { %9003 = vmatpush3.bf16.msra.mxu1 %v9482_v6 }
0x2634   :  { %9004 = vmatprep.subr.bf16.mxu1 %v9700_v23 }
0x2635   :  { %7120 = vmatpush1.bf16.msra.mxu0 %v11758_v14  ;;  %v9487_v14 = vld [vmem:[%s12384_s9 + $0x38] sm:$0xff]  }
0x2636   :  { %7121 = vmatprep.subr.bf16.mxu0 %v11769_v21 }
0x2637   :  { %9005 = vmatpush3.bf16.msra.mxu1 %v9483_v57 }
0x2638   :  { %9006 = vmatprep.subr.bf16.mxu1 %v9700_v23 }
0x2639   :  { %7122 = vmatpush1.bf16.msra.mxu0 %v11774_v58 }
0x263a   :  { %7123 = vmatprep.subr.bf16.mxu0 %v11783_v13 }
0x263b   :  { %9007 = vmatpush3.bf16.msra.mxu1 %v9484_v20 }
0x263c   :  { %9008 = vmatprep.subr.bf16.mxu1 %v9700_v23 }
0x263d   :  { %7124 = vmatpush1.bf16.msra.mxu0 %v11790_v35 }
0x263e   :  { %7125 = vmatprep.subr.bf16.mxu0 %v11796_v42 }
0x263f   :  { %9009 = vmatpush3.bf16.msra.mxu1 %v9485_v49 }
0x2640   :  { %9010 = vmatprep.subr.bf16.mxu1 %v9700_v23 }
0x2641   :  { %7126 = vmatpush1.bf16.msra.mxu0 %v11806_v24 }
0x2642   :  { %7127 = vmatprep.subr.bf16.mxu0 %v11812_v44 }
0x2643   :  { %9011 = vmatpush3.bf16.msra.mxu1 %v9486_v51 }
0x2644   :  { %9012 = vmatprep.subr.bf16.mxu1 %v9700_v23 }
0x2645   :  { %7128 = vmatpush1.bf16.msra.mxu0 %v11822_v29 }
0x2646   :  { %9018 = vmatprep.subr.bf16.mxu0 %v9700_v23 }
0x2647   :  { %9013 = vmatpush3.bf16.msra.mxu1 %v9487_v14 }
0x2648   :  { %7154 = vmatprep.subr.bf16.mxu1 %v11827_v30 }
0x26fb   :  { %v6710_v21 = vpop.f32.mrb[100].mxu1  ;;  %v6751_v58 = vpop.f32.mrb[124].mxu0 }
0x26fc   :  { %v6712_v13 = vpop.f32.mrb[101].mxu1  ;;  %v12181_v35 = vpop.f32.mrb[125].mxu0  ;;  %v6777_v12 = vrot.slane %v6751_v58, %v9833_v22 }
0x26fd   :  { %v6763_v42 = vcombine.low %v6710_v21, %v6712_v13  ;;  %v6714_v24 = vpop.f32.mrb[102].mxu1  ;;  %v6755_v44 = vpop.f32.mrb[126].mxu0 }
0x26fe   :  { %v6715_v29 = vpop.f32.mrb[103].mxu1  ;;  %v6756_v48 = vpop.f32.mrb[127].mxu0 }
0x26ff   :  { %v6770_v40 = vrot.slane %v6763_v42, %v9833_v22 }
0x2701   :  { %v6778_v46 = vcombine.low %v6770_v40, %v6777_v12 }
0x2703   :  { %v6780_v3 = vadd.f32 %v6778_v46, %v6759_v9 }
0x2705   :  { %v6781_v50 = vadd.f32 %v6780_v3, %v11979_v55  ;;  %v6789_v30 = vrot.slane %v6780_v3, 2  ;;  %v6798_v55 = vadd.f32 %v12190_v38, %v11986_v10 }
0x2707   :  { %v8372_v5 = vmul.f32 -1.442695, %v6781_v50  ;;  %v6791_v60 = vadd.f32 %v6789_v30, %v11981_v61  ;;  %v6800_v61 = vrot.slane %v6780_v3, 4 }
0x2709   :  { %9620 = vpow2.f32 %v8372_v5  ;;  %v8373_v7 = vmul.f32 -1.442695, %v6791_v60 }
0x270b   :  { %9622 = vpow2.f32 %v8373_v7 }
0x2713   :  { %v9621_v47 = vpop.eup %9620 }
0x2714   :  { %v6785_v16 = vadd.f32 1.0, %v9621_v47 }
0x2715   :  { %v9623_v17 = vpop.eup %9622 }
0x2716   :  { %9624 = vrcp.f32 %v6785_v16  ;;  %v6795_v34 = vadd.f32 1.0, %v9623_v17 }
0x2718   :  { %9626 = vrcp.f32 %v6795_v34 }
0x2720   :  { %v9625_v4 = vpop.eup %9624 }
0x2721   :  { %v6799_v0 = vmul.f32 %v9625_v4, %v6798_v55 }
0x2722   :  { %v9627_v57 = vpop.eup %9626 }
0x2723   :  { %v6802_v6 = vadd.f32 %v6800_v61, %v6799_v0  ;;  %v6804_v20 = vsub.f32 1.0, %v9627_v57  ;;  %v6806_v14 = vmul.f32 %v9627_v57, %v11842_v18  ;;  %v9488_v18 = vld [vmem:[%s12385_s10] sm:$0xff]  }
0x2725   :  { %9628 = vtanh.f32 %v6802_v6 }
0x272f   :  { %v9629_v49 = vpop.eup %9628 }
0x2730   :  { %v6805_v51 = vmul.f32 %v9629_v49, %v6804_v20 }
0x2732   :  { %v12195_v21 = vadd.f32 %v6806_v14, %v6805_v51 }
0x2734   :  { %v6811_v58 = vpack.c.bf16 %v12195_v21, %v12195_v21  ;;  %8382 = vst [vmem:[%s12389_s14 + $0xc] sm:$0x3] %v12195_v21 }
0x2736   :  { %9015 = vmatmul.mubr.bf16.vlgmr.msra.gmra.mrb[104].mxu1 %v6811_v58  ;;  %7146 = vmatmul.mubr.bf16.vlgmr.msra.gmra.mrb[128].mxu0 %v6811_v58 }
0x2737   :  { %7155 = vmatpush1.bf16.msra.mxu1 %v11847_v31  ;;  %7186 = vmatprep.mubr.bf16.mxu1 %v12443_v2  ;;  %v9489_v31 = vld [vmem:[%s12385_s10 + $0x8] sm:$0xff]  }
0x2738   :  { %7156 = vmatprep.subr.bf16.mxu1 %v11858_v36  ;;  %9034 = vmatprep.mubr.msk.bf16.mxu0 %vm9701_vm1, %v9700_v23  ;;  %v9490_v36 = vld [vmem:[%s12385_s10 + $0x10] sm:$0xff]  }
0x2739   :  { %9019 = vmatpush3.bf16.msra.mxu0 %v9488_v18 }
0x273a   :  { %9020 = vmatprep.subr.bf16.mxu0 %v9700_v23 }
0x273b   :  { %7157 = vmatpush1.bf16.msra.mxu1 %v11864_v52  ;;  %v9491_v52 = vld [vmem:[%s12385_s10 + $0x18] sm:$0xff]  }
0x273c   :  { %7158 = vmatprep.subr.bf16.mxu1 %v11871_v45  ;;  %v9492_v45 = vld [vmem:[%s12385_s10 + $0x20] sm:$0xff]  }
0x273d   :  { %9021 = vmatpush3.bf16.msra.mxu0 %v9489_v31 }
0x273e   :  { %9022 = vmatprep.subr.bf16.mxu0 %v9700_v23 }
0x273f   :  { %7159 = vmatpush1.bf16.msra.mxu1 %v11879_v53  ;;  %v9493_v53 = vld [vmem:[%s12385_s10 + $0x28] sm:$0xff]  }
0x2740   :  { %7160 = vmatprep.subr.bf16.mxu1 %v11885_v1  ;;  %v9494_v1 = vld [vmem:[%s12385_s10 + $0x30] sm:$0xff]  }
0x2741   :  { %9023 = vmatpush3.bf16.msra.mxu0 %v9490_v36 }
0x2742   :  { %9024 = vmatprep.subr.bf16.mxu0 %v9700_v23 }
0x2743   :  { %7161 = vmatpush1.bf16.msra.mxu1 %v11891_v43  ;;  %v9495_v43 = vld [vmem:[%s12385_s10 + $0x38] sm:$0xff]  }
0x2744   :  { %7162 = vmatprep.subr.bf16.mxu1 %v11897_v33  ;;  %v6809_v33 = vld [vmem:[#allocation3 + $0xc] sm:$0x3] }
0x2745   :  { %9025 = vmatpush3.bf16.msra.mxu0 %v9491_v52 }
0x2746   :  { %9026 = vmatprep.subr.bf16.mxu0 %v9700_v23 }
0x2747   :  { %7163 = vmatpush1.bf16.msra.mxu1 %v11903_v54  ;;  %v6810_v54 = vadd.f32 %v6809_v33, %v12181_v35 }
0x2748   :  { %7164 = vmatprep.subr.bf16.mxu1 %v11909_v59 }
0x2749   :  { %9027 = vmatpush3.bf16.msra.mxu0 %v9492_v45 }
0x274a   :  { %9028 = vmatprep.subr.bf16.mxu0 %v9700_v23 }
0x274b   :  { %7165 = vmatpush1.bf16.msra.mxu1 %v11915_v27 }
0x274c   :  { %7166 = vmatprep.subr.bf16.mxu1 %v11921_v32 }
0x274d   :  { %9029 = vmatpush3.bf16.msra.mxu0 %v9493_v53 }
0x274e   :  { %9030 = vmatprep.subr.bf16.mxu0 %v9700_v23 }
0x274f   :  { %7167 = vmatpush1.bf16.msra.mxu1 %v11927_v37 }
0x2750   :  { %7168 = vmatprep.subr.bf16.mxu1 %v11933_v28 }
0x2751   :  { %9031 = vmatpush3.bf16.msra.mxu0 %v9494_v1 }
0x2752   :  { %9032 = vmatprep.subr.bf16.mxu0 %v9700_v23 }
0x2753   :  { %7169 = vmatpush1.bf16.msra.mxu1 %v11939_v19 }
0x2754   :  { %9038 = vmatprep.subr.bf16.mxu1 %v9700_v23 }
0x2755   :  { %9033 = vmatpush3.bf16.msra.mxu0 %v9495_v43 }
0x2756   :  { %7187 = vmatmul.mubr.bf16.vlgmr.msra.gmra.mrb[108].mxu1 %v6811_v58  ;;  %9044 = vmatprep.subr.bf16.mxu0 %v9700_v23  ;;  %v7401_v58 = vsel %vm955_vm5, %v7395_v26, 0 }
0x2757   :  { %9040 = vmatprep.mubr.msk.bf16.mxu1 %vm9701_vm1, %v9700_v23  ;;  %9039 = vmatpush3.bf16.msra.mxu1 %v7401_v58  ;;  %v7680_v58 = vld [vmem:[#allocation2 + $0x2a] sm:$0x3f] }
0x2758   :  { %7597 = vmatprep.subr.bf16.mxu1 %v12025_v62  ;;  %v12491_v62 = vld [vmem:[#allocation7_spill] sm:$0xff] }
0x2809   :  { %v6910_v59 = vpop.f32.mrb[104].mxu1  ;;  %v12257_v27 = vpop.f32.mrb[128].mxu0 }
0x280a   :  { %v6916_v32 = vadd.f32 %v6910_v59, %v6810_v54  ;;  %v9016_v37 = vpop.f32.mrb[105].mxu1  ;;  %v12259_v28 = vpop.f32.mrb[129].mxu0  ;;  %v12493_v54 = vld [vmem:[#allocation10_spill] sm:$0xff]  ;;  %v12495_v59 = vld [vmem:[#allocation11_spill] sm:$0xff] }
0x280b   :  { %v6913_v19 = vpop.f32.mrb[106].mxu1  ;;  %v7151_v10 = vpop.f32.mrb[130].mxu0  ;;  %v12498_v37 = vld [vmem:[#allocation13_spill] sm:$0xff] }
0x280c   :  { %8383 = vst [vmem:[%s12390_s15 + $0xc] sm:$0x3] %v6916_v32  ;;  %v9017_v13 = vpop.f32.mrb[107].mxu1  ;;  %v7152_v42 = vpop.f32.mrb[131].mxu0  ;;  %v12496_v32 = vld [vmem:[#allocation12_spill] sm:$0xff]  ;;  %v12499_v19 = vld [vmem:[#allocation15_spill] sm:$0xff] }
0x280d   :  { %v12501_v10 = vld [vmem:[#allocation17_spill] sm:$0xff] }
0x2829   :  { %v12264_v24 = vpop.f32.mrb[108].mxu1 }
0x282a   :  { %v7190_v44 = vpop.f32.mrb[109].mxu1 }
0x282b   :  { %v7202_v35 = vrot.slane %v7190_v44, %v10072_v39  ;;  %v7192_v29 = vpop.f32.mrb[110].mxu1 }
0x282c   :  { %v7193_v48 = vpop.f32.mrb[111].mxu1 }
0x282d   :  { %v7203_v12 = vcombine.high %v7202_v35, %v7202_v35  ;;  %v7210_v40 = vrot.slane %v7202_v35, %v10072_v39 }
0x282f   :  { %v7217_v46 = vrot.slane %v7203_v12, %v10072_v39  ;;  %v7221_v9 = vrot.slane %v7210_v40, %v10048_v15 }
0x2831   :  { %v7225_v3 = vrot.slane %v7217_v46, %v10048_v15  ;;  %v7228_v50 = vadd.f32 %v11996_v41, %v7221_v9 }
0x2833   :  { %v7229_v30 = vadd.f32 %v12002_v63, %v7225_v3  ;;  %9630 = vtanh.f32 %v7228_v50 }
0x2835   :  { %9632 = vtanh.f32 %v7229_v30 }
0x283d   :  { %v9631_v5 = vpop.eup %9630 }
0x283f   :  { %v9633_v60 = vpop.eup %9632 }
0x2840   :  { %v7232_v7 = vpack.c.bf16 %v9633_v60, %v9631_v5 }
0x2842   :  { %9035 = vmatmul.mubr.bf16.vlgmr.msra.gmra.mrb[132].mxu0 %v7232_v7  ;;  %v9496_v7 = vld [vmem:[%s12384_s9] sm:$0xff]  }
0x2843   :  { %9046 = vmatprep.mubr.msk.bf16.mxu0 %vm9701_vm1, %v9700_v23 }
0x2915   :  { %v7331_v47 = vpop.f32.mrb[132].mxu0 }
0x2916   :  { %7341 = vperm.xlu0 %9076, %v7331_v47   ;;  %v9036_v16 = vpop.f32.mrb[133].mxu0  ;;  %v9497_v47 = vld [vmem:[%s12384_s9 + $0x8] sm:$0xff]  }
0x2917   :  { %v7334_v17 = vpop.f32.mrb[134].mxu0  ;;  %v9498_v16 = vld [vmem:[%s12384_s9 + $0x10] sm:$0xff]  }
0x2918   :  { %7344 = vperm.xlu1 %9077, %v7334_v17   ;;  %v9037_v34 = vpop.f32.mrb[135].mxu0  ;;  %v9499_v17 = vld [vmem:[%s12384_s9 + $0x18] sm:$0xff]  }
0x2919   :  { %v9500_v34 = vld [vmem:[%s12384_s9 + $0x20] sm:$0xff]  }
0x2995   :  { %v7342_v15 = vpop.permute.xlu0 %7341 }
0x2996   :  { %v7349_v41 = vrot.slane %v7342_v15, %v10100_v25  ;;  %v9501_v15 = vld [vmem:[%s12384_s9 + $0x28] sm:$0xff]  }
0x2997   :  { %v7345_v55 = vpop.permute.xlu1 %7344 }
0x2998   :  { %v7353_v63 = vrot.slane %v7345_v55, %v10100_v25  ;;  %v7396_v25 = vld [vmem:[%s12376_s1 + $0x4] sm:$0xf]  ;;  %v9502_v55 = vld [vmem:[%s12384_s9 + $0x30] sm:$0xff]  }
0x2999   :  { %v7447_v14 = vsel %vm955_vm5, %v7396_v25, 0 }
0x299a   :  { %v7354_v4 = vsel %vm906_vm2, %v7353_v63, %v7349_v41  ;;  %9045 = vmatpush3.bf16.msra.mxu0 %v7447_v14  ;;  %v9503_v41 = vld [vmem:[%s12384_s9 + $0x38] sm:$0xff]  }
0x299b   :  { %v7356_v0 = vsel %vm887_vm3, %v7354_v4, -1e+09  ;;  %7638 = vmatprep.subr.bf16.mxu0 %v12030_v56  ;;  %v12492_v56 = vld [vmem:[#allocation8_spill] sm:$0xff] }
0x299c   :  { %v7357_v61 = vsel %vm910_vm4, %v7356_v0, -inf }
0x299d   :  { %7358 = vmax.xlane.f32.xlu0 %v7357_v61 }
0x2a2a   :  { %v7359_v6 = vpop.xlane.xlu0 %7358 }
0x2a2b   :  { %v7360_v57 = vsub.f32 %v7356_v0, %v7359_v6 }
0x2a2d   :  { %v7361_v20 = vmul.f32 1.442695, %v7360_v57 }
0x2a2f   :  { %9634 = vpow2.f32 %v7361_v20 }
0x2a39   :  { %v9635_v49 = vpop.eup %9634 }
0x2a3a   :  { %v7363_v51 = vsel %vm910_vm4, %v9635_v49, 0.0 }
0x2a3b   :  { %7364 = vadd.xlane.f32.xlu1 %v7363_v51 }
0x2ac8   :  { %v7365_v18 = vpop.xlane.xlu1 %7364 }
0x2ac9   :  { %9636 = vrcp.f32 %v7365_v18 }
0x2ad3   :  { %v9637_v31 = vpop.eup %9636 }
0x2ad4   :  { %v7367_v36 = vmul.f32 %v9637_v31, %v9635_v49 }
0x2ad6   :  { %v7375_v52 = vrot.slane %v7367_v36, %v10072_v39 }
0x2ad8   :  { %v7383_v45 = vrot.slane %v7375_v52, %v10072_v39  ;;  %v7376_v53 = vcombine.high %v7375_v52, %v7375_v52 }
0x2ada   :  { %v7393_v1 = vpack.c.bf16 %v7383_v45, %v7383_v45  ;;  %v7390_v43 = vrot.slane %v7376_v53, %v10072_v39  ;;  %v12494_v39 = vld [vmem:[#allocation9_spill] sm:$0xff] }
0x2adc   :  { %9041 = vmatmul.mubr.msk.bf16.vlgmr.msra.gmra.mrb[112].mxu1 %vm951_vm6, %v7393_v1  ;;  %v7394_v33 = vpack.c.bf16 %v7390_v43, %v7390_v43 }
0x2add   :  { %7598 = vmatpush1.bf16.msra.mxu1 %v12039_v11  ;;  %7629 = vmatprep.mubr.bf16.mxu1 %v12443_v2  ;;  %v12497_v11 = vld [vmem:[#allocation14_spill] sm:$0xff] }
0x2ade   :  { %9047 = vmatmul.mubr.msk.bf16.vlgmr.msra.gmra.mrb[136].mxu0 %vm951_vm6, %v7394_v33  ;;  %7599 = vmatprep.subr.bf16.mxu1 %v12056_v8  ;;  %v12500_v8 = vld [vmem:[#allocation16_spill] sm:$0xff] }
0x2adf   :  { %7639 = vmatpush1.bf16.msra.mxu0 %v12491_v62  ;;  %7670 = vmatprep.mubr.bf16.mxu0 %v12443_v2  ;;  %v12502_v2 = vld [vmem:[#allocation18_spill] sm:$0xff] }
0x2ae0   :  { %7640 = vmatprep.subr.bf16.mxu0 %v12492_v56 }
0x2ae1   :  { %7600 = vmatpush1.bf16.msra.mxu1 %v12493_v54 }
0x2ae2   :  { %7601 = vmatprep.subr.bf16.mxu1 %v12494_v39 }
0x2ae3   :  { %7641 = vmatpush1.bf16.msra.mxu0 %v12495_v59 }
0x2ae4   :  { %7642 = vmatprep.subr.bf16.mxu0 %v12496_v32 }
0x2ae5   :  { %7602 = vmatpush1.bf16.msra.mxu1 %v12497_v11 }
0x2ae6   :  { %7603 = vmatprep.subr.bf16.mxu1 %v12498_v37 }
0x2ae7   :  { %7643 = vmatpush1.bf16.msra.mxu0 %v12499_v19 }
0x2ae8   :  { %7644 = vmatprep.subr.bf16.mxu0 %v12500_v8 }
0x2ae9   :  { %7604 = vmatpush1.bf16.msra.mxu1 %v12501_v10 }
0x2aea   :  { %9050 = vmatprep.subr.bf16.mxu1 %v9700_v23 }
0x2aeb   :  { %7645 = vmatpush1.bf16.msra.mxu0 %v12502_v2 }
0x2baf   :  { %v7437_v13 = vpop.f32.mrb[112].mxu1 }
0x2bb0   :  { %v9042_v42 = vpop.f32.mrb[113].mxu1  ;;  %v7489_v29 = vpack.c.bf16 %v7437_v13, %v7437_v13 }
0x2bb1   :  { %v7440_v44 = vpop.f32.mrb[114].mxu1  ;;  %v7483_v35 = vpop.f32.mrb[136].mxu0 }
0x2bb2   :  { %v7490_v48 = vpack.c.bf16 %v7483_v35, %v7483_v35  ;;  %v9043_v12 = vpop.f32.mrb[115].mxu1  ;;  %v9048_v40 = vpop.f32.mrb[137].mxu0  ;;  %v7509_v50 = vunpack.c.l.b16 %v7489_v29 }
0x2bb3   :  { %v7486_v46 = vpop.f32.mrb[138].mxu0 }
0x2bb4   :  { %v7510_v9 = vunpack.c.l.b16 %v7490_v48  ;;  %v9049_v3 = vpop.f32.mrb[139].mxu0 }
0x2bb6   :  { %v7511_v30 = vrot.slane %v7510_v9, 7 }
0x2bb8   :  { %v7512_v5 = vsel %vm906_vm2, %v7511_v30, %v7509_v50 }
0x2bb9   :  { %v7513_v60 = vpack.c.b16 %v7512_v5, %v7512_v5 }
0x2bbb   :  { %8442 = vmatmul.mubr.msk.bf16.vlgmr.msra.gmra.mrb[116].mxu1 %vm1150_vm7, %v7513_v60  ;;  %8443 = vmatmul.mubr.msk.bf16.vlgmr.msra.gmra.mrb[140].mxu0 %vm1150_vm7, %v7513_v60 }
0x2bbc   :  { %9066 = vmatprep.mubr.msk.bf16.mxu1 %vm9701_vm1, %v9700_v23  ;;  %9051 = vmatpush3.bf16.msra.mxu1 %v9496_v7 }
0x2bbd   :  { %9052 = vmatprep.subr.bf16.mxu1 %v9700_v23 }
0x2bc0   :  { %9053 = vmatpush3.bf16.msra.mxu1 %v9497_v47 }
0x2bc1   :  { %9054 = vmatprep.subr.bf16.mxu1 %v9700_v23 }
0x2bc4   :  { %9055 = vmatpush3.bf16.msra.mxu1 %v9498_v16 }
0x2bc5   :  { %9056 = vmatprep.subr.bf16.mxu1 %v9700_v23 }
0x2bc8   :  { %9057 = vmatpush3.bf16.msra.mxu1 %v9499_v17 }
0x2bc9   :  { %9058 = vmatprep.subr.bf16.mxu1 %v9700_v23 }
0x2bcc   :  { %9059 = vmatpush3.bf16.msra.mxu1 %v9500_v34 }
0x2bcd   :  { %9060 = vmatprep.subr.bf16.mxu1 %v9700_v23 }
0x2bd0   :  { %9061 = vmatpush3.bf16.msra.mxu1 %v9501_v15 }
0x2bd1   :  { %9062 = vmatprep.subr.bf16.mxu1 %v9700_v23 }
0x2bd4   :  { %9063 = vmatpush3.bf16.msra.mxu1 %v9502_v55 }
0x2bd5   :  { %9064 = vmatprep.subr.bf16.mxu1 %v9700_v23 }
0x2bd8   :  { %9065 = vmatpush3.bf16.msra.mxu1 %v9503_v41 }
0x2c8e   :  { %v7631_v63 = vpop.f32.mrb[116].mxu1  ;;  %v7672_v4 = vpop.f32.mrb[140].mxu0 }
0x2c8f   :  { %v7633_v0 = vpop.f32.mrb[117].mxu1  ;;  %v7674_v61 = vpop.f32.mrb[141].mxu0  ;;  %v7698_v25 = vrot.slane %v7672_v4, %v9833_v22 }
0x2c90   :  { %v7684_v6 = vcombine.low %v7631_v63, %v7633_v0  ;;  %v7635_v57 = vpop.f32.mrb[118].mxu1  ;;  %v7676_v20 = vpop.f32.mrb[142].mxu0 }
0x2c91   :  { %v7636_v49 = vpop.f32.mrb[119].mxu1  ;;  %v7677_v51 = vpop.f32.mrb[143].mxu0 }
0x2c92   :  { %v7691_v26 = vrot.slane %v7684_v6, %v9833_v22  ;;  %v7719_v22 = vadd.f32 %v12190_v38, %v12264_v24 }
0x2c94   :  { %v7699_v14 = vcombine.low %v7691_v26, %v7698_v25 }
0x2c96   :  { %v7701_v18 = vadd.f32 %v7699_v14, %v7680_v58 }
0x2c98   :  { %v7702_v31 = vadd.f32 %v7701_v18, %v12257_v27  ;;  %v7710_v23 = vrot.slane %v7701_v18, 2  ;;  %v7721_v54 = vrot.slane %v7701_v18, 4 }
0x2c9a   :  { %v8444_v36 = vmul.f32 -1.442695, %v7702_v31  ;;  %v7712_v52 = vadd.f32 %v7710_v23, %v12259_v28 }
0x2c9c   :  { %9638 = vpow2.f32 %v8444_v36  ;;  %v8445_v45 = vmul.f32 -1.442695, %v7712_v52 }
0x2c9e   :  { %9640 = vpow2.f32 %v8445_v45 }
0x2ca6   :  { %v9639_v53 = vpop.eup %9638 }
0x2ca7   :  { %v7706_v1 = vadd.f32 1.0, %v9639_v53 }
0x2ca8   :  { %v9641_v43 = vpop.eup %9640 }
0x2ca9   :  { %9642 = vrcp.f32 %v7706_v1  ;;  %v7716_v33 = vadd.f32 1.0, %v9641_v43 }
0x2cab   :  { %9644 = vrcp.f32 %v7716_v33 }
0x2cb3   :  { %v9643_v62 = vpop.eup %9642 }
0x2cb4   :  { %v7720_v56 = vmul.f32 %v9643_v62, %v7719_v22 }
0x2cb5   :  { %v9645_v39 = vpop.eup %9644 }
0x2cb6   :  { %v7723_v27 = vadd.f32 %v7721_v54, %v7720_v56  ;;  %v7725_v59 = vsub.f32 1.0, %v9645_v39  ;;  %v7727_v11 = vmul.f32 %v9645_v39, %v12195_v21 }
0x2cb8   :  { %9646 = vtanh.f32 %v7723_v27 }
0x2cc2   :  { %v9647_v28 = vpop.eup %9646 }
0x2cc3   :  { %v7726_v32 = vmul.f32 %v9647_v28, %v7725_v59 }
0x2cc5   :  { %v7728_v37 = vadd.f32 %v7727_v11, %v7726_v32 }
0x2cc7   :  { %v7732_v19 = vpack.c.bf16 %v7728_v37, %v7728_v37  ;;  %8454 = vst [vmem:[%s12389_s14 + $0xe] sm:$0x3] %v7728_v37  ;;  %7842 = vst [vmem:[#allocation4] sm:$0x3] %v7728_v37 }
0x2cc9   :  { %9067 = vmatmul.mubr.bf16.vlgmr.msra.gmra.mrb[120].mxu1 %v7732_v19 }
0x2cca   :  { %9685 = shalt.err (!%p9682_p4)
}
0x2ccb   :  { %s9686_s13 = scalar_lea.hbm %s12391_s16, 32 }
0x2ccc   :  { %p9687_p5 = scmp.ne.s32.totalorder %s12391_s16, %s9686_s13  ;;  %p9690_p6 = scmp.lt.u32.totalorder %s9686_s13, %s12391_s16 }
0x2cce   :  { %p9692_p7 = pnand %p9690_p6, %p9687_p5 }
0x2cd0   :  { %9695 = shalt.err (!%p9692_p7)
}
0x2cd1   :  { %7856 = dma.vmem_to_hbm [thread:$0]  %s7854_s22, 32, %s12391_s16, [#allocation5]   ;;  %v7730_v38 = vld [vmem:[#allocation3 + $0xe] sm:$0x3] }
0x2cd2   :  { %v7731_v21 = vadd.f32 %v7730_v38, %v7674_v61 }
0x2d9c   :  { %v7831_v24 = vpop.f32.mrb[120].mxu1 }
0x2d9d   :  { %v7837_v8 = vadd.f32 %v7831_v24, %v7731_v21  ;;  %v9068_v10 = vpop.f32.mrb[121].mxu1 }
0x2d9e   :  { %v7834_v2 = vpop.f32.mrb[122].mxu1 }
0x2d9f   :  { %8455 = vst [vmem:[%s12390_s15 + $0xe] sm:$0x3] %v7837_v8  ;;  %v9069_v13 = vpop.f32.mrb[123].mxu1 }
0x2da0   :  { %9696 = dma.done.wait [#allocation5], 32  }
0x2da1   :  { %9697 = vsyncadd [#allocation5], 4294967264 }
0x2da2   :  { %7864 = vsyncpa [#allocation5], 1 }

</bundles_post_ra>
